<compile_context>
chip_gen: v6e
topology: v6e:2x2x1
jax: 0.10.0
libtpu: 0.0.40
codegen_flags: <defaults>
</compile_context>

<pallas_src>
import jax
import jax.numpy as jnp
from jax.experimental import pallas as pl
from jax.experimental.pallas import tpu as pltpu


def _round_up(x, m):
    return (x + m - 1) // m * m


def _double_conv_kernel(x_ref, w1_ref, s1_ref, b1_ref, w2_ref, s2_ref, b2_ref,
                        o_ref, xpad_ref, mpad_ref, acc_ref):
    """Fused (conv3x3 -> BN -> ReLU) x 2 for one batch element.

    x_ref:    (1, H, W, C1)  input tile (compute dtype, lane-padded channels)
    w*_ref:   (9, Cin, C2)   filter taps, tap index = ky*3 + kx (lane-padded)
    s*_ref:   (1, C2) f32    folded BN scale  gamma / sqrt(var + eps)
    b*_ref:   (1, C2) f32    folded BN shift  scale*(bias - mean) + beta
    o_ref:    (1, H, W, C2)  output tile (f32)
    xpad_ref: VMEM (H+2, WP, C1)  zero-halo staging for the stage-1 input
    mpad_ref: VMEM (H+2, WP, C2)  zero-halo staging for the intermediate
    acc_ref:  VMEM (H*WP, C2) f32 accumulator shared by both stages
    """
    H = o_ref.shape[1]
    W = o_ref.shape[2]
    WP = xpad_ref.shape[1]      # padded width, multiple of 16 sublanes
    C2 = o_ref.shape[3]
    M = H * WP                  # flattened spatial extent of the accumulator

    def conv3x3_bn_relu(src_ref, w_ref, s_ref, b_ref):
        # src_ref holds the image in rows [1, H], columns [0, W); rows 0 and
        # H+1 and columns [W, WP) are zero, so the 3x3 halo reads are "free".
        # Each ky slab is loaded once (no per-tap slice/reshape of the input);
        # each tap is a dense K>=128 matmul and the kx = -1/+1 column shift is
        # applied to the f32 result as a 1-sublane-offset accumulate (the
        # columns that would wrap are zero or cropped, so this is exact).
        cin = src_ref.shape[-1]
        acc_ref[...] = jnp.zeros_like(acc_ref)
        for ky in range(3):
            slab = src_ref[pl.ds(ky, H), :, :].reshape(M, cin)
            for kx in range(3):
                contrib = jnp.dot(slab, w_ref[ky * 3 + kx],
                                  preferred_element_type=jnp.float32)
                if kx == 1:
                    acc_ref[...] += contrib
                elif kx == 0:   # output col w uses input col w-1
                    acc_ref[pl.ds(1, M - 1), :] += contrib[:M - 1, :]
                else:           # kx == 2: output col w uses input col w+1
                    acc_ref[pl.ds(0, M - 1), :] += contrib[1:, :]
        y = acc_ref[...] * s_ref[...] + b_ref[...]   # folded BN epilogue (f32)
        y = jnp.maximum(y, 0.0)                      # ReLU
        return y.reshape(H, WP, C2)

    # ---- stage 1: stage the input into the zero-halo scratch (aligned) ----
    xpad_ref[...] = jnp.zeros_like(xpad_ref)
    xpad_ref[pl.ds(1, H), pl.ds(0, W), :] = x_ref[0]
    y1 = conv3x3_bn_relu(xpad_ref, w1_ref, s1_ref, b1_ref)

    # ---- stage 2: intermediate never leaves VMEM ----
    mpad_ref[...] = jnp.zeros_like(mpad_ref)
    mpad_ref[pl.ds(1, H), pl.ds(0, W), :] = y1[:, :W, :].astype(mpad_ref.dtype)
    y2 = conv3x3_bn_relu(mpad_ref, w2_ref, s2_ref, b2_ref)

    o_ref[0] = y2[:, :W, :].astype(o_ref.dtype)


def _fold_bn(w_oihw, conv_bias, gamma, beta, run_mean, run_var, eps,
             cin_pad, cout_pad, compute_dtype):
    """Fold eval-mode BatchNorm (+ conv bias) into per-channel scale/shift."""
    cout, cin = w_oihw.shape[0], w_oihw.shape[1]
    # (Cout, Cin, 3, 3) -> (ky, kx, Cin, Cout) -> (9, Cin_pad, Cout_pad)
    w = jnp.transpose(w_oihw, (2, 3, 1, 0)).reshape(9, cin, cout)
    w = jnp.pad(w, ((0, 0), (0, cin_pad - cin), (0, cout_pad - cout)))
    scale = gamma / jnp.sqrt(run_var + eps)                # (Cout,)
    shift = scale * (conv_bias - run_mean) + beta          # (Cout,)
    scale = jnp.pad(scale, (0, cout_pad - cout)).reshape(1, cout_pad)
    shift = jnp.pad(shift, (0, cout_pad - cout)).reshape(1, cout_pad)
    return (w.astype(compute_dtype),
            scale.astype(jnp.float32),
            shift.astype(jnp.float32))


def double_conv_forward(x_nchw, p, *, eps=1e-5, compute_dtype=jnp.bfloat16):
    """DoubleConv forward. Input/output are NCHW like the PyTorch module."""
    N, Cin, H, W = x_nchw.shape
    Cout = p["w1"].shape[0]
    C1 = _round_up(Cin, 128)          # lane-dense input channels
    C2 = _round_up(Cout, 128)         # lane-dense output channels
    WP = _round_up(W + 2, 16)         # sublane-aligned padded width (bf16 tile)

    # NCHW -> NHWC, cast to the compute dtype, lane-pad the channels.
    # TODO(synk): an end-to-end NHWC model would make these transposes vanish;
    #             they are kept only because the PyTorch interface is NCHW.
    x = jnp.transpose(x_nchw, (0, 2, 3, 1)).astype(compute_dtype)
    x = jnp.pad(x, ((0, 0), (0, 0), (0, 0), (0, C1 - Cin)))

    w1, s1, b1 = _fold_bn(p["w1"], p["b1"], p["g1"], p["be1"], p["m1"],
                          p["v1"], eps, C1, C2, compute_dtype)
    w2, s2, b2 = _fold_bn(p["w2"], p["b2"], p["g2"], p["be2"], p["m2"],
                          p["v2"], eps, C2, C2, compute_dtype)

    out = pl.pallas_call(
        _double_conv_kernel,
        out_shape=jax.ShapeDtypeStruct((N, H, W, C2), jnp.float32),
        grid=(N,),
        in_specs=[
            pl.BlockSpec((1, H, W, C1), lambda n: (n, 0, 0, 0)),
            pl.BlockSpec((9, C1, C2), lambda n: (0, 0, 0)),
            pl.BlockSpec((1, C2), lambda n: (0, 0)),
            pl.BlockSpec((1, C2), lambda n: (0, 0)),
            pl.BlockSpec((9, C2, C2), lambda n: (0, 0, 0)),
            pl.BlockSpec((1, C2), lambda n: (0, 0)),
            pl.BlockSpec((1, C2), lambda n: (0, 0)),
        ],
        out_specs=pl.BlockSpec((1, H, W, C2), lambda n: (n, 0, 0, 0)),
        scratch_shapes=[
            pltpu.VMEM((H + 2, WP, C1), compute_dtype),   # padded input
            pltpu.VMEM((H + 2, WP, C2), compute_dtype),   # padded intermediate
            pltpu.VMEM((H * WP, C2), jnp.float32),        # f32 accumulator
        ],
        compiler_params=pltpu.CompilerParams(
            dimension_semantics=("parallel",),
            vmem_limit_bytes=32 * 1024 * 1024),
    )(x, w1, s1, b1, w2, s2, b2)

    out = out[..., :Cout]                       # drop channel padding
    return jnp.transpose(out, (0, 3, 1, 2))     # NHWC -> NCHW


def init_double_conv_params(key, in_ch, out_ch):
    """Deterministic parameter init mirroring the module's shapes."""
    ks = jax.random.split(key, 4)
    return {
        # Conv2d(in_ch, out_ch, 3, padding=1)
        "w1": jax.random.normal(ks[0], (out_ch, in_ch, 3, 3), jnp.float32) * 0.1,
        "b1": jax.random.normal(ks[1], (out_ch,), jnp.float32) * 0.1,
        # BatchNorm2d(out_ch)  (PyTorch default init, inference stats)
        "g1": jnp.ones((out_ch,), jnp.float32),
        "be1": jnp.zeros((out_ch,), jnp.float32),
        "m1": jnp.zeros((out_ch,), jnp.float32),
        "v1": jnp.ones((out_ch,), jnp.float32),
        # Conv2d(out_ch, out_ch, 3, padding=1)
        "w2": jax.random.normal(ks[2], (out_ch, out_ch, 3, 3), jnp.float32) * 0.1,
        "b2": jax.random.normal(ks[3], (out_ch,), jnp.float32) * 0.1,
        # BatchNorm2d(out_ch)
        "g2": jnp.ones((out_ch,), jnp.float32),
        "be2": jnp.zeros((out_ch,), jnp.float32),
        "m2": jnp.zeros((out_ch,), jnp.float32),
        "v2": jnp.ones((out_ch,), jnp.float32),
    }


def _reference_double_conv(x_nchw, p, eps=1e-5):
    """Pure-JAX eval-mode DoubleConv used as a numerical cross-check."""
    def stage(x, w, b, g, be, m, v):
        y = jax.lax.conv_general_dilated(
            x, w, window_strides=(1, 1), padding=((1, 1), (1, 1)),
            dimension_numbers=("NCHW", "OIHW", "NCHW"),
            precision=jax.lax.Precision.HIGHEST)
        y = y + b[None, :, None, None]
        y = (y - m[None, :, None, None]) * (
            g[None, :, None, None] / jnp.sqrt(v[None, :, None, None] + eps))
        y = y + be[None, :, None, None]
        return jnp.maximum(y, 0.0)

    x = stage(x_nchw, p["w1"], p["b1"], p["g1"], p["be1"], p["m1"], p["v1"])
    return stage(x, p["w2"], p["b2"], p["g2"], p["be2"], p["m2"], p["v2"])


if __name__ == "__main__":
    key = jax.random.PRNGKey(0)
    k_x, k_p = jax.random.split(key)

    N, in_ch, out_ch, H, W = 2, 4, 8, 16, 16
    x = jax.random.normal(k_x, (N, in_ch, H, W), jnp.float32)
    params = init_double_conv_params(k_p, in_ch, out_ch)

    out = jax.block_until_ready(double_conv_forward(x, params))

    assert out.shape == (N, out_ch, H, W), out.shape
    assert bool(jnp.all(out >= 0.0))  # ReLU output is non-negative

    # Cross-check against a pure-JAX reference of the same eval-mode module;
    # tolerance covers bf16 matmul inputs (accumulation is f32).
    ref = _reference_double_conv(x, params)
    max_err = float(jnp.max(jnp.abs(out - ref)))
    assert max_err < 5e-2, max_err

    print("KERNEL_OK")
</pallas_src>

<mosaic_0001>
module attributes {stable_mosaic.version = 11 : i64} {
  func.func @_double_conv_kernel(%arg0: i32, %arg1: memref<1x16x16x128xbf16, #tpu.memory_space<vmem>>, %arg2: memref<9x128x128xbf16, #tpu.memory_space<vmem>>, %arg3: memref<1x128xf32, #tpu.memory_space<vmem>>, %arg4: memref<1x128xf32, #tpu.memory_space<vmem>>, %arg5: memref<9x128x128xbf16, #tpu.memory_space<vmem>>, %arg6: memref<1x128xf32, #tpu.memory_space<vmem>>, %arg7: memref<1x128xf32, #tpu.memory_space<vmem>>, %arg8: memref<1x16x16x128xf32, #tpu.memory_space<vmem>>, %arg9: memref<18x32x128xbf16, #tpu.memory_space<vmem>>, %arg10: memref<18x32x128xbf16, #tpu.memory_space<vmem>>, %arg11: memref<512x128xf32, #tpu.memory_space<vmem>>) attributes {dimension_semantics = [#tpu.dimension_semantics<parallel>], iteration_bounds = array<i64: 2>, scalar_prefetch = 0 : i64, scratch_operands = 3 : i64, tpu.core_type = #tpu.core_type<tc>, window_params = [{transform_indices = @transform_0, window_bounds = array<i64: 1, 16, 16, 128>}, {pipeline_mode = #tpu.pipeline_mode<synchronous>, transform_indices = @transform_1, window_bounds = array<i64: 9, 128, 128>}, {pipeline_mode = #tpu.pipeline_mode<synchronous>, transform_indices = @transform_2, window_bounds = array<i64: 1, 128>}, {pipeline_mode = #tpu.pipeline_mode<synchronous>, transform_indices = @transform_3, window_bounds = array<i64: 1, 128>}, {pipeline_mode = #tpu.pipeline_mode<synchronous>, transform_indices = @transform_4, window_bounds = array<i64: 9, 128, 128>}, {pipeline_mode = #tpu.pipeline_mode<synchronous>, transform_indices = @transform_5, window_bounds = array<i64: 1, 128>}, {pipeline_mode = #tpu.pipeline_mode<synchronous>, transform_indices = @transform_6, window_bounds = array<i64: 1, 128>}, {transform_indices = @transform_7, window_bounds = array<i64: 1, 16, 16, 128>}]} {
    %cst = arith.constant 0.000000e+00 : bf16
    %0 = vector.broadcast %cst : bf16 to vector<18x32x128xbf16>
    %c0 = arith.constant 0 : index
    %c0_0 = arith.constant 0 : index
    %c0_1 = arith.constant 0 : index
    %1 = vector.load %arg9[%c0, %c0_0, %c0_1] : memref<18x32x128xbf16, #tpu.memory_space<vmem>>, vector<18x32x128xbf16>
    tpu.vector_store %arg9[%c0, %c0_0, %c0_1], %0 {strides = array<i32>} : memref<18x32x128xbf16, #tpu.memory_space<vmem>>, vector<18x32x128xbf16>,
    %c0_2 = arith.constant 0 : index
    %c0_3 = arith.constant 0 : index
    %c0_4 = arith.constant 0 : index
    %c0_5 = arith.constant 0 : index
    %2 = vector.load %arg1[%c0_2, %c0_3, %c0_4, %c0_5] : memref<1x16x16x128xbf16, #tpu.memory_space<vmem>>, vector<1x16x16x128xbf16>
    %3 = vector.shape_cast %2 : vector<1x16x16x128xbf16> to vector<16x16x128xbf16>
    %c1 = arith.constant 1 : index
    %c0_6 = arith.constant 0 : index
    %c0_7 = arith.constant 0 : index
    %4 = vector.load %arg9[%c1, %c0_6, %c0_7] : memref<18x32x128xbf16, #tpu.memory_space<vmem>>, vector<16x16x128xbf16>
    tpu.vector_store %arg9[%c1, %c0_6, %c0_7], %3 {strides = array<i32>} : memref<18x32x128xbf16, #tpu.memory_space<vmem>>, vector<16x16x128xbf16>,
    %cst_8 = arith.constant 0.000000e+00 : f32
    %5 = vector.broadcast %cst_8 : f32 to vector<512x128xf32>
    %c0_9 = arith.constant 0 : index
    %c0_10 = arith.constant 0 : index
    %6 = vector.load %arg11[%c0_9, %c0_10] : memref<512x128xf32, #tpu.memory_space<vmem>>, vector<512x128xf32>
    tpu.vector_store %arg11[%c0_9, %c0_10], %5 {strides = array<i32>} : memref<512x128xf32, #tpu.memory_space<vmem>>, vector<512x128xf32>,
    %c0_11 = arith.constant 0 : index
    %c0_12 = arith.constant 0 : index
    %c0_13 = arith.constant 0 : index
    %7 = vector.load %arg9[%c0_11, %c0_12, %c0_13] : memref<18x32x128xbf16, #tpu.memory_space<vmem>>, vector<16x32x128xbf16>
    %8 = vector.shape_cast %7 : vector<16x32x128xbf16> to vector<512x128xbf16>
    %c0_14 = arith.constant 0 : index
    %c0_15 = arith.constant 0 : index
    %c0_16 = arith.constant 0 : index
    %9 = vector.load %arg2[%c0_14, %c0_15, %c0_16] : memref<9x128x128xbf16, #tpu.memory_space<vmem>>, vector<1x128x128xbf16>
    %10 = vector.shape_cast %9 : vector<1x128x128xbf16> to vector<128x128xbf16>
    %cst_17 = arith.constant dense<0.000000e+00> : vector<512x128xf32>
    %11 = tpu.matmul %8, %10, %cst_17 {dimension_numbers = #tpu.dot_dimension_numbers<[1], [0], [0], [1], [0, 0, 1, 1], [], []>} : vector<512x128xbf16>, vector<128x128xbf16>, vector<512x128xf32> -> vector<512x128xf32>
    %c1_18 = arith.constant 1 : index
    %c0_19 = arith.constant 0 : index
    %12 = vector.load %arg11[%c1_18, %c0_19] : memref<512x128xf32, #tpu.memory_space<vmem>>, vector<511x128xf32>
    %13 = vector.extract_strided_slice %11 {offsets = [0, 0], sizes = [511, 128], strides = [1, 1]} : vector<512x128xf32> to vector<511x128xf32>
    %14 = arith.addf %12, %13 : vector<511x128xf32>
    %c1_20 = arith.constant 1 : index
    %c0_21 = arith.constant 0 : index
    %15 = vector.load %arg11[%c1_20, %c0_21] : memref<512x128xf32, #tpu.memory_space<vmem>>, vector<511x128xf32>
    tpu.vector_store %arg11[%c1_20, %c0_21], %14 {strides = array<i32>} : memref<512x128xf32, #tpu.memory_space<vmem>>, vector<511x128xf32>,
    %c1_22 = arith.constant 1 : index
    %c0_23 = arith.constant 0 : index
    %c0_24 = arith.constant 0 : index
    %16 = vector.load %arg2[%c1_22, %c0_23, %c0_24] : memref<9x128x128xbf16, #tpu.memory_space<vmem>>, vector<1x128x128xbf16>
    %17 = vector.shape_cast %16 : vector<1x128x128xbf16> to vector<128x128xbf16>
    %cst_25 = arith.constant dense<0.000000e+00> : vector<512x128xf32>
    %18 = tpu.matmul %8, %17, %cst_25 {dimension_numbers = #tpu.dot_dimension_numbers<[1], [0], [0], [1], [0, 0, 1, 1], [], []>} : vector<512x128xbf16>, vector<128x128xbf16>, vector<512x128xf32> -> vector<512x128xf32>
    %c0_26 = arith.constant 0 : index
    %c0_27 = arith.constant 0 : index
    %19 = vector.load %arg11[%c0_26, %c0_27] : memref<512x128xf32, #tpu.memory_space<vmem>>, vector<512x128xf32>
    %20 = arith.addf %19, %18 : vector<512x128xf32>
    %c0_28 = arith.constant 0 : index
    %c0_29 = arith.constant 0 : index
    %21 = vector.load %arg11[%c0_28, %c0_29] : memref<512x128xf32, #tpu.memory_space<vmem>>, vector<512x128xf32>
    tpu.vector_store %arg11[%c0_28, %c0_29], %20 {strides = array<i32>} : memref<512x128xf32, #tpu.memory_space<vmem>>, vector<512x128xf32>,
    %c2 = arith.constant 2 : index
    %c0_30 = arith.constant 0 : index
    %c0_31 = arith.constant 0 : index
    %22 = vector.load %arg2[%c2, %c0_30, %c0_31] : memref<9x128x128xbf16, #tpu.memory_space<vmem>>, vector<1x128x128xbf16>
    %23 = vector.shape_cast %22 : vector<1x128x128xbf16> to vector<128x128xbf16>
    %cst_32 = arith.constant dense<0.000000e+00> : vector<512x128xf32>
    %24 = tpu.matmul %8, %23, %cst_32 {dimension_numbers = #tpu.dot_dimension_numbers<[1], [0], [0], [1], [0, 0, 1, 1], [], []>} : vector<512x128xbf16>, vector<128x128xbf16>, vector<512x128xf32> -> vector<512x128xf32>
    %c0_33 = arith.constant 0 : index
    %c0_34 = arith.constant 0 : index
    %25 = vector.load %arg11[%c0_33, %c0_34] : memref<512x128xf32, #tpu.memory_space<vmem>>, vector<511x128xf32>
    %26 = vector.extract_strided_slice %24 {offsets = [1, 0], sizes = [511, 128], strides = [1, 1]} : vector<512x128xf32> to vector<511x128xf32>
    %27 = arith.addf %25, %26 : vector<511x128xf32>
    %c0_35 = arith.constant 0 : index
    %c0_36 = arith.constant 0 : index
    %28 = vector.load %arg11[%c0_35, %c0_36] : memref<512x128xf32, #tpu.memory_space<vmem>>, vector<511x128xf32>
    tpu.vector_store %arg11[%c0_35, %c0_36], %27 {strides = array<i32>} : memref<512x128xf32, #tpu.memory_space<vmem>>, vector<511x128xf32>,
    %c1_37 = arith.constant 1 : index
    %c0_38 = arith.constant 0 : index
    %c0_39 = arith.constant 0 : index
    %29 = vector.load %arg9[%c1_37, %c0_38, %c0_39] : memref<18x32x128xbf16, #tpu.memory_space<vmem>>, vector<16x32x128xbf16>
    %30 = vector.shape_cast %29 : vector<16x32x128xbf16> to vector<512x128xbf16>
    %c3 = arith.constant 3 : index
    %c0_40 = arith.constant 0 : index
    %c0_41 = arith.constant 0 : index
    %31 = vector.load %arg2[%c3, %c0_40, %c0_41] : memref<9x128x128xbf16, #tpu.memory_space<vmem>>, vector<1x128x128xbf16>
    %32 = vector.shape_cast %31 : vector<1x128x128xbf16> to vector<128x128xbf16>
    %cst_42 = arith.constant dense<0.000000e+00> : vector<512x128xf32>
    %33 = tpu.matmul %30, %32, %cst_42 {dimension_numbers = #tpu.dot_dimension_numbers<[1], [0], [0], [1], [0, 0, 1, 1], [], []>} : vector<512x128xbf16>, vector<128x128xbf16>, vector<512x128xf32> -> vector<512x128xf32>
    %c1_43 = arith.constant 1 : index
    %c0_44 = arith.constant 0 : index
    %34 = vector.load %arg11[%c1_43, %c0_44] : memref<512x128xf32, #tpu.memory_space<vmem>>, vector<511x128xf32>
    %35 = vector.extract_strided_slice %33 {offsets = [0, 0], sizes = [511, 128], strides = [1, 1]} : vector<512x128xf32> to vector<511x128xf32>
    %36 = arith.addf %34, %35 : vector<511x128xf32>
    %c1_45 = arith.constant 1 : index
    %c0_46 = arith.constant 0 : index
    %37 = vector.load %arg11[%c1_45, %c0_46] : memref<512x128xf32, #tpu.memory_space<vmem>>, vector<511x128xf32>
    tpu.vector_store %arg11[%c1_45, %c0_46], %36 {strides = array<i32>} : memref<512x128xf32, #tpu.memory_space<vmem>>, vector<511x128xf32>,
    %c4 = arith.constant 4 : index
    %c0_47 = arith.constant 0 : index
    %c0_48 = arith.constant 0 : index
    %38 = vector.load %arg2[%c4, %c0_47, %c0_48] : memref<9x128x128xbf16, #tpu.memory_space<vmem>>, vector<1x128x128xbf16>
    %39 = vector.shape_cast %38 : vector<1x128x128xbf16> to vector<128x128xbf16>
    %cst_49 = arith.constant dense<0.000000e+00> : vector<512x128xf32>
    %40 = tpu.matmul %30, %39, %cst_49 {dimension_numbers = #tpu.dot_dimension_numbers<[1], [0], [0], [1], [0, 0, 1, 1], [], []>} : vector<512x128xbf16>, vector<128x128xbf16>, vector<512x128xf32> -> vector<512x128xf32>
    %c0_50 = arith.constant 0 : index
    %c0_51 = arith.constant 0 : index
    %41 = vector.load %arg11[%c0_50, %c0_51] : memref<512x128xf32, #tpu.memory_space<vmem>>, vector<512x128xf32>
    %42 = arith.addf %41, %40 : vector<512x128xf32>
    %c0_52 = arith.constant 0 : index
    %c0_53 = arith.constant 0 : index
    %43 = vector.load %arg11[%c0_52, %c0_53] : memref<512x128xf32, #tpu.memory_space<vmem>>, vector<512x128xf32>
    tpu.vector_store %arg11[%c0_52, %c0_53], %42 {strides = array<i32>} : memref<512x128xf32, #tpu.memory_space<vmem>>, vector<512x128xf32>,
    %c5 = arith.constant 5 : index
    %c0_54 = arith.constant 0 : index
    %c0_55 = arith.constant 0 : index
    %44 = vector.load %arg2[%c5, %c0_54, %c0_55] : memref<9x128x128xbf16, #tpu.memory_space<vmem>>, vector<1x128x128xbf16>
    %45 = vector.shape_cast %44 : vector<1x128x128xbf16> to vector<128x128xbf16>
    %cst_56 = arith.constant dense<0.000000e+00> : vector<512x128xf32>
    %46 = tpu.matmul %30, %45, %cst_56 {dimension_numbers = #tpu.dot_dimension_numbers<[1], [0], [0], [1], [0, 0, 1, 1], [], []>} : vector<512x128xbf16>, vector<128x128xbf16>, vector<512x128xf32> -> vector<512x128xf32>
    %c0_57 = arith.constant 0 : index
    %c0_58 = arith.constant 0 : index
    %47 = vector.load %arg11[%c0_57, %c0_58] : memref<512x128xf32, #tpu.memory_space<vmem>>, vector<511x128xf32>
    %48 = vector.extract_strided_slice %46 {offsets = [1, 0], sizes = [511, 128], strides = [1, 1]} : vector<512x128xf32> to vector<511x128xf32>
    %49 = arith.addf %47, %48 : vector<511x128xf32>
    %c0_59 = arith.constant 0 : index
    %c0_60 = arith.constant 0 : index
    %50 = vector.load %arg11[%c0_59, %c0_60] : memref<512x128xf32, #tpu.memory_space<vmem>>, vector<511x128xf32>
    tpu.vector_store %arg11[%c0_59, %c0_60], %49 {strides = array<i32>} : memref<512x128xf32, #tpu.memory_space<vmem>>, vector<511x128xf32>,
    %c2_61 = arith.constant 2 : index
    %c0_62 = arith.constant 0 : index
    %c0_63 = arith.constant 0 : index
    %51 = vector.load %arg9[%c2_61, %c0_62, %c0_63] : memref<18x32x128xbf16, #tpu.memory_space<vmem>>, vector<16x32x128xbf16>
    %52 = vector.shape_cast %51 : vector<16x32x128xbf16> to vector<512x128xbf16>
    %c6 = arith.constant 6 : index
    %c0_64 = arith.constant 0 : index
    %c0_65 = arith.constant 0 : index
    %53 = vector.load %arg2[%c6, %c0_64, %c0_65] : memref<9x128x128xbf16, #tpu.memory_space<vmem>>, vector<1x128x128xbf16>
    %54 = vector.shape_cast %53 : vector<1x128x128xbf16> to vector<128x128xbf16>
    %cst_66 = arith.constant dense<0.000000e+00> : vector<512x128xf32>
    %55 = tpu.matmul %52, %54, %cst_66 {dimension_numbers = #tpu.dot_dimension_numbers<[1], [0], [0], [1], [0, 0, 1, 1], [], []>} : vector<512x128xbf16>, vector<128x128xbf16>, vector<512x128xf32> -> vector<512x128xf32>
    %c1_67 = arith.constant 1 : index
    %c0_68 = arith.constant 0 : index
    %56 = vector.load %arg11[%c1_67, %c0_68] : memref<512x128xf32, #tpu.memory_space<vmem>>, vector<511x128xf32>
    %57 = vector.extract_strided_slice %55 {offsets = [0, 0], sizes = [511, 128], strides = [1, 1]} : vector<512x128xf32> to vector<511x128xf32>
    %58 = arith.addf %56, %57 : vector<511x128xf32>
    %c1_69 = arith.constant 1 : index
    %c0_70 = arith.constant 0 : index
    %59 = vector.load %arg11[%c1_69, %c0_70] : memref<512x128xf32, #tpu.memory_space<vmem>>, vector<511x128xf32>
    tpu.vector_store %arg11[%c1_69, %c0_70], %58 {strides = array<i32>} : memref<512x128xf32, #tpu.memory_space<vmem>>, vector<511x128xf32>,
    %c7 = arith.constant 7 : index
    %c0_71 = arith.constant 0 : index
    %c0_72 = arith.constant 0 : index
    %60 = vector.load %arg2[%c7, %c0_71, %c0_72] : memref<9x128x128xbf16, #tpu.memory_space<vmem>>, vector<1x128x128xbf16>
    %61 = vector.shape_cast %60 : vector<1x128x128xbf16> to vector<128x128xbf16>
    %cst_73 = arith.constant dense<0.000000e+00> : vector<512x128xf32>
    %62 = tpu.matmul %52, %61, %cst_73 {dimension_numbers = #tpu.dot_dimension_numbers<[1], [0], [0], [1], [0, 0, 1, 1], [], []>} : vector<512x128xbf16>, vector<128x128xbf16>, vector<512x128xf32> -> vector<512x128xf32>
    %c0_74 = arith.constant 0 : index
    %c0_75 = arith.constant 0 : index
    %63 = vector.load %arg11[%c0_74, %c0_75] : memref<512x128xf32, #tpu.memory_space<vmem>>, vector<512x128xf32>
    %64 = arith.addf %63, %62 : vector<512x128xf32>
    %c0_76 = arith.constant 0 : index
    %c0_77 = arith.constant 0 : index
    %65 = vector.load %arg11[%c0_76, %c0_77] : memref<512x128xf32, #tpu.memory_space<vmem>>, vector<512x128xf32>
    tpu.vector_store %arg11[%c0_76, %c0_77], %64 {strides = array<i32>} : memref<512x128xf32, #tpu.memory_space<vmem>>, vector<512x128xf32>,
    %c8 = arith.constant 8 : index
    %c0_78 = arith.constant 0 : index
    %c0_79 = arith.constant 0 : index
    %66 = vector.load %arg2[%c8, %c0_78, %c0_79] : memref<9x128x128xbf16, #tpu.memory_space<vmem>>, vector<1x128x128xbf16>
    %67 = vector.shape_cast %66 : vector<1x128x128xbf16> to vector<128x128xbf16>
    %cst_80 = arith.constant dense<0.000000e+00> : vector<512x128xf32>
    %68 = tpu.matmul %52, %67, %cst_80 {dimension_numbers = #tpu.dot_dimension_numbers<[1], [0], [0], [1], [0, 0, 1, 1], [], []>} : vector<512x128xbf16>, vector<128x128xbf16>, vector<512x128xf32> -> vector<512x128xf32>
    %c0_81 = arith.constant 0 : index
    %c0_82 = arith.constant 0 : index
    %69 = vector.load %arg11[%c0_81, %c0_82] : memref<512x128xf32, #tpu.memory_space<vmem>>, vector<511x128xf32>
    %70 = vector.extract_strided_slice %68 {offsets = [1, 0], sizes = [511, 128], strides = [1, 1]} : vector<512x128xf32> to vector<511x128xf32>
    %71 = arith.addf %69, %70 : vector<511x128xf32>
    %c0_83 = arith.constant 0 : index
    %c0_84 = arith.constant 0 : index
    %72 = vector.load %arg11[%c0_83, %c0_84] : memref<512x128xf32, #tpu.memory_space<vmem>>, vector<511x128xf32>
    tpu.vector_store %arg11[%c0_83, %c0_84], %71 {strides = array<i32>} : memref<512x128xf32, #tpu.memory_space<vmem>>, vector<511x128xf32>,
    %c0_85 = arith.constant 0 : index
    %c0_86 = arith.constant 0 : index
    %73 = vector.load %arg11[%c0_85, %c0_86] : memref<512x128xf32, #tpu.memory_space<vmem>>, vector<512x128xf32>
    %c0_87 = arith.constant 0 : index
    %c0_88 = arith.constant 0 : index
    %74 = vector.load %arg3[%c0_87, %c0_88] : memref<1x128xf32, #tpu.memory_space<vmem>>, vector<1x128xf32>
    %75 = vector.broadcast %74 : vector<1x128xf32> to vector<512x128xf32>
    %76 = arith.mulf %73, %75 : vector<512x128xf32>
    %c0_89 = arith.constant 0 : index
    %c0_90 = arith.constant 0 : index
    %77 = vector.load %arg4[%c0_89, %c0_90] : memref<1x128xf32, #tpu.memory_space<vmem>>, vector<1x128xf32>
    %78 = vector.broadcast %77 : vector<1x128xf32> to vector<512x128xf32>
    %79 = arith.addf %76, %78 : vector<512x128xf32>
    %cst_91 = arith.constant 0.000000e+00 : f32
    %80 = vector.broadcast %cst_91 : f32 to vector<512x128xf32>
    %81 = arith.maximumf %79, %80 : vector<512x128xf32>
    %82 = vector.shape_cast %81 : vector<512x128xf32> to vector<16x32x128xf32>
    %cst_92 = arith.constant 0.000000e+00 : bf16
    %83 = vector.broadcast %cst_92 : bf16 to vector<18x32x128xbf16>
    %c0_93 = arith.constant 0 : index
    %c0_94 = arith.constant 0 : index
    %c0_95 = arith.constant 0 : index
    %84 = vector.load %arg10[%c0_93, %c0_94, %c0_95] : memref<18x32x128xbf16, #tpu.memory_space<vmem>>, vector<18x32x128xbf16>
    tpu.vector_store %arg10[%c0_93, %c0_94, %c0_95], %83 {strides = array<i32>} : memref<18x32x128xbf16, #tpu.memory_space<vmem>>, vector<18x32x128xbf16>,
    %85 = vector.extract_strided_slice %82 {offsets = [0, 0, 0], sizes = [16, 16, 128], strides = [1, 1, 1]} : vector<16x32x128xf32> to vector<16x16x128xf32>
    %86 = arith.truncf %85 : vector<16x16x128xf32> to vector<16x16x128xbf16>
    %c1_96 = arith.constant 1 : index
    %c0_97 = arith.constant 0 : index
    %c0_98 = arith.constant 0 : index
    %87 = vector.load %arg10[%c1_96, %c0_97, %c0_98] : memref<18x32x128xbf16, #tpu.memory_space<vmem>>, vector<16x16x128xbf16>
    tpu.vector_store %arg10[%c1_96, %c0_97, %c0_98], %86 {strides = array<i32>} : memref<18x32x128xbf16, #tpu.memory_space<vmem>>, vector<16x16x128xbf16>,
    %cst_99 = arith.constant 0.000000e+00 : f32
    %88 = vector.broadcast %cst_99 : f32 to vector<512x128xf32>
    %c0_100 = arith.constant 0 : index
    %c0_101 = arith.constant 0 : index
    %89 = vector.load %arg11[%c0_100, %c0_101] : memref<512x128xf32, #tpu.memory_space<vmem>>, vector<512x128xf32>
    tpu.vector_store %arg11[%c0_100, %c0_101], %88 {strides = array<i32>} : memref<512x128xf32, #tpu.memory_space<vmem>>, vector<512x128xf32>,
    %c0_102 = arith.constant 0 : index
    %c0_103 = arith.constant 0 : index
    %c0_104 = arith.constant 0 : index
    %90 = vector.load %arg10[%c0_102, %c0_103, %c0_104] : memref<18x32x128xbf16, #tpu.memory_space<vmem>>, vector<16x32x128xbf16>
    %91 = vector.shape_cast %90 : vector<16x32x128xbf16> to vector<512x128xbf16>
    %c0_105 = arith.constant 0 : index
    %c0_106 = arith.constant 0 : index
    %c0_107 = arith.constant 0 : index
    %92 = vector.load %arg5[%c0_105, %c0_106, %c0_107] : memref<9x128x128xbf16, #tpu.memory_space<vmem>>, vector<1x128x128xbf16>
    %93 = vector.shape_cast %92 : vector<1x128x128xbf16> to vector<128x128xbf16>
    %cst_108 = arith.constant dense<0.000000e+00> : vector<512x128xf32>
    %94 = tpu.matmul %91, %93, %cst_108 {dimension_numbers = #tpu.dot_dimension_numbers<[1], [0], [0], [1], [0, 0, 1, 1], [], []>} : vector<512x128xbf16>, vector<128x128xbf16>, vector<512x128xf32> -> vector<512x128xf32>
    %c1_109 = arith.constant 1 : index
    %c0_110 = arith.constant 0 : index
    %95 = vector.load %arg11[%c1_109, %c0_110] : memref<512x128xf32, #tpu.memory_space<vmem>>, vector<511x128xf32>
    %96 = vector.extract_strided_slice %94 {offsets = [0, 0], sizes = [511, 128], strides = [1, 1]} : vector<512x128xf32> to vector<511x128xf32>
    %97 = arith.addf %95, %96 : vector<511x128xf32>
    %c1_111 = arith.constant 1 : index
    %c0_112 = arith.constant 0 : index
    %98 = vector.load %arg11[%c1_111, %c0_112] : memref<512x128xf32, #tpu.memory_space<vmem>>, vector<511x128xf32>
    tpu.vector_store %arg11[%c1_111, %c0_112], %97 {strides = array<i32>} : memref<512x128xf32, #tpu.memory_space<vmem>>, vector<511x128xf32>,
    %c1_113 = arith.constant 1 : index
    %c0_114 = arith.constant 0 : index
    %c0_115 = arith.constant 0 : index
    %99 = vector.load %arg5[%c1_113, %c0_114, %c0_115] : memref<9x128x128xbf16, #tpu.memory_space<vmem>>, vector<1x128x128xbf16>
    %100 = vector.shape_cast %99 : vector<1x128x128xbf16> to vector<128x128xbf16>
    %cst_116 = arith.constant dense<0.000000e+00> : vector<512x128xf32>
    %101 = tpu.matmul %91, %100, %cst_116 {dimension_numbers = #tpu.dot_dimension_numbers<[1], [0], [0], [1], [0, 0, 1, 1], [], []>} : vector<512x128xbf16>, vector<128x128xbf16>, vector<512x128xf32> -> vector<512x128xf32>
    %c0_117 = arith.constant 0 : index
    %c0_118 = arith.constant 0 : index
    %102 = vector.load %arg11[%c0_117, %c0_118] : memref<512x128xf32, #tpu.memory_space<vmem>>, vector<512x128xf32>
    %103 = arith.addf %102, %101 : vector<512x128xf32>
    %c0_119 = arith.constant 0 : index
    %c0_120 = arith.constant 0 : index
    %104 = vector.load %arg11[%c0_119, %c0_120] : memref<512x128xf32, #tpu.memory_space<vmem>>, vector<512x128xf32>
    tpu.vector_store %arg11[%c0_119, %c0_120], %103 {strides = array<i32>} : memref<512x128xf32, #tpu.memory_space<vmem>>, vector<512x128xf32>,
    %c2_121 = arith.constant 2 : index
    %c0_122 = arith.constant 0 : index
    %c0_123 = arith.constant 0 : index
    %105 = vector.load %arg5[%c2_121, %c0_122, %c0_123] : memref<9x128x128xbf16, #tpu.memory_space<vmem>>, vector<1x128x128xbf16>
    %106 = vector.shape_cast %105 : vector<1x128x128xbf16> to vector<128x128xbf16>
    %cst_124 = arith.constant dense<0.000000e+00> : vector<512x128xf32>
    %107 = tpu.matmul %91, %106, %cst_124 {dimension_numbers = #tpu.dot_dimension_numbers<[1], [0], [0], [1], [0, 0, 1, 1], [], []>} : vector<512x128xbf16>, vector<128x128xbf16>, vector<512x128xf32> -> vector<512x128xf32>
    %c0_125 = arith.constant 0 : index
    %c0_126 = arith.constant 0 : index
    %108 = vector.load %arg11[%c0_125, %c0_126] : memref<512x128xf32, #tpu.memory_space<vmem>>, vector<511x128xf32>
    %109 = vector.extract_strided_slice %107 {offsets = [1, 0], sizes = [511, 128], strides = [1, 1]} : vector<512x128xf32> to vector<511x128xf32>
    %110 = arith.addf %108, %109 : vector<511x128xf32>
    %c0_127 = arith.constant 0 : index
    %c0_128 = arith.constant 0 : index
    %111 = vector.load %arg11[%c0_127, %c0_128] : memref<512x128xf32, #tpu.memory_space<vmem>>, vector<511x128xf32>
    tpu.vector_store %arg11[%c0_127, %c0_128], %110 {strides = array<i32>} : memref<512x128xf32, #tpu.memory_space<vmem>>, vector<511x128xf32>,
    %c1_129 = arith.constant 1 : index
    %c0_130 = arith.constant 0 : index
    %c0_131 = arith.constant 0 : index
    %112 = vector.load %arg10[%c1_129, %c0_130, %c0_131] : memref<18x32x128xbf16, #tpu.memory_space<vmem>>, vector<16x32x128xbf16>
    %113 = vector.shape_cast %112 : vector<16x32x128xbf16> to vector<512x128xbf16>
    %c3_132 = arith.constant 3 : index
    %c0_133 = arith.constant 0 : index
    %c0_134 = arith.constant 0 : index
    %114 = vector.load %arg5[%c3_132, %c0_133, %c0_134] : memref<9x128x128xbf16, #tpu.memory_space<vmem>>, vector<1x128x128xbf16>
    %115 = vector.shape_cast %114 : vector<1x128x128xbf16> to vector<128x128xbf16>
    %cst_135 = arith.constant dense<0.000000e+00> : vector<512x128xf32>
    %116 = tpu.matmul %113, %115, %cst_135 {dimension_numbers = #tpu.dot_dimension_numbers<[1], [0], [0], [1], [0, 0, 1, 1], [], []>} : vector<512x128xbf16>, vector<128x128xbf16>, vector<512x128xf32> -> vector<512x128xf32>
    %c1_136 = arith.constant 1 : index
    %c0_137 = arith.constant 0 : index
    %117 = vector.load %arg11[%c1_136, %c0_137] : memref<512x128xf32, #tpu.memory_space<vmem>>, vector<511x128xf32>
    %118 = vector.extract_strided_slice %116 {offsets = [0, 0], sizes = [511, 128], strides = [1, 1]} : vector<512x128xf32> to vector<511x128xf32>
    %119 = arith.addf %117, %118 : vector<511x128xf32>
    %c1_138 = arith.constant 1 : index
    %c0_139 = arith.constant 0 : index
    %120 = vector.load %arg11[%c1_138, %c0_139] : memref<512x128xf32, #tpu.memory_space<vmem>>, vector<511x128xf32>
    tpu.vector_store %arg11[%c1_138, %c0_139], %119 {strides = array<i32>} : memref<512x128xf32, #tpu.memory_space<vmem>>, vector<511x128xf32>,
    %c4_140 = arith.constant 4 : index
    %c0_141 = arith.constant 0 : index
    %c0_142 = arith.constant 0 : index
    %121 = vector.load %arg5[%c4_140, %c0_141, %c0_142] : memref<9x128x128xbf16, #tpu.memory_space<vmem>>, vector<1x128x128xbf16>
    %122 = vector.shape_cast %121 : vector<1x128x128xbf16> to vector<128x128xbf16>
    %cst_143 = arith.constant dense<0.000000e+00> : vector<512x128xf32>
    %123 = tpu.matmul %113, %122, %cst_143 {dimension_numbers = #tpu.dot_dimension_numbers<[1], [0], [0], [1], [0, 0, 1, 1], [], []>} : vector<512x128xbf16>, vector<128x128xbf16>, vector<512x128xf32> -> vector<512x128xf32>
    %c0_144 = arith.constant 0 : index
    %c0_145 = arith.constant 0 : index
    %124 = vector.load %arg11[%c0_144, %c0_145] : memref<512x128xf32, #tpu.memory_space<vmem>>, vector<512x128xf32>
    %125 = arith.addf %124, %123 : vector<512x128xf32>
    %c0_146 = arith.constant 0 : index
    %c0_147 = arith.constant 0 : index
    %126 = vector.load %arg11[%c0_146, %c0_147] : memref<512x128xf32, #tpu.memory_space<vmem>>, vector<512x128xf32>
    tpu.vector_store %arg11[%c0_146, %c0_147], %125 {strides = array<i32>} : memref<512x128xf32, #tpu.memory_space<vmem>>, vector<512x128xf32>,
    %c5_148 = arith.constant 5 : index
    %c0_149 = arith.constant 0 : index
    %c0_150 = arith.constant 0 : index
    %127 = vector.load %arg5[%c5_148, %c0_149, %c0_150] : memref<9x128x128xbf16, #tpu.memory_space<vmem>>, vector<1x128x128xbf16>
    %128 = vector.shape_cast %127 : vector<1x128x128xbf16> to vector<128x128xbf16>
    %cst_151 = arith.constant dense<0.000000e+00> : vector<512x128xf32>
    %129 = tpu.matmul %113, %128, %cst_151 {dimension_numbers = #tpu.dot_dimension_numbers<[1], [0], [0], [1], [0, 0, 1, 1], [], []>} : vector<512x128xbf16>, vector<128x128xbf16>, vector<512x128xf32> -> vector<512x128xf32>
    %c0_152 = arith.constant 0 : index
    %c0_153 = arith.constant 0 : index
    %130 = vector.load %arg11[%c0_152, %c0_153] : memref<512x128xf32, #tpu.memory_space<vmem>>, vector<511x128xf32>
    %131 = vector.extract_strided_slice %129 {offsets = [1, 0], sizes = [511, 128], strides = [1, 1]} : vector<512x128xf32> to vector<511x128xf32>
    %132 = arith.addf %130, %131 : vector<511x128xf32>
    %c0_154 = arith.constant 0 : index
    %c0_155 = arith.constant 0 : index
    %133 = vector.load %arg11[%c0_154, %c0_155] : memref<512x128xf32, #tpu.memory_space<vmem>>, vector<511x128xf32>
    tpu.vector_store %arg11[%c0_154, %c0_155], %132 {strides = array<i32>} : memref<512x128xf32, #tpu.memory_space<vmem>>, vector<511x128xf32>,
    %c2_156 = arith.constant 2 : index
    %c0_157 = arith.constant 0 : index
    %c0_158 = arith.constant 0 : index
    %134 = vector.load %arg10[%c2_156, %c0_157, %c0_158] : memref<18x32x128xbf16, #tpu.memory_space<vmem>>, vector<16x32x128xbf16>
    %135 = vector.shape_cast %134 : vector<16x32x128xbf16> to vector<512x128xbf16>
    %c6_159 = arith.constant 6 : index
    %c0_160 = arith.constant 0 : index
    %c0_161 = arith.constant 0 : index
    %136 = vector.load %arg5[%c6_159, %c0_160, %c0_161] : memref<9x128x128xbf16, #tpu.memory_space<vmem>>, vector<1x128x128xbf16>
    %137 = vector.shape_cast %136 : vector<1x128x128xbf16> to vector<128x128xbf16>
    %cst_162 = arith.constant dense<0.000000e+00> : vector<512x128xf32>
    %138 = tpu.matmul %135, %137, %cst_162 {dimension_numbers = #tpu.dot_dimension_numbers<[1], [0], [0], [1], [0, 0, 1, 1], [], []>} : vector<512x128xbf16>, vector<128x128xbf16>, vector<512x128xf32> -> vector<512x128xf32>
    %c1_163 = arith.constant 1 : index
    %c0_164 = arith.constant 0 : index
    %139 = vector.load %arg11[%c1_163, %c0_164] : memref<512x128xf32, #tpu.memory_space<vmem>>, vector<511x128xf32>
    %140 = vector.extract_strided_slice %138 {offsets = [0, 0], sizes = [511, 128], strides = [1, 1]} : vector<512x128xf32> to vector<511x128xf32>
    %141 = arith.addf %139, %140 : vector<511x128xf32>
    %c1_165 = arith.constant 1 : index
    %c0_166 = arith.constant 0 : index
    %142 = vector.load %arg11[%c1_165, %c0_166] : memref<512x128xf32, #tpu.memory_space<vmem>>, vector<511x128xf32>
    tpu.vector_store %arg11[%c1_165, %c0_166], %141 {strides = array<i32>} : memref<512x128xf32, #tpu.memory_space<vmem>>, vector<511x128xf32>,
    %c7_167 = arith.constant 7 : index
    %c0_168 = arith.constant 0 : index
    %c0_169 = arith.constant 0 : index
    %143 = vector.load %arg5[%c7_167, %c0_168, %c0_169] : memref<9x128x128xbf16, #tpu.memory_space<vmem>>, vector<1x128x128xbf16>
    %144 = vector.shape_cast %143 : vector<1x128x128xbf16> to vector<128x128xbf16>
    %cst_170 = arith.constant dense<0.000000e+00> : vector<512x128xf32>
    %145 = tpu.matmul %135, %144, %cst_170 {dimension_numbers = #tpu.dot_dimension_numbers<[1], [0], [0], [1], [0, 0, 1, 1], [], []>} : vector<512x128xbf16>, vector<128x128xbf16>, vector<512x128xf32> -> vector<512x128xf32>
    %c0_171 = arith.constant 0 : index
    %c0_172 = arith.constant 0 : index
    %146 = vector.load %arg11[%c0_171, %c0_172] : memref<512x128xf32, #tpu.memory_space<vmem>>, vector<512x128xf32>
    %147 = arith.addf %146, %145 : vector<512x128xf32>
    %c0_173 = arith.constant 0 : index
    %c0_174 = arith.constant 0 : index
    %148 = vector.load %arg11[%c0_173, %c0_174] : memref<512x128xf32, #tpu.memory_space<vmem>>, vector<512x128xf32>
    tpu.vector_store %arg11[%c0_173, %c0_174], %147 {strides = array<i32>} : memref<512x128xf32, #tpu.memory_space<vmem>>, vector<512x128xf32>,
    %c8_175 = arith.constant 8 : index
    %c0_176 = arith.constant 0 : index
    %c0_177 = arith.constant 0 : index
    %149 = vector.load %arg5[%c8_175, %c0_176, %c0_177] : memref<9x128x128xbf16, #tpu.memory_space<vmem>>, vector<1x128x128xbf16>
    %150 = vector.shape_cast %149 : vector<1x128x128xbf16> to vector<128x128xbf16>
    %cst_178 = arith.constant dense<0.000000e+00> : vector<512x128xf32>
    %151 = tpu.matmul %135, %150, %cst_178 {dimension_numbers = #tpu.dot_dimension_numbers<[1], [0], [0], [1], [0, 0, 1, 1], [], []>} : vector<512x128xbf16>, vector<128x128xbf16>, vector<512x128xf32> -> vector<512x128xf32>
    %c0_179 = arith.constant 0 : index
    %c0_180 = arith.constant 0 : index
    %152 = vector.load %arg11[%c0_179, %c0_180] : memref<512x128xf32, #tpu.memory_space<vmem>>, vector<511x128xf32>
    %153 = vector.extract_strided_slice %151 {offsets = [1, 0], sizes = [511, 128], strides = [1, 1]} : vector<512x128xf32> to vector<511x128xf32>
    %154 = arith.addf %152, %153 : vector<511x128xf32>
    %c0_181 = arith.constant 0 : index
    %c0_182 = arith.constant 0 : index
    %155 = vector.load %arg11[%c0_181, %c0_182] : memref<512x128xf32, #tpu.memory_space<vmem>>, vector<511x128xf32>
    tpu.vector_store %arg11[%c0_181, %c0_182], %154 {strides = array<i32>} : memref<512x128xf32, #tpu.memory_space<vmem>>, vector<511x128xf32>,
    %c0_183 = arith.constant 0 : index
    %c0_184 = arith.constant 0 : index
    %156 = vector.load %arg11[%c0_183, %c0_184] : memref<512x128xf32, #tpu.memory_space<vmem>>, vector<512x128xf32>
    %c0_185 = arith.constant 0 : index
    %c0_186 = arith.constant 0 : index
    %157 = vector.load %arg6[%c0_185, %c0_186] : memref<1x128xf32, #tpu.memory_space<vmem>>, vector<1x128xf32>
    %158 = vector.broadcast %157 : vector<1x128xf32> to vector<512x128xf32>
    %159 = arith.mulf %156, %158 : vector<512x128xf32>
    %c0_187 = arith.constant 0 : index
    %c0_188 = arith.constant 0 : index
    %160 = vector.load %arg7[%c0_187, %c0_188] : memref<1x128xf32, #tpu.memory_space<vmem>>, vector<1x128xf32>
    %161 = vector.broadcast %160 : vector<1x128xf32> to vector<512x128xf32>
    %162 = arith.addf %159, %161 : vector<512x128xf32>
    %cst_189 = arith.constant 0.000000e+00 : f32
    %163 = vector.broadcast %cst_189 : f32 to vector<512x128xf32>
    %164 = arith.maximumf %162, %163 : vector<512x128xf32>
    %165 = vector.shape_cast %164 : vector<512x128xf32> to vector<16x32x128xf32>
    %166 = vector.extract_strided_slice %165 {offsets = [0, 0, 0], sizes = [16, 16, 128], strides = [1, 1, 1]} : vector<16x32x128xf32> to vector<16x16x128xf32>
    %c0_190 = arith.constant 0 : index
    %c0_191 = arith.constant 0 : index
    %c0_192 = arith.constant 0 : index
    %c0_193 = arith.constant 0 : index
    %167 = vector.load %arg8[%c0_190, %c0_191, %c0_192, %c0_193] : memref<1x16x16x128xf32, #tpu.memory_space<vmem>>, vector<1x16x16x128xf32>
    %168 = vector.shape_cast %167 : vector<1x16x16x128xf32> to vector<16x16x128xf32>
    %169 = vector.shape_cast %166 : vector<16x16x128xf32> to vector<1x16x16x128xf32>
    tpu.vector_store %arg8[%c0_190, %c0_191, %c0_192, %c0_193], %169 {strides = array<i32>} : memref<1x16x16x128xf32, #tpu.memory_space<vmem>>, vector<1x16x16x128xf32>,
    return
  }
  func.func @transform_0(%arg0: i32) -> (i32, i32, i32, i32) {
    %c0_i32 = arith.constant 0 : i32
    %c0_i32_0 = arith.constant 0 : i32
    %c0_i32_1 = arith.constant 0 : i32
    %c0_i32_2 = arith.constant 0 : i32
    return %arg0, %c0_i32, %c0_i32_0, %c0_i32_1 : i32, i32, i32, i32
  }
  func.func @transform_1(%arg0: i32) -> (i32, i32, i32) {
    %c0_i32 = arith.constant 0 : i32
    %c0_i32_0 = arith.constant 0 : i32
    %c0_i32_1 = arith.constant 0 : i32
    %c0_i32_2 = arith.constant 0 : i32
    return %c0_i32, %c0_i32_0, %c0_i32_1 : i32, i32, i32
  }
  func.func @transform_2(%arg0: i32) -> (i32, i32) {
    %c0_i32 = arith.constant 0 : i32
    %c0_i32_0 = arith.constant 0 : i32
    %c0_i32_1 = arith.constant 0 : i32
    return %c0_i32, %c0_i32_0 : i32, i32
  }
  func.func @transform_3(%arg0: i32) -> (i32, i32) {
    %c0_i32 = arith.constant 0 : i32
    %c0_i32_0 = arith.constant 0 : i32
    %c0_i32_1 = arith.constant 0 : i32
    return %c0_i32, %c0_i32_0 : i32, i32
  }
  func.func @transform_4(%arg0: i32) -> (i32, i32, i32) {
    %c0_i32 = arith.constant 0 : i32
    %c0_i32_0 = arith.constant 0 : i32
    %c0_i32_1 = arith.constant 0 : i32
    %c0_i32_2 = arith.constant 0 : i32
    return %c0_i32, %c0_i32_0, %c0_i32_1 : i32, i32, i32
  }
  func.func @transform_5(%arg0: i32) -> (i32, i32) {
    %c0_i32 = arith.constant 0 : i32
    %c0_i32_0 = arith.constant 0 : i32
    %c0_i32_1 = arith.constant 0 : i32
    return %c0_i32, %c0_i32_0 : i32, i32
  }
  func.func @transform_6(%arg0: i32) -> (i32, i32) {
    %c0_i32 = arith.constant 0 : i32
    %c0_i32_0 = arith.constant 0 : i32
    %c0_i32_1 = arith.constant 0 : i32
    return %c0_i32, %c0_i32_0 : i32, i32
  }
  func.func @transform_7(%arg0: i32) -> (i32, i32, i32, i32) {
    %c0_i32 = arith.constant 0 : i32
    %c0_i32_0 = arith.constant 0 : i32
    %c0_i32_1 = arith.constant 0 : i32
    %c0_i32_2 = arith.constant 0 : i32
    return %arg0, %c0_i32, %c0_i32_0, %c0_i32_1 : i32, i32, i32, i32
  }
}

</mosaic_0001>

<bundles_post_ra>
// kernel: tpu_custom_call.1
= control target key start
LH: loop header
LB: loop body
LE: loop exit
PB: predicated region body
PF: predicated region fallthrough
CT: control target
= control target key end

     0   :  { %s19643_s0 = inlined_call_operand.hbm [shape: bf16[2,16,16,128], index: 0, kind: input, shape index: {}]   ;;  %s19644_s1 = inlined_call_operand.hbm [shape: bf16[9,128,128], index: 1, kind: input, shape index: {}]   ;;  %s19645_s2 = inlined_call_operand.vmem [shape: f32[1,128], index: 2, kind: input, shape index: {}]   ;;  %s19646_s3 = inlined_call_operand.vmem [shape: f32[1,128], index: 3, kind: input, shape index: {}]   ;;  %s19647_s4 = inlined_call_operand.hbm [shape: bf16[9,128,128], index: 4, kind: input, shape index: {}]   ;;  %s19648_s5 = inlined_call_operand.vmem [shape: f32[1,128], index: 5, kind: input, shape index: {}]   ;;  %s19649_s6 = inlined_call_operand.vmem [shape: f32[1,128], index: 6, kind: input, shape index: {}]   ;;  %s19650_s7 = inlined_call_operand.hbm [shape: f32[2,16,16,128], index: 7, kind: output, shape index: {}]  }
   0x1   :  { %19657 = sst [smem:[#allocation15_spill]] %s19644_s1 }
   0x2   :  { %12 = vsyncpa [#allocation6], 0 }
   0x3   :  { %14 = vsyncpa [#allocation6 + $0x1], 0 }
   0x4   :  { %15 = vsyncpa [#allocation9], 0 }
   0x5   :  { %16 = vsyncpa [#allocation7], 0 }
   0x6   :  { %18 = vsyncpa [#allocation7 + $0x1], 0  ;;  %s17576_s24 = smov 0   ;;  %s17578_s25 = smov 0  }
   0x7   :  { %s17580_s26 = smov 0   ;;  %s17582_s27 = smov 0  }
   0x8 LB: > { %s17597_s28 = sadd.s32 4294967295, %s17524_s27   ;;  %s14142_s29 = sadd.s32 4294967294, %s17524_s27   ;;  %s17524_s27 = sphi %s17582_s27, %s19677_s27   ;;  %s17520_s26 = sphi %s17580_s26, %s19676_s26   ;;  %s17516_s25 = sphi %s17578_s25, %s19675_s25   ;;  %s17512_s24 = sphi %s17576_s24, %s19674_s24  }
   0x9   : > { %p44_p0 = scmp.ne.s32.totalorder %s17516_s25, %s17512_s24  ;;  %p19652_p1 = scmp.eq.s32.totalorder %s17597_s28, 0 }
   0xa   : > { %p194_p2 = scmp.eq.s32.totalorder %s17597_s28, 1  ;;  %p200_p3 = scmp.eq.s32.totalorder %s14142_s29, 1 }
   0xb   : > { %p17606_p4 = por %p19652_p1, %p44_p0  ;;  %p14143_p5 = scmp.ge.s32.totalorder %s17524_s27, 1 }
   0xc   : > { %p17611_p6 = por %p200_p3, %p44_p0  ;;  %p207_p7 = scmp.lt.s32.totalorder %s17524_s27, 3 }
   0xd   : > { %s19658_s30 = scalar_select %p17606_p4, 1, 0 }
   0xe   : > { %s19659_s8 = scalar_select %p17611_p6, 1, 0 }
   0xf   : > { %p17616_p8 = pnand %p14143_p5, %p207_p7  ;;  %s17526_s10 = smov [#allocation8]  }
  0x10   : > { %s219_s11 = sshll.u32 %s17526_s10, 4  ;;  %s17527_s13 = smov [#allocation10]   ;;  %s220_s11 = int_to_ptr.vmem [resolvable:$true] %s219_s11 }
  0x11   : > { %s19660_s9 = scalar_select %p17616_p8, 1, 0 }
  0x12   : > { %p16833_p9 = pneg %p17616_p8  ;;  %s238_s14 = sshll.u32 %s17527_s13, 4  ;;  %s239_s14 = int_to_ptr.vmem [resolvable:$true] %s238_s14 }
  0x13   : > { %s17387_s15 = scalar_lea.vmem %s220_s11, 9216  ;;  %p17395_p5 = scmp.lt.s32.totalorder %s220_s11, %s220_s11 }
  0x14   : > { %p17625_p11 = pnand %p16833_p9, %p19652_p1  ;;  %p17388_p13 = scmp.ne.s32.totalorder %s220_s11, %s17387_s15 }
  0x15   : > { %p17396_p7 = scmp.lt.s32.totalorder %s17387_s15, %s17387_s15 }
  0x16   : > { %p17378_p12 = pneg %p17625_p11 }
  0x17   : > { %p17397_p10 = por %p17396_p7, %p17395_p5 }
  0x18   : > { %p17390_p0 = pnand %p17388_p13, %p17378_p12 }
  0x1a   : > { %p17391_p3 = pneg %p17390_p0 }
  0x1c   : > { %p17398_p9 = pnand %p17397_p10, %p17391_p3 }
  0x1e   : > { %17401 = shalt.err (!%p17398_p9)
}
  0x1f   : > { %s19651_s16 = smov 64   ;;  %s19653_s17 = smov 4  }
  0x20   : > { %s19662_s1 = sld [smem:[#allocation15_spill]]  ;;  %s17413_s20 = scalar_lea.vmem %s239_s14, 9216 }
  0x21   : > { %p17414_p13 = scmp.ne.s32.totalorder %s239_s14, %s17413_s20  ;;  %p17421_p10 = scmp.lt.s32.totalorder %s239_s14, %s239_s14 }
  0x22   : > { %p17422_p3 = scmp.lt.s32.totalorder %s17413_s20, %s17413_s20 }
  0x23   : > { %p17416_p0 = pnand %p17414_p13, %p17378_p12 }
  0x24   : > { %p17423_p7 = por %p17422_p3, %p17421_p10 }
  0x25   : > { %p17417_p5 = pneg %p17416_p0 }
  0x26   : > { %16836 = dma.hbm_to_vmem [thread:$0]  (!%p17625_p11), %s19662_s1, 9216, %s220_s11, [#allocation9], %s19651_s16, %s19651_s16, %s19653_s17  }
  0x27   : > { %p17424_p9 = pnand %p17423_p7, %p17417_p5 }
  0x29   : > { %17427 = shalt.err (!%p17424_p9)
}
  0x2a   : > { %16839 = dma.hbm_to_vmem [thread:$0]  (!%p17625_p11), %s19647_s4, 9216, %s239_s14, [#allocation9], %s19651_s16, %s19651_s16, %s19653_s17  }
  0x2b   : > { %s17654_s23 = sadd.s32 1, %s17524_s27   ;;  %s31_s29 = sadd.s32 1, %s17520_s26 }
  0x2c   : > { %s28_s10 = ssub.s32 %s17524_s27, %s17654_s23  ;;  %p38_p12 = scmp.ne.s32.totalorder %s17520_s26, %s17516_s25 }
  0x2d   : > { %p29_p13 = scmp.eq.s32.totalorder %s28_s10, 0  ;;  %p39_p0 = scmp.eq.s32.totalorder %s17524_s27, 0 }
  0x2e   : > { %p17664_p5 = por %p194_p2, %p38_p12  ;;  %p16850_p10 = scmp.lt.s32.totalorder %s17524_s27, 2 }
  0x2f   : > { %s17670_s12 = scalar_select %p29_p13, %s17520_s26, %s31_s29  }
  0x30   : > { %s19663_s11 = scalar_select %p17664_p5, 1, 0 }
  0x31   : > { %p40_p3 = por %p39_p0, %p38_p12  ;;  %s258_s13 = sand.u32 1, %s17520_s26  }
  0x32   : > { %s14147_s15 = sshll.u32 %s258_s13, 7  ;;  %s14532_s14 = sshll.u32 %s17524_s27, 11 }
  0x33   : > { %s17677_s20 = scalar_lea.hbm %s19643_s0, %s14532_s14  ;;  %s262_s21 = scalar_lea.vmem [#allocation5], %s14147_s15 }
  0x34   : > { %s269_s22 = sshll.u32 %s262_s21, 4  ;;  %p17681_p2 = pnand %p16850_p10, %p40_p3  ;;  %s17679_s22 = int_to_ptr.vmem [resolvable:$true] %s269_s22 }
  0x35   : > { %s17685_s29 = scalar_lea.sflag [#allocation6], %s258_s13  ;;  %s17428_s16 = scalar_lea.hbm %s17677_s20, 2048 }
  0x36   : > { %p17429_p11 = scmp.ne.s32.totalorder %s17677_s20, %s17428_s16  ;;  %p17430_p7 = pneg %p17681_p2 }
  0x37   : > { %s17433_s15 = scalar_lea.hbm %s19643_s0, 4096  ;;  %p17434_p13 = scmp.lt.s32.totalorder %s17677_s20, %s19643_s0 }
  0x38   : > { %p17431_p9 = pnand %p17430_p7, %p17429_p11  ;;  %p17435_p0 = scmp.lt.s32.totalorder %s17433_s15, %s17428_s16 }
  0x3a   : > { %p17432_p12 = pneg %p17431_p9  ;;  %p17436_p10 = por %p17435_p0, %p17434_p13 }
  0x3c   : > { %p17437_p3 = pnand %p17436_p10, %p17432_p12 }
  0x3e   : > { %17440 = shalt.err (!%p17437_p3)
}
  0x3f   : > { %s17441_s13 = scalar_lea.vmem %s17679_s22, 2048  ;;  %s17530_s17 = smov [#allocation5]  }
  0x40   : > { %p17442_p1 = scmp.ne.s32.totalorder %s17679_s22, %s17441_s13  ;;  %s17446_s1 = sshll.u32 %s17530_s17, 4  ;;  %s17447_s1 = int_to_ptr.vmem [resolvable:$false] %s17446_s1 }
  0x41   : > { %s17448_s14 = scalar_lea.vmem %s17447_s1, 4096  ;;  %p17449_p9 = scmp.lt.s32.totalorder %s17679_s22, %s17447_s1 }
  0x42   : > { %p17444_p6 = pnand %p17442_p1, %p17430_p7  ;;  %p17450_p5 = scmp.lt.s32.totalorder %s17448_s14, %s17441_s13 }
  0x44   : > { %p17445_p11 = pneg %p17444_p6  ;;  %p17451_p4 = por %p17450_p5, %p17449_p9 }
  0x46   : > { %p17452_p8 = pnand %p17451_p4, %p17445_p11 }
  0x48   : > { %17455 = shalt.err (!%p17452_p8)
}
  0x49   : > { %s19665_s16 = smov 4   ;;  %s19666_s18 = smov 64  }
  0x4a   : > { %16843 = dma.hbm_to_vmem [thread:$0]  (!%p17681_p2), %s17677_s20, 2048, %s17679_s22, %s17685_s29, %s19666_s18, %s19666_s18, %s19665_s16  }
  0x4b   : > { %p19667_p1 = scmp.ne.s32.totalorder %s19660_s9, 0 }
  0x4c   : > { %s17712_s17 = sand.u32 (!%p19667_p1), 1, %s17516_s25   ;;  %p19668_p4 = scmp.ne.s32.totalorder (!%p19667_p1), %s19658_s30, 0 }
  0x4d   : > { %281 = sbr.rel (%p19667_p1) target bundleno = 1743 (0x6cf), region = 48  ;;  %s14151_s1 = sshll.u32 (!%p19667_p1), %s17712_s17, 7 }
  0x4e   : > { %s284_s15 = scalar_lea.sflag (!%p19667_p1), [#allocation6], %s17712_s17  ;;  %s17716_s19 = scalar_lea.vmem (!%p19667_p1), [#allocation5], %s14151_s1 }
  0x52   : > { %17499 = dma.done.wait (%p19668_p4), %s284_s15, 2048  }
  0x53   : > { %17501 = vsyncadd (%p19668_p4), %s284_s15, 4294965248  ;;  %p19669_p6 = scmp.eq.s32.totalorder %s17597_s28, 0 }
  0x55   : > { %17503 = dma.done.wait (%p19669_p6), [#allocation9], 18432   ;;  %p19670_p8 = pmov %p19669_p6 }
  0x56   : > { %v17531_v0 = vmov 0   ;;  %v16894_v1 = vld [vmem:[#allocation8 + $0x38] sm:$0xff]   ;;  %v16896_v3 = vld [vmem:[#allocation8 + $0x30] sm:$0xff]   ;;  %v16898_v5 = vld [vmem:[#allocation8 + $0x28] sm:$0xff]   ;;  %vm2357_vm0 = vcmask 1046528   ;;  %s14154_s14 = sshll.u32 %s17712_s17, 8 }
  0x57   : > { %17505 = vsyncadd (%p19670_p8), [#allocation9], 4294948864  ;;  %327 = vst [vmem:[#allocation2] sm:$0xf] %v17531_v0  ;;  %v16895_v2 = vld [vmem:[#allocation8 + $0x78] sm:$0xff]   ;;  %15381 = vmatprep.subr.bf16.mxu0 %v16894_v1  ;;  %v16897_v4 = vld [vmem:[#allocation8 + $0x70] sm:$0xff]  }
  0x58   : > { %328 = vst [vmem:[#allocation2 + $0x4] sm:$0xf] %v17531_v0  ;;  %329 = vst [vmem:[#allocation2 + $0x8] sm:$0xf] %v17531_v0  ;;  %15382 = vmatpush3.bf16.msra.mxu0 %v16894_v1  ;;  %15461 = vmatprep.subr.bf16.mxu1 %v16895_v2  ;;  %v16899_v6 = vld [vmem:[#allocation8 + $0x68] sm:$0xff]   ;;  %v16900_v7 = vld [vmem:[#allocation8 + $0x20] sm:$0xff]  }
  0x59   : > { %330 = vst [vmem:[#allocation2 + $0xc] sm:$0xf] %v17531_v0  ;;  %331 = vst [vmem:[#allocation2 + $0x10] sm:$0xf] %v17531_v0  ;;  %15462 = vmatpush3.bf16.msra.mxu1 %v16895_v2  ;;  %15383 = vmatprep.subr.bf16.mxu0 %v16896_v3  ;;  %v16901_v8 = vld [vmem:[#allocation8 + $0x60] sm:$0xff]   ;;  %v16902_v9 = vld [vmem:[#allocation8 + $0x18] sm:$0xff]  }
  0x5a   : > { %332 = vst [vmem:[#allocation2 + $0x14] sm:$0xf] %v17531_v0  ;;  %333 = vst [vmem:[#allocation2 + $0x18] sm:$0xf] %v17531_v0  ;;  %15463 = vmatprep.subr.bf16.mxu1 %v16897_v4  ;;  %v16903_v10 = vld [vmem:[#allocation8 + $0x58] sm:$0xff]   ;;  %v16904_v11 = vld [vmem:[#allocation8 + $0x10] sm:$0xff]  }
  0x5b   : > { %334 = vst [vmem:[#allocation2 + $0x1c] sm:$0xf] %v17531_v0  ;;  %335 = vst [vmem:[#allocation2 + $0x20] sm:$0xf] %v17531_v0  ;;  %v16905_v13 = vld [vmem:[#allocation8 + $0x50] sm:$0xff]   ;;  %v399_v14 = vld [vmem:[%s17716_s19] sm:$0xff]  }
  0x5c   : > { %336 = vst [vmem:[#allocation2 + $0x24] sm:$0xf] %v17531_v0  ;;  %337 = vst [vmem:[#allocation2 + $0x28] sm:$0xf] %v17531_v0  ;;  %15384 = vmatpush3.bf16.msra.mxu0 %v16896_v3  ;;  %v16906_v15 = vld [vmem:[#allocation8 + $0x8] sm:$0xff]   ;;  %v403_v18 = vld [vmem:[%s17716_s19 + $0x10] sm:$0xff]  }
  0x5d   : > { %338 = vst [vmem:[#allocation2 + $0x2c] sm:$0xf] %v17531_v0  ;;  %339 = vst [vmem:[#allocation2 + $0x30] sm:$0xf] %v17531_v0  ;;  %15464 = vmatpush3.bf16.msra.mxu1 %v16897_v4  ;;  %15385 = vmatprep.subr.bf16.mxu0 %v16898_v5  ;;  %v401_v16 = vld [vmem:[%s17716_s19 + $0x8] sm:$0xff]   ;;  %v16908_v19 = vld [vmem:[#allocation8] sm:$0xff]  }
  0x5e   : > { %340 = vst [vmem:[#allocation2 + $0x34] sm:$0xf] %v17531_v0  ;;  %341 = vst [vmem:[#allocation2 + $0x38] sm:$0xf] %v17531_v0  ;;  %15465 = vmatprep.subr.bf16.mxu1 %v16899_v6  ;;  %v16907_v17 = vld [vmem:[#allocation8 + $0x48] sm:$0xff]   ;;  %v405_v20 = vld [vmem:[%s17716_s19 + $0x18] sm:$0xff]  }
  0x5f   : > { %342 = vst [vmem:[#allocation2 + $0x3c] sm:$0xf] %v17531_v0  ;;  %343 = vst [vmem:[#allocation2 + $0x40] sm:$0xf] %v17531_v0  ;;  %v16910_v12 = vld [vmem:[#allocation2] sm:$0xff]   ;;  %v16912_v23 = vld [vmem:[#allocation8 + $0xb8] sm:$0xff]  }
  0x60   : > { %344 = vst [vmem:[#allocation2 + $0x44] sm:$0xf] %v17531_v0  ;;  %345 = vst [vmem:[#allocation2 + $0x48] sm:$0xf] %v17531_v0  ;;  %15386 = vmatpush3.bf16.msra.mxu0 %v16898_v5  ;;  %15397 = vmatprep.mubr.bf16.mxu0 %v16910_v12  ;;  %v16909_v21 = vld [vmem:[#allocation8 + $0x40] sm:$0xff]   ;;  %v409_v24 = vld [vmem:[%s17716_s19 + $0x28] sm:$0xff]  }
  0x61   : > { %346 = vst [vmem:[#allocation2 + $0x4c] sm:$0xf] %v17531_v0  ;;  %347 = vst [vmem:[#allocation2 + $0x50] sm:$0xf] %v17531_v0  ;;  %15466 = vmatpush3.bf16.msra.mxu1 %v16899_v6  ;;  %15387 = vmatprep.subr.bf16.mxu0 %v16900_v7  ;;  %v407_v22 = vld [vmem:[%s17716_s19 + $0x20] sm:$0xff]   ;;  %v17876_v25 = vld [vmem:[#allocation2 + $0x8] sm:$0xff]  }
  0x62   : > { %348 = vst [vmem:[#allocation2 + $0x54] sm:$0xf] %v17531_v0  ;;  %349 = vst [vmem:[#allocation2 + $0x58] sm:$0xf] %v17531_v0  ;;  %15467 = vmatprep.subr.bf16.mxu1 %v16901_v8  ;;  %15477 = vmatprep.mubr.bf16.mxu1 %v16910_v12  ;;  %v16917_v27 = vld [vmem:[#allocation8 + $0xb0] sm:$0xff]   ;;  %v16922_v29 = vld [vmem:[#allocation8 + $0xa8] sm:$0xff]  }
  0x63   : > { %350 = vst [vmem:[#allocation2 + $0x5c] sm:$0xf] %v17531_v0  ;;  %351 = vst [vmem:[#allocation2 + $0x60] sm:$0xf] %v17531_v0  ;;  %v411_v28 = vld [vmem:[%s17716_s19 + $0x30] sm:$0xff]   ;;  %v413_v30 = vld [vmem:[%s17716_s19 + $0x38] sm:$0xff]  }
  0x64   : > { %352 = vst [vmem:[#allocation2 + $0x64] sm:$0xf] %v17531_v0  ;;  %353 = vst [vmem:[#allocation2 + $0x68] sm:$0xf] %v17531_v0  ;;  %15388 = vmatpush3.bf16.msra.mxu0 %v16900_v7  ;;  %v16914_v31 = vld [vmem:[#allocation2 + $0x18] sm:$0xff]   ;;  %v415_v33 = vld [vmem:[%s17716_s19 + $0x40] sm:$0xff]  }
  0x65   : > { %354 = vst [vmem:[#allocation2 + $0x6c] sm:$0xf] %v17531_v0  ;;  %355 = vst [vmem:[#allocation2 + $0x70] sm:$0xf] %v17531_v0  ;;  %15468 = vmatpush3.bf16.msra.mxu1 %v16901_v8  ;;  %15389 = vmatprep.subr.bf16.mxu0 %v16902_v9  ;;  %v16927_v34 = vld [vmem:[#allocation8 + $0xa0] sm:$0xff]   ;;  %v417_v35 = vld [vmem:[%s17716_s19 + $0x48] sm:$0xff]  }
  0x66   : > { %356 = vst [vmem:[#allocation2 + $0x74] sm:$0xf] %v17531_v0  ;;  %357 = vst [vmem:[#allocation2 + $0x78] sm:$0xf] %v17531_v0  ;;  %15469 = vmatprep.subr.bf16.mxu1 %v16903_v10  ;;  %v16932_v36 = vld [vmem:[#allocation8 + $0x98] sm:$0xff]   ;;  %v419_v37 = vld [vmem:[%s17716_s19 + $0x50] sm:$0xff]  }
  0x67   : > { %358 = vst [vmem:[#allocation2 + $0x7c] sm:$0xf] %v17531_v0  ;;  %359 = vst [vmem:[#allocation2 + $0x80] sm:$0xf] %v17531_v0  ;;  %v16916_v38 = vld [vmem:[#allocation2 + $0x28] sm:$0xff]   ;;  %v421_v39 = vld [vmem:[%s17716_s19 + $0x58] sm:$0xff]  }
  0x68   : > { %360 = vst [vmem:[#allocation2 + $0x84] sm:$0xf] %v17531_v0  ;;  %361 = vst [vmem:[#allocation2 + $0x88] sm:$0xf] %v17531_v0  ;;  %15390 = vmatpush3.bf16.msra.mxu0 %v16902_v9  ;;  %v16937_v41 = vld [vmem:[#allocation8 + $0x90] sm:$0xff]   ;;  %v16943_v42 = vld [vmem:[#allocation8 + $0xf8] sm:$0xff]  }
  0x69   : > { %362 = vst [vmem:[#allocation2 + $0x8c] sm:$0xf] %v17531_v0  ;;  %363 = vst [vmem:[#allocation2 + $0x90] sm:$0xf] %v17531_v0  ;;  %15470 = vmatpush3.bf16.msra.mxu1 %v16903_v10  ;;  %15391 = vmatprep.subr.bf16.mxu0 %v16904_v11  ;;  %v16919_v43 = vld [vmem:[#allocation2 + $0x38] sm:$0xff]   ;;  %v16944_v44 = vld [vmem:[#allocation8 + $0xf0] sm:$0xff]  }
  0x6a   : > { %364 = vst [vmem:[#allocation2 + $0x94] sm:$0xf] %v17531_v0  ;;  %365 = vst [vmem:[#allocation2 + $0x98] sm:$0xf] %v17531_v0  ;;  %15471 = vmatprep.subr.bf16.mxu1 %v16905_v13  ;;  %v16942_v45 = vld [vmem:[#allocation8 + $0x88] sm:$0xff]   ;;  %v423_v47 = vld [vmem:[%s17716_s19 + $0x60] sm:$0xff]  }
  0x6b   : > { %366 = vst [vmem:[#allocation2 + $0x9c] sm:$0xf] %v17531_v0  ;;  %367 = vst [vmem:[#allocation2 + $0xa0] sm:$0xf] %v17531_v0  ;;  %v16947_v48 = vld [vmem:[#allocation8 + $0xe8] sm:$0xff]   ;;  %v16948_v50 = vld [vmem:[#allocation8 + $0xe0] sm:$0xff]  }
  0x6c   : > { %368 = vst [vmem:[#allocation2 + $0xa4] sm:$0xf] %v17531_v0  ;;  %369 = vst [vmem:[#allocation2 + $0xa8] sm:$0xf] %v17531_v0  ;;  %15392 = vmatpush3.bf16.msra.mxu0 %v16904_v11  ;;  %v425_v49 = vld [vmem:[%s17716_s19 + $0x68] sm:$0xff]   ;;  %v16951_v51 = vld [vmem:[#allocation8 + $0x80] sm:$0xff]  }
  0x6d   : > { %370 = vst [vmem:[#allocation2 + $0xac] sm:$0xf] %v17531_v0  ;;  %371 = vst [vmem:[#allocation2 + $0xb0] sm:$0xf] %v17531_v0  ;;  %15472 = vmatpush3.bf16.msra.mxu1 %v16905_v13  ;;  %15393 = vmatprep.subr.bf16.mxu0 %v16906_v15  ;;  %v16921_v52 = vld [vmem:[#allocation2 + $0x48] sm:$0xff]   ;;  %v427_v53 = vld [vmem:[%s17716_s19 + $0x70] sm:$0xff]  }
  0x6e   : > { %372 = vst [vmem:[#allocation2 + $0xb4] sm:$0xf] %v17531_v0  ;;  %373 = vst [vmem:[#allocation2 + $0xb8] sm:$0xf] %v17531_v0  ;;  %15473 = vmatprep.subr.bf16.mxu1 %v16907_v17  ;;  %v16952_v55 = vld [vmem:[#allocation8 + $0xd8] sm:$0xff]   ;;  %v16953_v56 = vld [vmem:[#allocation8 + $0xd0] sm:$0xff]  }
  0x6f   : > { %374 = vst [vmem:[#allocation2 + $0xbc] sm:$0xf] %v17531_v0  ;;  %375 = vst [vmem:[#allocation2 + $0xc0] sm:$0xf] %v17531_v0  ;;  %v17893_v57 = vld [vmem:[#allocation8 + $0x138] sm:$0xff]   ;;  %v16956_v60 = vld [vmem:[#allocation8 + $0xc8] sm:$0xff]  }
  0x70   : > { %376 = vst [vmem:[#allocation2 + $0xc4] sm:$0xf] %v17531_v0  ;;  %377 = vst [vmem:[#allocation2 + $0xc8] sm:$0xf] %v17531_v0  ;;  %15394 = vmatpush3.bf16.msra.mxu0 %v16906_v15  ;;  %v16924_v58 = vld [vmem:[#allocation2 + $0x58] sm:$0xff]   ;;  %v16957_v61 = vld [vmem:[#allocation8 + $0xc0] sm:$0xff]  }
  0x71   : > { %378 = vst [vmem:[#allocation2 + $0xcc] sm:$0xf] %v17531_v0  ;;  %379 = vst [vmem:[#allocation2 + $0xd0] sm:$0xf] %v17531_v0  ;;  %15474 = vmatpush3.bf16.msra.mxu1 %v16907_v17  ;;  %15395 = vmatprep.subr.bf16.mxu0 %v16908_v19  ;;  %v16926_v62 = vld [vmem:[#allocation2 + $0x68] sm:$0xff]   ;;  %v17532_v3 = vmov 0.0  }
  0x72   : > { %380 = vst [vmem:[#allocation2 + $0xd4] sm:$0xf] %v17531_v0  ;;  %381 = vst [vmem:[#allocation2 + $0xd8] sm:$0xf] %v17531_v0  ;;  %15475 = vmatprep.subr.bf16.mxu1 %v16909_v21  ;;  %v17896_v2 = vld [vmem:[#allocation2 + $0x88] sm:$0xff]   ;;  %v17968_v5 = vld [vmem:[#allocation2 + $0x98] sm:$0xff]  }
  0x73   : > { %382 = vst [vmem:[#allocation2 + $0xdc] sm:$0xf] %v17531_v0  ;;  %383 = vst [vmem:[#allocation2 + $0xe0] sm:$0xf] %v17531_v0  ;;  %v16991_v13 = vld [vmem:[#allocation8 + $0x178] sm:$0xff]   ;;  %s19411_s16 = scalar_lea.vmem [#allocation11], %s14154_s14 }
  0x74   : > { %384 = vst [vmem:[#allocation2 + $0xe4] sm:$0xf] %v17531_v0  ;;  %385 = vst [vmem:[#allocation2 + $0xe8] sm:$0xf] %v17531_v0  ;;  %15396 = vmatpush3.bf16.msra.mxu0 %v16908_v19  ;;  %v17976_v7 = vld [vmem:[#allocation2 + $0xa8] sm:$0xff]   ;;  %s14565_s15 = sshll.u32 %s17597_s28, 12 }
  0x75   : > { %386 = vst [vmem:[#allocation2 + $0xec] sm:$0xf] %v17531_v0  ;;  %387 = vst [vmem:[#allocation2 + $0xf0] sm:$0xf] %v17531_v0  ;;  %15476 = vmatpush3.bf16.msra.mxu1 %v16909_v21  ;;  %15541 = vmatprep.subr.bf16.mxu0 %v16912_v23  ;;  %v17230_v21 = vld [vmem:[#allocation2] sm:$0xff]   ;;  %s19596_s10 = scalar_lea.hbm %s19650_s7, %s14565_s15  ;;  %s14037_s28 = scalar_lea.sflag [#allocation7], %s17712_s17 }
  0x76   : > { %388 = vst [vmem:[#allocation2 + $0xf4] sm:$0xf] %v17531_v0  ;;  %389 = vst [vmem:[#allocation2 + $0xf8] sm:$0xf] %v17531_v0  ;;  %15621 = vmatprep.subr.bf16.mxu1 %v16943_v42  ;;  %v16939_v9 = vld [vmem:[#allocation2 + $0xb8] sm:$0xff]   ;;  %p19671_p2 = scmp.ne.s32.totalorder %s19663_s11, 0 }
  0x77   : > { %390 = vst [vmem:[#allocation2 + $0xfc] sm:$0xf] %v17531_v0  ;;  %391 = vst [vmem:[#allocation2 + $0x100] sm:$0xf] %v17531_v0  ;;  %15398 = vmatmul.mubr.bf16.vlgmr.msra.gmra.mxu0 %v17876_v25  ;;  %s17533_s21 = smov [#allocation11]  }
  0x78   : > { %392 = vst [vmem:[#allocation2 + $0x104] sm:$0xf] %v17531_v0  ;;  %393 = vst [vmem:[#allocation2 + $0x108] sm:$0xf] %v17531_v0  ;;  %15478 = vmatmul.mubr.bf16.vlgmr.msra.gmra.mxu1 %v17876_v25  ;;  %15542 = vmatpush3.bf16.msra.mxu0 %v16912_v23  ;;  %v16941_v11 = vld [vmem:[#allocation2 + $0xc8] sm:$0xff]   ;;  %s17460_s13 = sshll.u32 %s17533_s21, 4  ;;  %s17461_s13 = int_to_ptr.vmem [resolvable:$false] %s17460_s13 }
  0x79   : > { %394 = vst [vmem:[#allocation2 + $0x10c] sm:$0xf] %v17531_v0  ;;  %395 = vst [vmem:[#allocation2 + $0x110] sm:$0xf] %v17531_v0  ;;  %15543 = vmatprep.subr.bf16.mxu0 %v16917_v27  ;;  %15622 = vmatpush3.bf16.msra.mxu1 %v16943_v42  ;;  %v16989_v42 = vld [vmem:[#allocation8 + $0x108] sm:$0xff]   ;;  %s17462_s14 = scalar_lea.vmem %s17461_s13, 8192 }
  0x7a   : > { %396 = vst [vmem:[#allocation2 + $0x114] sm:$0xf] %v17531_v0  ;;  %397 = vst [vmem:[#allocation2 + $0x118] sm:$0xf] %v17531_v0  ;;  %15623 = vmatprep.subr.bf16.mxu1 %v16944_v44 }
  0x7b   : > { %398 = vst [vmem:[#allocation2 + $0x11c] sm:$0xf] %v17531_v0  ;;  %7118 = vst [vmem:[#allocation3] sm:$0xf] %v17531_v0 }
  0x7c   : > { %7119 = vst [vmem:[#allocation3 + $0x4] sm:$0xf] %v17531_v0  ;;  %7120 = vst [vmem:[#allocation3 + $0x8] sm:$0xf] %v17531_v0  ;;  %15544 = vmatpush3.bf16.msra.mxu0 %v16917_v27  ;;  %v16992_v27 = vld [vmem:[#allocation8 + $0x170] sm:$0xff]  }
  0x7d   : > { %7121 = vst [vmem:[#allocation3 + $0xc] sm:$0xf] %v17531_v0  ;;  %7122 = vst [vmem:[#allocation3 + $0x10] sm:$0xf] %v17531_v0  ;;  %15545 = vmatprep.subr.bf16.mxu0 %v16922_v29  ;;  %15624 = vmatpush3.bf16.msra.mxu1 %v16944_v44  ;;  %v17004_v44 = vld [vmem:[#allocation8 + $0x148] sm:$0xff]  }
  0x7e   : > { %7123 = vst [vmem:[#allocation3 + $0x14] sm:$0xf] %v17531_v0  ;;  %7124 = vst [vmem:[#allocation3 + $0x18] sm:$0xf] %v17531_v0  ;;  %15625 = vmatprep.subr.bf16.mxu1 %v16947_v48  ;;  %v16955_v19 = vld [vmem:[#allocation2 + $0xf8] sm:$0xff]  }
  0x7f   : > { %7125 = vst [vmem:[#allocation3 + $0x1c] sm:$0xf] %v17531_v0  ;;  %7126 = vst [vmem:[#allocation3 + $0x20] sm:$0xf] %v17531_v0 }
  0x80   : > { %7127 = vst [vmem:[#allocation3 + $0x24] sm:$0xf] %v17531_v0  ;;  %7128 = vst [vmem:[#allocation3 + $0x28] sm:$0xf] %v17531_v0  ;;  %15546 = vmatpush3.bf16.msra.mxu0 %v16922_v29  ;;  %v16962_v29 = vld [vmem:[#allocation2 + $0x28] sm:$0xff]  }
  0x81   : > { %7129 = vst [vmem:[#allocation3 + $0x2c] sm:$0xf] %v17531_v0  ;;  %7130 = vst [vmem:[#allocation3 + $0x30] sm:$0xf] %v17531_v0  ;;  %15547 = vmatprep.subr.bf16.mxu0 %v16927_v34  ;;  %15626 = vmatpush3.bf16.msra.mxu1 %v16947_v48  ;;  %v17235_v48 = vld [vmem:[#allocation2 + $0x38] sm:$0xff]  }
  0x82   : > { %7131 = vst [vmem:[#allocation3 + $0x34] sm:$0xf] %v17531_v0  ;;  %7132 = vst [vmem:[#allocation3 + $0x38] sm:$0xf] %v17531_v0  ;;  %15627 = vmatprep.subr.bf16.mxu1 %v16948_v50 }
  0x83   : > { %7133 = vst [vmem:[#allocation3 + $0x3c] sm:$0xf] %v17531_v0  ;;  %7134 = vst [vmem:[#allocation3 + $0x40] sm:$0xf] %v17531_v0 }
  0x84   : > { %7135 = vst [vmem:[#allocation3 + $0x44] sm:$0xf] %v17531_v0  ;;  %7136 = vst [vmem:[#allocation3 + $0x48] sm:$0xf] %v17531_v0  ;;  %15548 = vmatpush3.bf16.msra.mxu0 %v16927_v34  ;;  %v17231_v34 = vld [vmem:[#allocation2 + $0x18] sm:$0xff]  }
  0x85   : > { %7137 = vst [vmem:[#allocation3 + $0x4c] sm:$0xf] %v17531_v0  ;;  %7138 = vst [vmem:[#allocation3 + $0x50] sm:$0xf] %v17531_v0  ;;  %15549 = vmatprep.subr.bf16.mxu0 %v16932_v36  ;;  %15628 = vmatpush3.bf16.msra.mxu1 %v16948_v50  ;;  %v16970_v50 = vld [vmem:[#allocation2 + $0x58] sm:$0xff]  }
  0x86   : > { %7139 = vst [vmem:[#allocation3 + $0x54] sm:$0xf] %v17531_v0  ;;  %7140 = vst [vmem:[#allocation3 + $0x58] sm:$0xf] %v17531_v0  ;;  %15629 = vmatprep.subr.bf16.mxu1 %v16952_v55 }
  0x87   : > { %7141 = vst [vmem:[#allocation3 + $0x5c] sm:$0xf] %v17531_v0  ;;  %7142 = vst [vmem:[#allocation3 + $0x60] sm:$0xf] %v17531_v0 }
  0x88   : > { %7143 = vst [vmem:[#allocation3 + $0x64] sm:$0xf] %v17531_v0  ;;  %7144 = vst [vmem:[#allocation3 + $0x68] sm:$0xf] %v17531_v0  ;;  %15550 = vmatpush3.bf16.msra.mxu0 %v16932_v36  ;;  %v17000_v36 = vld [vmem:[#allocation8 + $0x158] sm:$0xff]  }
  0x89   : > { %7145 = vst [vmem:[#allocation3 + $0x6c] sm:$0xf] %v17531_v0  ;;  %7146 = vst [vmem:[#allocation3 + $0x70] sm:$0xf] %v17531_v0  ;;  %15551 = vmatprep.subr.bf16.mxu0 %v16937_v41  ;;  %15630 = vmatpush3.bf16.msra.mxu1 %v16952_v55  ;;  %v16972_v55 = vld [vmem:[#allocation2 + $0x68] sm:$0xff]  }
  0x8a   : > { %7147 = vst [vmem:[#allocation3 + $0x74] sm:$0xf] %v17531_v0  ;;  %7148 = vst [vmem:[#allocation3 + $0x78] sm:$0xf] %v17531_v0  ;;  %15631 = vmatprep.subr.bf16.mxu1 %v16953_v56 }
  0x8b   : > { %7149 = vst [vmem:[#allocation3 + $0x7c] sm:$0xf] %v17531_v0  ;;  %7150 = vst [vmem:[#allocation3 + $0x80] sm:$0xf] %v17531_v0 }
  0x8c   : > { %7151 = vst [vmem:[#allocation3 + $0x84] sm:$0xf] %v17531_v0  ;;  %7152 = vst [vmem:[#allocation3 + $0x88] sm:$0xf] %v17531_v0  ;;  %15552 = vmatpush3.bf16.msra.mxu0 %v16937_v41 }
  0x8d   : > { %7153 = vst [vmem:[#allocation3 + $0x8c] sm:$0xf] %v17531_v0  ;;  %7154 = vst [vmem:[#allocation3 + $0x90] sm:$0xf] %v17531_v0  ;;  %15553 = vmatprep.subr.bf16.mxu0 %v16942_v45  ;;  %15632 = vmatpush3.bf16.msra.mxu1 %v16953_v56 }
  0x8e   : > { %7155 = vst [vmem:[#allocation3 + $0x94] sm:$0xf] %v17531_v0  ;;  %7156 = vst [vmem:[#allocation3 + $0x98] sm:$0xf] %v17531_v0  ;;  %15633 = vmatprep.subr.bf16.mxu1 %v16956_v60 }
  0x8f   : > { %7157 = vst [vmem:[#allocation3 + $0x9c] sm:$0xf] %v17531_v0  ;;  %7158 = vst [vmem:[#allocation3 + $0xa0] sm:$0xf] %v17531_v0 }
  0x90   : > { %7159 = vst [vmem:[#allocation3 + $0xa4] sm:$0xf] %v17531_v0  ;;  %7160 = vst [vmem:[#allocation3 + $0xa8] sm:$0xf] %v17531_v0  ;;  %15554 = vmatpush3.bf16.msra.mxu0 %v16942_v45 }
  0x91   : > { %7161 = vst [vmem:[#allocation3 + $0xac] sm:$0xf] %v17531_v0  ;;  %7162 = vst [vmem:[#allocation3 + $0xb0] sm:$0xf] %v17531_v0  ;;  %15555 = vmatprep.subr.bf16.mxu0 %v16951_v51  ;;  %15634 = vmatpush3.bf16.msra.mxu1 %v16956_v60 }
  0x92   : > { %7163 = vst [vmem:[#allocation3 + $0xb4] sm:$0xf] %v17531_v0  ;;  %7164 = vst [vmem:[#allocation3 + $0xb8] sm:$0xf] %v17531_v0  ;;  %15635 = vmatprep.subr.bf16.mxu1 %v16957_v61 }
  0x93   : > { %7165 = vst [vmem:[#allocation3 + $0xbc] sm:$0xf] %v17531_v0  ;;  %7166 = vst [vmem:[#allocation3 + $0xc0] sm:$0xf] %v17531_v0 }
  0x94   : > { %7167 = vst [vmem:[#allocation3 + $0xc4] sm:$0xf] %v17531_v0  ;;  %7168 = vst [vmem:[#allocation3 + $0xc8] sm:$0xf] %v17531_v0  ;;  %15556 = vmatpush3.bf16.msra.mxu0 %v16951_v51  ;;  %v17006_v51 = vld [vmem:[#allocation8 + $0x1b8] sm:$0xff]  }
  0x95   : > { %7169 = vst [vmem:[#allocation3 + $0xcc] sm:$0xf] %v17531_v0  ;;  %7170 = vst [vmem:[#allocation3 + $0xd0] sm:$0xf] %v17531_v0  ;;  %15701 = vmatprep.subr.bf16.mxu0 %v17893_v57  ;;  %15636 = vmatpush3.bf16.msra.mxu1 %v16957_v61  ;;  %v17241_v61 = vld [vmem:[#allocation2 + $0x68] sm:$0xff]  }
  0x96   : > { %7171 = vst [vmem:[#allocation3 + $0xd4] sm:$0xf] %v17531_v0  ;;  %7172 = vst [vmem:[#allocation3 + $0xd8] sm:$0xf] %v17531_v0  ;;  %15781 = vmatprep.subr.bf16.mxu1 %v16991_v13 }
  0x97   : > { %7173 = vst [vmem:[#allocation3 + $0xdc] sm:$0xf] %v17531_v0  ;;  %7174 = vst [vmem:[#allocation3 + $0xe0] sm:$0xf] %v17531_v0 }
  0x98   : > { %7175 = vst [vmem:[#allocation3 + $0xe4] sm:$0xf] %v17531_v0  ;;  %7176 = vst [vmem:[#allocation3 + $0xe8] sm:$0xf] %v17531_v0 }
  0x99   : > { %7177 = vst [vmem:[#allocation3 + $0xec] sm:$0xf] %v17531_v0  ;;  %7178 = vst [vmem:[#allocation3 + $0xf0] sm:$0xf] %v17531_v0 }
  0x9a   : > { %7179 = vst [vmem:[#allocation3 + $0xf4] sm:$0xf] %v17531_v0  ;;  %7180 = vst [vmem:[#allocation3 + $0xf8] sm:$0xf] %v17531_v0 }
  0x9b   : > { %7181 = vst [vmem:[#allocation3 + $0xfc] sm:$0xf] %v17531_v0  ;;  %7182 = vst [vmem:[#allocation3 + $0x100] sm:$0xf] %v17531_v0 }
  0x9c   : > { %7183 = vst [vmem:[#allocation3 + $0x104] sm:$0xf] %v17531_v0  ;;  %7184 = vst [vmem:[#allocation3 + $0x108] sm:$0xf] %v17531_v0 }
  0x9d   : > { %7185 = vst [vmem:[#allocation3 + $0x10c] sm:$0xf] %v17531_v0  ;;  %7186 = vst [vmem:[#allocation3 + $0x110] sm:$0xf] %v17531_v0 }
  0x9e   : > { %7187 = vst [vmem:[#allocation3 + $0x114] sm:$0xf] %v17531_v0  ;;  %7188 = vst [vmem:[#allocation3 + $0x118] sm:$0xf] %v17531_v0 }
  0x9f   : > { %7189 = vst [vmem:[#allocation3 + $0x11c] sm:$0xf] %v17531_v0  ;;  %432 = vst [vmem:[#allocation2 + $0x10] sm:$0xff] %v399_v14   ;;  %v16929_v0 = vld [vmem:[#allocation2 + $0x78] sm:$0xff]  }
  0xa0   : > { %434 = vst [vmem:[#allocation2 + $0x20] sm:$0xff] %v401_v16   ;;  %436 = vst [vmem:[#allocation2 + $0x30] sm:$0xff] %v403_v18   ;;  %v16946_v14 = vld [vmem:[#allocation2 + $0xd8] sm:$0xff]   ;;  %v16950_v16 = vld [vmem:[#allocation2 + $0xe8] sm:$0xff]  }
  0xa1   : > { %438 = vst [vmem:[#allocation2 + $0x40] sm:$0xff] %v405_v20   ;;  %440 = vst [vmem:[#allocation2 + $0x50] sm:$0xff] %v407_v22   ;;  %v429_v18 = vld [vmem:[%s17716_s19 + $0x78] sm:$0xff]   ;;  %s14050_s19 = sshll.u32 %s19411_s16, 4  ;;  %s19598_s19 = int_to_ptr.vmem [resolvable:$true] %s14050_s19 }
  0xa2   : > { %442 = vst [vmem:[#allocation2 + $0x60] sm:$0xff] %v409_v24   ;;  %444 = vst [vmem:[#allocation2 + $0x70] sm:$0xff] %v411_v28   ;;  %v16960_v22 = vld [vmem:[#allocation2 + $0x18] sm:$0xff]   ;;  %v16964_v24 = vld [vmem:[#allocation8 + $0x130] sm:$0xff]   ;;  %s17456_s29 = scalar_lea.vmem %s19598_s19, 4096  ;;  %p17463_p13 = scmp.lt.s32.totalorder %s19598_s19, %s17461_s13 }
  0xa3   : > { %446 = vst [vmem:[#allocation2 + $0x80] sm:$0xff] %v413_v30   ;;  %448 = vst [vmem:[#allocation2 + $0x90] sm:$0xff] %v415_v33   ;;  %v16969_v28 = vld [vmem:[#allocation8 + $0x128] sm:$0xff]   ;;  %v16996_v33 = vld [vmem:[#allocation8 + $0x160] sm:$0xff]   ;;  %p17457_p5 = scmp.ne.s32.totalorder %s19598_s19, %s17456_s29  ;;  %p17464_p0 = scmp.lt.s32.totalorder %s17462_s14, %s17456_s29 }
  0xa4   : > { %450 = vst [vmem:[#allocation2 + $0xa0] sm:$0xff] %v417_v35   ;;  %452 = vst [vmem:[#allocation2 + $0xb0] sm:$0xff] %v419_v37   ;;  %v16995_v30 = vld [vmem:[#allocation8 + $0x168] sm:$0xff]   ;;  %v16979_v35 = vld [vmem:[#allocation8 + $0x118] sm:$0xff]  }
  0xa5   : > { %454 = vst [vmem:[#allocation2 + $0xc0] sm:$0xff] %v421_v39   ;;  %456 = vst [vmem:[#allocation2 + $0xd0] sm:$0xff] %v423_v47   ;;  %v17001_v39 = vld [vmem:[#allocation8 + $0x150] sm:$0xff]   ;;  %v17005_v47 = vld [vmem:[#allocation8 + $0x140] sm:$0xff]   ;;  %p17458_p7 = pnand %p17457_p5, %p19671_p2  ;;  %p17465_p10 = por %p17464_p0, %p17463_p13 }
  0xa6   : > { %v17878_v26 = vld [vmem:[#allocation2 + $0x10] sm:$0xff]   ;;  %458 = vst [vmem:[#allocation2 + $0xe0] sm:$0xff] %v425_v49   ;;  %460 = vst [vmem:[#allocation2 + $0xf0] sm:$0xff] %v427_v53   ;;  %v17237_v53 = vld [vmem:[#allocation2 + $0x48] sm:$0xff]  }
  0xa7   : > { %15401 = vmatprep.mubr.bf16.mxu0 %v17878_v26  ;;  %15481 = vmatprep.mubr.bf16.mxu1 %v17878_v26  ;;  %v16915_v32 = vld [vmem:[#allocation2 + $0x20] sm:$0xff]   ;;  %v16918_v40 = vld [vmem:[#allocation2 + $0x30] sm:$0xff]   ;;  %466 = vst [vmem:[#allocation4 + $0x10] sm:$0xff] %v17532_v3  ;;  %467 = vst [vmem:[#allocation4 + $0x18] sm:$0xff] %v17532_v3  ;;  %p17459_p12 = pneg %p17458_p7 }
  0xa8   : > { %15402 = vmatmul.mubr.bf16.gmra.mxu0 %v16914_v31  ;;  %15482 = vmatmul.mubr.bf16.gmra.mxu1 %v16914_v31  ;;  %v16920_v46 = vld [vmem:[#allocation2 + $0x40] sm:$0xff]   ;;  %v16923_v54 = vld [vmem:[#allocation2 + $0x50] sm:$0xff]   ;;  %464 = vst [vmem:[#allocation4] sm:$0xff] %v17532_v3  ;;  %465 = vst [vmem:[#allocation4 + $0x8] sm:$0xff] %v17532_v3 }
  0xa9   : > { %15405 = vmatprep.mubr.bf16.mxu0 %v16915_v32  ;;  %15485 = vmatprep.mubr.bf16.mxu1 %v16915_v32  ;;  %v16925_v59 = vld [vmem:[#allocation2 + $0x60] sm:$0xff]   ;;  %v16928_v63 = vld [vmem:[#allocation2 + $0x70] sm:$0xff]   ;;  %468 = vst [vmem:[#allocation4 + $0x20] sm:$0xff] %v17532_v3  ;;  %469 = vst [vmem:[#allocation4 + $0x28] sm:$0xff] %v17532_v3  ;;  %p17466_p3 = pnand %p17465_p10, %p17459_p12 }
  0xaa   : > { %v16930_v1 = vld [vmem:[#allocation2 + $0x80] sm:$0xff]   ;;  %470 = vst [vmem:[#allocation4 + $0x30] sm:$0xff] %v17532_v3  ;;  %471 = vst [vmem:[#allocation4 + $0x38] sm:$0xff] %v17532_v3  ;;  %v17962_v4 = vld [vmem:[#allocation2 + $0x90] sm:$0xff]  }
  0xab   : > { %472 = vst [vmem:[#allocation4 + $0x40] sm:$0xff] %v17532_v3  ;;  %473 = vst [vmem:[#allocation4 + $0x48] sm:$0xff] %v17532_v3  ;;  %v17970_v6 = vld [vmem:[#allocation2 + $0xa0] sm:$0xff]   ;;  %v17978_v8 = vld [vmem:[#allocation2 + $0xb0] sm:$0xff]  }
  0xac   : > { %474 = vst [vmem:[#allocation4 + $0x50] sm:$0xff] %v17532_v3  ;;  %475 = vst [vmem:[#allocation4 + $0x58] sm:$0xff] %v17532_v3  ;;  %v16940_v10 = vld [vmem:[#allocation2 + $0xc0] sm:$0xff]   ;;  %v16945_v12 = vld [vmem:[#allocation2 + $0xd0] sm:$0xff]  }
  0xad   : > { %476 = vst [vmem:[#allocation4 + $0x60] sm:$0xff] %v17532_v3  ;;  %477 = vst [vmem:[#allocation4 + $0x68] sm:$0xff] %v17532_v3  ;;  %v16949_v15 = vld [vmem:[#allocation2 + $0xe0] sm:$0xff]   ;;  %v16954_v17 = vld [vmem:[#allocation2 + $0xf0] sm:$0xff]  }
  0xae   : > { %478 = vst [vmem:[#allocation4 + $0x70] sm:$0xff] %v17532_v3  ;;  %479 = vst [vmem:[#allocation4 + $0x78] sm:$0xff] %v17532_v3  ;;  %v16958_v20 = vld [vmem:[#allocation2 + $0x10] sm:$0xff]   ;;  %v16961_v23 = vld [vmem:[#allocation2 + $0x20] sm:$0xff]  }
  0xaf   : > { %480 = vst [vmem:[#allocation4 + $0x80] sm:$0xff] %v17532_v3  ;;  %481 = vst [vmem:[#allocation4 + $0x88] sm:$0xff] %v17532_v3  ;;  %v16963_v31 = vld [vmem:[#allocation2 + $0x30] sm:$0xff]   ;;  %v16974_v32 = vld [vmem:[#allocation8 + $0x120] sm:$0xff]  }
  0xb0   : > { %15406 = vmatmul.mubr.bf16.gmra.mxu0 %v16916_v38  ;;  %15486 = vmatmul.mubr.bf16.gmra.mxu1 %v16916_v38  ;;  %482 = vst [vmem:[#allocation4 + $0x90] sm:$0xff] %v17532_v3  ;;  %483 = vst [vmem:[#allocation4 + $0x98] sm:$0xff] %v17532_v3  ;;  %v16966_v37 = vld [vmem:[#allocation2 + $0x40] sm:$0xff]   ;;  %v16984_v38 = vld [vmem:[#allocation8 + $0x110] sm:$0xff]  }
  0xb1   : > { %15409 = vmatprep.mubr.bf16.mxu0 %v16918_v40  ;;  %15489 = vmatprep.mubr.bf16.mxu1 %v16918_v40  ;;  %484 = vst [vmem:[#allocation4 + $0xa0] sm:$0xff] %v17532_v3  ;;  %485 = vst [vmem:[#allocation4 + $0xa8] sm:$0xff] %v17532_v3  ;;  %v17233_v40 = vld [vmem:[#allocation2 + $0x28] sm:$0xff]   ;;  %v17234_v41 = vld [vmem:[#allocation2 + $0x30] sm:$0xff]  }
  0xb2   : > { %486 = vst [vmem:[#allocation4 + $0xb0] sm:$0xff] %v17532_v3  ;;  %487 = vst [vmem:[#allocation4 + $0xb8] sm:$0xff] %v17532_v3  ;;  %v16968_v45 = vld [vmem:[#allocation2 + $0x50] sm:$0xff]   ;;  %v17236_v49 = vld [vmem:[#allocation2 + $0x40] sm:$0xff]  }
  0xb3   : > { %488 = vst [vmem:[#allocation4 + $0xc0] sm:$0xff] %v17532_v3  ;;  %489 = vst [vmem:[#allocation4 + $0xc8] sm:$0xff] %v17532_v3  ;;  %v16973_v56 = vld [vmem:[#allocation2 + $0x70] sm:$0xff]   ;;  %v16976_v60 = vld [vmem:[#allocation2 + $0x80] sm:$0xff]  }
  0xb4   : > { %490 = vst [vmem:[#allocation4 + $0xd0] sm:$0xff] %v17532_v3  ;;  %491 = vst [vmem:[#allocation4 + $0xd8] sm:$0xff] %v17532_v3 }
  0xb5   : > { %492 = vst [vmem:[#allocation4 + $0xe0] sm:$0xff] %v17532_v3  ;;  %493 = vst [vmem:[#allocation4 + $0xe8] sm:$0xff] %v17532_v3 }
  0xb6   : > { %494 = vst [vmem:[#allocation4 + $0xf0] sm:$0xff] %v17532_v3  ;;  %495 = vst [vmem:[#allocation4 + $0xf8] sm:$0xff] %v17532_v3 }
  0xb7   : > { %496 = vst [vmem:[#allocation4 + $0x100] sm:$0xff] %v17532_v3  ;;  %497 = vst [vmem:[#allocation4 + $0x108] sm:$0xff] %v17532_v3 }
  0xb8   : > { %15410 = vmatmul.mubr.bf16.gmra.mxu0 %v16919_v43  ;;  %15490 = vmatmul.mubr.bf16.gmra.mxu1 %v16919_v43  ;;  %498 = vst [vmem:[#allocation4 + $0x110] sm:$0xff] %v17532_v3  ;;  %499 = vst [vmem:[#allocation4 + $0x118] sm:$0xff] %v17532_v3  ;;  %v16967_v43 = vld [vmem:[#allocation2 + $0x48] sm:$0xff]  }
  0xb9   : > { %15413 = vmatprep.mubr.bf16.mxu0 %v16920_v46  ;;  %15493 = vmatprep.mubr.bf16.mxu1 %v16920_v46  ;;  %500 = vst [vmem:[#allocation4 + $0x120] sm:$0xff] %v17532_v3  ;;  %501 = vst [vmem:[#allocation4 + $0x128] sm:$0xff] %v17532_v3  ;;  %v16998_v46 = vld [vmem:[#allocation8 + $0x100] sm:$0xff]  }
  0xba   : > { %502 = vst [vmem:[#allocation4 + $0x130] sm:$0xff] %v17532_v3  ;;  %503 = vst [vmem:[#allocation4 + $0x138] sm:$0xff] %v17532_v3 }
  0xbb   : > { %504 = vst [vmem:[#allocation4 + $0x140] sm:$0xff] %v17532_v3  ;;  %505 = vst [vmem:[#allocation4 + $0x148] sm:$0xff] %v17532_v3 }
  0xbc   : > { %506 = vst [vmem:[#allocation4 + $0x150] sm:$0xff] %v17532_v3  ;;  %507 = vst [vmem:[#allocation4 + $0x158] sm:$0xff] %v17532_v3 }
  0xbd   : > { %508 = vst [vmem:[#allocation4 + $0x160] sm:$0xff] %v17532_v3  ;;  %509 = vst [vmem:[#allocation4 + $0x168] sm:$0xff] %v17532_v3 }
  0xbe   : > { %510 = vst [vmem:[#allocation4 + $0x170] sm:$0xff] %v17532_v3  ;;  %511 = vst [vmem:[#allocation4 + $0x178] sm:$0xff] %v17532_v3 }
  0xbf   : > { %512 = vst [vmem:[#allocation4 + $0x180] sm:$0xff] %v17532_v3  ;;  %513 = vst [vmem:[#allocation4 + $0x188] sm:$0xff] %v17532_v3 }
  0xc0   : > { %15414 = vmatmul.mubr.bf16.gmra.mxu0 %v16921_v52  ;;  %15494 = vmatmul.mubr.bf16.gmra.mxu1 %v16921_v52  ;;  %514 = vst [vmem:[#allocation4 + $0x190] sm:$0xff] %v17532_v3  ;;  %515 = vst [vmem:[#allocation4 + $0x198] sm:$0xff] %v17532_v3  ;;  %v16971_v52 = vld [vmem:[#allocation2 + $0x60] sm:$0xff]  }
  0xc1   : > { %15417 = vmatprep.mubr.bf16.mxu0 %v16923_v54  ;;  %15497 = vmatprep.mubr.bf16.mxu1 %v16923_v54  ;;  %516 = vst [vmem:[#allocation4 + $0x1a0] sm:$0xff] %v17532_v3  ;;  %517 = vst [vmem:[#allocation4 + $0x1a8] sm:$0xff] %v17532_v3  ;;  %v17238_v54 = vld [vmem:[#allocation2 + $0x50] sm:$0xff]  }
  0xc2   : > { %518 = vst [vmem:[#allocation4 + $0x1b0] sm:$0xff] %v17532_v3  ;;  %519 = vst [vmem:[#allocation4 + $0x1b8] sm:$0xff] %v17532_v3 }
  0xc3   : > { %520 = vst [vmem:[#allocation4 + $0x1c0] sm:$0xff] %v17532_v3  ;;  %521 = vst [vmem:[#allocation4 + $0x1c8] sm:$0xff] %v17532_v3 }
  0xc4   : > { %522 = vst [vmem:[#allocation4 + $0x1d0] sm:$0xff] %v17532_v3  ;;  %523 = vst [vmem:[#allocation4 + $0x1d8] sm:$0xff] %v17532_v3 }
  0xc5   : > { %524 = vst [vmem:[#allocation4 + $0x1e0] sm:$0xff] %v17532_v3  ;;  %525 = vst [vmem:[#allocation4 + $0x1e8] sm:$0xff] %v17532_v3 }
  0xc6   : > { %526 = vst [vmem:[#allocation4 + $0x1f0] sm:$0xff] %v17532_v3  ;;  %527 = vst [vmem:[#allocation4 + $0x1f8] sm:$0xff] %v17532_v3 }
  0xc7   : > { %462 = vst [vmem:[#allocation2 + $0x100] sm:$0xff] %v429_v18  }
  0xc8   : > { %15418 = vmatmul.mubr.bf16.gmra.mxu0 %v16924_v58  ;;  %15498 = vmatmul.mubr.bf16.gmra.mxu1 %v16924_v58  ;;  %v17240_v58 = vld [vmem:[#allocation2 + $0x60] sm:$0xff]  }
  0xc9   : > { %15421 = vmatprep.mubr.bf16.mxu0 %v16925_v59  ;;  %15501 = vmatprep.mubr.bf16.mxu1 %v16925_v59  ;;  %v16975_v59 = vld [vmem:[#allocation2 + $0x78] sm:$0xff]  }
  0xd0   : > { %15422 = vmatmul.mubr.bf16.gmra.mxu0 %v16926_v62  ;;  %15502 = vmatmul.mubr.bf16.gmra.mxu1 %v16926_v62  ;;  %v17242_v62 = vld [vmem:[#allocation2 + $0x70] sm:$0xff]  }
  0xd1   : > { %15425 = vmatprep.mubr.bf16.mxu0 %v16928_v63  ;;  %15505 = vmatprep.mubr.bf16.mxu1 %v16928_v63  ;;  %v16977_v63 = vld [vmem:[#allocation2 + $0x88] sm:$0xff]  }
  0xd8   : > { %15426 = vmatmul.mubr.bf16.gmra.mxu0 %v16929_v0  ;;  %15506 = vmatmul.mubr.bf16.gmra.mxu1 %v16929_v0  ;;  %v16978_v0 = vld [vmem:[#allocation2 + $0x90] sm:$0xff]  }
  0xd9   : > { %15429 = vmatprep.mubr.bf16.mxu0 %v16930_v1  ;;  %15509 = vmatprep.mubr.bf16.mxu1 %v16930_v1  ;;  %v17243_v1 = vld [vmem:[#allocation2 + $0x78] sm:$0xff]  }
  0xe0   : > { %15430 = vmatmul.mubr.bf16.gmra.mxu0 %v17896_v2  ;;  %15510 = vmatmul.mubr.bf16.gmra.mxu1 %v17896_v2  ;;  %v17244_v2 = vld [vmem:[#allocation2 + $0x80] sm:$0xff]  }
  0xe1   : > { %15433 = vmatprep.mubr.bf16.mxu0 %v17962_v4  ;;  %15513 = vmatprep.mubr.bf16.mxu1 %v17962_v4 }
  0xe8   : > { %15434 = vmatmul.mubr.bf16.gmra.mxu0 %v17968_v5  ;;  %15514 = vmatmul.mubr.bf16.gmra.mxu1 %v17968_v5 }
  0xe9   : > { %15437 = vmatprep.mubr.bf16.mxu0 %v17970_v6  ;;  %15517 = vmatprep.mubr.bf16.mxu1 %v17970_v6 }
  0xf0   : > { %15438 = vmatmul.mubr.bf16.gmra.mxu0 %v17976_v7  ;;  %15518 = vmatmul.mubr.bf16.gmra.mxu1 %v17976_v7 }
  0xf1   : > { %15441 = vmatprep.mubr.bf16.mxu0 %v17978_v8  ;;  %15521 = vmatprep.mubr.bf16.mxu1 %v17978_v8 }
  0xf8   : > { %15442 = vmatmul.mubr.bf16.gmra.mxu0 %v16939_v9  ;;  %15522 = vmatmul.mubr.bf16.gmra.mxu1 %v16939_v9  ;;  %v16980_v9 = vld [vmem:[#allocation2 + $0x98] sm:$0xff]  }
  0xf9   : > { %15445 = vmatprep.mubr.bf16.mxu0 %v16940_v10  ;;  %15525 = vmatprep.mubr.bf16.mxu1 %v16940_v10  ;;  %v1139_v10 = vld [vmem:[#allocation4 + $0x11] sm:$0xff] }
 0x100   : > { %15446 = vmatmul.mubr.bf16.gmra.mxu0 %v16941_v11  ;;  %15526 = vmatmul.mubr.bf16.gmra.mxu1 %v16941_v11  ;;  %v16981_v11 = vld [vmem:[#allocation2 + $0xa0] sm:$0xff]  }
 0x101   : > { %15449 = vmatprep.mubr.bf16.mxu0 %v16945_v12  ;;  %15529 = vmatprep.mubr.bf16.mxu1 %v16945_v12  ;;  %v1137_v12 = vld [vmem:[#allocation4 + $0x1] sm:$0xff] }
 0x108   : > { %15450 = vmatmul.mubr.bf16.gmra.mxu0 %v16946_v14  ;;  %15530 = vmatmul.mubr.bf16.gmra.mxu1 %v16946_v14  ;;  %v17245_v14 = vld [vmem:[#allocation2 + $0x88] sm:$0xff]  }
 0x109   : > { %15453 = vmatprep.mubr.bf16.mxu0 %v16949_v15  ;;  %15533 = vmatprep.mubr.bf16.mxu1 %v16949_v15  ;;  %v1140_v15 = vld [vmem:[#allocation4 + $0x19] sm:$0xff] }
 0x110   : > { %15454 = vmatmul.mubr.bf16.gmra.mxu0 %v16950_v16  ;;  %15534 = vmatmul.mubr.bf16.gmra.mxu1 %v16950_v16 }
 0x111   : > { %15457 = vmatprep.mubr.bf16.mxu0 %v16954_v17  ;;  %15537 = vmatprep.mubr.bf16.mxu1 %v16954_v17 }
 0x118   : > { %15458 = vmatmul.mubr.bf16.gmra.mxu0 %v16955_v19  ;;  %15538 = vmatmul.mubr.bf16.gmra.mxu1 %v16955_v19  ;;  %v1138_v19 = vld [vmem:[#allocation4 + $0x9] sm:$0xff] }
 0x119   : > { %15557 = vmatprep.mubr.bf16.mxu0 %v17230_v21  ;;  %15637 = vmatprep.mubr.bf16.mxu1 %v16958_v20 }
 0x120   : > { %15558 = vmatmul.mubr.bf16.vlgmr.msra.gmra.mxu0 %v17876_v25  ;;  %15638 = vmatmul.mubr.bf16.vlgmr.msra.gmra.mxu1 %v16960_v22  ;;  %v17232_v25 = vld [vmem:[#allocation2 + $0x20] sm:$0xff]   ;;  %v16982_v22 = vld [vmem:[#allocation2 + $0xa8] sm:$0xff]  }
 0x121   : > { %15702 = vmatpush3.bf16.msra.mxu0 %v17893_v57  ;;  %15561 = vmatprep.mubr.bf16.mxu0 %v17878_v26  ;;  %v16965_v26 = vld [vmem:[#allocation2 + $0x38] sm:$0xff]  }
 0x122   : > { %15641 = vmatprep.mubr.bf16.mxu1 %v16961_v23  ;;  %15703 = vmatprep.subr.bf16.mxu0 %v16964_v24  ;;  %v17239_v57 = vld [vmem:[#allocation2 + $0x58] sm:$0xff]  }
 0x123   : > { %15782 = vmatpush3.bf16.msra.mxu1 %v16991_v13 }
 0x124   : > { %15783 = vmatprep.subr.bf16.mxu1 %v16992_v27 }
 0x125   : > { %15704 = vmatpush3.bf16.msra.mxu0 %v16964_v24  ;;  %v1143_v24 = vld [vmem:[#allocation4 + $0x31] sm:$0xff] }
 0x126   : > { %15705 = vmatprep.subr.bf16.mxu0 %v16969_v28 }
 0x127   : > { %15784 = vmatpush3.bf16.msra.mxu1 %v16992_v27  ;;  %v16983_v27 = vld [vmem:[#allocation2 + $0xb0] sm:$0xff]  }
 0x128   : > { %15562 = vmatmul.mubr.bf16.gmra.mxu0 %v17231_v34  ;;  %15785 = vmatprep.subr.bf16.mxu1 %v16995_v30 }
 0x129   : > { %15642 = vmatmul.mubr.bf16.gmra.mxu1 %v16962_v29  ;;  %15565 = vmatprep.mubr.bf16.mxu0 %v17232_v25 }
 0x12a   : > { %15645 = vmatprep.mubr.bf16.mxu1 %v16963_v31  ;;  %15706 = vmatpush3.bf16.msra.mxu0 %v16969_v28 }
 0x12b   : > { %15707 = vmatprep.subr.bf16.mxu0 %v16974_v32  ;;  %15786 = vmatpush3.bf16.msra.mxu1 %v16995_v30 }
 0x12c   : > { %15787 = vmatprep.subr.bf16.mxu1 %v16996_v33 }
 0x12e   : > { %15708 = vmatpush3.bf16.msra.mxu0 %v16974_v32 }
 0x12f   : > { %15709 = vmatprep.subr.bf16.mxu0 %v16979_v35  ;;  %15788 = vmatpush3.bf16.msra.mxu1 %v16996_v33  ;;  %v1141_v33 = vld [vmem:[#allocation4 + $0x21] sm:$0xff] }
 0x130   : > { %15566 = vmatmul.mubr.bf16.gmra.mxu0 %v17233_v40  ;;  %15789 = vmatprep.subr.bf16.mxu1 %v17000_v36 }
 0x131   : > { %15646 = vmatmul.mubr.bf16.gmra.mxu1 %v16965_v26  ;;  %15569 = vmatprep.mubr.bf16.mxu0 %v17234_v41 }
 0x132   : > { %15649 = vmatprep.mubr.bf16.mxu1 %v16966_v37  ;;  %15710 = vmatpush3.bf16.msra.mxu0 %v16979_v35 }
 0x133   : > { %15711 = vmatprep.subr.bf16.mxu0 %v16984_v38  ;;  %15790 = vmatpush3.bf16.msra.mxu1 %v17000_v36  ;;  %v1142_v36 = vld [vmem:[#allocation4 + $0x29] sm:$0xff] }
 0x134   : > { %15791 = vmatprep.subr.bf16.mxu1 %v17001_v39 }
 0x136   : > { %15712 = vmatpush3.bf16.msra.mxu0 %v16984_v38 }
 0x137   : > { %15713 = vmatprep.subr.bf16.mxu0 %v16989_v42  ;;  %15792 = vmatpush3.bf16.msra.mxu1 %v17001_v39  ;;  %v15399_v13 = vpop.f32.mrf.mxu0  ;;  %v16985_v39 = vld [vmem:[#allocation2 + $0xb8] sm:$0xff]  }
 0x138   : > { %15570 = vmatmul.mubr.bf16.gmra.mxu0 %v17235_v48  ;;  %15793 = vmatprep.subr.bf16.mxu1 %v17004_v44  ;;  %v1203_v16 = vadd.f32 %v15399_v13, %v1139_v10  ;;  %v15479_v17 = vpop.f32.mrf.mxu1  ;;  %v1145_v48 = vld [vmem:[#allocation4 + $0x41] sm:$0xff]  ;;  %v16988_v13 = vld [vmem:[#allocation2 + $0xd0] sm:$0xff]  }
 0x139   : > { %15650 = vmatmul.mubr.bf16.gmra.mxu1 %v16967_v43  ;;  %15573 = vmatprep.mubr.bf16.mxu0 %v17236_v49  ;;  %v882_v18 = vpop.f32.mrf.mxu0  ;;  %v16986_v43 = vld [vmem:[#allocation2 + $0xc0] sm:$0xff]  }
 0x13a   : > { %15653 = vmatprep.mubr.bf16.mxu1 %v16968_v45  ;;  %15714 = vmatpush3.bf16.msra.mxu0 %v16989_v42  ;;  %1267 = vst [vmem:[#allocation4 + $0x11] sm:$0xff] %v1203_v16  ;;  %v1201_v20 = vadd.f32 %v1137_v12, %v882_v18  ;;  %v1428_v21 = vpop.f32.mrf.mxu1  ;;  %v1147_v42 = vld [vmem:[#allocation4 + $0x51] sm:$0xff] }
 0x13b   : > { %15715 = vmatprep.subr.bf16.mxu0 %v16998_v46  ;;  %15794 = vmatpush3.bf16.msra.mxu1 %v17004_v44  ;;  %v15400_v23 = vpop.f32.mrf.mxu0 }
 0x13c   : > { %15795 = vmatprep.subr.bf16.mxu1 %v17005_v47  ;;  %1265 = vst [vmem:[#allocation4 + $0x1] sm:$0xff] %v1201_v20  ;;  %v1204_v28 = vadd.f32 %v15400_v23, %v1140_v15  ;;  %v15480_v29 = vpop.f32.mrf.mxu1  ;;  %v1149_v20 = vld [vmem:[#allocation4 + $0x61] sm:$0xff] }
 0x13d   : > { %v885_v30 = vpop.f32.mrf.mxu0 }
 0x13e   : > { %15716 = vmatpush3.bf16.msra.mxu0 %v16998_v46  ;;  %1268 = vst [vmem:[#allocation4 + $0x19] sm:$0xff] %v1204_v28  ;;  %v1202_v31 = vadd.f32 %v1138_v19, %v885_v30  ;;  %v1431_v32 = vpop.f32.mrf.mxu1  ;;  %v17246_v19 = vld [vmem:[#allocation2 + $0xb8] sm:$0xff]   ;;  %v1150_v30 = vld [vmem:[#allocation4 + $0x69] sm:$0xff] }
 0x13f   : > { %15796 = vmatpush3.bf16.msra.mxu1 %v17005_v47  ;;  %15861 = vmatprep.subr.bf16.mxu0 %v17006_v51 }
 0x140   : > { %15574 = vmatmul.mubr.bf16.gmra.mxu0 %v17237_v53  ;;  %1266 = vst [vmem:[#allocation4 + $0x9] sm:$0xff] %v1202_v31 }
 0x141   : > { %15654 = vmatmul.mubr.bf16.gmra.mxu1 %v16970_v50  ;;  %15577 = vmatprep.mubr.bf16.mxu0 %v17238_v54  ;;  %v1148_v54 = vld [vmem:[#allocation4 + $0x59] sm:$0xff] }
 0x142   : > { %15657 = vmatprep.mubr.bf16.mxu1 %v16971_v52 }
 0x143   : > { %v1683_v40 = vld [vmem:[#allocation4] sm:$0xff] }
 0x145   : > { %v1686_v46 = vld [vmem:[#allocation4 + $0x18] sm:$0xff] }
 0x147   : > { %v1685_v51 = vld [vmem:[#allocation4 + $0x10] sm:$0xff]  ;;  %v1684_v52 = vld [vmem:[#allocation4 + $0x8] sm:$0xff] }
 0x148   : > { %15578 = vmatmul.mubr.bf16.gmra.mxu0 %v17239_v57 }
 0x149   : > { %15658 = vmatmul.mubr.bf16.gmra.mxu1 %v16972_v55  ;;  %15581 = vmatprep.mubr.bf16.mxu0 %v17240_v58  ;;  %v1749_v55 = vadd.f32 %v15479_v17, %v1685_v51 }
 0x14a   : > { %15661 = vmatprep.mubr.bf16.mxu1 %v16973_v56  ;;  %v1748_v56 = vadd.f32 %v1684_v52, %v1431_v32  ;;  %v1156_v52 = vld [vmem:[#allocation4 + $0x99] sm:$0xff] }
 0x14b   : > { %1813 = vst [vmem:[#allocation4 + $0x10] sm:$0xff] %v1749_v55 }
 0x14c   : > { %1812 = vst [vmem:[#allocation4 + $0x8] sm:$0xff] %v1748_v56  ;;  %v16994_v56 = vld [vmem:[#allocation2 + $0xe8] sm:$0xff]  }
 0x150   : > { %15582 = vmatmul.mubr.bf16.gmra.mxu0 %v17241_v61 }
 0x151   : > { %15662 = vmatmul.mubr.bf16.gmra.mxu1 %v16975_v59  ;;  %15585 = vmatprep.mubr.bf16.mxu0 %v17242_v62 }
 0x152   : > { %15665 = vmatprep.mubr.bf16.mxu1 %v16976_v60  ;;  %v1146_v60 = vld [vmem:[#allocation4 + $0x49] sm:$0xff] }
 0x158   : > { %15586 = vmatmul.mubr.bf16.gmra.mxu0 %v17243_v1  ;;  %v1151_v1 = vld [vmem:[#allocation4 + $0x71] sm:$0xff] }
 0x159   : > { %15666 = vmatmul.mubr.bf16.gmra.mxu1 %v16977_v63  ;;  %15589 = vmatprep.mubr.bf16.mxu0 %v17244_v2 }
 0x15a   : > { %15669 = vmatprep.mubr.bf16.mxu1 %v16978_v0 }
 0x160   : > { %15590 = vmatmul.mubr.bf16.gmra.mxu0 %v17245_v14 }
 0x161   : > { %15670 = vmatmul.mubr.bf16.gmra.mxu1 %v16980_v9  ;;  %15593 = vmatprep.mubr.bf16.mxu0 %v17962_v4  ;;  %v1144_v4 = vld [vmem:[#allocation4 + $0x39] sm:$0xff] }
 0x162   : > { %15673 = vmatprep.mubr.bf16.mxu1 %v16981_v11 }
 0x168   : > { %v15403_v34 = vpop.f32.mrf.mxu0  ;;  %15594 = vmatmul.mubr.bf16.gmra.mxu0 %v17968_v5  ;;  %v17990_v26 = vpop.f32.mrf.mxu1  ;;  %v1747_v5 = vadd.f32 %v1683_v40, %v1428_v21 }
 0x169   : > { %v1207_v25 = vadd.f32 %v15403_v34, %v1143_v24  ;;  %15674 = vmatmul.mubr.bf16.gmra.mxu1 %v16982_v22  ;;  %15597 = vmatprep.mubr.bf16.mxu0 %v17970_v6  ;;  %v1750_v6 = vadd.f32 %v15480_v29, %v1686_v46  ;;  %v1152_v29 = vld [vmem:[#allocation4 + $0x79] sm:$0xff]  ;;  %v1153_v46 = vld [vmem:[#allocation4 + $0x81] sm:$0xff] }
 0x16a   : > { %v898_v35 = vpop.f32.mrf.mxu0  ;;  %15677 = vmatprep.mubr.bf16.mxu1 %v16983_v27  ;;  %v1444_v38 = vpop.f32.mrf.mxu1  ;;  %1811 = vst [vmem:[#allocation4] sm:$0xff] %v1747_v5  ;;  %v17247_v27 = vld [vmem:[#allocation2 + $0xc0] sm:$0xff]  }
 0x16b   : > { %1271 = vst [vmem:[#allocation4 + $0x31] sm:$0xff] %v1207_v25  ;;  %v1205_v37 = vadd.f32 %v1141_v33, %v898_v35  ;;  %1814 = vst [vmem:[#allocation4 + $0x18] sm:$0xff] %v1750_v6  ;;  %v16990_v33 = vld [vmem:[#allocation2 + $0xd8] sm:$0xff]  }
 0x16c   : > { %v15404_v41 = vpop.f32.mrf.mxu0  ;;  %v15484_v45 = vpop.f32.mrf.mxu1 }
 0x16d   : > { %1269 = vst [vmem:[#allocation4 + $0x21] sm:$0xff] %v1205_v37  ;;  %v1208_v44 = vadd.f32 %v15404_v41, %v1144_v4 }
 0x16e   : > { %v901_v47 = vpop.f32.mrf.mxu0  ;;  %v1447_v50 = vpop.f32.mrf.mxu1 }
 0x16f   : > { %1272 = vst [vmem:[#allocation4 + $0x39] sm:$0xff] %v1208_v44  ;;  %v1206_v49 = vadd.f32 %v1142_v36, %v901_v47 }
 0x170   : > { %v15407_v53 = vpop.f32.mrf.mxu0  ;;  %15598 = vmatmul.mubr.bf16.gmra.mxu0 %v17976_v7  ;;  %v17994_v58 = vpop.f32.mrf.mxu1  ;;  %v16987_v7 = vld [vmem:[#allocation2 + $0xc8] sm:$0xff]  }
 0x171   : > { %1270 = vst [vmem:[#allocation4 + $0x29] sm:$0xff] %v1206_v49  ;;  %v1211_v57 = vadd.f32 %v15407_v53, %v1147_v42  ;;  %15678 = vmatmul.mubr.bf16.gmra.mxu1 %v16985_v39  ;;  %15601 = vmatprep.mubr.bf16.mxu0 %v17978_v8  ;;  %v16993_v39 = vld [vmem:[#allocation2 + $0xe0] sm:$0xff]   ;;  %v1154_v53 = vld [vmem:[#allocation4 + $0x89] sm:$0xff] }
 0x172   : > { %v914_v59 = vpop.f32.mrf.mxu0  ;;  %15681 = vmatprep.mubr.bf16.mxu1 %v16986_v43  ;;  %v1460_v62 = vpop.f32.mrf.mxu1 }
 0x173   : > { %1275 = vst [vmem:[#allocation4 + $0x51] sm:$0xff] %v1211_v57  ;;  %v1209_v61 = vadd.f32 %v1145_v48, %v914_v59  ;;  %v1159_v59 = vld [vmem:[#allocation4 + $0xb1] sm:$0xff] }
 0x174   : > { %v1687_v63 = vld [vmem:[#allocation4 + $0x20] sm:$0xff]  ;;  %v15408_v0 = vpop.f32.mrf.mxu0  ;;  %v15488_v10 = vpop.f32.mrf.mxu1 }
 0x175   : > { %v1751_v2 = vadd.f32 %v1687_v63, %v1444_v38  ;;  %1273 = vst [vmem:[#allocation4 + $0x41] sm:$0xff] %v1209_v61  ;;  %v1212_v9 = vadd.f32 %v15408_v0, %v1148_v54  ;;  %v1155_v38 = vld [vmem:[#allocation4 + $0x91] sm:$0xff] }
 0x176   : > { %v1690_v11 = vld [vmem:[#allocation4 + $0x38] sm:$0xff]  ;;  %v917_v12 = vpop.f32.mrf.mxu0  ;;  %v1463_v15 = vpop.f32.mrf.mxu1  ;;  %v16997_v0 = vld [vmem:[#allocation2 + $0xf0] sm:$0xff]  }
 0x177   : > { %1815 = vst [vmem:[#allocation4 + $0x20] sm:$0xff] %v1751_v2  ;;  %v1754_v8 = vadd.f32 %v15484_v45, %v1690_v11  ;;  %1276 = vst [vmem:[#allocation4 + $0x59] sm:$0xff] %v1212_v9  ;;  %v1210_v14 = vadd.f32 %v1146_v60, %v917_v12  ;;  %v17248_v45 = vld [vmem:[#allocation2 + $0xc8] sm:$0xff]  }
 0x178   : > { %v1689_v16 = vld [vmem:[#allocation4 + $0x30] sm:$0xff]  ;;  %v1688_v17 = vld [vmem:[#allocation4 + $0x28] sm:$0xff]  ;;  %v15411_v18 = vpop.f32.mrf.mxu0  ;;  %15602 = vmatmul.mubr.bf16.gmra.mxu0 %v17246_v19  ;;  %v17998_v24 = vpop.f32.mrf.mxu1  ;;  %v18006_v19 = vld [vmem:[#allocation8 + $0x1f8] sm:$0xff]  }
 0x179   : > { %1818 = vst [vmem:[#allocation4 + $0x38] sm:$0xff] %v1754_v8  ;;  %v1753_v21 = vadd.f32 %v17990_v26, %v1689_v16  ;;  %v1752_v22 = vadd.f32 %v1688_v17, %v1447_v50  ;;  %1274 = vst [vmem:[#allocation4 + $0x49] sm:$0xff] %v1210_v14  ;;  %v1215_v23 = vadd.f32 %v15411_v18, %v1151_v1  ;;  %15682 = vmatmul.mubr.bf16.gmra.mxu1 %v16987_v7  ;;  %v17249_v50 = vld [vmem:[#allocation2 + $0xd0] sm:$0xff]   ;;  %v1157_v8 = vld [vmem:[#allocation4 + $0xa1] sm:$0xff] }
 0x17a   : > { %15605 = vmatprep.mubr.bf16.mxu0 %v17247_v27  ;;  %v930_v28 = vpop.f32.mrf.mxu0  ;;  %15685 = vmatprep.mubr.bf16.mxu1 %v16988_v13  ;;  %v1476_v32 = vpop.f32.mrf.mxu1  ;;  %v17250_v13 = vld [vmem:[#allocation2 + $0xd8] sm:$0xff]   ;;  %v17251_v18 = vld [vmem:[#allocation2 + $0xe0] sm:$0xff]  }
 0x17b   : > { %1817 = vst [vmem:[#allocation4 + $0x30] sm:$0xff] %v1753_v21  ;;  %1816 = vst [vmem:[#allocation4 + $0x28] sm:$0xff] %v1752_v22  ;;  %v1213_v31 = vadd.f32 %v1149_v20, %v930_v28  ;;  %v1160_v21 = vld [vmem:[#allocation4 + $0xb9] sm:$0xff]  ;;  %15941 = vmatprep.subr.bf16.mxu1 %v18006_v19  ;;  %v1158_v28 = vld [vmem:[#allocation4 + $0xa9] sm:$0xff] }
 0x17c   : > { %1279 = vst [vmem:[#allocation4 + $0x71] sm:$0xff] %v1215_v23  ;;  %v1691_v34 = vld [vmem:[#allocation4 + $0x40] sm:$0xff]  ;;  %v15412_v4 = vpop.f32.mrf.mxu0  ;;  %v15492_v35 = vpop.f32.mrf.mxu1 }
 0x17d   : > { %v1755_v25 = vadd.f32 %v1691_v34, %v1460_v62  ;;  %1277 = vst [vmem:[#allocation4 + $0x61] sm:$0xff] %v1213_v31  ;;  %v1216_v26 = vadd.f32 %v15412_v4, %v1152_v29  ;;  %v1163_v4 = vld [vmem:[#allocation4 + $0xd1] sm:$0xff] }
 0x17e   : > { %v1694_v36 = vld [vmem:[#allocation4 + $0x58] sm:$0xff]  ;;  %v933_v37 = vpop.f32.mrf.mxu0  ;;  %v1479_v42 = vpop.f32.mrf.mxu1 }
 0x17f   : > { %1819 = vst [vmem:[#allocation4 + $0x40] sm:$0xff] %v1755_v25  ;;  %v1758_v40 = vadd.f32 %v15488_v10, %v1694_v36  ;;  %1280 = vst [vmem:[#allocation4 + $0x79] sm:$0xff] %v1216_v26  ;;  %v1214_v41 = vadd.f32 %v1150_v30, %v933_v37  ;;  %v17002_v25 = vld [vmem:[#allocation2 + $0x100] sm:$0xff]  }
 0x180   : > { %v1693_v43 = vld [vmem:[#allocation4 + $0x50] sm:$0xff]  ;;  %v1692_v5 = vld [vmem:[#allocation4 + $0x48] sm:$0xff]  ;;  %v15415_v44 = vpop.f32.mrf.mxu0  ;;  %15606 = vmatmul.mubr.bf16.gmra.mxu0 %v17248_v45  ;;  %v18001_v49 = vpop.f32.mrf.mxu1 }
 0x181   : > { %1822 = vst [vmem:[#allocation4 + $0x58] sm:$0xff] %v1758_v40  ;;  %v1757_v47 = vadd.f32 %v17994_v58, %v1693_v43  ;;  %v1756_v48 = vadd.f32 %v1692_v5, %v1463_v15  ;;  %1278 = vst [vmem:[#allocation4 + $0x69] sm:$0xff] %v1214_v41  ;;  %v1219_v6 = vadd.f32 %v15415_v44, %v1155_v38  ;;  %15686 = vmatmul.mubr.bf16.gmra.mxu1 %v16990_v33  ;;  %v17252_v40 = vld [vmem:[#allocation2 + $0xe8] sm:$0xff]   ;;  %v17253_v45 = vld [vmem:[#allocation2 + $0xf0] sm:$0xff]  }
 0x182   : > { %15609 = vmatprep.mubr.bf16.mxu0 %v17249_v50  ;;  %v946_v51 = vpop.f32.mrf.mxu0  ;;  %15689 = vmatprep.mubr.bf16.mxu1 %v16993_v39  ;;  %v1492_v55 = vpop.f32.mrf.mxu1  ;;  %v1161_v41 = vld [vmem:[#allocation4 + $0xc1] sm:$0xff] }
 0x183   : > { %1821 = vst [vmem:[#allocation4 + $0x50] sm:$0xff] %v1757_v47  ;;  %1820 = vst [vmem:[#allocation4 + $0x48] sm:$0xff] %v1756_v48  ;;  %v1217_v54 = vadd.f32 %v1153_v46, %v946_v51  ;;  %v1164_v47 = vld [vmem:[#allocation4 + $0xd9] sm:$0xff] }
 0x184   : > { %1283 = vst [vmem:[#allocation4 + $0x91] sm:$0xff] %v1219_v6  ;;  %v1695_v57 = vld [vmem:[#allocation4 + $0x60] sm:$0xff]  ;;  %v15416_v58 = vpop.f32.mrf.mxu0  ;;  %v15496_v62 = vpop.f32.mrf.mxu1 }
 0x185   : > { %v1759_v60 = vadd.f32 %v1695_v57, %v1476_v32  ;;  %1281 = vst [vmem:[#allocation4 + $0x81] sm:$0xff] %v1217_v54  ;;  %v1220_v61 = vadd.f32 %v15416_v58, %v1156_v52  ;;  %v16999_v32 = vld [vmem:[#allocation2 + $0xf8] sm:$0xff]   ;;  %v1162_v52 = vld [vmem:[#allocation4 + $0xc9] sm:$0xff] }
 0x186   : > { %v1698_v7 = vld [vmem:[#allocation4 + $0x78] sm:$0xff]  ;;  %v949_v63 = vpop.f32.mrf.mxu0  ;;  %v1495_v9 = vpop.f32.mrf.mxu1 }
 0x187   : > { %1823 = vst [vmem:[#allocation4 + $0x60] sm:$0xff] %v1759_v60  ;;  %v1762_v1 = vadd.f32 %v15492_v35, %v1698_v7  ;;  %1284 = vst [vmem:[#allocation4 + $0x99] sm:$0xff] %v1220_v61  ;;  %v1218_v2 = vadd.f32 %v1154_v53, %v949_v63  ;;  %v1167_v58 = vld [vmem:[#allocation4 + $0xf1] sm:$0xff] }
 0x188   : > { %v1697_v10 = vld [vmem:[#allocation4 + $0x70] sm:$0xff]  ;;  %v1696_v11 = vld [vmem:[#allocation4 + $0x68] sm:$0xff]  ;;  %v15419_v12 = vpop.f32.mrf.mxu0  ;;  %15610 = vmatmul.mubr.bf16.gmra.mxu0 %v17250_v13  ;;  %v18004_v17 = vpop.f32.mrf.mxu1 }
 0x189   : > { %1826 = vst [vmem:[#allocation4 + $0x78] sm:$0xff] %v1762_v1  ;;  %v1761_v14 = vadd.f32 %v17998_v24, %v1697_v10  ;;  %v1760_v15 = vadd.f32 %v1696_v11, %v1479_v42  ;;  %1282 = vst [vmem:[#allocation4 + $0x89] sm:$0xff] %v1218_v2  ;;  %v1223_v16 = vadd.f32 %v15419_v12, %v1159_v59  ;;  %15690 = vmatmul.mubr.bf16.gmra.mxu1 %v16994_v56  ;;  %v1165_v1 = vld [vmem:[#allocation4 + $0xe1] sm:$0xff]  ;;  %v17255_v12 = vld [vmem:[#allocation2 + $0x10] sm:$0xff]  }
 0x18a   : > { %15613 = vmatprep.mubr.bf16.mxu0 %v17251_v18  ;;  %v962_v20 = vpop.f32.mrf.mxu0  ;;  %15693 = vmatprep.mubr.bf16.mxu1 %v16997_v0  ;;  %v1508_v23 = vpop.f32.mrf.mxu1  ;;  %v17254_v0 = vld [vmem:[#allocation2 + $0xf8] sm:$0xff]  }
 0x18b   : > { %1825 = vst [vmem:[#allocation4 + $0x70] sm:$0xff] %v1761_v14  ;;  %1824 = vst [vmem:[#allocation4 + $0x68] sm:$0xff] %v1760_v15  ;;  %v1221_v22 = vadd.f32 %v1157_v8, %v962_v20  ;;  %v1168_v8 = vld [vmem:[#allocation4 + $0xf9] sm:$0xff]  ;;  %v1166_v20 = vld [vmem:[#allocation4 + $0xe9] sm:$0xff] }
 0x18c   : > { %1287 = vst [vmem:[#allocation4 + $0xb1] sm:$0xff] %v1223_v16  ;;  %v1699_v24 = vld [vmem:[#allocation4 + $0x80] sm:$0xff]  ;;  %v15420_v27 = vpop.f32.mrf.mxu0  ;;  %v15500_v31 = vpop.f32.mrf.mxu1 }
 0x18d   : > { %v1763_v29 = vadd.f32 %v1699_v24, %v1492_v55  ;;  %1285 = vst [vmem:[#allocation4 + $0xa1] sm:$0xff] %v1221_v22  ;;  %v1224_v30 = vadd.f32 %v15420_v27, %v1160_v21  ;;  %v17003_v55 = vld [vmem:[#allocation2 + $0x108] sm:$0xff]   ;;  %v1171_v27 = vld [vmem:[#allocation4 + $0x111] sm:$0xff] }
 0x18e   : > { %v1702_v33 = vld [vmem:[#allocation4 + $0x98] sm:$0xff]  ;;  %v965_v34 = vpop.f32.mrf.mxu0  ;;  %v1511_v36 = vpop.f32.mrf.mxu1 }
 0x18f   : > { %1827 = vst [vmem:[#allocation4 + $0x80] sm:$0xff] %v1763_v29  ;;  %v1766_v26 = vadd.f32 %v15496_v62, %v1702_v33  ;;  %1288 = vst [vmem:[#allocation4 + $0xb9] sm:$0xff] %v1224_v30  ;;  %v1222_v35 = vadd.f32 %v1158_v28, %v965_v34 }
 0x190   : > { %v1701_v37 = vld [vmem:[#allocation4 + $0x90] sm:$0xff]  ;;  %v1700_v38 = vld [vmem:[#allocation4 + $0x88] sm:$0xff]  ;;  %v15423_v39 = vpop.f32.mrf.mxu0  ;;  %15614 = vmatmul.mubr.bf16.gmra.mxu0 %v17252_v40  ;;  %v18010_v44 = vpop.f32.mrf.mxu1 }
 0x191   : > { %1830 = vst [vmem:[#allocation4 + $0x98] sm:$0xff] %v1766_v26  ;;  %v1765_v42 = vadd.f32 %v18001_v49, %v1701_v37  ;;  %v1764_v43 = vadd.f32 %v1700_v38, %v1495_v9  ;;  %1286 = vst [vmem:[#allocation4 + $0xa9] sm:$0xff] %v1222_v35  ;;  %v1227_v5 = vadd.f32 %v15423_v39, %v1163_v4  ;;  %15694 = vmatmul.mubr.bf16.gmra.mxu1 %v16999_v32  ;;  %v17007_v32 = vld [vmem:[#allocation8 + $0x1b0] sm:$0xff]   ;;  %v17257_v39 = vld [vmem:[#allocation8 + $0x1b8] sm:$0xff]  }
 0x192   : > { %15617 = vmatprep.mubr.bf16.mxu0 %v17253_v45  ;;  %v978_v46 = vpop.f32.mrf.mxu0  ;;  %15697 = vmatprep.mubr.bf16.mxu1 %v17002_v25  ;;  %v1524_v6 = vpop.f32.mrf.mxu1  ;;  %v17256_v25 = vld [vmem:[#allocation2 + $0x18] sm:$0xff]   ;;  %v17014_v26 = vld [vmem:[#allocation8 + $0x1f0] sm:$0xff]  }
 0x193   : > { %1829 = vst [vmem:[#allocation4 + $0x90] sm:$0xff] %v1765_v42  ;;  %1828 = vst [vmem:[#allocation4 + $0x88] sm:$0xff] %v1764_v43  ;;  %v1225_v48 = vadd.f32 %v1161_v41, %v978_v46  ;;  %v1172_v41 = vld [vmem:[#allocation4 + $0x119] sm:$0xff]  ;;  %v17008_v43 = vld [vmem:[#allocation8 + $0x1a8] sm:$0xff]  }
 0x194   : > { %1291 = vst [vmem:[#allocation4 + $0xd1] sm:$0xff] %v1227_v5  ;;  %v1703_v50 = vld [vmem:[#allocation4 + $0xa0] sm:$0xff]  ;;  %v15424_v51 = vpop.f32.mrf.mxu0  ;;  %v15504_v54 = vpop.f32.mrf.mxu1 }
 0x195   : > { %v1767_v49 = vadd.f32 %v1703_v50, %v1508_v23  ;;  %1289 = vst [vmem:[#allocation4 + $0xc1] sm:$0xff] %v1225_v48  ;;  %v1228_v53 = vadd.f32 %v15424_v51, %v1164_v47  ;;  %v17258_v42 = vld [vmem:[#allocation2 + $0x20] sm:$0xff]   ;;  %v1170_v47 = vld [vmem:[#allocation4 + $0x109] sm:$0xff] }
 0x196   : > { %v1706_v56 = vld [vmem:[#allocation4 + $0xb8] sm:$0xff]  ;;  %v981_v57 = vpop.f32.mrf.mxu0  ;;  %v1527_v61 = vpop.f32.mrf.mxu1  ;;  %v17016_v48 = vld [vmem:[#allocation8 + $0x1e8] sm:$0xff]  }
 0x197   : > { %1831 = vst [vmem:[#allocation4 + $0xa0] sm:$0xff] %v1767_v49  ;;  %v1770_v59 = vadd.f32 %v15500_v31, %v1706_v56  ;;  %1292 = vst [vmem:[#allocation4 + $0xd9] sm:$0xff] %v1228_v53  ;;  %v1226_v60 = vadd.f32 %v1162_v52, %v981_v57  ;;  %v1169_v31 = vld [vmem:[#allocation4 + $0x101] sm:$0xff]  ;;  %v1175_v53 = vld [vmem:[#allocation4 + $0x131] sm:$0xff] }
 0x198   : > { %v1705_v62 = vld [vmem:[#allocation4 + $0xb0] sm:$0xff]  ;;  %v1704_v7 = vld [vmem:[#allocation4 + $0xa8] sm:$0xff]  ;;  %v15427_v63 = vpop.f32.mrf.mxu0  ;;  %15618 = vmatmul.mubr.bf16.gmra.mxu0 %v17254_v0  ;;  %v18013_v11 = vpop.f32.mrf.mxu1  ;;  %v17009_v57 = vld [vmem:[#allocation8 + $0x1a0] sm:$0xff]  }
 0x199   : > { %1834 = vst [vmem:[#allocation4 + $0xb8] sm:$0xff] %v1770_v59  ;;  %v1769_v2 = vadd.f32 %v18004_v17, %v1705_v62  ;;  %v1768_v9 = vadd.f32 %v1704_v7, %v1511_v36  ;;  %1290 = vst [vmem:[#allocation4 + $0xc9] sm:$0xff] %v1226_v60  ;;  %v1231_v10 = vadd.f32 %v15427_v63, %v1167_v58  ;;  %15698 = vmatmul.mubr.bf16.gmra.mxu1 %v17003_v55  ;;  %v17017_v62 = vld [vmem:[#allocation8 + $0x1e0] sm:$0xff]  }
 0x19a   : > { %15717 = vmatprep.mubr.bf16.mxu0 %v17255_v12  ;;  %v994_v13 = vpop.f32.mrf.mxu0  ;;  %15797 = vmatprep.mubr.bf16.mxu1 %v17255_v12  ;;  %v1540_v15 = vpop.f32.mrf.mxu1 }
 0x19b   : > { %1833 = vst [vmem:[#allocation4 + $0xb0] sm:$0xff] %v1769_v2  ;;  %1832 = vst [vmem:[#allocation4 + $0xa8] sm:$0xff] %v1768_v9  ;;  %v1229_v14 = vadd.f32 %v1165_v1, %v994_v13  ;;  %v17260_v2 = vld [vmem:[#allocation2 + $0x30] sm:$0xff]  }
 0x19c   : > { %1295 = vst [vmem:[#allocation4 + $0xf1] sm:$0xff] %v1231_v10  ;;  %v1707_v16 = vld [vmem:[#allocation4 + $0xc0] sm:$0xff]  ;;  %v15428_v18 = vpop.f32.mrf.mxu0  ;;  %v15508_v22 = vpop.f32.mrf.mxu1 }
 0x19d   : > { %v1771_v17 = vadd.f32 %v1707_v16, %v1524_v6  ;;  %1293 = vst [vmem:[#allocation4 + $0xe1] sm:$0xff] %v1229_v14  ;;  %v1232_v21 = vadd.f32 %v15428_v18, %v1168_v8  ;;  %v1176_v10 = vld [vmem:[#allocation4 + $0x139] sm:$0xff] }
 0x19e   : > { %v1710_v23 = vld [vmem:[#allocation4 + $0xd8] sm:$0xff]  ;;  %v997_v24 = vpop.f32.mrf.mxu0  ;;  %v1543_v30 = vpop.f32.mrf.mxu1 }
 0x19f   : > { %1835 = vst [vmem:[#allocation4 + $0xc0] sm:$0xff] %v1771_v17  ;;  %v1774_v28 = vadd.f32 %v15504_v54, %v1710_v23  ;;  %1296 = vst [vmem:[#allocation4 + $0xf9] sm:$0xff] %v1232_v21  ;;  %v1230_v29 = vadd.f32 %v1166_v20, %v997_v24  ;;  %v17010_v8 = vld [vmem:[#allocation8 + $0x198] sm:$0xff]  }
 0x1a0   : > { %v1709_v33 = vld [vmem:[#allocation4 + $0xd0] sm:$0xff]  ;;  %v1708_v34 = vld [vmem:[#allocation4 + $0xc8] sm:$0xff]  ;;  %v15431_v4 = vpop.f32.mrf.mxu0  ;;  %15718 = vmatmul.mubr.bf16.vlgmr.msra.gmra.mxu0 %v17256_v25  ;;  %v18016_v38 = vpop.f32.mrf.mxu1  ;;  %v17018_v16 = vld [vmem:[#allocation8 + $0x1d8] sm:$0xff]  }
 0x1a1   : > { %1838 = vst [vmem:[#allocation4 + $0xd8] sm:$0xff] %v1774_v28  ;;  %v1773_v35 = vadd.f32 %v18010_v44, %v1709_v33  ;;  %v1772_v36 = vadd.f32 %v1708_v34, %v1527_v61  ;;  %1294 = vst [vmem:[#allocation4 + $0xe9] sm:$0xff] %v1230_v29  ;;  %v1235_v37 = vadd.f32 %v15431_v4, %v1171_v27  ;;  %15798 = vmatmul.mubr.bf16.vlgmr.msra.gmra.mxu1 %v17256_v25  ;;  %v17259_v61 = vld [vmem:[#allocation2 + $0x28] sm:$0xff]   ;;  %v1179_v23 = vld [vmem:[#allocation4 + $0x151] sm:$0xff] }
 0x1a2   : > { %15862 = vmatpush3.bf16.msra.mxu0 %v17257_v39  ;;  %v1010_v40 = vpop.f32.mrf.mxu0  ;;  %15721 = vmatprep.mubr.bf16.mxu0 %v17258_v42  ;;  %v1556_v45 = vpop.f32.mrf.mxu1  ;;  %v1177_v29 = vld [vmem:[#allocation4 + $0x141] sm:$0xff]  ;;  %v17261_v34 = vld [vmem:[#allocation2 + $0x38] sm:$0xff]   ;;  %v17019_v4 = vld [vmem:[#allocation8 + $0x1d0] sm:$0xff]  }
 0x1a3   : > { %15801 = vmatprep.mubr.bf16.mxu1 %v17258_v42  ;;  %1837 = vst [vmem:[#allocation4 + $0xd0] sm:$0xff] %v1773_v35  ;;  %1836 = vst [vmem:[#allocation4 + $0xc8] sm:$0xff] %v1772_v36  ;;  %v1233_v5 = vadd.f32 %v1169_v31, %v1010_v40  ;;  %15863 = vmatprep.subr.bf16.mxu0 %v17007_v32  ;;  %v1180_v40 = vld [vmem:[#allocation4 + $0x159] sm:$0xff] }
 0x1a4   : > { %1299 = vst [vmem:[#allocation4 + $0x111] sm:$0xff] %v1235_v37  ;;  %15942 = vmatpush3.bf16.msra.mxu1 %v18006_v19  ;;  %v1711_v44 = vld [vmem:[#allocation4 + $0xe0] sm:$0xff]  ;;  %v15432_v46 = vpop.f32.mrf.mxu0  ;;  %v15512_v51 = vpop.f32.mrf.mxu1 }
 0x1a5   : > { %15943 = vmatprep.subr.bf16.mxu1 %v17014_v26  ;;  %v1775_v6 = vadd.f32 %v1711_v44, %v1540_v15  ;;  %1297 = vst [vmem:[#allocation4 + $0x101] sm:$0xff] %v1233_v5  ;;  %v1236_v50 = vadd.f32 %v15432_v46, %v1172_v41  ;;  %v1173_v19 = vld [vmem:[#allocation4 + $0x121] sm:$0xff]  ;;  %v1174_v15 = vld [vmem:[#allocation4 + $0x129] sm:$0xff] }
 0x1a6   : > { %15864 = vmatpush3.bf16.msra.mxu0 %v17007_v32  ;;  %v1714_v52 = vld [vmem:[#allocation4 + $0xf8] sm:$0xff]  ;;  %v1013_v49 = vpop.f32.mrf.mxu0  ;;  %v18019_v56 = vpop.f32.mrf.mxu1  ;;  %v17262_v37 = vld [vmem:[#allocation2 + $0x40] sm:$0xff]   ;;  %v17023_v44 = vld [vmem:[#allocation8 + $0x1c8] sm:$0xff]  }
 0x1a7   : > { %15865 = vmatprep.subr.bf16.mxu0 %v17008_v43  ;;  %1839 = vst [vmem:[#allocation4 + $0xe0] sm:$0xff] %v1775_v6  ;;  %v1778_v54 = vadd.f32 %v15508_v22, %v1714_v52  ;;  %1300 = vst [vmem:[#allocation4 + $0x119] sm:$0xff] %v1236_v50  ;;  %v1234_v55 = vadd.f32 %v1170_v47, %v1013_v49 }
 0x1a8   : > { %15944 = vmatpush3.bf16.msra.mxu1 %v17014_v26  ;;  %v1713_v58 = vld [vmem:[#allocation4 + $0xf0] sm:$0xff]  ;;  %v1712_v59 = vld [vmem:[#allocation4 + $0xe8] sm:$0xff]  ;;  %v15435_v60 = vpop.f32.mrf.mxu0  ;;  %15722 = vmatmul.mubr.bf16.gmra.mxu0 %v17259_v61  ;;  %v18022_v1 = vpop.f32.mrf.mxu1 }
 0x1a9   : > { %15945 = vmatprep.subr.bf16.mxu1 %v17016_v48  ;;  %1842 = vst [vmem:[#allocation4 + $0xf8] sm:$0xff] %v1778_v54  ;;  %v1777_v7 = vadd.f32 %v18013_v11, %v1713_v58  ;;  %v1776_v63 = vadd.f32 %v1712_v59, %v1543_v30  ;;  %1298 = vst [vmem:[#allocation4 + $0x109] sm:$0xff] %v1234_v55  ;;  %v1239_v0 = vadd.f32 %v15435_v60, %v1175_v53  ;;  %v17011_v30 = vld [vmem:[#allocation8 + $0x190] sm:$0xff]   ;;  %v1181_v54 = vld [vmem:[#allocation4 + $0x161] sm:$0xff] }
 0x1aa   : > { %15802 = vmatmul.mubr.bf16.gmra.mxu1 %v17259_v61  ;;  %15725 = vmatprep.mubr.bf16.mxu0 %v17260_v2  ;;  %v1026_v9 = vpop.f32.mrf.mxu0  ;;  %v1572_v13 = vpop.f32.mrf.mxu1  ;;  %v17015_v55 = vld [vmem:[#allocation8 + $0x180] sm:$0xff]   ;;  %v17263_v58 = vld [vmem:[#allocation2 + $0x48] sm:$0xff]  }
 0x1ab   : > { %15805 = vmatprep.mubr.bf16.mxu1 %v17260_v2  ;;  %15866 = vmatpush3.bf16.msra.mxu0 %v17008_v43  ;;  %1841 = vst [vmem:[#allocation4 + $0xf0] sm:$0xff] %v1777_v7  ;;  %1840 = vst [vmem:[#allocation4 + $0xe8] sm:$0xff] %v1776_v63  ;;  %v1237_v12 = vadd.f32 %v1173_v19, %v1026_v9  ;;  %v17024_v59 = vld [vmem:[#allocation8 + $0x1c0] sm:$0xff]   ;;  %v17264_v63 = vld [vmem:[#allocation2 + $0x50] sm:$0xff]  }
 0x1ac   : > { %1303 = vst [vmem:[#allocation4 + $0x131] sm:$0xff] %v1239_v0  ;;  %15867 = vmatprep.subr.bf16.mxu0 %v17009_v57  ;;  %15946 = vmatpush3.bf16.msra.mxu1 %v17016_v48  ;;  %v1715_v11 = vld [vmem:[#allocation4 + $0x100] sm:$0xff]  ;;  %v15436_v14 = vpop.f32.mrf.mxu0  ;;  %v15516_v17 = vpop.f32.mrf.mxu1 }
 0x1ad   : > { %15947 = vmatprep.subr.bf16.mxu1 %v17017_v62  ;;  %v1779_v18 = vadd.f32 %v1715_v11, %v1556_v45  ;;  %1301 = vst [vmem:[#allocation4 + $0x121] sm:$0xff] %v1237_v12  ;;  %v1240_v20 = vadd.f32 %v15436_v14, %v1176_v10  ;;  %v1178_v45 = vld [vmem:[#allocation4 + $0x149] sm:$0xff]  ;;  %v1184_v2 = vld [vmem:[#allocation4 + $0x179] sm:$0xff] }
 0x1ae   : > { %v1718_v21 = vld [vmem:[#allocation4 + $0x118] sm:$0xff]  ;;  %v1029_v22 = vpop.f32.mrf.mxu0  ;;  %v18024_v28 = vpop.f32.mrf.mxu1 }
 0x1af   : > { %15868 = vmatpush3.bf16.msra.mxu0 %v17009_v57  ;;  %1843 = vst [vmem:[#allocation4 + $0x100] sm:$0xff] %v1779_v18  ;;  %v1782_v24 = vadd.f32 %v15512_v51, %v1718_v21  ;;  %1304 = vst [vmem:[#allocation4 + $0x139] sm:$0xff] %v1240_v20  ;;  %v1238_v27 = vadd.f32 %v1174_v15, %v1029_v22  ;;  %v1183_v51 = vld [vmem:[#allocation4 + $0x171] sm:$0xff] }
 0x1b0   : > { %15869 = vmatprep.subr.bf16.mxu0 %v17010_v8  ;;  %15948 = vmatpush3.bf16.msra.mxu1 %v17017_v62  ;;  %v1717_v31 = vld [vmem:[#allocation4 + $0x110] sm:$0xff]  ;;  %v1716_v32 = vld [vmem:[#allocation4 + $0x108] sm:$0xff]  ;;  %v15439_v33 = vpop.f32.mrf.mxu0  ;;  %v18028_v36 = vpop.f32.mrf.mxu1 }
 0x1b1   : > { %15726 = vmatmul.mubr.bf16.gmra.mxu0 %v17261_v34  ;;  %15949 = vmatprep.subr.bf16.mxu1 %v17018_v16  ;;  %1846 = vst [vmem:[#allocation4 + $0x118] sm:$0xff] %v1782_v24  ;;  %v1781_v25 = vadd.f32 %v18016_v38, %v1717_v31  ;;  %v1780_v26 = vadd.f32 %v1716_v32, %v18019_v56  ;;  %1302 = vst [vmem:[#allocation4 + $0x129] sm:$0xff] %v1238_v27  ;;  %v17012_v38 = vld [vmem:[#allocation8 + $0x188] sm:$0xff]   ;;  %v1187_v20 = vld [vmem:[#allocation4 + $0x191] sm:$0xff] }
 0x1b2   : > { %v1243_v35 = vadd.f32 %v15439_v33, %v1179_v23  ;;  %15806 = vmatmul.mubr.bf16.gmra.mxu1 %v17261_v34  ;;  %15729 = vmatprep.mubr.bf16.mxu0 %v17262_v37  ;;  %v1042_v39 = vpop.f32.mrf.mxu0  ;;  %v1588_v42 = vpop.f32.mrf.mxu1  ;;  %v17266_v34 = vld [vmem:[#allocation2 + $0x60] sm:$0xff]  }
 0x1b3   : > { %15809 = vmatprep.mubr.bf16.mxu1 %v17262_v37  ;;  %15870 = vmatpush3.bf16.msra.mxu0 %v17010_v8  ;;  %1845 = vst [vmem:[#allocation4 + $0x110] sm:$0xff] %v1781_v25  ;;  %1844 = vst [vmem:[#allocation4 + $0x108] sm:$0xff] %v1780_v26  ;;  %v1241_v41 = vadd.f32 %v1177_v29, %v1042_v39  ;;  %v1182_v8 = vld [vmem:[#allocation4 + $0x169] sm:$0xff]  ;;  %v1185_v29 = vld [vmem:[#allocation4 + $0x181] sm:$0xff] }
 0x1b4   : > { %1307 = vst [vmem:[#allocation4 + $0x151] sm:$0xff] %v1243_v35  ;;  %15871 = vmatprep.subr.bf16.mxu0 %v17011_v30  ;;  %15950 = vmatpush3.bf16.msra.mxu1 %v17018_v16  ;;  %v1719_v43 = vld [vmem:[#allocation4 + $0x120] sm:$0xff]  ;;  %v15440_v5 = vpop.f32.mrf.mxu0  ;;  %v15520_v48 = vpop.f32.mrf.mxu1 }
 0x1b5   : > { %15951 = vmatprep.subr.bf16.mxu1 %v17019_v4  ;;  %v1783_v46 = vadd.f32 %v1719_v43, %v1572_v13  ;;  %1305 = vst [vmem:[#allocation4 + $0x141] sm:$0xff] %v1241_v41  ;;  %v1244_v47 = vadd.f32 %v15440_v5, %v1180_v40  ;;  %v1188_v25 = vld [vmem:[#allocation4 + $0x199] sm:$0xff]  ;;  %v1186_v40 = vld [vmem:[#allocation4 + $0x189] sm:$0xff]  ;;  %v1191_v5 = vld [vmem:[#allocation4 + $0x1b1] sm:$0xff] }
 0x1b6   : > { %v1722_v6 = vld [vmem:[#allocation4 + $0x138] sm:$0xff]  ;;  %v1045_v50 = vpop.f32.mrf.mxu0  ;;  %v1591_v53 = vpop.f32.mrf.mxu1 }
 0x1b7   : > { %15872 = vmatpush3.bf16.msra.mxu0 %v17011_v30  ;;  %1847 = vst [vmem:[#allocation4 + $0x120] sm:$0xff] %v1783_v46  ;;  %v1786_v52 = vadd.f32 %v15516_v17, %v1722_v6  ;;  %1308 = vst [vmem:[#allocation4 + $0x159] sm:$0xff] %v1244_v47  ;;  %v1242_v49 = vadd.f32 %v1178_v45, %v1045_v50  ;;  %v17267_v50 = vld [vmem:[#allocation2 + $0x68] sm:$0xff]  }
 0x1b8   : > { %15873 = vmatprep.subr.bf16.mxu0 %v17012_v38  ;;  %15952 = vmatpush3.bf16.msra.mxu1 %v17019_v4  ;;  %v1721_v56 = vld [vmem:[#allocation4 + $0x130] sm:$0xff]  ;;  %v1720_v19 = vld [vmem:[#allocation4 + $0x128] sm:$0xff]  ;;  %v15443_v57 = vpop.f32.mrf.mxu0  ;;  %v18032_v7 = vpop.f32.mrf.mxu1 }
 0x1b9   : > { %15730 = vmatmul.mubr.bf16.gmra.mxu0 %v17263_v58  ;;  %15953 = vmatprep.subr.bf16.mxu1 %v17023_v44  ;;  %1850 = vst [vmem:[#allocation4 + $0x138] sm:$0xff] %v1786_v52  ;;  %v1785_v60 = vadd.f32 %v18022_v1, %v1721_v56  ;;  %v1784_v61 = vadd.f32 %v1720_v19, %v18024_v28  ;;  %1306 = vst [vmem:[#allocation4 + $0x149] sm:$0xff] %v1242_v49  ;;  %v18034_v1 = vld [vmem:[#allocation8 + $0x238] sm:$0xff]  }
 0x1ba   : > { %v1247_v62 = vadd.f32 %v15443_v57, %v1183_v51  ;;  %15810 = vmatmul.mubr.bf16.gmra.mxu1 %v17263_v58  ;;  %15733 = vmatprep.mubr.bf16.mxu0 %v17264_v63  ;;  %v1058_v0 = vpop.f32.mrf.mxu0  ;;  %v1604_v10 = vpop.f32.mrf.mxu1  ;;  %v17265_v28 = vld [vmem:[#allocation2 + $0x58] sm:$0xff]   ;;  %v1189_v51 = vld [vmem:[#allocation4 + $0x1a1] sm:$0xff] }
 0x1bb   : > { %15813 = vmatprep.mubr.bf16.mxu1 %v17264_v63  ;;  %15874 = vmatpush3.bf16.msra.mxu0 %v17012_v38  ;;  %1849 = vst [vmem:[#allocation4 + $0x130] sm:$0xff] %v1785_v60  ;;  %1848 = vst [vmem:[#allocation4 + $0x128] sm:$0xff] %v1784_v61  ;;  %v1245_v9 = vadd.f32 %v1181_v54, %v1058_v0  ;;  %v1192_v19 = vld [vmem:[#allocation4 + $0x1b9] sm:$0xff]  ;;  %v1190_v61 = vld [vmem:[#allocation4 + $0x1a9] sm:$0xff] }
 0x1bc   : > { %1311 = vst [vmem:[#allocation4 + $0x171] sm:$0xff] %v1247_v62  ;;  %15875 = vmatprep.subr.bf16.mxu0 %v17015_v55  ;;  %15954 = vmatpush3.bf16.msra.mxu1 %v17023_v44  ;;  %v1723_v12 = vld [vmem:[#allocation4 + $0x140] sm:$0xff]  ;;  %v15444_v13 = vpop.f32.mrf.mxu0  ;;  %v15524_v15 = vpop.f32.mrf.mxu1 }
 0x1bd   : > { %15955 = vmatprep.subr.bf16.mxu1 %v17024_v59  ;;  %v1787_v11 = vadd.f32 %v1723_v12, %v1588_v42  ;;  %1309 = vst [vmem:[#allocation4 + $0x161] sm:$0xff] %v1245_v9  ;;  %v1248_v14 = vadd.f32 %v15444_v13, %v1184_v2  ;;  %v1195_v9 = vld [vmem:[#allocation4 + $0x1d1] sm:$0xff] }
 0x1be   : > { %v1726_v16 = vld [vmem:[#allocation4 + $0x158] sm:$0xff]  ;;  %v1061_v18 = vpop.f32.mrf.mxu0  ;;  %v1607_v22 = vpop.f32.mrf.mxu1 }
 0x1bf   : > { %15876 = vmatpush3.bf16.msra.mxu0 %v17015_v55  ;;  %1851 = vst [vmem:[#allocation4 + $0x140] sm:$0xff] %v1787_v11  ;;  %v1790_v17 = vadd.f32 %v15520_v48, %v1726_v16  ;;  %1312 = vst [vmem:[#allocation4 + $0x179] sm:$0xff] %v1248_v14  ;;  %v1246_v21 = vadd.f32 %v1182_v8, %v1061_v18  ;;  %v17268_v55 = vld [vmem:[#allocation2 + $0x70] sm:$0xff]   ;;  %v1193_v16 = vld [vmem:[#allocation4 + $0x1c1] sm:$0xff] }
 0x1c0   : > { %16021 = vmatprep.subr.bf16.mxu0 %v18034_v1  ;;  %15956 = vmatpush3.bf16.msra.mxu1 %v17024_v59  ;;  %v1725_v23 = vld [vmem:[#allocation4 + $0x150] sm:$0xff]  ;;  %v1724_v24 = vld [vmem:[#allocation4 + $0x148] sm:$0xff]  ;;  %v15447_v27 = vpop.f32.mrf.mxu0  ;;  %v18038_v33 = vpop.f32.mrf.mxu1 }
 0x1c1   : > { %15734 = vmatmul.mubr.bf16.gmra.mxu0 %v17265_v28  ;;  %1854 = vst [vmem:[#allocation4 + $0x158] sm:$0xff] %v1790_v17  ;;  %v1789_v30 = vadd.f32 %v18028_v36, %v1725_v23  ;;  %v1788_v31 = vadd.f32 %v1724_v24, %v1591_v53  ;;  %1310 = vst [vmem:[#allocation4 + $0x169] sm:$0xff] %v1246_v21  ;;  %v1251_v32 = vadd.f32 %v15447_v27, %v1187_v20  ;;  %v1196_v24 = vld [vmem:[#allocation4 + $0x1d9] sm:$0xff] }
 0x1c2   : > { %15814 = vmatmul.mubr.bf16.gmra.mxu1 %v17265_v28  ;;  %15737 = vmatprep.mubr.bf16.mxu0 %v17266_v34  ;;  %v1074_v4 = vpop.f32.mrf.mxu0  ;;  %v1620_v35 = vpop.f32.mrf.mxu1 }
 0x1c3   : > { %15817 = vmatprep.mubr.bf16.mxu1 %v17266_v34  ;;  %1853 = vst [vmem:[#allocation4 + $0x150] sm:$0xff] %v1789_v30  ;;  %1852 = vst [vmem:[#allocation4 + $0x148] sm:$0xff] %v1788_v31  ;;  %v1249_v26 = vadd.f32 %v1185_v29, %v1074_v4  ;;  %v1194_v31 = vld [vmem:[#allocation4 + $0x1c9] sm:$0xff] }
 0x1c4   : > { %1315 = vst [vmem:[#allocation4 + $0x191] sm:$0xff] %v1251_v32  ;;  %v1727_v37 = vld [vmem:[#allocation4 + $0x160] sm:$0xff]  ;;  %v15448_v39 = vpop.f32.mrf.mxu0  ;;  %v15528_v42 = vpop.f32.mrf.mxu1 }
 0x1c5   : > { %v1791_v36 = vadd.f32 %v1727_v37, %v1604_v10  ;;  %1313 = vst [vmem:[#allocation4 + $0x181] sm:$0xff] %v1249_v26  ;;  %v1252_v41 = vadd.f32 %v15448_v39, %v1188_v25  ;;  %v1199_v26 = vld [vmem:[#allocation4 + $0x1f1] sm:$0xff] }
 0x1c6   : > { %v1730_v38 = vld [vmem:[#allocation4 + $0x178] sm:$0xff]  ;;  %v1077_v43 = vpop.f32.mrf.mxu0  ;;  %v1623_v46 = vpop.f32.mrf.mxu1 }
 0x1c7   : > { %1855 = vst [vmem:[#allocation4 + $0x160] sm:$0xff] %v1791_v36  ;;  %v1794_v45 = vadd.f32 %v15524_v15, %v1730_v38  ;;  %1316 = vst [vmem:[#allocation4 + $0x199] sm:$0xff] %v1252_v41  ;;  %v1250_v44 = vadd.f32 %v1186_v40, %v1077_v43  ;;  %v17269_v15 = vld [vmem:[#allocation2 + $0x78] sm:$0xff]   ;;  %v1197_v38 = vld [vmem:[#allocation4 + $0x1e1] sm:$0xff] }
 0x1c8   : > { %v1729_v47 = vld [vmem:[#allocation4 + $0x170] sm:$0xff]  ;;  %v1728_v48 = vld [vmem:[#allocation4 + $0x168] sm:$0xff]  ;;  %v15451_v6 = vpop.f32.mrf.mxu0  ;;  %v18041_v54 = vpop.f32.mrf.mxu1 }
 0x1c9   : > { %15738 = vmatmul.mubr.bf16.gmra.mxu0 %v17267_v50  ;;  %1858 = vst [vmem:[#allocation4 + $0x178] sm:$0xff] %v1794_v45  ;;  %v1793_v52 = vadd.f32 %v18032_v7, %v1729_v47  ;;  %v1792_v49 = vadd.f32 %v1728_v48, %v1607_v22  ;;  %1314 = vst [vmem:[#allocation4 + $0x189] sm:$0xff] %v1250_v44  ;;  %v1255_v53 = vadd.f32 %v15451_v6, %v1191_v5  ;;  %v17270_v22 = vld [vmem:[#allocation2 + $0x80] sm:$0xff]   ;;  %v1200_v47 = vld [vmem:[#allocation4 + $0x1f9] sm:$0x7f] }
 0x1ca   : > { %15818 = vmatmul.mubr.bf16.gmra.mxu1 %v17267_v50  ;;  %15741 = vmatprep.mubr.bf16.mxu0 %v17268_v55  ;;  %v1090_v56 = vpop.f32.mrf.mxu0  ;;  %v1636_v58 = vpop.f32.mrf.mxu1 }
 0x1cb   : > { %15821 = vmatprep.mubr.bf16.mxu1 %v17268_v55  ;;  %1857 = vst [vmem:[#allocation4 + $0x170] sm:$0xff] %v1793_v52  ;;  %1856 = vst [vmem:[#allocation4 + $0x168] sm:$0xff] %v1792_v49  ;;  %v1253_v57 = vadd.f32 %v1189_v51, %v1090_v56  ;;  %v1198_v49 = vld [vmem:[#allocation4 + $0x1e9] sm:$0xff] }
 0x1cc   : > { %1319 = vst [vmem:[#allocation4 + $0x1b1] sm:$0xff] %v1255_v53  ;;  %v1731_v59 = vld [vmem:[#allocation4 + $0x180] sm:$0xff]  ;;  %v15452_v60 = vpop.f32.mrf.mxu0  ;;  %v15532_v63 = vpop.f32.mrf.mxu1 }
 0x1cd   : > { %v1795_v62 = vadd.f32 %v1731_v59, %v1620_v35  ;;  %1317 = vst [vmem:[#allocation4 + $0x1a1] sm:$0xff] %v1253_v57  ;;  %v1256_v7 = vadd.f32 %v15452_v60, %v1192_v19 }
 0x1ce   : > { %v1734_v0 = vld [vmem:[#allocation4 + $0x198] sm:$0xff]  ;;  %v1093_v2 = vpop.f32.mrf.mxu0  ;;  %v1639_v13 = vpop.f32.mrf.mxu1 }
 0x1cf   : > { %1859 = vst [vmem:[#allocation4 + $0x180] sm:$0xff] %v1795_v62  ;;  %v1798_v10 = vadd.f32 %v15528_v42, %v1734_v0  ;;  %1320 = vst [vmem:[#allocation4 + $0x1b9] sm:$0xff] %v1256_v7  ;;  %v1254_v12 = vadd.f32 %v1190_v61, %v1093_v2  ;;  %v17271_v42 = vld [vmem:[#allocation2 + $0x88] sm:$0xff]   ;;  %v17273_v7 = vld [vmem:[#allocation2 + $0x98] sm:$0xff]  }
 0x1d0   : > { %v1733_v8 = vld [vmem:[#allocation4 + $0x190] sm:$0xff]  ;;  %v1732_v11 = vld [vmem:[#allocation4 + $0x188] sm:$0xff]  ;;  %v15455_v14 = vpop.f32.mrf.mxu0  ;;  %v18044_v21 = vpop.f32.mrf.mxu1 }
 0x1d1   : > { %15742 = vmatmul.mubr.bf16.gmra.mxu0 %v17269_v15  ;;  %1862 = vst [vmem:[#allocation4 + $0x198] sm:$0xff] %v1798_v10  ;;  %v1797_v18 = vadd.f32 %v18038_v33, %v1733_v8  ;;  %v1796_v20 = vadd.f32 %v1732_v11, %v1623_v46  ;;  %1318 = vst [vmem:[#allocation4 + $0x1a9] sm:$0xff] %v1254_v12  ;;  %v1259_v17 = vadd.f32 %v15455_v14, %v1195_v9  ;;  %v17272_v46 = vld [vmem:[#allocation2 + $0x90] sm:$0xff]   ;;  %v17274_v9 = vld [vmem:[#allocation2 + $0xa0] sm:$0xff]  }
 0x1d2   : > { %15822 = vmatmul.mubr.bf16.gmra.mxu1 %v17269_v15  ;;  %15745 = vmatprep.mubr.bf16.mxu0 %v17270_v22  ;;  %v1106_v23 = vpop.f32.mrf.mxu0  ;;  %v1652_v28 = vpop.f32.mrf.mxu1 }
 0x1d3   : > { %15825 = vmatprep.mubr.bf16.mxu1 %v17270_v22  ;;  %1861 = vst [vmem:[#allocation4 + $0x190] sm:$0xff] %v1797_v18  ;;  %1860 = vst [vmem:[#allocation4 + $0x188] sm:$0xff] %v1796_v20  ;;  %v1257_v27 = vadd.f32 %v1193_v16, %v1106_v23  ;;  %v2231_v22 = vld [vmem:[#allocation4 + $0x10] sm:$0xff] }
 0x1d4   : > { %1323 = vst [vmem:[#allocation4 + $0x1d1] sm:$0xff] %v1259_v17  ;;  %v1735_v29 = vld [vmem:[#allocation4 + $0x1a0] sm:$0xff]  ;;  %v15456_v30 = vpop.f32.mrf.mxu0  ;;  %v15536_v34 = vpop.f32.mrf.mxu1 }
 0x1d5   : > { %v1799_v32 = vadd.f32 %v1735_v29, %v1636_v58  ;;  %1321 = vst [vmem:[#allocation4 + $0x1c1] sm:$0xff] %v1257_v27  ;;  %v1260_v33 = vadd.f32 %v15456_v30, %v1196_v24 }
 0x1d6   : > { %v1738_v4 = vld [vmem:[#allocation4 + $0x1b8] sm:$0xff]  ;;  %v1109_v25 = vpop.f32.mrf.mxu0  ;;  %v1655_v39 = vpop.f32.mrf.mxu1 }
 0x1d7   : > { %1863 = vst [vmem:[#allocation4 + $0x1a0] sm:$0xff] %v1799_v32  ;;  %v1802_v35 = vadd.f32 %v15532_v63, %v1738_v4  ;;  %1324 = vst [vmem:[#allocation4 + $0x1d9] sm:$0xff] %v1260_v33  ;;  %v1258_v37 = vadd.f32 %v1194_v31, %v1109_v25  ;;  %v17275_v31 = vld [vmem:[#allocation2 + $0xa8] sm:$0xff]   ;;  %v2229_v33 = vld [vmem:[#allocation4] sm:$0xff] }
 0x1d8   : > { %v1737_v40 = vld [vmem:[#allocation4 + $0x1b0] sm:$0xff]  ;;  %v1736_v36 = vld [vmem:[#allocation4 + $0x1a8] sm:$0xff]  ;;  %v15459_v41 = vpop.f32.mrf.mxu0  ;;  %v18047_v44 = vpop.f32.mrf.mxu1 }
 0x1d9   : > { %15746 = vmatmul.mubr.bf16.gmra.mxu0 %v17271_v42  ;;  %1866 = vst [vmem:[#allocation4 + $0x1b8] sm:$0xff] %v1802_v35  ;;  %v1801_v43 = vadd.f32 %v18041_v54, %v1737_v40  ;;  %v1800_v5 = vadd.f32 %v1736_v36, %v1639_v13  ;;  %1322 = vst [vmem:[#allocation4 + $0x1c9] sm:$0xff] %v1258_v37  ;;  %v1263_v45 = vadd.f32 %v15459_v41, %v1199_v26  ;;  %v17276_v35 = vld [vmem:[#allocation2 + $0xb0] sm:$0xff]  }
 0x1da   : > { %15826 = vmatmul.mubr.bf16.gmra.mxu1 %v17271_v42  ;;  %15749 = vmatprep.mubr.bf16.mxu0 %v17272_v46  ;;  %v1122_v48 = vpop.f32.mrf.mxu0  ;;  %v1668_v50 = vpop.f32.mrf.mxu1 }
 0x1db   : > { %15829 = vmatprep.mubr.bf16.mxu1 %v17272_v46  ;;  %1865 = vst [vmem:[#allocation4 + $0x1b0] sm:$0xff] %v1801_v43  ;;  %1864 = vst [vmem:[#allocation4 + $0x1a8] sm:$0xff] %v1800_v5  ;;  %v1261_v6 = vadd.f32 %v1197_v38, %v1122_v48  ;;  %v2232_v43 = vld [vmem:[#allocation4 + $0x18] sm:$0xff] }
 0x1dc   : > { %1327 = vst [vmem:[#allocation4 + $0x1f1] sm:$0xff] %v1263_v45  ;;  %v1739_v51 = vld [vmem:[#allocation4 + $0x1c0] sm:$0xff]  ;;  %v15460_v52 = vpop.f32.mrf.mxu0  ;;  %v15540_v55 = vpop.f32.mrf.mxu1 }
 0x1dd   : > { %v1803_v53 = vadd.f32 %v1739_v51, %v1652_v28  ;;  %1325 = vst [vmem:[#allocation4 + $0x1e1] sm:$0xff] %v1261_v6  ;;  %v1264_v54 = vadd.f32 %v15460_v52, %v1200_v47  ;;  %v2235_v6 = vld [vmem:[#allocation4 + $0x30] sm:$0xff] }
 0x1de   : > { %v1742_v56 = vld [vmem:[#allocation4 + $0x1d8] sm:$0xff]  ;;  %v1125_v19 = vpop.f32.mrf.mxu0  ;;  %v1671_v59 = vpop.f32.mrf.mxu1 }
 0x1df   : > { %1867 = vst [vmem:[#allocation4 + $0x1c0] sm:$0xff] %v1803_v53  ;;  %v1806_v57 = vadd.f32 %v15536_v34, %v1742_v56  ;;  %1328 = vst [vmem:[#allocation4 + $0x1f9] sm:$0x7f] %v1264_v54  ;;  %v1262_v58 = vadd.f32 %v1198_v49, %v1125_v19  ;;  %v2230_v34 = vld [vmem:[#allocation4 + $0x8] sm:$0xff]  ;;  %v17277_v54 = vld [vmem:[#allocation2 + $0xb8] sm:$0xff]  }
 0x1e0   : > { %v1741_v60 = vld [vmem:[#allocation4 + $0x1d0] sm:$0xff]  ;;  %v1740_v61 = vld [vmem:[#allocation4 + $0x1c8] sm:$0xff]  ;;  %v15559_v62 = vpop.f32.mrf.mxu0  ;;  %v18050_v2 = vpop.f32.mrf.mxu1 }
 0x1e1   : > { %15750 = vmatmul.mubr.bf16.gmra.mxu0 %v17273_v7  ;;  %1870 = vst [vmem:[#allocation4 + $0x1d8] sm:$0xff] %v1806_v57  ;;  %v1805_v63 = vadd.f32 %v18044_v21, %v1741_v60  ;;  %v1804_v0 = vadd.f32 %v1740_v61, %v1655_v39  ;;  %1326 = vst [vmem:[#allocation4 + $0x1e9] sm:$0xff] %v1262_v58  ;;  %v2361_v14 = vrot.slane %v15559_v62, 1  ;;  %v2234_v56 = vld [vmem:[#allocation4 + $0x28] sm:$0xff] }
 0x1e2   : > { %15830 = vmatmul.mubr.bf16.gmra.mxu1 %v17273_v7  ;;  %15753 = vmatprep.mubr.bf16.mxu0 %v17274_v9  ;;  %v1974_v10 = vpop.f32.mrf.mxu0  ;;  %v18052_v12 = vpop.f32.mrf.mxu1 }
 0x1e3   : > { %15833 = vmatprep.mubr.bf16.mxu1 %v17274_v9  ;;  %1869 = vst [vmem:[#allocation4 + $0x1d0] sm:$0xff] %v1805_v63  ;;  %1868 = vst [vmem:[#allocation4 + $0x1c8] sm:$0xff] %v1804_v0  ;;  %v2358_v21 = vrot.slane %v1974_v10, 1 }
 0x1e4   : > { %v1743_v13 = vld [vmem:[#allocation4 + $0x1e0] sm:$0xff]  ;;  %v15560_v8 = vpop.f32.mrf.mxu0  ;;  %v18054_v16 = vpop.f32.mrf.mxu1 }
 0x1e5   : > { %v1807_v11 = vadd.f32 %v1743_v13, %v1668_v50  ;;  %v2363_v15 = vrot.slane %v15560_v8, 1 }
 0x1e6   : > { %v1746_v18 = vld [vmem:[#allocation4 + $0x1f8] sm:$0xff]  ;;  %v1977_v20 = vpop.f32.mrf.mxu0  ;;  %v3035_v27 = vpop.f32.mrf.mxu1 }
 0x1e7   : > { %1871 = vst [vmem:[#allocation4 + $0x1e0] sm:$0xff] %v1807_v11  ;;  %v1810_v17 = vadd.f32 %v15540_v55, %v1746_v18  ;;  %v2364_v23 = vsel %vm2357_vm0, %v2361_v14, %v2363_v15  ;;  %v2359_v24 = vrot.slane %v1977_v20, 1  ;;  %v2233_v55 = vld [vmem:[#allocation4 + $0x20] sm:$0xff] }
 0x1e8   : > { %v1744_v28 = vld [vmem:[#allocation4 + $0x1e8] sm:$0xff]  ;;  %v2551_v29 = vadd.f32 %v2364_v23, %v2231_v22  ;;  %v15563_v30 = vpop.f32.mrf.mxu0  ;;  %v2239_v22 = vld [vmem:[#allocation4 + $0x50] sm:$0xff] }
 0x1e9   : > { %15754 = vmatmul.mubr.bf16.gmra.mxu0 %v17275_v31  ;;  %1874 = vst [vmem:[#allocation4 + $0x1f8] sm:$0xff] %v1810_v17  ;;  %v1808_v32 = vadd.f32 %v1744_v28, %v1671_v59  ;;  %v2360_v4 = vsel %vm2357_vm0, %v2358_v21, %v2359_v24  ;;  %v2362_v25 = vsel %vm2357_vm0, %v2359_v24, %v2361_v14  ;;  %v18059_v26 = vpop.f32.mrf.mxu1  ;;  %v2369_v38 = vrot.slane %v15563_v30, 1  ;;  %v17278_v59 = vld [vmem:[#allocation2 + $0xc0] sm:$0xff]   ;;  %v2236_v14 = vld [vmem:[#allocation4 + $0x38] sm:$0xff]  ;;  %v17279_v30 = vld [vmem:[#allocation2 + $0xc8] sm:$0xff]  }
 0x1ea   : > { %15834 = vmatmul.mubr.bf16.gmra.mxu1 %v17275_v31  ;;  %15757 = vmatprep.mubr.bf16.mxu0 %v17276_v35  ;;  %2615 = vst [vmem:[#allocation4 + $0x10] sm:$0xff] %v2551_v29  ;;  %v2549_v37 = vadd.f32 %v2360_v4, %v2229_v33  ;;  %v2550_v39 = vadd.f32 %v2362_v25, %v2230_v34  ;;  %v1990_v40 = vpop.f32.mrf.mxu0  ;;  %v2238_v33 = vld [vmem:[#allocation4 + $0x48] sm:$0xff] }
 0x1eb   : > { %15837 = vmatprep.mubr.bf16.mxu1 %v17276_v35  ;;  %1872 = vst [vmem:[#allocation4 + $0x1e8] sm:$0xff] %v1808_v32  ;;  %v2365_v36 = vrot.slane %v1990_v40, 1  ;;  %v18061_v41 = vpop.f32.mrf.mxu1  ;;  %v2237_v32 = vld [vmem:[#allocation4 + $0x40] sm:$0xff]  ;;  %v17280_v35 = vld [vmem:[#allocation2 + $0xd0] sm:$0xff]  }
 0x1ec   : > { %2613 = vst [vmem:[#allocation4] sm:$0xff] %v2549_v37  ;;  %2614 = vst [vmem:[#allocation4 + $0x8] sm:$0xff] %v2550_v39  ;;  %v15564_v42 = vpop.f32.mrf.mxu0 }
 0x1ed   : > { %v2366_v5 = vsel %vm2357_vm0, %v2363_v15, %v2365_v36  ;;  %v2371_v45 = vrot.slane %v15564_v42, 1  ;;  %v18064_v46 = vpop.f32.mrf.mxu1 }
 0x1ee   : > { %v2552_v47 = vadd.f32 %v2366_v5, %v2232_v43  ;;  %v1993_v48 = vpop.f32.mrf.mxu0 }
 0x1ef   : > { %v2372_v50 = vsel %vm2357_vm0, %v2369_v38, %v2371_v45  ;;  %v2367_v51 = vrot.slane %v1993_v48, 1  ;;  %v18067_v52 = vpop.f32.mrf.mxu1 }
 0x1f0   : > { %2616 = vst [vmem:[#allocation4 + $0x18] sm:$0xff] %v2552_v47  ;;  %v2555_v49 = vadd.f32 %v2372_v50, %v2235_v6  ;;  %v15567_v53 = vpop.f32.mrf.mxu0  ;;  %v2240_v50 = vld [vmem:[#allocation4 + $0x58] sm:$0xff] }
 0x1f1   : > { %15758 = vmatmul.mubr.bf16.gmra.mxu0 %v17277_v54  ;;  %v2368_v19 = vsel %vm2357_vm0, %v2365_v36, %v2367_v51  ;;  %v2370_v57 = vsel %vm2357_vm0, %v2367_v51, %v2369_v38  ;;  %v18071_v58 = vpop.f32.mrf.mxu1  ;;  %v2377_v11 = vrot.slane %v15567_v53, 1 }
 0x1f2   : > { %15838 = vmatmul.mubr.bf16.gmra.mxu1 %v17277_v54  ;;  %15761 = vmatprep.mubr.bf16.mxu0 %v17278_v59  ;;  %2619 = vst [vmem:[#allocation4 + $0x30] sm:$0xff] %v2555_v49  ;;  %v2553_v60 = vadd.f32 %v2368_v19, %v2233_v55  ;;  %v2554_v61 = vadd.f32 %v2370_v57, %v2234_v56  ;;  %v2006_v62 = vpop.f32.mrf.mxu0 }
 0x1f3   : > { %15841 = vmatprep.mubr.bf16.mxu1 %v17278_v59  ;;  %v3288_v7 = vld [vmem:[#allocation4 + $0x9] sm:$0xff]  ;;  %v2373_v63 = vrot.slane %v2006_v62, 1  ;;  %v18073_v0 = vpop.f32.mrf.mxu1  ;;  %v3287_v9 = vld [vmem:[#allocation4 + $0x1] sm:$0xff] }
 0x1f4   : > { %v3352_v10 = vadd.f32 %v3288_v7, %v3035_v27  ;;  %2617 = vst [vmem:[#allocation4 + $0x20] sm:$0xff] %v2553_v60  ;;  %2618 = vst [vmem:[#allocation4 + $0x28] sm:$0xff] %v2554_v61  ;;  %v15568_v13 = vpop.f32.mrf.mxu0  ;;  %v3351_v8 = vadd.f32 %v3287_v9, %v18052_v12  ;;  %v17281_v60 = vld [vmem:[#allocation2 + $0xd8] sm:$0xff]   ;;  %v2241_v62 = vld [vmem:[#allocation4 + $0x60] sm:$0xff] }
 0x1f5   : > { %v2374_v15 = vsel %vm2357_vm0, %v2371_v45, %v2373_v63  ;;  %v2379_v18 = vrot.slane %v15568_v13, 1  ;;  %v18077_v20 = vpop.f32.mrf.mxu1  ;;  %v2242_v7 = vld [vmem:[#allocation4 + $0x68] sm:$0xff]  ;;  %v17282_v13 = vld [vmem:[#allocation2 + $0xe0] sm:$0xff]  }
 0x1f6   : > { %3416 = vst [vmem:[#allocation4 + $0x9] sm:$0xff] %v3352_v10  ;;  %v2556_v17 = vadd.f32 %v2374_v15, %v2236_v14  ;;  %v2009_v21 = vpop.f32.mrf.mxu0  ;;  %3415 = vst [vmem:[#allocation4 + $0x1] sm:$0xff] %v3351_v8 }
 0x1f7   : > { %v2380_v23 = vsel %vm2357_vm0, %v2377_v11, %v2379_v18  ;;  %v2375_v24 = vrot.slane %v2009_v21, 1  ;;  %v18080_v27 = vpop.f32.mrf.mxu1  ;;  %v3289_v28 = vld [vmem:[#allocation4 + $0x11] sm:$0xff] }
 0x1f8   : > { %2620 = vst [vmem:[#allocation4 + $0x38] sm:$0xff] %v2556_v17  ;;  %v2559_v12 = vadd.f32 %v2380_v23, %v2239_v22  ;;  %v15571_v29 = vpop.f32.mrf.mxu0  ;;  %v3353_v31 = vadd.f32 %v18050_v2, %v3289_v28 }
 0x1f9   : > { %15762 = vmatmul.mubr.bf16.gmra.mxu0 %v17279_v30  ;;  %v2376_v34 = vsel %vm2357_vm0, %v2373_v63, %v2375_v24  ;;  %v2378_v4 = vsel %vm2357_vm0, %v2375_v24, %v2377_v11  ;;  %v18085_v25 = vpop.f32.mrf.mxu1  ;;  %v2385_v6 = vrot.slane %v15571_v29, 1  ;;  %v2244_v29 = vld [vmem:[#allocation4 + $0x78] sm:$0xff] }
 0x1fa   : > { %15842 = vmatmul.mubr.bf16.gmra.mxu1 %v17279_v30  ;;  %15765 = vmatprep.mubr.bf16.mxu0 %v17280_v35  ;;  %2623 = vst [vmem:[#allocation4 + $0x50] sm:$0xff] %v2559_v12  ;;  %v2557_v37 = vadd.f32 %v2376_v34, %v2237_v32  ;;  %v2558_v39 = vadd.f32 %v2378_v4, %v2238_v33  ;;  %v2022_v40 = vpop.f32.mrf.mxu0  ;;  %3417 = vst [vmem:[#allocation4 + $0x11] sm:$0xff] %v3353_v31 }
 0x1fb   : > { %15845 = vmatprep.mubr.bf16.mxu1 %v17280_v35  ;;  %v3292_v36 = vld [vmem:[#allocation4 + $0x29] sm:$0xff]  ;;  %v2381_v42 = vrot.slane %v2022_v40, 1  ;;  %v18087_v2 = vpop.f32.mrf.mxu1  ;;  %v3290_v38 = vld [vmem:[#allocation4 + $0x19] sm:$0xff]  ;;  %v3291_v43 = vld [vmem:[#allocation4 + $0x21] sm:$0xff] }
 0x1fc   : > { %v3356_v5 = vadd.f32 %v3292_v36, %v18067_v52  ;;  %2621 = vst [vmem:[#allocation4 + $0x40] sm:$0xff] %v2557_v37  ;;  %2622 = vst [vmem:[#allocation4 + $0x48] sm:$0xff] %v2558_v39  ;;  %v15572_v45 = vpop.f32.mrf.mxu0  ;;  %v3354_v47 = vadd.f32 %v18054_v16, %v3290_v38  ;;  %v3355_v48 = vadd.f32 %v3291_v43, %v18061_v41  ;;  %v2243_v52 = vld [vmem:[#allocation4 + $0x70] sm:$0xff]  ;;  %v17283_v40 = vld [vmem:[#allocation2 + $0xe8] sm:$0xff]  }
 0x1fd   : > { %v2382_v51 = vsel %vm2357_vm0, %v2379_v18, %v2381_v42  ;;  %v2387_v49 = vrot.slane %v15572_v45, 1  ;;  %v18093_v53 = vpop.f32.mrf.mxu1  ;;  %v2246_v38 = vld [vmem:[#allocation4 + $0x88] sm:$0xff] }
 0x1fe   : > { %3420 = vst [vmem:[#allocation4 + $0x29] sm:$0xff] %v3356_v5  ;;  %v2560_v54 = vadd.f32 %v2382_v51, %v2240_v50  ;;  %v2025_v55 = vpop.f32.mrf.mxu0  ;;  %3418 = vst [vmem:[#allocation4 + $0x19] sm:$0xff] %v3354_v47  ;;  %v17284_v47 = vld [vmem:[#allocation2 + $0xf0] sm:$0xff]  }
 0x1ff   : > { %3419 = vst [vmem:[#allocation4 + $0x21] sm:$0xff] %v3355_v48  ;;  %v2388_v56 = vsel %vm2357_vm0, %v2385_v6, %v2387_v49  ;;  %v2383_v19 = vrot.slane %v2025_v55, 1  ;;  %v18096_v57 = vpop.f32.mrf.mxu1  ;;  %v3293_v16 = vld [vmem:[#allocation4 + $0x31] sm:$0xff] }
 0x200   : > { %2624 = vst [vmem:[#allocation4 + $0x58] sm:$0xff] %v2560_v54  ;;  %v2563_v41 = vadd.f32 %v2388_v56, %v2243_v52  ;;  %v15575_v59 = vpop.f32.mrf.mxu0  ;;  %v3357_v61 = vadd.f32 %v18059_v26, %v3293_v16 }
 0x201   : > { %15766 = vmatmul.mubr.bf16.gmra.mxu0 %v17281_v60  ;;  %v2384_v63 = vsel %vm2357_vm0, %v2381_v42, %v2383_v19  ;;  %v2386_v9 = vsel %vm2357_vm0, %v2383_v19, %v2385_v6  ;;  %v18101_v10 = vpop.f32.mrf.mxu1  ;;  %v2393_v12 = vrot.slane %v15575_v59, 1  ;;  %v2245_v42 = vld [vmem:[#allocation4 + $0x80] sm:$0xff]  ;;  %v2248_v59 = vld [vmem:[#allocation4 + $0x98] sm:$0xff] }
 0x202   : > { %15846 = vmatmul.mubr.bf16.gmra.mxu1 %v17281_v60  ;;  %15769 = vmatprep.mubr.bf16.mxu0 %v17282_v13  ;;  %2627 = vst [vmem:[#allocation4 + $0x70] sm:$0xff] %v2563_v41  ;;  %v2561_v8 = vadd.f32 %v2384_v63, %v2241_v62  ;;  %v2562_v11 = vadd.f32 %v2386_v9, %v2242_v7  ;;  %v2038_v14 = vpop.f32.mrf.mxu0  ;;  %3421 = vst [vmem:[#allocation4 + $0x31] sm:$0xff] %v3357_v61 }
 0x203   : > { %15849 = vmatprep.mubr.bf16.mxu1 %v17282_v13  ;;  %v3296_v15 = vld [vmem:[#allocation4 + $0x49] sm:$0xff]  ;;  %v2389_v18 = vrot.slane %v2038_v14, 1  ;;  %v18103_v26 = vpop.f32.mrf.mxu1  ;;  %v3294_v17 = vld [vmem:[#allocation4 + $0x39] sm:$0xff]  ;;  %v3295_v21 = vld [vmem:[#allocation4 + $0x41] sm:$0xff] }
 0x204   : > { %v3360_v22 = vadd.f32 %v3296_v15, %v18080_v27  ;;  %2625 = vst [vmem:[#allocation4 + $0x60] sm:$0xff] %v2561_v8  ;;  %2626 = vst [vmem:[#allocation4 + $0x68] sm:$0xff] %v2562_v11  ;;  %v15576_v23 = vpop.f32.mrf.mxu0  ;;  %v3358_v24 = vadd.f32 %v18064_v46, %v3294_v17  ;;  %v3359_v28 = vadd.f32 %v3295_v21, %v18073_v0  ;;  %v2247_v27 = vld [vmem:[#allocation4 + $0x90] sm:$0xff]  ;;  %v17285_v14 = vld [vmem:[#allocation2 + $0xf8] sm:$0xff]  }
 0x205   : > { %v2390_v30 = vsel %vm2357_vm0, %v2387_v49, %v2389_v18  ;;  %v2395_v31 = vrot.slane %v15576_v23, 1  ;;  %v18109_v32 = vpop.f32.mrf.mxu1  ;;  %v2250_v17 = vld [vmem:[#allocation4 + $0xa8] sm:$0xff] }
 0x206   : > { %3424 = vst [vmem:[#allocation4 + $0x49] sm:$0xff] %v3360_v22  ;;  %v2564_v33 = vadd.f32 %v2390_v30, %v2244_v29  ;;  %v2041_v34 = vpop.f32.mrf.mxu0  ;;  %3422 = vst [vmem:[#allocation4 + $0x39] sm:$0xff] %v3358_v24  ;;  %v17286_v24 = vld [vmem:[#allocation2 + $0x100] sm:$0xff]  }
 0x207   : > { %3423 = vst [vmem:[#allocation4 + $0x41] sm:$0xff] %v3359_v28  ;;  %v2396_v4 = vsel %vm2357_vm0, %v2393_v12, %v2395_v31  ;;  %v2391_v35 = vrot.slane %v2041_v34, 1  ;;  %v18112_v37 = vpop.f32.mrf.mxu1  ;;  %v3297_v46 = vld [vmem:[#allocation4 + $0x51] sm:$0xff] }
 0x208   : > { %2628 = vst [vmem:[#allocation4 + $0x78] sm:$0xff] %v2564_v33  ;;  %v2567_v0 = vadd.f32 %v2396_v4, %v2247_v27  ;;  %v15579_v39 = vpop.f32.mrf.mxu0  ;;  %v3361_v36 = vadd.f32 %v18071_v58, %v3297_v46 }
 0x209   : > { %15770 = vmatmul.mubr.bf16.gmra.mxu0 %v17283_v40  ;;  %v2392_v43 = vsel %vm2357_vm0, %v2389_v18, %v2391_v35  ;;  %v2394_v5 = vsel %vm2357_vm0, %v2391_v35, %v2393_v12  ;;  %v18117_v45 = vpop.f32.mrf.mxu1  ;;  %v2401_v41 = vrot.slane %v15579_v39, 1  ;;  %v2249_v18 = vld [vmem:[#allocation4 + $0xa0] sm:$0xff]  ;;  %v2252_v39 = vld [vmem:[#allocation4 + $0xb8] sm:$0xff] }
 0x20a   : > { %15850 = vmatmul.mubr.bf16.gmra.mxu1 %v17283_v40  ;;  %15773 = vmatprep.mubr.bf16.mxu0 %v17284_v47  ;;  %2631 = vst [vmem:[#allocation4 + $0x90] sm:$0xff] %v2567_v0  ;;  %v2565_v48 = vadd.f32 %v2392_v43, %v2245_v42  ;;  %v2566_v6 = vadd.f32 %v2394_v5, %v2246_v38  ;;  %v2054_v50 = vpop.f32.mrf.mxu0  ;;  %3425 = vst [vmem:[#allocation4 + $0x51] sm:$0xff] %v3361_v36  ;;  %v17020_v38 = vld [vmem:[#allocation2 + $0x20] sm:$0xff]  }
 0x20b   : > { %15853 = vmatprep.mubr.bf16.mxu1 %v17284_v47  ;;  %v3300_v51 = vld [vmem:[#allocation4 + $0x69] sm:$0xff]  ;;  %v2397_v49 = vrot.slane %v2054_v50, 1  ;;  %v18119_v58 = vpop.f32.mrf.mxu1  ;;  %v3298_v54 = vld [vmem:[#allocation4 + $0x59] sm:$0xff]  ;;  %v3299_v55 = vld [vmem:[#allocation4 + $0x61] sm:$0xff] }
 0x20c   : > { %v3364_v52 = vadd.f32 %v3300_v51, %v18096_v57  ;;  %2629 = vst [vmem:[#allocation4 + $0x80] sm:$0xff] %v2565_v48  ;;  %2630 = vst [vmem:[#allocation4 + $0x88] sm:$0xff] %v2566_v6  ;;  %v15580_v56 = vpop.f32.mrf.mxu0  ;;  %v3362_v19 = vadd.f32 %v18077_v20, %v3298_v54  ;;  %v3363_v16 = vadd.f32 %v3299_v55, %v18087_v2  ;;  %v2251_v57 = vld [vmem:[#allocation4 + $0xb0] sm:$0xff]  ;;  %v17287_v51 = vld [vmem:[#allocation2 + $0x108] sm:$0xff]  }
 0x20d   : > { %v2398_v60 = vsel %vm2357_vm0, %v2395_v31, %v2397_v49  ;;  %v2403_v61 = vrot.slane %v15580_v56, 1  ;;  %v18125_v62 = vpop.f32.mrf.mxu1  ;;  %v2253_v54 = vld [vmem:[#allocation4 + $0xc0] sm:$0xff]  ;;  %v2254_v55 = vld [vmem:[#allocation4 + $0xc8] sm:$0xff] }
 0x20e   : > { %3428 = vst [vmem:[#allocation4 + $0x69] sm:$0xff] %v3364_v52  ;;  %v2568_v7 = vadd.f32 %v2398_v60, %v2248_v59  ;;  %v2057_v63 = vpop.f32.mrf.mxu0  ;;  %3426 = vst [vmem:[#allocation4 + $0x59] sm:$0xff] %v3362_v19 }
 0x20f   : > { %3427 = vst [vmem:[#allocation4 + $0x61] sm:$0xff] %v3363_v16  ;;  %v2404_v9 = vsel %vm2357_vm0, %v2401_v41, %v2403_v61  ;;  %v2399_v13 = vrot.slane %v2057_v63, 1  ;;  %v18128_v8 = vpop.f32.mrf.mxu1  ;;  %v3301_v20 = vld [vmem:[#allocation4 + $0x71] sm:$0xff] }
 0x210   : > { %2632 = vst [vmem:[#allocation4 + $0x98] sm:$0xff] %v2568_v7  ;;  %v2571_v2 = vadd.f32 %v2404_v9, %v2251_v57  ;;  %v15583_v11 = vpop.f32.mrf.mxu0  ;;  %v3365_v15 = vadd.f32 %v18085_v25, %v3301_v20 }
 0x211   : > { %15774 = vmatmul.mubr.bf16.gmra.mxu0 %v17285_v14  ;;  %v2400_v21 = vsel %vm2357_vm0, %v2397_v49, %v2399_v13  ;;  %v2402_v22 = vsel %vm2357_vm0, %v2399_v13, %v2401_v41  ;;  %v18133_v23 = vpop.f32.mrf.mxu1  ;;  %v2409_v0 = vrot.slane %v15583_v11, 1  ;;  %v17021_v13 = vld [vmem:[#allocation2 + $0x28] sm:$0xff]  }
 0x212   : > { %15854 = vmatmul.mubr.bf16.gmra.mxu1 %v17285_v14  ;;  %15777 = vmatprep.mubr.bf16.mxu0 %v17286_v24  ;;  %2635 = vst [vmem:[#allocation4 + $0xb0] sm:$0xff] %v2571_v2  ;;  %v2569_v28 = vadd.f32 %v2400_v21, %v2249_v18  ;;  %v2570_v12 = vadd.f32 %v2402_v22, %v2250_v17  ;;  %v2070_v29 = vpop.f32.mrf.mxu0  ;;  %3429 = vst [vmem:[#allocation4 + $0x71] sm:$0xff] %v3365_v15  ;;  %v2256_v14 = vld [vmem:[#allocation4 + $0xd8] sm:$0xff]  ;;  %v17025_v21 = vld [vmem:[#allocation2 + $0x30] sm:$0xff]  }
 0x213   : > { %15857 = vmatprep.mubr.bf16.mxu1 %v17286_v24  ;;  %v3304_v30 = vld [vmem:[#allocation4 + $0x89] sm:$0xff]  ;;  %v2405_v31 = vrot.slane %v2070_v29, 1  ;;  %v18135_v25 = vpop.f32.mrf.mxu1  ;;  %v3302_v33 = vld [vmem:[#allocation4 + $0x79] sm:$0xff]  ;;  %v3303_v34 = vld [vmem:[#allocation4 + $0x81] sm:$0xff] }
 0x214   : > { %v3368_v27 = vadd.f32 %v3304_v30, %v18112_v37  ;;  %2633 = vst [vmem:[#allocation4 + $0xa0] sm:$0xff] %v2569_v28  ;;  %2634 = vst [vmem:[#allocation4 + $0xa8] sm:$0xff] %v2570_v12  ;;  %v15584_v4 = vpop.f32.mrf.mxu0  ;;  %v3366_v35 = vadd.f32 %v18093_v53, %v3302_v33  ;;  %v3367_v46 = vadd.f32 %v3303_v34, %v18103_v26  ;;  %v2255_v37 = vld [vmem:[#allocation4 + $0xd0] sm:$0xff]  ;;  %v2257_v34 = vld [vmem:[#allocation4 + $0xe0] sm:$0xff] }
 0x215   : > { %v2406_v40 = vsel %vm2357_vm0, %v2403_v61, %v2405_v31  ;;  %v2411_v36 = vrot.slane %v15584_v4, 1  ;;  %v18141_v42 = vpop.f32.mrf.mxu1  ;;  %v2259_v28 = vld [vmem:[#allocation4 + $0xf0] sm:$0xff] }
 0x216   : > { %3432 = vst [vmem:[#allocation4 + $0x89] sm:$0xff] %v3368_v27  ;;  %v2572_v43 = vadd.f32 %v2406_v40, %v2252_v39  ;;  %v2073_v5 = vpop.f32.mrf.mxu0  ;;  %3430 = vst [vmem:[#allocation4 + $0x79] sm:$0xff] %v3366_v35  ;;  %v2258_v27 = vld [vmem:[#allocation4 + $0xe8] sm:$0xff] }
 0x217   : > { %3431 = vst [vmem:[#allocation4 + $0x81] sm:$0xff] %v3367_v46  ;;  %v2412_v47 = vsel %vm2357_vm0, %v2409_v0, %v2411_v36  ;;  %v2407_v48 = vrot.slane %v2073_v5, 1  ;;  %v18144_v53 = vpop.f32.mrf.mxu1  ;;  %v3305_v26 = vld [vmem:[#allocation4 + $0x91] sm:$0xff] }
 0x218   : > { %2636 = vst [vmem:[#allocation4 + $0xb8] sm:$0xff] %v2572_v43  ;;  %v2575_v6 = vadd.f32 %v2412_v47, %v2255_v37  ;;  %v15587_v50 = vpop.f32.mrf.mxu0  ;;  %v3369_v49 = vadd.f32 %v18101_v10, %v3305_v26 }
 0x219   : > { %15778 = vmatmul.mubr.bf16.gmra.mxu0 %v17287_v51  ;;  %v2408_v52 = vsel %vm2357_vm0, %v2405_v31, %v2407_v48  ;;  %v2410_v56 = vsel %vm2357_vm0, %v2407_v48, %v2409_v0  ;;  %v18149_v19 = vpop.f32.mrf.mxu1  ;;  %v2417_v11 = vrot.slane %v15587_v50, 1  ;;  %v17026_v48 = vld [vmem:[#allocation2 + $0x38] sm:$0xff]  }
 0x21a   : > { %15858 = vmatmul.mubr.bf16.gmra.mxu1 %v17287_v51  ;;  %15877 = vmatprep.mubr.bf16.mxu0 %v17020_v38  ;;  %2639 = vst [vmem:[#allocation4 + $0xd0] sm:$0xff] %v2575_v6  ;;  %v2573_v16 = vadd.f32 %v2408_v52, %v2253_v54  ;;  %v2574_v41 = vadd.f32 %v2410_v56, %v2254_v55  ;;  %v2086_v59 = vpop.f32.mrf.mxu0  ;;  %3433 = vst [vmem:[#allocation4 + $0x91] sm:$0xff] %v3369_v49  ;;  %v2260_v51 = vld [vmem:[#allocation4 + $0xf8] sm:$0xff]  ;;  %v17027_v52 = vld [vmem:[#allocation2 + $0x40] sm:$0xff]  }
 0x21b   : > { %15957 = vmatprep.mubr.bf16.mxu1 %v17020_v38  ;;  %v3308_v60 = vld [vmem:[#allocation4 + $0xa9] sm:$0xff]  ;;  %v2413_v61 = vrot.slane %v2086_v59, 1  ;;  %v18151_v7 = vpop.f32.mrf.mxu1  ;;  %v3306_v10 = vld [vmem:[#allocation4 + $0x99] sm:$0xff]  ;;  %v3307_v63 = vld [vmem:[#allocation4 + $0xa1] sm:$0xff] }
 0x21c   : > { %v3372_v57 = vadd.f32 %v3308_v60, %v18128_v8  ;;  %2637 = vst [vmem:[#allocation4 + $0xc0] sm:$0xff] %v2573_v16  ;;  %2638 = vst [vmem:[#allocation4 + $0xc8] sm:$0xff] %v2574_v41  ;;  %v15588_v9 = vpop.f32.mrf.mxu0  ;;  %v3370_v20 = vadd.f32 %v18109_v32, %v3306_v10  ;;  %v3371_v2 = vadd.f32 %v3307_v63, %v18119_v58  ;;  %v17029_v8 = vld [vmem:[#allocation8 + $0x230] sm:$0xff]   ;;  %v17039_v16 = vld [vmem:[#allocation8 + $0x220] sm:$0xff]  }
 0x21d   : > { %v2414_v15 = vsel %vm2357_vm0, %v2411_v36, %v2413_v61  ;;  %v2419_v18 = vrot.slane %v15588_v9, 1  ;;  %v18157_v17 = vpop.f32.mrf.mxu1  ;;  %v17034_v36 = vld [vmem:[#allocation8 + $0x228] sm:$0xff]   ;;  %v2263_v41 = vld [vmem:[#allocation4 + $0x110] sm:$0xff] }
 0x21e   : > { %3436 = vst [vmem:[#allocation4 + $0xa9] sm:$0xff] %v3372_v57  ;;  %v2576_v22 = vadd.f32 %v2414_v15, %v2256_v14  ;;  %v2089_v24 = vpop.f32.mrf.mxu0  ;;  %3434 = vst [vmem:[#allocation4 + $0x99] sm:$0xff] %v3370_v20  ;;  %v2261_v57 = vld [vmem:[#allocation4 + $0x100] sm:$0xff]  ;;  %v2262_v9 = vld [vmem:[#allocation4 + $0x108] sm:$0xff] }
 0x21f   : > { %3435 = vst [vmem:[#allocation4 + $0xa1] sm:$0xff] %v3371_v2  ;;  %v2420_v12 = vsel %vm2357_vm0, %v2417_v11, %v2419_v18  ;;  %v2415_v32 = vrot.slane %v2089_v24, 1  ;;  %v18160_v29 = vpop.f32.mrf.mxu1  ;;  %v3309_v58 = vld [vmem:[#allocation4 + $0xb1] sm:$0xff] }
 0x220   : > { %2640 = vst [vmem:[#allocation4 + $0xd8] sm:$0xff] %v2576_v22  ;;  %v2579_v30 = vadd.f32 %v2420_v12, %v2259_v28  ;;  %v15591_v31 = vpop.f32.mrf.mxu0  ;;  %v3373_v33 = vadd.f32 %v18117_v45, %v3309_v58 }
 0x221   : > { %15878 = vmatmul.mubr.bf16.vlgmr.msra.gmra.mxu0 %v17021_v13  ;;  %v2416_v4 = vsel %vm2357_vm0, %v2413_v61, %v2415_v32  ;;  %v2418_v35 = vsel %vm2357_vm0, %v2415_v32, %v2417_v11  ;;  %v18165_v46 = vpop.f32.mrf.mxu1  ;;  %v2425_v50 = vrot.slane %v15591_v31, 1  ;;  %v17028_v32 = vld [vmem:[#allocation2 + $0x48] sm:$0xff]  }
 0x222   : > { %16022 = vmatpush3.bf16.msra.mxu0 %v18034_v1  ;;  %15881 = vmatprep.mubr.bf16.mxu0 %v17025_v21  ;;  %2643 = vst [vmem:[#allocation4 + $0xf0] sm:$0xff] %v2579_v30  ;;  %v2577_v0 = vadd.f32 %v2416_v4, %v2257_v34  ;;  %v2578_v39 = vadd.f32 %v2418_v35, %v2258_v27  ;;  %v2102_v40 = vpop.f32.mrf.mxu0  ;;  %3437 = vst [vmem:[#allocation4 + $0xb1] sm:$0xff] %v3373_v33  ;;  %v2264_v33 = vld [vmem:[#allocation4 + $0x118] sm:$0xff]  ;;  %v17030_v35 = vld [vmem:[#allocation2 + $0x50] sm:$0xff]  }
 0x223   : > { %15958 = vmatmul.mubr.bf16.vlgmr.msra.gmra.mxu1 %v17021_v13  ;;  %16023 = vmatprep.subr.bf16.mxu0 %v17029_v8  ;;  %v3312_v45 = vld [vmem:[#allocation4 + $0xc9] sm:$0xff]  ;;  %v2421_v38 = vrot.slane %v2102_v40, 1  ;;  %v18168_v43 = vpop.f32.mrf.mxu1  ;;  %v3310_v5 = vld [vmem:[#allocation4 + $0xb9] sm:$0xff]  ;;  %v3311_v37 = vld [vmem:[#allocation4 + $0xc1] sm:$0xff] }
 0x224   : > { %15961 = vmatprep.mubr.bf16.mxu1 %v17025_v21  ;;  %v3376_v47 = vadd.f32 %v3312_v45, %v18144_v53  ;;  %2641 = vst [vmem:[#allocation4 + $0xe0] sm:$0xff] %v2577_v0  ;;  %2642 = vst [vmem:[#allocation4 + $0xe8] sm:$0xff] %v2578_v39  ;;  %v15592_v1 = vpop.f32.mrf.mxu0  ;;  %v3374_v26 = vadd.f32 %v18125_v62, %v3310_v5  ;;  %v3375_v6 = vadd.f32 %v3311_v37, %v18135_v25  ;;  %v17049_v39 = vld [vmem:[#allocation8 + $0x210] sm:$0xff]  }
 0x225   : > { %v2422_v49 = vsel %vm2357_vm0, %v2419_v18, %v2421_v38  ;;  %v2427_v54 = vrot.slane %v15592_v1, 1  ;;  %v18174_v55 = vpop.f32.mrf.mxu1  ;;  %v17044_v18 = vld [vmem:[#allocation8 + $0x218] sm:$0xff]   ;;  %v2267_v40 = vld [vmem:[#allocation4 + $0x130] sm:$0xff]  ;;  %v2266_v1 = vld [vmem:[#allocation4 + $0x128] sm:$0xff] }
 0x226   : > { %16024 = vmatpush3.bf16.msra.mxu0 %v17029_v8  ;;  %3440 = vst [vmem:[#allocation4 + $0xc9] sm:$0xff] %v3376_v47  ;;  %v2580_v56 = vadd.f32 %v2422_v49, %v2260_v51  ;;  %v2105_v53 = vpop.f32.mrf.mxu0  ;;  %3438 = vst [vmem:[#allocation4 + $0xb9] sm:$0xff] %v3374_v26  ;;  %v2265_v47 = vld [vmem:[#allocation4 + $0x120] sm:$0xff] }
 0x227   : > { %16025 = vmatprep.subr.bf16.mxu0 %v17034_v36  ;;  %3439 = vst [vmem:[#allocation4 + $0xc1] sm:$0xff] %v3375_v6  ;;  %v2428_v62 = vsel %vm2357_vm0, %v2425_v50, %v2427_v54  ;;  %v2423_v25 = vrot.slane %v2105_v53, 1  ;;  %v18177_v59 = vpop.f32.mrf.mxu1  ;;  %v3313_v60 = vld [vmem:[#allocation4 + $0xd1] sm:$0xff] }
 0x228   : > { %2644 = vst [vmem:[#allocation4 + $0xf8] sm:$0xff] %v2580_v56  ;;  %v2583_v61 = vadd.f32 %v2428_v62, %v2263_v41  ;;  %v15595_v10 = vpop.f32.mrf.mxu0  ;;  %v3377_v63 = vadd.f32 %v18133_v23, %v3313_v60 }
 0x229   : > { %15882 = vmatmul.mubr.bf16.gmra.mxu0 %v17026_v48  ;;  %v2424_v13 = vsel %vm2357_vm0, %v2421_v38, %v2423_v25  ;;  %v2426_v20 = vsel %vm2357_vm0, %v2423_v25, %v2425_v50  ;;  %v18182_v2 = vpop.f32.mrf.mxu1  ;;  %v2433_v31 = vrot.slane %v15595_v10, 1  ;;  %v17031_v25 = vld [vmem:[#allocation2 + $0x58] sm:$0xff]  }
 0x22a   : > { %15885 = vmatprep.mubr.bf16.mxu0 %v17027_v52  ;;  %16026 = vmatpush3.bf16.msra.mxu0 %v17034_v36  ;;  %2647 = vst [vmem:[#allocation4 + $0x110] sm:$0xff] %v2583_v61  ;;  %v2581_v11 = vadd.f32 %v2424_v13, %v2261_v57  ;;  %v2582_v14 = vadd.f32 %v2426_v20, %v2262_v9  ;;  %v2118_v15 = vpop.f32.mrf.mxu0  ;;  %3441 = vst [vmem:[#allocation4 + $0xd1] sm:$0xff] %v3377_v63  ;;  %v2268_v63 = vld [vmem:[#allocation4 + $0x138] sm:$0xff]  ;;  %v17032_v20 = vld [vmem:[#allocation2 + $0x60] sm:$0xff]  }
 0x22b   : > { %15962 = vmatmul.mubr.bf16.gmra.mxu1 %v17026_v48  ;;  %16027 = vmatprep.subr.bf16.mxu0 %v17039_v16  ;;  %v3316_v21 = vld [vmem:[#allocation4 + $0xe9] sm:$0xff]  ;;  %v2429_v23 = vrot.slane %v2118_v15, 1  ;;  %v18184_v22 = vpop.f32.mrf.mxu1  ;;  %v3314_v24 = vld [vmem:[#allocation4 + $0xd9] sm:$0xff]  ;;  %v3315_v8 = vld [vmem:[#allocation4 + $0xe1] sm:$0xff] }
 0x22c   : > { %15965 = vmatprep.mubr.bf16.mxu1 %v17027_v52  ;;  %v3380_v28 = vadd.f32 %v3316_v21, %v18160_v29  ;;  %2645 = vst [vmem:[#allocation4 + $0x100] sm:$0xff] %v2581_v11  ;;  %2646 = vst [vmem:[#allocation4 + $0x108] sm:$0xff] %v2582_v14  ;;  %v15596_v12 = vpop.f32.mrf.mxu0  ;;  %v3378_v58 = vadd.f32 %v18141_v42, %v3314_v24  ;;  %v3379_v30 = vadd.f32 %v3315_v8, %v18151_v7  ;;  %v17059_v14 = vld [vmem:[#allocation8 + $0x200] sm:$0xff]   ;;  %v2271_v15 = vld [vmem:[#allocation4 + $0x150] sm:$0xff] }
 0x22d   : > { %v2430_v34 = vsel %vm2357_vm0, %v2427_v54, %v2429_v23  ;;  %v2435_v27 = vrot.slane %v15596_v12, 1  ;;  %v18190_v4 = vpop.f32.mrf.mxu1  ;;  %v17054_v54 = vld [vmem:[#allocation8 + $0x208] sm:$0xff]  }
 0x22e   : > { %16028 = vmatpush3.bf16.msra.mxu0 %v17039_v16  ;;  %3444 = vst [vmem:[#allocation4 + $0xe9] sm:$0xff] %v3380_v28  ;;  %v2584_v0 = vadd.f32 %v2430_v34, %v2264_v33  ;;  %v2121_v29 = vpop.f32.mrf.mxu0  ;;  %3442 = vst [vmem:[#allocation4 + $0xd9] sm:$0xff] %v3378_v58  ;;  %v2269_v28 = vld [vmem:[#allocation4 + $0x140] sm:$0xff]  ;;  %v2270_v12 = vld [vmem:[#allocation4 + $0x148] sm:$0xff] }
 0x22f   : > { %16029 = vmatprep.subr.bf16.mxu0 %v17044_v18  ;;  %3443 = vst [vmem:[#allocation4 + $0xe1] sm:$0xff] %v3379_v30  ;;  %v2436_v42 = vsel %vm2357_vm0, %v2433_v31, %v2435_v27  ;;  %v2431_v7 = vrot.slane %v2121_v29, 1  ;;  %v18193_v36 = vpop.f32.mrf.mxu1  ;;  %v3317_v45 = vld [vmem:[#allocation4 + $0xf1] sm:$0xff] }
 0x230   : > { %2648 = vst [vmem:[#allocation4 + $0x118] sm:$0xff] %v2584_v0  ;;  %v2587_v38 = vadd.f32 %v2436_v42, %v2267_v40  ;;  %v15599_v5 = vpop.f32.mrf.mxu0  ;;  %v3381_v37 = vadd.f32 %v18149_v19, %v3317_v45  ;;  %v17033_v42 = vld [vmem:[#allocation2 + $0x68] sm:$0xff]  }
 0x231   : > { %15886 = vmatmul.mubr.bf16.gmra.mxu0 %v17028_v32  ;;  %v2432_v48 = vsel %vm2357_vm0, %v2429_v23, %v2431_v7  ;;  %v2434_v26 = vsel %vm2357_vm0, %v2431_v7, %v2433_v31  ;;  %v18198_v6 = vpop.f32.mrf.mxu1  ;;  %v2441_v10 = vrot.slane %v15599_v5, 1  ;;  %v2272_v5 = vld [vmem:[#allocation4 + $0x158] sm:$0xff] }
 0x232   : > { %15889 = vmatprep.mubr.bf16.mxu0 %v17030_v35  ;;  %16030 = vmatpush3.bf16.msra.mxu0 %v17044_v18  ;;  %2651 = vst [vmem:[#allocation4 + $0x130] sm:$0xff] %v2587_v38  ;;  %v2585_v50 = vadd.f32 %v2432_v48, %v2265_v47  ;;  %v2586_v51 = vadd.f32 %v2434_v26, %v2266_v1  ;;  %v2134_v49 = vpop.f32.mrf.mxu0  ;;  %3445 = vst [vmem:[#allocation4 + $0xf1] sm:$0xff] %v3381_v37  ;;  %v17035_v48 = vld [vmem:[#allocation2 + $0x70] sm:$0xff]  }
 0x233   : > { %15966 = vmatmul.mubr.bf16.gmra.mxu1 %v17028_v32  ;;  %16031 = vmatprep.subr.bf16.mxu0 %v17049_v39  ;;  %v3320_v52 = vld [vmem:[#allocation4 + $0x109] sm:$0xff]  ;;  %v2437_v19 = vrot.slane %v2134_v49, 1  ;;  %v18200_v56 = vpop.f32.mrf.mxu1  ;;  %v3318_v53 = vld [vmem:[#allocation4 + $0xf9] sm:$0xff]  ;;  %v3319_v16 = vld [vmem:[#allocation4 + $0x101] sm:$0xff] }
 0x234   : > { %15969 = vmatprep.mubr.bf16.mxu1 %v17030_v35  ;;  %v3384_v41 = vadd.f32 %v3320_v52, %v18177_v59  ;;  %2649 = vst [vmem:[#allocation4 + $0x120] sm:$0xff] %v2585_v50  ;;  %2650 = vst [vmem:[#allocation4 + $0x128] sm:$0xff] %v2586_v51  ;;  %v15600_v62 = vpop.f32.mrf.mxu0  ;;  %v3382_v60 = vadd.f32 %v18157_v17, %v3318_v53  ;;  %v3383_v61 = vadd.f32 %v3319_v16, %v18168_v43  ;;  %v2275_v50 = vld [vmem:[#allocation4 + $0x170] sm:$0xff]  ;;  %v2273_v53 = vld [vmem:[#allocation4 + $0x160] sm:$0xff] }
 0x235   : > { %v2438_v57 = vsel %vm2357_vm0, %v2435_v27, %v2437_v19  ;;  %v2443_v9 = vrot.slane %v15600_v62, 1  ;;  %v18206_v13 = vpop.f32.mrf.mxu1  ;;  %v2274_v16 = vld [vmem:[#allocation4 + $0x168] sm:$0xff] }
 0x236   : > { %16032 = vmatpush3.bf16.msra.mxu0 %v17049_v39  ;;  %3448 = vst [vmem:[#allocation4 + $0x109] sm:$0xff] %v3384_v41  ;;  %v2588_v11 = vadd.f32 %v2438_v57, %v2268_v63  ;;  %v2137_v59 = vpop.f32.mrf.mxu0  ;;  %3446 = vst [vmem:[#allocation4 + $0xf9] sm:$0xff] %v3382_v60 }
 0x237   : > { %16033 = vmatprep.subr.bf16.mxu0 %v17054_v54  ;;  %3447 = vst [vmem:[#allocation4 + $0x101] sm:$0xff] %v3383_v61  ;;  %v2444_v17 = vsel %vm2357_vm0, %v2441_v10, %v2443_v9  ;;  %v2439_v43 = vrot.slane %v2137_v59, 1  ;;  %v18209_v18 = vpop.f32.mrf.mxu1  ;;  %v3321_v21 = vld [vmem:[#allocation4 + $0x111] sm:$0xff] }
 0x238   : > { %2652 = vst [vmem:[#allocation4 + $0x138] sm:$0xff] %v2588_v11  ;;  %v2591_v23 = vadd.f32 %v2444_v17, %v2271_v15  ;;  %v15603_v24 = vpop.f32.mrf.mxu0  ;;  %v3385_v8 = vadd.f32 %v18165_v46, %v3321_v21  ;;  %v2276_v21 = vld [vmem:[#allocation4 + $0x178] sm:$0xff] }
 0x239   : > { %15890 = vmatmul.mubr.bf16.gmra.mxu0 %v17031_v25  ;;  %v2440_v32 = vsel %vm2357_vm0, %v2437_v19, %v2439_v43  ;;  %v2442_v58 = vsel %vm2357_vm0, %v2439_v43, %v2441_v10  ;;  %v18214_v30 = vpop.f32.mrf.mxu1  ;;  %v2449_v38 = vrot.slane %v15603_v24, 1 }
 0x23a   : > { %15893 = vmatprep.mubr.bf16.mxu0 %v17032_v20  ;;  %16034 = vmatpush3.bf16.msra.mxu0 %v17054_v54  ;;  %2655 = vst [vmem:[#allocation4 + $0x150] sm:$0xff] %v2591_v23  ;;  %v2589_v31 = vadd.f32 %v2440_v32, %v2269_v28  ;;  %v2590_v33 = vadd.f32 %v2442_v58, %v2270_v12  ;;  %v2150_v34 = vpop.f32.mrf.mxu0  ;;  %3449 = vst [vmem:[#allocation4 + $0x111] sm:$0xff] %v3385_v8  ;;  %v17037_v28 = vld [vmem:[#allocation2 + $0x80] sm:$0xff]  }
 0x23b   : > { %15970 = vmatmul.mubr.bf16.gmra.mxu1 %v17031_v25  ;;  %16035 = vmatprep.subr.bf16.mxu0 %v17059_v14  ;;  %v3324_v27 = vld [vmem:[#allocation4 + $0x129] sm:$0xff]  ;;  %v2445_v35 = vrot.slane %v2150_v34, 1  ;;  %v18216_v46 = vpop.f32.mrf.mxu1  ;;  %v3322_v0 = vld [vmem:[#allocation4 + $0x119] sm:$0xff]  ;;  %v3323_v29 = vld [vmem:[#allocation4 + $0x121] sm:$0xff] }
 0x23c   : > { %15973 = vmatprep.mubr.bf16.mxu1 %v17032_v20  ;;  %v3388_v39 = vadd.f32 %v3324_v27, %v18193_v36  ;;  %2653 = vst [vmem:[#allocation4 + $0x140] sm:$0xff] %v2589_v31  ;;  %2654 = vst [vmem:[#allocation4 + $0x148] sm:$0xff] %v2590_v33  ;;  %v15604_v40 = vpop.f32.mrf.mxu0  ;;  %v3386_v7 = vadd.f32 %v18174_v55, %v3322_v0  ;;  %v3387_v45 = vadd.f32 %v3323_v29, %v18184_v22  ;;  %v2278_v0 = vld [vmem:[#allocation4 + $0x188] sm:$0xff] }
 0x23d   : > { %v2446_v37 = vsel %vm2357_vm0, %v2443_v9, %v2445_v35  ;;  %v2451_v47 = vrot.slane %v15604_v40, 1  ;;  %v18222_v1 = vpop.f32.mrf.mxu1 }
 0x23e   : > { %16036 = vmatpush3.bf16.msra.mxu0 %v17059_v14  ;;  %3452 = vst [vmem:[#allocation4 + $0x129] sm:$0xff] %v3388_v39  ;;  %v2592_v26 = vadd.f32 %v2446_v37, %v2272_v5  ;;  %v2153_v36 = vpop.f32.mrf.mxu0  ;;  %3450 = vst [vmem:[#allocation4 + $0x119] sm:$0xff] %v3386_v7  ;;  %v17036_v14 = vld [vmem:[#allocation2 + $0x78] sm:$0xff]  }
 0x23f   : > { %3451 = vst [vmem:[#allocation4 + $0x121] sm:$0xff] %v3387_v45  ;;  %v2452_v51 = vsel %vm2357_vm0, %v2449_v38, %v2451_v47  ;;  %v2447_v55 = vrot.slane %v2153_v36, 1  ;;  %v18225_v49 = vpop.f32.mrf.mxu1  ;;  %v3325_v22 = vld [vmem:[#allocation4 + $0x131] sm:$0xff]  ;;  %v17038_v36 = vld [vmem:[#allocation2 + $0x88] sm:$0xff]  }
 0x240   : > { %2656 = vst [vmem:[#allocation4 + $0x158] sm:$0xff] %v2592_v26  ;;  %v2595_v54 = vadd.f32 %v2452_v51, %v2275_v50  ;;  %v15607_v52 = vpop.f32.mrf.mxu0  ;;  %v3389_v19 = vadd.f32 %v18182_v2, %v3325_v22  ;;  %v2280_v22 = vld [vmem:[#allocation4 + $0x198] sm:$0xff] }
 0x241   : > { %15894 = vmatmul.mubr.bf16.gmra.mxu0 %v17033_v42  ;;  %v2448_v41 = vsel %vm2357_vm0, %v2445_v35, %v2447_v55  ;;  %v2450_v62 = vsel %vm2357_vm0, %v2447_v55, %v2449_v38  ;;  %v18230_v25 = vpop.f32.mrf.mxu1  ;;  %v2457_v43 = vrot.slane %v15607_v52, 1  ;;  %v2277_v35 = vld [vmem:[#allocation4 + $0x180] sm:$0xff] }
 0x242   : > { %15897 = vmatprep.mubr.bf16.mxu0 %v17035_v48  ;;  %2659 = vst [vmem:[#allocation4 + $0x170] sm:$0xff] %v2595_v54  ;;  %v2593_v60 = vadd.f32 %v2448_v41, %v2273_v53  ;;  %v2594_v61 = vadd.f32 %v2450_v62, %v2274_v16  ;;  %v2166_v10 = vpop.f32.mrf.mxu0  ;;  %3453 = vst [vmem:[#allocation4 + $0x131] sm:$0xff] %v3389_v19  ;;  %v17040_v53 = vld [vmem:[#allocation2 + $0x90] sm:$0xff]  }
 0x243   : > { %15974 = vmatmul.mubr.bf16.gmra.mxu1 %v17033_v42  ;;  %v3328_v63 = vld [vmem:[#allocation4 + $0x149] sm:$0xff]  ;;  %v2453_v57 = vrot.slane %v2166_v10, 1  ;;  %v18232_v9 = vpop.f32.mrf.mxu1  ;;  %v3326_v2 = vld [vmem:[#allocation4 + $0x139] sm:$0xff]  ;;  %v3327_v20 = vld [vmem:[#allocation4 + $0x141] sm:$0xff] }
 0x244   : > { %15977 = vmatprep.mubr.bf16.mxu1 %v17035_v48  ;;  %v3392_v11 = vadd.f32 %v3328_v63, %v18209_v18  ;;  %2657 = vst [vmem:[#allocation4 + $0x160] sm:$0xff] %v2593_v60  ;;  %2658 = vst [vmem:[#allocation4 + $0x168] sm:$0xff] %v2594_v61  ;;  %v15608_v59 = vpop.f32.mrf.mxu0  ;;  %v3390_v15 = vadd.f32 %v18190_v4, %v3326_v2  ;;  %v3391_v17 = vadd.f32 %v3327_v20, %v18200_v56  ;;  %v2279_v18 = vld [vmem:[#allocation4 + $0x190] sm:$0xff]  ;;  %v2282_v2 = vld [vmem:[#allocation4 + $0x1a8] sm:$0xff] }
 0x245   : > { %v2454_v23 = vsel %vm2357_vm0, %v2451_v47, %v2453_v57  ;;  %v2459_v24 = vrot.slane %v15608_v59, 1  ;;  %v18238_v8 = vpop.f32.mrf.mxu1 }
 0x246   : > { %3456 = vst [vmem:[#allocation4 + $0x149] sm:$0xff] %v3392_v11  ;;  %v2596_v12 = vadd.f32 %v2454_v23, %v2276_v21  ;;  %v2169_v32 = vpop.f32.mrf.mxu0  ;;  %3454 = vst [vmem:[#allocation4 + $0x139] sm:$0xff] %v3390_v15 }
 0x247   : > { %3455 = vst [vmem:[#allocation4 + $0x141] sm:$0xff] %v3391_v17  ;;  %v2460_v58 = vsel %vm2357_vm0, %v2457_v43, %v2459_v24  ;;  %v2455_v31 = vrot.slane %v2169_v32, 1  ;;  %v18241_v4 = vpop.f32.mrf.mxu1  ;;  %v3329_v56 = vld [vmem:[#allocation4 + $0x151] sm:$0xff] }
 0x248   : > { %2660 = vst [vmem:[#allocation4 + $0x178] sm:$0xff] %v2596_v12  ;;  %v2599_v33 = vadd.f32 %v2460_v58, %v2279_v18  ;;  %v15611_v34 = vpop.f32.mrf.mxu0  ;;  %v3393_v27 = vadd.f32 %v18198_v6, %v3329_v56  ;;  %v17041_v32 = vld [vmem:[#allocation2 + $0x98] sm:$0xff]  }
 0x249   : > { %15898 = vmatmul.mubr.bf16.gmra.mxu0 %v17036_v14  ;;  %v2456_v29 = vsel %vm2357_vm0, %v2453_v57, %v2455_v31  ;;  %v2458_v39 = vsel %vm2357_vm0, %v2455_v31, %v2457_v43  ;;  %v18246_v40 = vpop.f32.mrf.mxu1  ;;  %v2465_v55 = vrot.slane %v15611_v34, 1  ;;  %v2281_v57 = vld [vmem:[#allocation4 + $0x1a0] sm:$0xff]  ;;  %v2284_v56 = vld [vmem:[#allocation4 + $0x1b8] sm:$0xff] }
 0x24a   : > { %15901 = vmatprep.mubr.bf16.mxu0 %v17037_v28  ;;  %2663 = vst [vmem:[#allocation4 + $0x190] sm:$0xff] %v2599_v33  ;;  %v2597_v42 = vadd.f32 %v2456_v29, %v2277_v35  ;;  %v2598_v7 = vadd.f32 %v2458_v39, %v2278_v0  ;;  %v2182_v45 = vpop.f32.mrf.mxu0  ;;  %3457 = vst [vmem:[#allocation4 + $0x151] sm:$0xff] %v3393_v27  ;;  %v17042_v35 = vld [vmem:[#allocation2 + $0xa0] sm:$0xff]  }
 0x24b   : > { %15978 = vmatmul.mubr.bf16.gmra.mxu1 %v17036_v14  ;;  %v3332_v38 = vld [vmem:[#allocation4 + $0x169] sm:$0xff]  ;;  %v2461_v5 = vrot.slane %v2182_v45, 1  ;;  %v18248_v37 = vpop.f32.mrf.mxu1  ;;  %v3330_v6 = vld [vmem:[#allocation4 + $0x159] sm:$0xff]  ;;  %v3331_v47 = vld [vmem:[#allocation4 + $0x161] sm:$0xff] }
 0x24c   : > { %15981 = vmatprep.mubr.bf16.mxu1 %v17037_v28  ;;  %v3396_v48 = vadd.f32 %v3332_v38, %v18225_v49  ;;  %2661 = vst [vmem:[#allocation4 + $0x180] sm:$0xff] %v2597_v42  ;;  %2662 = vst [vmem:[#allocation4 + $0x188] sm:$0xff] %v2598_v7  ;;  %v15612_v26 = vpop.f32.mrf.mxu0  ;;  %v3394_v50 = vadd.f32 %v18206_v13, %v3330_v6  ;;  %v3395_v51 = vadd.f32 %v3331_v47, %v18216_v46  ;;  %v2283_v49 = vld [vmem:[#allocation4 + $0x1b0] sm:$0xff]  ;;  %v2286_v6 = vld [vmem:[#allocation4 + $0x1c8] sm:$0xff] }
 0x24d   : > { %v2462_v54 = vsel %vm2357_vm0, %v2459_v24, %v2461_v5  ;;  %v2467_v52 = vrot.slane %v15612_v26, 1  ;;  %v18254_v19 = vpop.f32.mrf.mxu1 }
 0x24e   : > { %3460 = vst [vmem:[#allocation4 + $0x169] sm:$0xff] %v3396_v48  ;;  %v2600_v16 = vadd.f32 %v2462_v54, %v2280_v22  ;;  %v2185_v41 = vpop.f32.mrf.mxu0  ;;  %3458 = vst [vmem:[#allocation4 + $0x159] sm:$0xff] %v3394_v50 }
 0x24f   : > { %3459 = vst [vmem:[#allocation4 + $0x161] sm:$0xff] %v3395_v51  ;;  %v2468_v62 = vsel %vm2357_vm0, %v2465_v55, %v2467_v52  ;;  %v2463_v60 = vrot.slane %v2185_v41, 1  ;;  %v18257_v13 = vpop.f32.mrf.mxu1  ;;  %v3333_v46 = vld [vmem:[#allocation4 + $0x171] sm:$0xff] }
 0x250   : > { %2664 = vst [vmem:[#allocation4 + $0x198] sm:$0xff] %v2600_v16  ;;  %v2603_v61 = vadd.f32 %v2468_v62, %v2283_v49  ;;  %v15615_v10 = vpop.f32.mrf.mxu0  ;;  %v3397_v63 = vadd.f32 %v18214_v30, %v3333_v46  ;;  %v17043_v49 = vld [vmem:[#allocation2 + $0xa8] sm:$0xff]  }
 0x251   : > { %15902 = vmatmul.mubr.bf16.gmra.mxu0 %v17038_v36  ;;  %v2464_v20 = vsel %vm2357_vm0, %v2461_v5, %v2463_v60  ;;  %v2466_v11 = vsel %vm2357_vm0, %v2463_v60, %v2465_v55  ;;  %v18262_v59 = vpop.f32.mrf.mxu1  ;;  %v2473_v31 = vrot.slane %v15615_v10, 1  ;;  %v2285_v5 = vld [vmem:[#allocation4 + $0x1c0] sm:$0xff]  ;;  %v1745_v55 = vld [vmem:[#allocation4 + $0x1f0] sm:$0xff] }
 0x252   : > { %15905 = vmatprep.mubr.bf16.mxu0 %v17040_v53  ;;  %2667 = vst [vmem:[#allocation4 + $0x1b0] sm:$0xff] %v2603_v61  ;;  %v2601_v14 = vadd.f32 %v2464_v20, %v2281_v57  ;;  %v2602_v15 = vadd.f32 %v2466_v11, %v2282_v2  ;;  %v2198_v17 = vpop.f32.mrf.mxu0  ;;  %3461 = vst [vmem:[#allocation4 + $0x171] sm:$0xff] %v3397_v63  ;;  %v2288_v61 = vld [vmem:[#allocation4 + $0x1d8] sm:$0xff]  ;;  %v17045_v2 = vld [vmem:[#allocation2 + $0xb0] sm:$0xff]  }
 0x253   : > { %15982 = vmatmul.mubr.bf16.gmra.mxu1 %v17038_v36  ;;  %v3336_v43 = vld [vmem:[#allocation4 + $0x189] sm:$0xff]  ;;  %v2469_v21 = vrot.slane %v2198_v17, 1  ;;  %v18264_v23 = vpop.f32.mrf.mxu1  ;;  %v3334_v30 = vld [vmem:[#allocation4 + $0x179] sm:$0xff]  ;;  %v3335_v24 = vld [vmem:[#allocation4 + $0x181] sm:$0xff] }
 0x254   : > { %15985 = vmatprep.mubr.bf16.mxu1 %v17040_v53  ;;  %v3400_v28 = vadd.f32 %v3336_v43, %v18241_v4  ;;  %2665 = vst [vmem:[#allocation4 + $0x1a0] sm:$0xff] %v2601_v14  ;;  %2666 = vst [vmem:[#allocation4 + $0x1a8] sm:$0xff] %v2602_v15  ;;  %v15616_v12 = vpop.f32.mrf.mxu0  ;;  %v3398_v18 = vadd.f32 %v18222_v1, %v3334_v30  ;;  %v3399_v58 = vadd.f32 %v3335_v24, %v18232_v9  ;;  %v2287_v4 = vld [vmem:[#allocation4 + $0x1d0] sm:$0xff]  ;;  %v2292_v11 = vld [vmem:[#allocation4 + $0x1f8] sm:$0x7f] }
 0x255   : > { %v2470_v33 = vsel %vm2357_vm0, %v2467_v52, %v2469_v21  ;;  %v2475_v34 = vrot.slane %v15616_v12, 1  ;;  %v18270_v27 = vpop.f32.mrf.mxu1 }
 0x256   : > { %3464 = vst [vmem:[#allocation4 + $0x189] sm:$0xff] %v3400_v28  ;;  %v2604_v0 = vadd.f32 %v2470_v33, %v2284_v56  ;;  %v2201_v29 = vpop.f32.mrf.mxu0  ;;  %3462 = vst [vmem:[#allocation4 + $0x179] sm:$0xff] %v3398_v18  ;;  %v2289_v28 = vld [vmem:[#allocation4 + $0x1e0] sm:$0xff] }
 0x257   : > { %3463 = vst [vmem:[#allocation4 + $0x181] sm:$0xff] %v3399_v58  ;;  %v2476_v39 = vsel %vm2357_vm0, %v2473_v31, %v2475_v34  ;;  %v2471_v42 = vrot.slane %v2201_v29, 1  ;;  %v18273_v1 = vpop.f32.mrf.mxu1  ;;  %v3337_v9 = vld [vmem:[#allocation4 + $0x191] sm:$0xff] }
 0x258   : > { %2668 = vst [vmem:[#allocation4 + $0x1b8] sm:$0xff] %v2604_v0  ;;  %v2607_v7 = vadd.f32 %v2476_v39, %v2287_v4  ;;  %v15619_v45 = vpop.f32.mrf.mxu0  ;;  %v3401_v38 = vadd.f32 %v18230_v25, %v3337_v9  ;;  %v17046_v39 = vld [vmem:[#allocation2 + $0xb8] sm:$0xff]  }
 0x259   : > { %15906 = vmatmul.mubr.bf16.gmra.mxu0 %v17041_v32  ;;  %v2472_v47 = vsel %vm2357_vm0, %v2469_v21, %v2471_v42  ;;  %v2474_v48 = vsel %vm2357_vm0, %v2471_v42, %v2473_v31  ;;  %v18278_v26 = vpop.f32.mrf.mxu1  ;;  %v2481_v46 = vrot.slane %v15619_v45, 1  ;;  %v17047_v45 = vld [vmem:[#allocation2 + $0xc0] sm:$0xff]  }
 0x25a   : > { %15909 = vmatprep.mubr.bf16.mxu0 %v17042_v35  ;;  %2671 = vst [vmem:[#allocation4 + $0x1d0] sm:$0xff] %v2607_v7  ;;  %v2605_v36 = vadd.f32 %v2472_v47, %v2285_v5  ;;  %v2606_v50 = vadd.f32 %v2474_v48, %v2286_v6  ;;  %v2214_v51 = vpop.f32.mrf.mxu0  ;;  %3465 = vst [vmem:[#allocation4 + $0x191] sm:$0xff] %v3401_v38  ;;  %v3835_v38 = vld [vmem:[#allocation4 + $0x10] sm:$0xff]  ;;  %v3834_v48 = vld [vmem:[#allocation4 + $0x8] sm:$0xff] }
 0x25b   : > { %15986 = vmatmul.mubr.bf16.gmra.mxu1 %v17041_v32  ;;  %v3340_v22 = vld [vmem:[#allocation4 + $0x1a9] sm:$0xff]  ;;  %v2477_v54 = vrot.slane %v2214_v51, 1  ;;  %v18280_v52 = vpop.f32.mrf.mxu1  ;;  %v3338_v25 = vld [vmem:[#allocation4 + $0x199] sm:$0xff]  ;;  %v3339_v53 = vld [vmem:[#allocation4 + $0x1a1] sm:$0xff] }
 0x25c   : > { %15989 = vmatprep.mubr.bf16.mxu1 %v17042_v35  ;;  %v3404_v16 = vadd.f32 %v3340_v22, %v18257_v13  ;;  %2669 = vst [vmem:[#allocation4 + $0x1c0] sm:$0xff] %v2605_v36  ;;  %2670 = vst [vmem:[#allocation4 + $0x1c8] sm:$0xff] %v2606_v50  ;;  %v15620_v41 = vpop.f32.mrf.mxu0  ;;  %v3402_v62 = vadd.f32 %v18238_v8, %v3338_v25  ;;  %v3403_v60 = vadd.f32 %v3339_v53, %v18248_v37  ;;  %v3833_v22 = vld [vmem:[#allocation4] sm:$0xff] }
 0x25d   : > { %v2478_v10 = vsel %vm2357_vm0, %v2475_v34, %v2477_v54  ;;  %v2483_v63 = vrot.slane %v15620_v41, 1  ;;  %v18286_v57 = vpop.f32.mrf.mxu1  ;;  %v1809_v13 = vadd.f32 %v18047_v44, %v1745_v55  ;;  %v2290_v44 = vld [vmem:[#allocation4 + $0x1e8] sm:$0xff] }
 0x25e   : > { %3468 = vst [vmem:[#allocation4 + $0x1a9] sm:$0xff] %v3404_v16  ;;  %v2608_v20 = vadd.f32 %v2478_v10, %v2288_v61  ;;  %v2217_v14 = vpop.f32.mrf.mxu0  ;;  %3466 = vst [vmem:[#allocation4 + $0x199] sm:$0xff] %v3402_v62 }
 0x25f   : > { %3467 = vst [vmem:[#allocation4 + $0x1a1] sm:$0xff] %v3403_v60  ;;  %v2484_v8 = vsel %vm2357_vm0, %v2481_v46, %v2483_v63  ;;  %v2612_v15 = vadd.f32 %v2483_v63, %v2292_v11  ;;  %v2479_v37 = vrot.slane %v2217_v14, 1  ;;  %v18290_v17 = vpop.f32.mrf.mxu1  ;;  %v3341_v43 = vld [vmem:[#allocation4 + $0x1b1] sm:$0xff] }
 0x260   : > { %2672 = vst [vmem:[#allocation4 + $0x1d8] sm:$0xff] %v2608_v20  ;;  %v2611_v21 = vadd.f32 %v2484_v8, %v1809_v13  ;;  %v15719_v30 = vpop.f32.mrf.mxu0  ;;  %v3405_v24 = vadd.f32 %v18246_v40, %v3341_v43  ;;  %v3836_v8 = vld [vmem:[#allocation4 + $0x18] sm:$0xff]  ;;  %v17048_v43 = vld [vmem:[#allocation2 + $0xc8] sm:$0xff]  }
 0x261   : > { %15910 = vmatmul.mubr.bf16.gmra.mxu0 %v17043_v49  ;;  %2676 = vst [vmem:[#allocation4 + $0x1f8] sm:$0x7f] %v2612_v15  ;;  %v2480_v12 = vsel %vm2357_vm0, %v2477_v54, %v2479_v37  ;;  %v2482_v32 = vsel %vm2357_vm0, %v2479_v37, %v2481_v46  ;;  %v15799_v18 = vpop.f32.mrf.mxu1 }
 0x262   : > { %15913 = vmatprep.mubr.bf16.mxu0 %v17045_v2  ;;  %2675 = vst [vmem:[#allocation4 + $0x1f0] sm:$0xff] %v2611_v21  ;;  %v2609_v58 = vadd.f32 %v2480_v12, %v2289_v28  ;;  %v2610_v31 = vadd.f32 %v2482_v32, %v2290_v44  ;;  %v3578_v56 = vpop.f32.mrf.mxu0  ;;  %3469 = vst [vmem:[#allocation4 + $0x1b1] sm:$0xff] %v3405_v24  ;;  %v4510_v29 = vrot.slane %v15799_v18, 1  ;;  %v17050_v28 = vld [vmem:[#allocation2 + $0xd0] sm:$0xff]   ;;  %v3838_v18 = vld [vmem:[#allocation4 + $0x28] sm:$0xff] }
 0x263   : > { %15990 = vmatmul.mubr.bf16.gmra.mxu1 %v17043_v49  ;;  %v3344_v33 = vld [vmem:[#allocation4 + $0x1c9] sm:$0xff]  ;;  %v4124_v34 = vpop.f32.mrf.mxu1  ;;  %v3342_v35 = vld [vmem:[#allocation4 + $0x1b9] sm:$0xff]  ;;  %v3343_v40 = vld [vmem:[#allocation4 + $0x1c1] sm:$0xff]  ;;  %v3897_v16 = vadd.f32 %v3833_v22, %v3578_v56 }
 0x264   : > { %15993 = vmatprep.mubr.bf16.mxu1 %v17045_v2  ;;  %v3408_v0 = vadd.f32 %v3344_v33, %v18273_v1  ;;  %2673 = vst [vmem:[#allocation4 + $0x1e0] sm:$0xff] %v2609_v58  ;;  %2674 = vst [vmem:[#allocation4 + $0x1e8] sm:$0xff] %v2610_v31  ;;  %v15720_v4 = vpop.f32.mrf.mxu0  ;;  %v3406_v42 = vadd.f32 %v18254_v19, %v3342_v35  ;;  %v3407_v9 = vadd.f32 %v3343_v40, %v18264_v23  ;;  %v3839_v44 = vld [vmem:[#allocation4 + $0x30] sm:$0xff]  ;;  %v3837_v33 = vld [vmem:[#allocation4 + $0x20] sm:$0xff] }
 0x265   : > { %v15800_v7 = vpop.f32.mrf.mxu1  ;;  %v4507_v5 = vrot.slane %v4124_v34, 1  ;;  %v3899_v1 = vadd.f32 %v15719_v30, %v3835_v38  ;;  %v3900_v30 = vadd.f32 %v15720_v4, %v3836_v8  ;;  %v3840_v38 = vld [vmem:[#allocation4 + $0x38] sm:$0xff] }
 0x266   : > { %3472 = vst [vmem:[#allocation4 + $0x1c9] sm:$0xff] %v3408_v0  ;;  %v4512_v6 = vrot.slane %v15800_v7, 1  ;;  %v3581_v47 = vpop.f32.mrf.mxu0  ;;  %3470 = vst [vmem:[#allocation4 + $0x1b9] sm:$0xff] %v3406_v42 }
 0x267   : > { %3471 = vst [vmem:[#allocation4 + $0x1c1] sm:$0xff] %v3407_v9  ;;  %v3898_v36 = vadd.f32 %v3834_v48, %v3581_v47  ;;  %v4127_v50 = vpop.f32.mrf.mxu1  ;;  %v3345_v51 = vld [vmem:[#allocation4 + $0x1d1] sm:$0xff] }
 0x268   : > { %v3350_v55 = vld [vmem:[#allocation4 + $0x1f9] sm:$0x7f]  ;;  %v4513_v19 = vsel %vm2357_vm0, %v4510_v29, %v4512_v6  ;;  %v4508_v54 = vrot.slane %v4127_v50, 1  ;;  %v15723_v23 = vpop.f32.mrf.mxu0  ;;  %v3409_v25 = vadd.f32 %v18262_v59, %v3345_v51  ;;  %v17052_v50 = vld [vmem:[#allocation2 + $0xe0] sm:$0xff]   ;;  %v3843_v51 = vld [vmem:[#allocation4 + $0x50] sm:$0xff] }
 0x269   : > { %15914 = vmatmul.mubr.bf16.gmra.mxu0 %v17046_v39  ;;  %v3414_v53 = vadd.f32 %v18286_v57, %v3350_v55  ;;  %v4700_v41 = vadd.f32 %v4513_v19, %v3899_v1  ;;  %v3349_v62 = vld [vmem:[#allocation4 + $0x1f1] sm:$0xff]  ;;  %v3903_v58 = vadd.f32 %v15723_v23, %v3839_v44 }
 0x26a   : > { %v15803_v49 = vpop.f32.mrf.mxu1  ;;  %15917 = vmatprep.mubr.bf16.mxu0 %v17047_v45  ;;  %v4509_v60 = vsel %vm2357_vm0, %v4507_v5, %v4508_v54  ;;  %v4511_v46 = vsel %vm2357_vm0, %v4508_v54, %v4510_v29  ;;  %v3594_v61 = vpop.f32.mrf.mxu0  ;;  %3473 = vst [vmem:[#allocation4 + $0x1d1] sm:$0xff] %v3409_v25  ;;  %v3413_v10 = vadd.f32 %v18278_v26, %v3349_v62  ;;  %v17051_v48 = vld [vmem:[#allocation2 + $0xd8] sm:$0xff]   ;;  %v3842_v54 = vld [vmem:[#allocation4 + $0x48] sm:$0xff] }
 0x26b   : > { %15994 = vmatmul.mubr.bf16.gmra.mxu1 %v17046_v39  ;;  %3478 = vst [vmem:[#allocation4 + $0x1f9] sm:$0x7f] %v3414_v53  ;;  %v3348_v63 = vld [vmem:[#allocation4 + $0x1e9] sm:$0xff]  ;;  %4764 = vst [vmem:[#allocation4 + $0x10] sm:$0xff] %v4700_v41  ;;  %v4698_v59 = vadd.f32 %v4509_v60, %v3897_v16  ;;  %v4699_v2 = vadd.f32 %v4511_v46, %v3898_v36  ;;  %v4518_v57 = vrot.slane %v15803_v49, 1  ;;  %v3346_v13 = vld [vmem:[#allocation4 + $0x1d9] sm:$0xff] }
 0x26c   : > { %v4140_v20 = vpop.f32.mrf.mxu1  ;;  %15997 = vmatprep.mubr.bf16.mxu1 %v17047_v45  ;;  %v3347_v11 = vld [vmem:[#allocation4 + $0x1e1] sm:$0xff]  ;;  %v3412_v14 = vadd.f32 %v3348_v63, %v18290_v17  ;;  %v15724_v37 = vpop.f32.mrf.mxu0  ;;  %v3410_v21 = vadd.f32 %v18270_v27, %v3346_v13  ;;  %3477 = vst [vmem:[#allocation4 + $0x1f1] sm:$0xff] %v3413_v10  ;;  %v3901_v40 = vadd.f32 %v3837_v33, %v3594_v61 }
 0x26d   : > { %v4514_v15 = vrot.slane %v4140_v20, 1  ;;  %v3411_v26 = vadd.f32 %v3347_v11, %v18280_v52  ;;  %4762 = vst [vmem:[#allocation4] sm:$0xff] %v4698_v59  ;;  %4763 = vst [vmem:[#allocation4 + $0x8] sm:$0xff] %v4699_v2  ;;  %v3904_v1 = vadd.f32 %v15724_v37, %v3840_v38  ;;  %v3841_v41 = vld [vmem:[#allocation4 + $0x40] sm:$0xff]  ;;  %v3844_v11 = vld [vmem:[#allocation4 + $0x58] sm:$0xff] }
 0x26e   : > { %v15804_v24 = vpop.f32.mrf.mxu1  ;;  %3476 = vst [vmem:[#allocation4 + $0x1e9] sm:$0xff] %v3412_v14  ;;  %v3597_v17 = vpop.f32.mrf.mxu0  ;;  %3474 = vst [vmem:[#allocation4 + $0x1d9] sm:$0xff] %v3410_v21  ;;  %v17053_v37 = vld [vmem:[#allocation2 + $0xe8] sm:$0xff]  }
 0x26f   : > { %v4515_v12 = vsel %vm2357_vm0, %v4512_v6, %v4514_v15  ;;  %v4520_v32 = vrot.slane %v15804_v24, 1  ;;  %3475 = vst [vmem:[#allocation4 + $0x1e1] sm:$0xff] %v3411_v26  ;;  %v3902_v27 = vadd.f32 %v3838_v18, %v3597_v17  ;;  %v17055_v26 = vld [vmem:[#allocation2 + $0xf0] sm:$0xff]  }
 0x270   : > { %v4701_v31 = vadd.f32 %v4515_v12, %v3900_v30  ;;  %v4143_v56 = vpop.f32.mrf.mxu1  ;;  %v3847_v30 = vld [vmem:[#allocation4 + $0x70] sm:$0xff]  ;;  %v3846_v12 = vld [vmem:[#allocation4 + $0x68] sm:$0xff] }
 0x271   : > { %v4521_v52 = vsel %vm2357_vm0, %v4518_v57, %v4520_v32  ;;  %v4516_v34 = vrot.slane %v4143_v56, 1  ;;  %v15727_v35 = vpop.f32.mrf.mxu0  ;;  %15918 = vmatmul.mubr.bf16.gmra.mxu0 %v17048_v43 }
 0x272   : > { %4765 = vst [vmem:[#allocation4 + $0x18] sm:$0xff] %v4701_v31  ;;  %v4704_v0 = vadd.f32 %v4521_v52, %v3903_v58  ;;  %v15807_v29 = vpop.f32.mrf.mxu1  ;;  %15921 = vmatprep.mubr.bf16.mxu0 %v17050_v28  ;;  %v3907_v23 = vadd.f32 %v15727_v35, %v3843_v51  ;;  %v3845_v31 = vld [vmem:[#allocation4 + $0x60] sm:$0xff] }
 0x273   : > { %v4517_v4 = vsel %vm2357_vm0, %v4514_v15, %v4516_v34  ;;  %v4519_v39 = vsel %vm2357_vm0, %v4516_v34, %v4518_v57  ;;  %v3610_v42 = vpop.f32.mrf.mxu0  ;;  %15998 = vmatmul.mubr.bf16.gmra.mxu1 %v17048_v43  ;;  %v4526_v5 = vrot.slane %v15807_v29, 1 }
 0x274   : > { %4768 = vst [vmem:[#allocation4 + $0x30] sm:$0xff] %v4704_v0  ;;  %v4702_v9 = vadd.f32 %v4517_v4, %v3901_v40  ;;  %v4703_v7 = vadd.f32 %v4519_v39, %v3902_v27  ;;  %v4156_v45 = vpop.f32.mrf.mxu1  ;;  %16001 = vmatprep.mubr.bf16.mxu1 %v17050_v28  ;;  %v3905_v46 = vadd.f32 %v3841_v41, %v3610_v42 }
 0x275   : > { %v4522_v6 = vrot.slane %v4156_v45, 1  ;;  %v15728_v47 = vpop.f32.mrf.mxu0 }
 0x276   : > { %4766 = vst [vmem:[#allocation4 + $0x20] sm:$0xff] %v4702_v9  ;;  %4767 = vst [vmem:[#allocation4 + $0x28] sm:$0xff] %v4703_v7  ;;  %v15808_v36 = vpop.f32.mrf.mxu1  ;;  %v3908_v43 = vadd.f32 %v15728_v47, %v3844_v11  ;;  %v17062_v9 = vld [vmem:[#allocation10 + $0x38] sm:$0xff]  }
 0x277   : > { %v4523_v55 = vsel %vm2357_vm0, %v4520_v32, %v4522_v6  ;;  %v4528_v22 = vrot.slane %v15808_v36, 1  ;;  %v3613_v19 = vpop.f32.mrf.mxu0  ;;  %v3848_v7 = vld [vmem:[#allocation4 + $0x78] sm:$0xff]  ;;  %16101 = vmatprep.subr.bf16.mxu1 %v17062_v9  ;;  %v3851_v36 = vld [vmem:[#allocation4 + $0x90] sm:$0xff] }
 0x278   : > { %v4705_v25 = vadd.f32 %v4523_v55, %v3904_v1  ;;  %v3906_v53 = vadd.f32 %v3842_v54, %v3613_v19  ;;  %v4159_v16 = vpop.f32.mrf.mxu1  ;;  %v17057_v1 = vld [vmem:[#allocation2 + $0x100] sm:$0xff]   ;;  %16102 = vmatpush3.bf16.msra.mxu1 %v17062_v9 }
 0x279   : > { %v4529_v49 = vsel %vm2357_vm0, %v4526_v5, %v4528_v22  ;;  %v4524_v62 = vrot.slane %v4159_v16, 1  ;;  %v15731_v60 = vpop.f32.mrf.mxu0  ;;  %15922 = vmatmul.mubr.bf16.gmra.mxu0 %v17051_v48 }
 0x27a   : > { %4769 = vst [vmem:[#allocation4 + $0x38] sm:$0xff] %v4705_v25  ;;  %v4708_v61 = vadd.f32 %v4529_v49, %v3907_v23  ;;  %v15811_v10 = vpop.f32.mrf.mxu1  ;;  %15925 = vmatprep.mubr.bf16.mxu0 %v17052_v50  ;;  %v3911_v32 = vadd.f32 %v15731_v60, %v3847_v30 }
 0x27b   : > { %v4525_v63 = vsel %vm2357_vm0, %v4522_v6, %v4524_v62  ;;  %v4527_v59 = vsel %vm2357_vm0, %v4524_v62, %v4526_v5  ;;  %v3626_v2 = vpop.f32.mrf.mxu0  ;;  %16002 = vmatmul.mubr.bf16.gmra.mxu1 %v17051_v48  ;;  %v4534_v14 = vrot.slane %v15811_v10, 1  ;;  %v17056_v6 = vld [vmem:[#allocation2 + $0xf8] sm:$0xff]  }
 0x27c   : > { %4772 = vst [vmem:[#allocation4 + $0x50] sm:$0xff] %v4708_v61  ;;  %v4706_v57 = vadd.f32 %v4525_v63, %v3905_v46  ;;  %v4707_v20 = vadd.f32 %v4527_v59, %v3906_v53  ;;  %v4172_v13 = vpop.f32.mrf.mxu1  ;;  %16005 = vmatprep.mubr.bf16.mxu1 %v17052_v50  ;;  %v3909_v52 = vadd.f32 %v3845_v31, %v3626_v2  ;;  %v3849_v53 = vld [vmem:[#allocation4 + $0x80] sm:$0xff] }
 0x27d   : > { %v4530_v8 = vrot.slane %v4172_v13, 1  ;;  %v15732_v15 = vpop.f32.mrf.mxu0 }
 0x27e   : > { %4770 = vst [vmem:[#allocation4 + $0x40] sm:$0xff] %v4706_v57  ;;  %4771 = vst [vmem:[#allocation4 + $0x48] sm:$0xff] %v4707_v20  ;;  %v15812_v21 = vpop.f32.mrf.mxu1  ;;  %v3912_v47 = vadd.f32 %v15732_v15, %v3848_v7  ;;  %v3852_v20 = vld [vmem:[#allocation4 + $0x98] sm:$0xff] }
 0x27f   : > { %v4531_v24 = vsel %vm2357_vm0, %v4528_v22, %v4530_v8  ;;  %v4536_v28 = vrot.slane %v15812_v21, 1  ;;  %v3629_v44 = vpop.f32.mrf.mxu0  ;;  %v3850_v22 = vld [vmem:[#allocation4 + $0x88] sm:$0xff]  ;;  %v3855_v21 = vld [vmem:[#allocation4 + $0xb0] sm:$0xff] }
 0x280   : > { %v4709_v17 = vadd.f32 %v4531_v24, %v3908_v43  ;;  %v3910_v18 = vadd.f32 %v3846_v12, %v3629_v44  ;;  %v4175_v58 = vpop.f32.mrf.mxu1  ;;  %v17060_v43 = vld [vmem:[#allocation2 + $0x110] sm:$0xff]  }
 0x281   : > { %v4537_v27 = vsel %vm2357_vm0, %v4534_v14, %v4536_v28  ;;  %v4532_v56 = vrot.slane %v4175_v58, 1  ;;  %v15735_v33 = vpop.f32.mrf.mxu0  ;;  %15926 = vmatmul.mubr.bf16.gmra.mxu0 %v17053_v37 }
 0x282   : > { %4773 = vst [vmem:[#allocation4 + $0x58] sm:$0xff] %v4709_v17  ;;  %v4712_v34 = vadd.f32 %v4537_v27, %v3911_v32  ;;  %v15815_v35 = vpop.f32.mrf.mxu1  ;;  %15929 = vmatprep.mubr.bf16.mxu0 %v17055_v26  ;;  %v3915_v19 = vadd.f32 %v15735_v33, %v3851_v36 }
 0x283   : > { %v4533_v40 = vsel %vm2357_vm0, %v4530_v8, %v4532_v56  ;;  %v4535_v0 = vsel %vm2357_vm0, %v4532_v56, %v4534_v14  ;;  %v3642_v29 = vpop.f32.mrf.mxu0  ;;  %16006 = vmatmul.mubr.bf16.gmra.mxu1 %v17053_v37  ;;  %v4542_v45 = vrot.slane %v15815_v35, 1  ;;  %v17058_v8 = vld [vmem:[#allocation2 + $0x108] sm:$0xff]  }
 0x284   : > { %4776 = vst [vmem:[#allocation4 + $0x70] sm:$0xff] %v4712_v34  ;;  %v4710_v4 = vadd.f32 %v4533_v40, %v3909_v52  ;;  %v4711_v39 = vadd.f32 %v4535_v0, %v3910_v18  ;;  %v4188_v42 = vpop.f32.mrf.mxu1  ;;  %16009 = vmatprep.mubr.bf16.mxu1 %v17055_v26  ;;  %v3913_v62 = vadd.f32 %v3849_v53, %v3642_v29  ;;  %v3853_v18 = vld [vmem:[#allocation4 + $0xa0] sm:$0xff] }
 0x285   : > { %v4538_v38 = vrot.slane %v4188_v42, 1  ;;  %v15736_v5 = vpop.f32.mrf.mxu0  ;;  %v3856_v42 = vld [vmem:[#allocation4 + $0xb8] sm:$0xff] }
 0x286   : > { %4774 = vst [vmem:[#allocation4 + $0x60] sm:$0xff] %v4710_v4  ;;  %4775 = vst [vmem:[#allocation4 + $0x68] sm:$0xff] %v4711_v39  ;;  %v15816_v48 = vpop.f32.mrf.mxu1  ;;  %v3916_v15 = vadd.f32 %v15736_v5, %v3852_v20  ;;  %v17063_v39 = vld [vmem:[#allocation10 + $0x30] sm:$0xff]  }
 0x287   : > { %v4539_v50 = vsel %vm2357_vm0, %v4536_v28, %v4538_v38  ;;  %v4544_v51 = vrot.slane %v15816_v48, 1  ;;  %v3645_v55 = vpop.f32.mrf.mxu0  ;;  %v3854_v28 = vld [vmem:[#allocation4 + $0xa8] sm:$0xff]  ;;  %16103 = vmatprep.subr.bf16.mxu1 %v17063_v39 }
 0x288   : > { %v4713_v54 = vadd.f32 %v4539_v50, %v3912_v47  ;;  %v3914_v23 = vadd.f32 %v3850_v22, %v3645_v55  ;;  %v4191_v25 = vpop.f32.mrf.mxu1  ;;  %v3859_v47 = vld [vmem:[#allocation4 + $0xd0] sm:$0xff]  ;;  %v3858_v50 = vld [vmem:[#allocation4 + $0xc8] sm:$0xff]  ;;  %16104 = vmatpush3.bf16.msra.mxu1 %v17063_v39 }
 0x289   : > { %v4545_v16 = vsel %vm2357_vm0, %v4542_v45, %v4544_v51  ;;  %v4540_v41 = vrot.slane %v4191_v25, 1  ;;  %v15739_v49 = vpop.f32.mrf.mxu0  ;;  %15930 = vmatmul.mubr.bf16.gmra.mxu0 %v17056_v6 }
 0x28a   : > { %4777 = vst [vmem:[#allocation4 + $0x78] sm:$0xff] %v4713_v54  ;;  %v4716_v60 = vadd.f32 %v4545_v16, %v3915_v19  ;;  %v15819_v46 = vpop.f32.mrf.mxu1  ;;  %15933 = vmatprep.mubr.bf16.mxu0 %v17057_v1  ;;  %v3919_v44 = vadd.f32 %v15739_v49, %v3855_v21  ;;  %v3857_v54 = vld [vmem:[#allocation4 + $0xc0] sm:$0xff]  ;;  %v3862_v21 = vld [vmem:[#allocation4 + $0xe8] sm:$0xff] }
 0x28b   : > { %v4541_v61 = vsel %vm2357_vm0, %v4538_v38, %v4540_v41  ;;  %v4543_v10 = vsel %vm2357_vm0, %v4540_v41, %v4542_v45  ;;  %v3658_v63 = vpop.f32.mrf.mxu0  ;;  %16010 = vmatmul.mubr.bf16.gmra.mxu1 %v17056_v6  ;;  %v4550_v13 = vrot.slane %v15819_v46, 1  ;;  %v17061_v38 = vld [vmem:[#allocation2 + $0x118] sm:$0xff]  }
 0x28c   : > { %4780 = vst [vmem:[#allocation4 + $0x90] sm:$0xff] %v4716_v60  ;;  %v4714_v59 = vadd.f32 %v4541_v61, %v3913_v62  ;;  %v4715_v2 = vadd.f32 %v4543_v10, %v3914_v23  ;;  %v4204_v57 = vpop.f32.mrf.mxu1  ;;  %16013 = vmatprep.mubr.bf16.mxu1 %v17057_v1  ;;  %v3917_v56 = vadd.f32 %v3853_v18, %v3658_v63  ;;  %v17288_v62 = vld [vmem:[#allocation2 + $0x20] sm:$0xff]   ;;  %v17289_v18 = vld [vmem:[#allocation2 + $0x28] sm:$0xff]  }
 0x28d   : > { %v4546_v11 = vrot.slane %v4204_v57, 1  ;;  %v15740_v14 = vpop.f32.mrf.mxu0 }
 0x28e   : > { %4778 = vst [vmem:[#allocation4 + $0x80] sm:$0xff] %v4714_v59  ;;  %4779 = vst [vmem:[#allocation4 + $0x88] sm:$0xff] %v4715_v2  ;;  %v15820_v37 = vpop.f32.mrf.mxu1  ;;  %v3920_v5 = vadd.f32 %v15740_v14, %v3856_v42  ;;  %v3860_v2 = vld [vmem:[#allocation4 + $0xd8] sm:$0xff] }
 0x28f   : > { %v4547_v26 = vsel %vm2357_vm0, %v4544_v51, %v4546_v11  ;;  %v4552_v30 = vrot.slane %v15820_v37, 1  ;;  %v3661_v24 = vpop.f32.mrf.mxu0 }
 0x290   : > { %v4717_v12 = vadd.f32 %v4547_v26, %v3916_v15  ;;  %v3918_v32 = vadd.f32 %v3854_v28, %v3661_v24  ;;  %v4207_v17 = vpop.f32.mrf.mxu1 }
 0x291   : > { %v4553_v58 = vsel %vm2357_vm0, %v4550_v13, %v4552_v30  ;;  %v4548_v31 = vrot.slane %v4207_v17, 1  ;;  %v15743_v27 = vpop.f32.mrf.mxu0  ;;  %15934 = vmatmul.mubr.bf16.gmra.mxu0 %v17058_v8 }
 0x292   : > { %4781 = vst [vmem:[#allocation4 + $0x98] sm:$0xff] %v4717_v12  ;;  %v4720_v33 = vadd.f32 %v4553_v58, %v3919_v44  ;;  %v15823_v52 = vpop.f32.mrf.mxu1  ;;  %15937 = vmatprep.mubr.bf16.mxu0 %v17060_v43  ;;  %v3923_v51 = vadd.f32 %v15743_v27, %v3859_v47  ;;  %v3861_v44 = vld [vmem:[#allocation4 + $0xe0] sm:$0xff] }
 0x293   : > { %v4549_v34 = vsel %vm2357_vm0, %v4546_v11, %v4548_v31  ;;  %v4551_v35 = vsel %vm2357_vm0, %v4548_v31, %v4550_v13  ;;  %v3674_v40 = vpop.f32.mrf.mxu0  ;;  %16014 = vmatmul.mubr.bf16.gmra.mxu1 %v17058_v8  ;;  %v4558_v9 = vrot.slane %v15823_v52, 1  ;;  %v3863_v8 = vld [vmem:[#allocation4 + $0xf0] sm:$0xff] }
 0x294   : > { %4784 = vst [vmem:[#allocation4 + $0xb0] sm:$0xff] %v4720_v33  ;;  %v4718_v0 = vadd.f32 %v4549_v34, %v3917_v56  ;;  %v4719_v29 = vadd.f32 %v4551_v35, %v3918_v32  ;;  %v4220_v4 = vpop.f32.mrf.mxu1  ;;  %16017 = vmatprep.mubr.bf16.mxu1 %v17060_v43  ;;  %v3921_v16 = vadd.f32 %v3857_v54, %v3674_v40  ;;  %v17290_v56 = vld [vmem:[#allocation2 + $0x30] sm:$0xff]  }
 0x295   : > { %v4554_v7 = vrot.slane %v4220_v4, 1  ;;  %v15744_v45 = vpop.f32.mrf.mxu0  ;;  %v3864_v4 = vld [vmem:[#allocation4 + $0xf8] sm:$0xff] }
 0x296   : > { %4782 = vst [vmem:[#allocation4 + $0xa0] sm:$0xff] %v4718_v0  ;;  %4783 = vst [vmem:[#allocation4 + $0xa8] sm:$0xff] %v4719_v29  ;;  %v15824_v6 = vpop.f32.mrf.mxu1  ;;  %v3924_v11 = vadd.f32 %v15744_v45, %v3860_v2  ;;  %v17064_v29 = vld [vmem:[#allocation10 + $0x28] sm:$0xff]  }
 0x297   : > { %v4555_v48 = vsel %vm2357_vm0, %v4552_v30, %v4554_v7  ;;  %v4560_v1 = vrot.slane %v15824_v6, 1  ;;  %v3677_v36 = vpop.f32.mrf.mxu0  ;;  %16105 = vmatprep.subr.bf16.mxu1 %v17064_v29 }
 0x298   : > { %v4721_v55 = vadd.f32 %v4555_v48, %v3920_v5  ;;  %v3922_v22 = vadd.f32 %v3858_v50, %v3677_v36  ;;  %v4223_v19 = vpop.f32.mrf.mxu1  ;;  %v3866_v48 = vld [vmem:[#allocation4 + $0x108] sm:$0xff]  ;;  %16106 = vmatpush3.bf16.msra.mxu1 %v17064_v29 }
 0x299   : > { %v4561_v23 = vsel %vm2357_vm0, %v4558_v9, %v4560_v1  ;;  %v4556_v25 = vrot.slane %v4223_v19, 1  ;;  %v15747_v53 = vpop.f32.mrf.mxu0  ;;  %15938 = vmatmul.mubr.bf16.gmra.mxu0 %v17061_v38 }
 0x29a   : > { %4785 = vst [vmem:[#allocation4 + $0xb8] sm:$0xff] %v4721_v55  ;;  %v4724_v41 = vadd.f32 %v4561_v23, %v3923_v51  ;;  %v15827_v49 = vpop.f32.mrf.mxu1  ;;  %16037 = vmatprep.mubr.bf16.mxu0 %v17288_v62  ;;  %v3927_v26 = vadd.f32 %v15747_v53, %v3863_v8  ;;  %v3865_v55 = vld [vmem:[#allocation4 + $0x100] sm:$0xff]  ;;  %v17291_v23 = vld [vmem:[#allocation2 + $0x38] sm:$0xff]  }
 0x29b   : > { %v4557_v60 = vsel %vm2357_vm0, %v4554_v7, %v4556_v25  ;;  %v4559_v46 = vsel %vm2357_vm0, %v4556_v25, %v4558_v9  ;;  %v3690_v61 = vpop.f32.mrf.mxu0  ;;  %16018 = vmatmul.mubr.bf16.gmra.mxu1 %v17061_v38  ;;  %v4566_v57 = vrot.slane %v15827_v49, 1  ;;  %v3867_v38 = vld [vmem:[#allocation4 + $0x110] sm:$0xff] }
 0x29c   : > { %4788 = vst [vmem:[#allocation4 + $0xd0] sm:$0xff] %v4724_v41  ;;  %v4722_v10 = vadd.f32 %v4557_v60, %v3921_v16  ;;  %v4723_v63 = vadd.f32 %v4559_v46, %v3922_v22  ;;  %v4236_v59 = vpop.f32.mrf.mxu1  ;;  %v3925_v58 = vadd.f32 %v3861_v44, %v3690_v61  ;;  %v17292_v41 = vld [vmem:[#allocation2 + $0x40] sm:$0xff]  }
 0x29d   : > { %v4562_v20 = vrot.slane %v4236_v59, 1  ;;  %v15748_v13 = vpop.f32.mrf.mxu0 }
 0x29e   : > { %4786 = vst [vmem:[#allocation4 + $0xc0] sm:$0xff] %v4722_v10  ;;  %4787 = vst [vmem:[#allocation4 + $0xc8] sm:$0xff] %v4723_v63  ;;  %v15828_v14 = vpop.f32.mrf.mxu1  ;;  %v3928_v7 = vadd.f32 %v15748_v13, %v3864_v4  ;;  %v3868_v63 = vld [vmem:[#allocation4 + $0x118] sm:$0xff] }
 0x29f   : > { %v4563_v15 = vsel %vm2357_vm0, %v4560_v1, %v4562_v20  ;;  %v4568_v37 = vrot.slane %v15828_v14, 1  ;;  %v3693_v43 = vpop.f32.mrf.mxu0 }
 0x2a0   : > { %v4725_v30 = vadd.f32 %v4563_v15, %v3924_v11  ;;  %v3926_v24 = vadd.f32 %v3862_v21, %v3693_v43  ;;  %v4239_v28 = vpop.f32.mrf.mxu1  ;;  %v3871_v11 = vld [vmem:[#allocation4 + $0x130] sm:$0xff] }
 0x2a1   : > { %v4569_v12 = vsel %vm2357_vm0, %v4566_v57, %v4568_v37  ;;  %v4564_v32 = vrot.slane %v4239_v28, 1  ;;  %v15751_v17 = vpop.f32.mrf.mxu0  ;;  %16038 = vmatmul.mubr.bf16.vlgmr.msra.gmra.mxu0 %v17289_v18 }
 0x2a2   : > { %4789 = vst [vmem:[#allocation4 + $0xd8] sm:$0xff] %v4725_v30  ;;  %v4728_v31 = vadd.f32 %v4569_v12, %v3927_v26  ;;  %v15831_v27 = vpop.f32.mrf.mxu1  ;;  %16041 = vmatprep.mubr.bf16.mxu0 %v17290_v56  ;;  %v3931_v1 = vadd.f32 %v15751_v17, %v3867_v38 }
 0x2a3   : > { %v4565_v33 = vsel %vm2357_vm0, %v4562_v20, %v4564_v32  ;;  %v4567_v52 = vsel %vm2357_vm0, %v4564_v32, %v4566_v57  ;;  %v3706_v34 = vpop.f32.mrf.mxu0  ;;  %v4574_v39 = vrot.slane %v15831_v27, 1  ;;  %v17293_v32 = vld [vmem:[#allocation2 + $0x48] sm:$0xff]  }
 0x2a4   : > { %4792 = vst [vmem:[#allocation4 + $0xf0] sm:$0xff] %v4728_v31  ;;  %v4726_v35 = vadd.f32 %v4565_v33, %v3925_v58  ;;  %v4727_v40 = vadd.f32 %v4567_v52, %v3926_v24  ;;  %v4252_v0 = vpop.f32.mrf.mxu1  ;;  %v3929_v25 = vadd.f32 %v3865_v55, %v3706_v34  ;;  %v3869_v24 = vld [vmem:[#allocation4 + $0x120] sm:$0xff]  ;;  %v17294_v31 = vld [vmem:[#allocation2 + $0x50] sm:$0xff]  }
 0x2a5   : > { %v4570_v42 = vrot.slane %v4252_v0, 1  ;;  %v15752_v9 = vpop.f32.mrf.mxu0  ;;  %v3872_v0 = vld [vmem:[#allocation4 + $0x138] sm:$0xff] }
 0x2a6   : > { %4790 = vst [vmem:[#allocation4 + $0xe0] sm:$0xff] %v4726_v35  ;;  %4791 = vst [vmem:[#allocation4 + $0xe8] sm:$0xff] %v4727_v40  ;;  %v15832_v45 = vpop.f32.mrf.mxu1  ;;  %v3932_v20 = vadd.f32 %v15752_v9, %v3868_v63  ;;  %v17065_v40 = vld [vmem:[#allocation10 + $0x20] sm:$0xff]  }
 0x2a7   : > { %v4571_v5 = vsel %vm2357_vm0, %v4568_v37, %v4570_v42  ;;  %v4576_v6 = vrot.slane %v15832_v45, 1  ;;  %v3709_v47 = vpop.f32.mrf.mxu0  ;;  %v3870_v37 = vld [vmem:[#allocation4 + $0x128] sm:$0xff]  ;;  %16107 = vmatprep.subr.bf16.mxu1 %v17065_v40 }
 0x2a8   : > { %v4729_v36 = vadd.f32 %v4571_v5, %v3928_v7  ;;  %v3930_v50 = vadd.f32 %v3866_v48, %v3709_v47  ;;  %v4255_v51 = vpop.f32.mrf.mxu1  ;;  %v3875_v7 = vld [vmem:[#allocation4 + $0x150] sm:$0xff]  ;;  %16108 = vmatpush3.bf16.msra.mxu1 %v17065_v40 }
 0x2a9   : > { %v4577_v22 = vsel %vm2357_vm0, %v4574_v39, %v4576_v6  ;;  %v4572_v19 = vrot.slane %v4255_v51, 1  ;;  %v15755_v54 = vpop.f32.mrf.mxu0  ;;  %16042 = vmatmul.mubr.bf16.gmra.mxu0 %v17291_v23 }
 0x2aa   : > { %4793 = vst [vmem:[#allocation4 + $0xf8] sm:$0xff] %v4729_v36  ;;  %v4732_v53 = vadd.f32 %v4577_v22, %v3931_v1  ;;  %v15835_v16 = vpop.f32.mrf.mxu1  ;;  %16045 = vmatprep.mubr.bf16.mxu0 %v17292_v41  ;;  %v3935_v43 = vadd.f32 %v15755_v54, %v3871_v11 }
 0x2ab   : > { %v4573_v49 = vsel %vm2357_vm0, %v4570_v42, %v4572_v19  ;;  %v4575_v62 = vsel %vm2357_vm0, %v4572_v19, %v4574_v39  ;;  %v3722_v60 = vpop.f32.mrf.mxu0  ;;  %v4582_v59 = vrot.slane %v15835_v16, 1  ;;  %v17295_v19 = vld [vmem:[#allocation2 + $0x58] sm:$0xff]  }
 0x2ac   : > { %4796 = vst [vmem:[#allocation4 + $0x110] sm:$0xff] %v4732_v53  ;;  %v4730_v46 = vadd.f32 %v4573_v49, %v3929_v25  ;;  %v4731_v61 = vadd.f32 %v4575_v62, %v3930_v50  ;;  %v4268_v10 = vpop.f32.mrf.mxu1  ;;  %v3933_v17 = vadd.f32 %v3869_v24, %v3722_v60  ;;  %v3873_v50 = vld [vmem:[#allocation4 + $0x140] sm:$0xff] }
 0x2ad   : > { %v4578_v2 = vrot.slane %v4268_v10, 1  ;;  %v15756_v57 = vpop.f32.mrf.mxu0  ;;  %v17296_v53 = vld [vmem:[#allocation2 + $0x60] sm:$0xff]  }
 0x2ae   : > { %4794 = vst [vmem:[#allocation4 + $0x100] sm:$0xff] %v4730_v46  ;;  %4795 = vst [vmem:[#allocation4 + $0x108] sm:$0xff] %v4731_v61  ;;  %v15836_v13 = vpop.f32.mrf.mxu1  ;;  %v3936_v42 = vadd.f32 %v15756_v57, %v3872_v0  ;;  %v3876_v61 = vld [vmem:[#allocation4 + $0x158] sm:$0xff] }
 0x2af   : > { %v4579_v14 = vsel %vm2357_vm0, %v4576_v6, %v4578_v2  ;;  %v4584_v8 = vrot.slane %v15836_v13, 1  ;;  %v3725_v15 = vpop.f32.mrf.mxu0  ;;  %v3874_v6 = vld [vmem:[#allocation4 + $0x148] sm:$0xff] }
 0x2b0   : > { %v4733_v21 = vadd.f32 %v4579_v14, %v3932_v20  ;;  %v3934_v26 = vadd.f32 %v3870_v37, %v3725_v15  ;;  %v4271_v30 = vpop.f32.mrf.mxu1  ;;  %v3879_v20 = vld [vmem:[#allocation4 + $0x170] sm:$0xff] }
 0x2b1   : > { %v4585_v28 = vsel %vm2357_vm0, %v4582_v59, %v4584_v8  ;;  %v4580_v44 = vrot.slane %v4271_v30, 1  ;;  %v15759_v12 = vpop.f32.mrf.mxu0  ;;  %16046 = vmatmul.mubr.bf16.gmra.mxu0 %v17293_v32 }
 0x2b2   : > { %4797 = vst [vmem:[#allocation4 + $0x118] sm:$0xff] %v4733_v21  ;;  %v4736_v18 = vadd.f32 %v4585_v28, %v3935_v43  ;;  %v15839_v58 = vpop.f32.mrf.mxu1  ;;  %16049 = vmatprep.mubr.bf16.mxu0 %v17294_v31  ;;  %v3939_v47 = vadd.f32 %v15759_v12, %v3875_v7 }
 0x2b3   : > { %v4581_v27 = vsel %vm2357_vm0, %v4578_v2, %v4580_v44  ;;  %v4583_v56 = vsel %vm2357_vm0, %v4580_v44, %v4582_v59  ;;  %v3738_v33 = vpop.f32.mrf.mxu0  ;;  %v4590_v29 = vrot.slane %v15839_v58, 1  ;;  %v17297_v44 = vld [vmem:[#allocation2 + $0x68] sm:$0xff]  }
 0x2b4   : > { %4800 = vst [vmem:[#allocation4 + $0x130] sm:$0xff] %v4736_v18  ;;  %v4734_v52 = vadd.f32 %v4581_v27, %v3933_v17  ;;  %v4735_v34 = vadd.f32 %v4583_v56, %v3934_v26  ;;  %v4284_v35 = vpop.f32.mrf.mxu1  ;;  %v3937_v54 = vadd.f32 %v3873_v50, %v3738_v33  ;;  %v3877_v26 = vld [vmem:[#allocation4 + $0x160] sm:$0xff]  ;;  %v17298_v18 = vld [vmem:[#allocation2 + $0x70] sm:$0xff]  }
 0x2b5   : > { %v4586_v4 = vrot.slane %v4284_v35, 1  ;;  %v15760_v39 = vpop.f32.mrf.mxu0  ;;  %v3880_v35 = vld [vmem:[#allocation4 + $0x178] sm:$0xff] }
 0x2b6   : > { %4798 = vst [vmem:[#allocation4 + $0x120] sm:$0xff] %v4734_v52  ;;  %4799 = vst [vmem:[#allocation4 + $0x128] sm:$0xff] %v4735_v34  ;;  %v15840_v9 = vpop.f32.mrf.mxu1  ;;  %v3940_v2 = vadd.f32 %v15760_v39, %v3876_v61  ;;  %v17066_v34 = vld [vmem:[#allocation10 + $0x18] sm:$0xff]  }
 0x2b7   : > { %v4587_v45 = vsel %vm2357_vm0, %v4584_v8, %v4586_v4  ;;  %v4592_v38 = vrot.slane %v15840_v9, 1  ;;  %v3741_v5 = vpop.f32.mrf.mxu0  ;;  %v3878_v8 = vld [vmem:[#allocation4 + $0x168] sm:$0xff]  ;;  %16109 = vmatprep.subr.bf16.mxu1 %v17066_v34 }
 0x2b8   : > { %v4737_v48 = vadd.f32 %v4587_v45, %v3936_v42  ;;  %v3938_v1 = vadd.f32 %v3874_v6, %v3741_v5  ;;  %v4287_v36 = vpop.f32.mrf.mxu1  ;;  %v3883_v42 = vld [vmem:[#allocation4 + $0x190] sm:$0xff]  ;;  %16110 = vmatpush3.bf16.msra.mxu1 %v17066_v34 }
 0x2b9   : > { %v4593_v51 = vsel %vm2357_vm0, %v4590_v29, %v4592_v38  ;;  %v4588_v55 = vrot.slane %v4287_v36, 1  ;;  %v15763_v22 = vpop.f32.mrf.mxu0  ;;  %16050 = vmatmul.mubr.bf16.gmra.mxu0 %v17295_v19 }
 0x2ba   : > { %4801 = vst [vmem:[#allocation4 + $0x138] sm:$0xff] %v4737_v48  ;;  %v4740_v23 = vadd.f32 %v4593_v51, %v3939_v47  ;;  %v15843_v25 = vpop.f32.mrf.mxu1  ;;  %16053 = vmatprep.mubr.bf16.mxu0 %v17296_v53  ;;  %v3943_v15 = vadd.f32 %v15763_v22, %v3879_v20 }
 0x2bb   : > { %v4589_v16 = vsel %vm2357_vm0, %v4586_v4, %v4588_v55  ;;  %v4591_v41 = vsel %vm2357_vm0, %v4588_v55, %v4590_v29  ;;  %v3754_v49 = vpop.f32.mrf.mxu0  ;;  %v4598_v10 = vrot.slane %v15843_v25, 1  ;;  %v17299_v55 = vld [vmem:[#allocation2 + $0x78] sm:$0xff]  }
 0x2bc   : > { %4804 = vst [vmem:[#allocation4 + $0x150] sm:$0xff] %v4740_v23  ;;  %v4738_v62 = vadd.f32 %v4589_v16, %v3937_v54  ;;  %v4739_v60 = vadd.f32 %v4591_v41, %v3938_v1  ;;  %v4300_v46 = vpop.f32.mrf.mxu1  ;;  %v3941_v12 = vadd.f32 %v3877_v26, %v3754_v49  ;;  %v3881_v1 = vld [vmem:[#allocation4 + $0x180] sm:$0xff] }
 0x2bd   : > { %v4594_v63 = vrot.slane %v4300_v46, 1  ;;  %v15764_v59 = vpop.f32.mrf.mxu0  ;;  %v17300_v23 = vld [vmem:[#allocation2 + $0x80] sm:$0xff]  }
 0x2be   : > { %4802 = vst [vmem:[#allocation4 + $0x140] sm:$0xff] %v4738_v62  ;;  %4803 = vst [vmem:[#allocation4 + $0x148] sm:$0xff] %v4739_v60  ;;  %v15844_v57 = vpop.f32.mrf.mxu1  ;;  %v3944_v4 = vadd.f32 %v15764_v59, %v3880_v35  ;;  %v3884_v60 = vld [vmem:[#allocation4 + $0x198] sm:$0xff] }
 0x2bf   : > { %v4595_v13 = vsel %vm2357_vm0, %v4592_v38, %v4594_v63  ;;  %v4600_v11 = vrot.slane %v15844_v57, 1  ;;  %v3757_v14 = vpop.f32.mrf.mxu0  ;;  %v3882_v38 = vld [vmem:[#allocation4 + $0x188] sm:$0xff] }
 0x2c0   : > { %v4741_v37 = vadd.f32 %v4595_v13, %v3940_v2  ;;  %v3942_v43 = vadd.f32 %v3878_v8, %v3757_v14  ;;  %v4303_v21 = vpop.f32.mrf.mxu1  ;;  %v3887_v2 = vld [vmem:[#allocation4 + $0x1b0] sm:$0xff] }
 0x2c1   : > { %v4601_v30 = vsel %vm2357_vm0, %v4598_v10, %v4600_v11  ;;  %v4596_v24 = vrot.slane %v4303_v21, 1  ;;  %v15767_v28 = vpop.f32.mrf.mxu0  ;;  %16054 = vmatmul.mubr.bf16.gmra.mxu0 %v17297_v44 }
 0x2c2   : > { %4805 = vst [vmem:[#allocation4 + $0x158] sm:$0xff] %v4741_v37  ;;  %v4744_v32 = vadd.f32 %v4601_v30, %v3943_v15  ;;  %v15847_v17 = vpop.f32.mrf.mxu1  ;;  %16057 = vmatprep.mubr.bf16.mxu0 %v17298_v18  ;;  %v3947_v5 = vadd.f32 %v15767_v28, %v3883_v42 }
 0x2c3   : > { %v4597_v58 = vsel %vm2357_vm0, %v4594_v63, %v4596_v24  ;;  %v4599_v31 = vsel %vm2357_vm0, %v4596_v24, %v4598_v10  ;;  %v3770_v27 = vpop.f32.mrf.mxu0  ;;  %v4606_v40 = vrot.slane %v15847_v17, 1  ;;  %v17301_v24 = vld [vmem:[#allocation2 + $0x88] sm:$0xff]  }
 0x2c4   : > { %4808 = vst [vmem:[#allocation4 + $0x170] sm:$0xff] %v4744_v32  ;;  %v4742_v56 = vadd.f32 %v4597_v58, %v3941_v12  ;;  %v4743_v33 = vadd.f32 %v4599_v31, %v3942_v43  ;;  %v4316_v52 = vpop.f32.mrf.mxu1  ;;  %v3945_v22 = vadd.f32 %v3881_v1, %v3770_v27  ;;  %v3885_v43 = vld [vmem:[#allocation4 + $0x1a0] sm:$0xff]  ;;  %v17302_v32 = vld [vmem:[#allocation2 + $0x90] sm:$0xff]  }
 0x2c5   : > { %v4602_v0 = vrot.slane %v4316_v52, 1  ;;  %v15768_v29 = vpop.f32.mrf.mxu0  ;;  %v3888_v52 = vld [vmem:[#allocation4 + $0x1b8] sm:$0xff] }
 0x2c6   : > { %4806 = vst [vmem:[#allocation4 + $0x160] sm:$0xff] %v4742_v56  ;;  %4807 = vst [vmem:[#allocation4 + $0x168] sm:$0xff] %v4743_v33  ;;  %v15848_v39 = vpop.f32.mrf.mxu1  ;;  %v3948_v63 = vadd.f32 %v15768_v29, %v3884_v60  ;;  %v17067_v33 = vld [vmem:[#allocation10 + $0x10] sm:$0xff]   ;;  %v3892_v60 = vld [vmem:[#allocation4 + $0x1d8] sm:$0xff] }
 0x2c7   : > { %v4603_v9 = vsel %vm2357_vm0, %v4600_v11, %v4602_v0  ;;  %v4608_v7 = vrot.slane %v15848_v39, 1  ;;  %v3773_v45 = vpop.f32.mrf.mxu0  ;;  %v3886_v11 = vld [vmem:[#allocation4 + $0x1a8] sm:$0xff]  ;;  %16111 = vmatprep.subr.bf16.mxu1 %v17067_v33 }
 0x2c8   : > { %v4745_v6 = vadd.f32 %v4603_v9, %v3944_v4  ;;  %v3946_v47 = vadd.f32 %v3882_v38, %v3773_v45  ;;  %v4319_v48 = vpop.f32.mrf.mxu1  ;;  %v3891_v4 = vld [vmem:[#allocation4 + $0x1d0] sm:$0xff]  ;;  %16112 = vmatpush3.bf16.msra.mxu1 %v17067_v33  ;;  %v17069_v45 = vld [vmem:[#allocation10 + $0x78] sm:$0xff]  }
 0x2c9   : > { %v4609_v36 = vsel %vm2357_vm0, %v4606_v40, %v4608_v7  ;;  %v4604_v50 = vrot.slane %v4319_v48, 1  ;;  %v15771_v51 = vpop.f32.mrf.mxu0  ;;  %16058 = vmatmul.mubr.bf16.gmra.mxu0 %v17299_v55  ;;  %v3889_v48 = vld [vmem:[#allocation4 + $0x1c0] sm:$0xff]  ;;  %16181 = vmatprep.subr.bf16.mxu0 %v17069_v45 }
 0x2ca   : > { %4809 = vst [vmem:[#allocation4 + $0x178] sm:$0xff] %v4745_v6  ;;  %v4748_v19 = vadd.f32 %v4609_v36, %v3947_v5  ;;  %v15851_v54 = vpop.f32.mrf.mxu1  ;;  %16061 = vmatprep.mubr.bf16.mxu0 %v17300_v23  ;;  %v3951_v14 = vadd.f32 %v15771_v51, %v3887_v2  ;;  %v17303_v51 = vld [vmem:[#allocation2 + $0x98] sm:$0xff]   ;;  %16182 = vmatpush3.bf16.msra.mxu0 %v17069_v45 }
 0x2cb   : > { %v4605_v25 = vsel %vm2357_vm0, %v4602_v0, %v4604_v50  ;;  %v4607_v53 = vsel %vm2357_vm0, %v4604_v50, %v4606_v40  ;;  %v3786_v16 = vpop.f32.mrf.mxu0  ;;  %v4614_v46 = vrot.slane %v15851_v54, 1  ;;  %v17304_v54 = vld [vmem:[#allocation2 + $0xa0] sm:$0xff]  }
 0x2cc   : > { %4812 = vst [vmem:[#allocation4 + $0x190] sm:$0xff] %v4748_v19  ;;  %v4746_v41 = vadd.f32 %v4605_v25, %v3945_v22  ;;  %v4747_v49 = vadd.f32 %v4607_v53, %v3946_v47  ;;  %v4332_v62 = vpop.f32.mrf.mxu1  ;;  %v3949_v28 = vadd.f32 %v3885_v43, %v3786_v16  ;;  %v17070_v16 = vld [vmem:[#allocation10 + $0x70] sm:$0xff]  }
 0x2cd   : > { %v4610_v61 = vrot.slane %v4332_v62, 1  ;;  %v15772_v10 = vpop.f32.mrf.mxu0  ;;  %16183 = vmatprep.subr.bf16.mxu0 %v17070_v16 }
 0x2ce   : > { %4810 = vst [vmem:[#allocation4 + $0x180] sm:$0xff] %v4746_v41  ;;  %4811 = vst [vmem:[#allocation4 + $0x188] sm:$0xff] %v4747_v49  ;;  %v15852_v59 = vpop.f32.mrf.mxu1  ;;  %v3952_v0 = vadd.f32 %v15772_v10, %v3888_v52  ;;  %16184 = vmatpush3.bf16.msra.mxu0 %v17070_v16  ;;  %v5437_v52 = vld [vmem:[#allocation4 + $0x1] sm:$0xff] }
 0x2cf   : > { %v4611_v57 = vsel %vm2357_vm0, %v4608_v7, %v4610_v61  ;;  %v4616_v20 = vrot.slane %v15852_v59, 1  ;;  %v3789_v13 = vpop.f32.mrf.mxu0  ;;  %v3890_v7 = vld [vmem:[#allocation4 + $0x1c8] sm:$0xff] }
 0x2d0   : > { %v4749_v8 = vadd.f32 %v4611_v57, %v3948_v63  ;;  %v3950_v15 = vadd.f32 %v3886_v11, %v3789_v13  ;;  %v4335_v37 = vpop.f32.mrf.mxu1  ;;  %v3896_v63 = vld [vmem:[#allocation4 + $0x1f8] sm:$0xff] }
 0x2d1   : > { %v4617_v21 = vsel %vm2357_vm0, %v4614_v46, %v4616_v20  ;;  %v4612_v26 = vrot.slane %v4335_v37, 1  ;;  %v15775_v30 = vpop.f32.mrf.mxu0  ;;  %16062 = vmatmul.mubr.bf16.gmra.mxu0 %v17301_v24 }
 0x2d2   : > { %4813 = vst [vmem:[#allocation4 + $0x198] sm:$0xff] %v4749_v8  ;;  %v4752_v44 = vadd.f32 %v4617_v21, %v3951_v14  ;;  %v15855_v12 = vpop.f32.mrf.mxu1  ;;  %16065 = vmatprep.mubr.bf16.mxu0 %v17302_v32  ;;  %v3955_v38 = vadd.f32 %v15775_v30, %v3891_v4  ;;  %v3894_v14 = vld [vmem:[#allocation4 + $0x1e8] sm:$0xff]  ;;  %v3893_v30 = vld [vmem:[#allocation4 + $0x1e0] sm:$0xff] }
 0x2d3   : > { %v4613_v17 = vsel %vm2357_vm0, %v4610_v61, %v4612_v26  ;;  %v4615_v18 = vsel %vm2357_vm0, %v4612_v26, %v4614_v46  ;;  %v3802_v58 = vpop.f32.mrf.mxu0  ;;  %v4622_v34 = vrot.slane %v15855_v12, 1  ;;  %v17305_v12 = vld [vmem:[#allocation2 + $0xa8] sm:$0xff]  }
 0x2d4   : > { %4816 = vst [vmem:[#allocation4 + $0x1b0] sm:$0xff] %v4752_v44  ;;  %v4750_v31 = vadd.f32 %v4613_v17, %v3949_v28  ;;  %v4751_v27 = vadd.f32 %v4615_v18, %v3950_v15  ;;  %v4348_v56 = vpop.f32.mrf.mxu1  ;;  %v3953_v55 = vadd.f32 %v3889_v48, %v3802_v58  ;;  %v17071_v15 = vld [vmem:[#allocation10 + $0x68] sm:$0xff]   ;;  %v5439_v44 = vld [vmem:[#allocation4 + $0x11] sm:$0xff] }
 0x2d5   : > { %v4618_v35 = vrot.slane %v4348_v56, 1  ;;  %v15776_v40 = vpop.f32.mrf.mxu0  ;;  %16185 = vmatprep.subr.bf16.mxu0 %v17071_v15  ;;  %v17068_v4 = vld [vmem:[#allocation10 + $0x8] sm:$0xff]  }
 0x2d6   : > { %4814 = vst [vmem:[#allocation4 + $0x1a0] sm:$0xff] %v4750_v31  ;;  %4815 = vst [vmem:[#allocation4 + $0x1a8] sm:$0xff] %v4751_v27  ;;  %v15856_v29 = vpop.f32.mrf.mxu1  ;;  %v3956_v59 = vadd.f32 %v15776_v40, %v3892_v60  ;;  %v17306_v31 = vld [vmem:[#allocation2 + $0xb0] sm:$0xff]   ;;  %16186 = vmatpush3.bf16.msra.mxu0 %v17071_v15  ;;  %16113 = vmatprep.subr.bf16.mxu1 %v17068_v4 }
 0x2d7   : > { %v4619_v39 = vsel %vm2357_vm0, %v4616_v20, %v4618_v35  ;;  %v4624_v42 = vrot.slane %v15856_v29, 1  ;;  %v3805_v9 = vpop.f32.mrf.mxu0  ;;  %v3895_v20 = vld [vmem:[#allocation4 + $0x1f0] sm:$0xff]  ;;  %16114 = vmatpush3.bf16.msra.mxu1 %v17068_v4 }
 0x2d8   : > { %v4753_v5 = vadd.f32 %v4619_v39, %v3952_v0  ;;  %v3954_v6 = vadd.f32 %v3890_v7, %v3805_v9  ;;  %v4351_v47 = vpop.f32.mrf.mxu1 }
 0x2d9   : > { %v4625_v1 = vsel %vm2357_vm0, %v4622_v34, %v4624_v42  ;;  %v4620_v36 = vrot.slane %v4351_v47, 1  ;;  %v15779_v50 = vpop.f32.mrf.mxu0  ;;  %16066 = vmatmul.mubr.bf16.gmra.mxu0 %v17303_v51  ;;  %v17074_v47 = vld [vmem:[#allocation10 + $0x58] sm:$0xff]  }
 0x2da   : > { %4817 = vst [vmem:[#allocation4 + $0x1b8] sm:$0xff] %v4753_v5  ;;  %v4756_v22 = vadd.f32 %v4625_v1, %v3955_v38  ;;  %v15859_v19 = vpop.f32.mrf.mxu1  ;;  %16069 = vmatprep.mubr.bf16.mxu0 %v17304_v54  ;;  %v3959_v37 = vadd.f32 %v15779_v50, %v3895_v20  ;;  %v5438_v5 = vld [vmem:[#allocation4 + $0x9] sm:$0xff]  ;;  %v5443_v50 = vld [vmem:[#allocation4 + $0x31] sm:$0xff] }
 0x2db   : > { %v4621_v23 = vsel %vm2357_vm0, %v4618_v35, %v4620_v36  ;;  %v4623_v25 = vsel %vm2357_vm0, %v4620_v36, %v4622_v34  ;;  %v3818_v53 = vpop.f32.mrf.mxu0  ;;  %v4630_v46 = vrot.slane %v15859_v19, 1  ;;  %v17072_v35 = vld [vmem:[#allocation10 + $0x60] sm:$0xff]   ;;  %v17307_v51 = vld [vmem:[#allocation2 + $0xb8] sm:$0xff]   ;;  %v17076_v20 = vld [vmem:[#allocation10 + $0x48] sm:$0xff]  }
 0x2dc   : > { %4820 = vst [vmem:[#allocation4 + $0x1d0] sm:$0xff] %v4756_v22  ;;  %v4754_v41 = vadd.f32 %v4621_v23, %v3953_v55  ;;  %v4755_v49 = vadd.f32 %v4623_v25, %v3954_v6  ;;  %v4364_v62 = vpop.f32.mrf.mxu1  ;;  %v3957_v17 = vadd.f32 %v3893_v30, %v3818_v53  ;;  %16187 = vmatprep.subr.bf16.mxu0 %v17072_v35  ;;  %v17308_v19 = vld [vmem:[#allocation2 + $0xc0] sm:$0xff]   ;;  %v17075_v53 = vld [vmem:[#allocation10 + $0x50] sm:$0xff]  }
 0x2dd   : > { %v4626_v61 = vrot.slane %v4364_v62, 1  ;;  %v15780_v10 = vpop.f32.mrf.mxu0  ;;  %16188 = vmatpush3.bf16.msra.mxu0 %v17072_v35  ;;  %v5441_v23 = vld [vmem:[#allocation4 + $0x21] sm:$0xff] }
 0x2de   : > { %4818 = vst [vmem:[#allocation4 + $0x1c0] sm:$0xff] %v4754_v41  ;;  %4819 = vst [vmem:[#allocation4 + $0x1c8] sm:$0xff] %v4755_v49  ;;  %v3960_v2 = vadd.f32 %v15780_v10, %v3896_v63  ;;  %v15860_v57 = vpop.f32.mrf.mxu1  ;;  %16189 = vmatprep.subr.bf16.mxu0 %v17074_v47  ;;  %v5444_v49 = vld [vmem:[#allocation4 + $0x39] sm:$0xff] }
 0x2df   : > { %v4627_v13 = vsel %vm2357_vm0, %v4624_v42, %v4626_v61  ;;  %v3821_v11 = vpop.f32.mrf.mxu0  ;;  %v4632_v8 = vrot.slane %v15860_v57, 1  ;;  %v5440_v42 = vld [vmem:[#allocation4 + $0x19] sm:$0xff] }
 0x2e0   : > { %v4757_v43 = vadd.f32 %v4627_v13, %v3956_v59  ;;  %4024 = vst [vmem:[#allocation4 + $0x1f8] sm:$0xff] %v3960_v2  ;;  %v3958_v21 = vadd.f32 %v3894_v14, %v3821_v11  ;;  %v4367_v26 = vpop.f32.mrf.mxu1  ;;  %v17073_v10 = vld [vmem:[#allocation10] sm:$0xff]   ;;  %v5442_v59 = vld [vmem:[#allocation4 + $0x29] sm:$0xff] }
 0x2e1   : > { %v4633_v24 = vsel %vm2357_vm0, %v4630_v46, %v4632_v8  ;;  %v15879_v28 = vpop.f32.mrf.mxu0  ;;  %16070 = vmatmul.mubr.bf16.gmra.mxu0 %v17305_v12  ;;  %v4628_v32 = vrot.slane %v4367_v26, 1  ;;  %16115 = vmatprep.subr.bf16.mxu1 %v17073_v10  ;;  %v18371_v14 = vld [vmem:[#allocation3] sm:$0xff]   ;;  %v18374_v12 = vld [vmem:[#allocation3 + $0x8] sm:$0xff]  }
 0x2e2   : > { %4821 = vst [vmem:[#allocation4 + $0x1d8] sm:$0xff] %v4757_v43  ;;  %v4760_v18 = vadd.f32 %v4633_v24, %v3959_v37  ;;  %v5503_v58 = vadd.f32 %v15879_v28, %v5439_v44  ;;  %16073 = vmatprep.mubr.bf16.mxu0 %v17306_v31  ;;  %16190 = vmatpush3.bf16.msra.mxu0 %v17074_v47  ;;  %v5447_v37 = vld [vmem:[#allocation4 + $0x51] sm:$0xff] }
 0x2e3   : > { %v4629_v27 = vsel %vm2357_vm0, %v4626_v61, %v4628_v32  ;;  %v4631_v56 = vsel %vm2357_vm0, %v4628_v32, %v4630_v46  ;;  %v5182_v33 = vpop.f32.mrf.mxu0  ;;  %v18367_v34 = vpop.f32.mrf.mxu1  ;;  %16191 = vmatprep.subr.bf16.mxu0 %v17075_v53  ;;  %16116 = vmatpush3.bf16.msra.mxu1 %v17073_v10  ;;  %v17310_v44 = vld [vmem:[#allocation2 + $0xd0] sm:$0xff]  }
 0x2e4   : > { %4824 = vst [vmem:[#allocation4 + $0x1f0] sm:$0xff] %v4760_v18  ;;  %5567 = vst [vmem:[#allocation4 + $0x11] sm:$0xff] %v5503_v58  ;;  %v4758_v40 = vadd.f32 %v4629_v27, %v3957_v17  ;;  %v4759_v0 = vadd.f32 %v4631_v56, %v3958_v21  ;;  %v5501_v29 = vadd.f32 %v5437_v52, %v5182_v33  ;;  %v17309_v21 = vld [vmem:[#allocation2 + $0xc8] sm:$0xff]   ;;  %16117 = vmatprep.mubr.bf16.mxu1 %v18371_v14  ;;  %v17079_v58 = vld [vmem:[#allocation10 + $0x40] sm:$0xff]  }
 0x2e5   : > { %v15880_v39 = vpop.f32.mrf.mxu0  ;;  %v5728_v9 = vpop.f32.mrf.mxu1  ;;  %v5445_v17 = vld [vmem:[#allocation4 + $0x41] sm:$0xff]  ;;  %v5448_v56 = vld [vmem:[#allocation4 + $0x59] sm:$0xff] }
 0x2e6   : > { %4822 = vst [vmem:[#allocation4 + $0x1e0] sm:$0xff] %v4758_v40  ;;  %4823 = vst [vmem:[#allocation4 + $0x1e8] sm:$0xff] %v4759_v0  ;;  %v5504_v7 = vadd.f32 %v15880_v39, %v5440_v42  ;;  %16192 = vmatpush3.bf16.msra.mxu0 %v17075_v53  ;;  %16118 = vmatmul.mubr.bf16.vlgmr.msra.gmra.mxu1 %v18374_v12  ;;  %v5446_v0 = vld [vmem:[#allocation4 + $0x49] sm:$0xff] }
 0x2e7   : > { %5565 = vst [vmem:[#allocation4 + $0x1] sm:$0xff] %v5501_v29  ;;  %v4442_v45 = vld [vmem:[#allocation4 + $0x1f8] sm:$0x7f]  ;;  %v5185_v38 = vpop.f32.mrf.mxu0  ;;  %v15960_v6 = vpop.f32.mrf.mxu1  ;;  %16193 = vmatprep.subr.bf16.mxu0 %v17076_v20 }
 0x2e8   : > { %v4761_v48 = vadd.f32 %v4632_v8, %v4442_v45  ;;  %5568 = vst [vmem:[#allocation4 + $0x19] sm:$0xff] %v5504_v7  ;;  %v5502_v1 = vadd.f32 %v5438_v5, %v5185_v38  ;;  %v5451_v38 = vld [vmem:[#allocation4 + $0x71] sm:$0xff] }
 0x2e9   : > { %v15883_v36 = vpop.f32.mrf.mxu0  ;;  %16074 = vmatmul.mubr.bf16.gmra.mxu0 %v17307_v51  ;;  %v5731_v55 = vpop.f32.mrf.mxu1 }
 0x2ea   : > { %4825 = vst [vmem:[#allocation4 + $0x1f8] sm:$0x7f] %v4761_v48  ;;  %5566 = vst [vmem:[#allocation4 + $0x9] sm:$0xff] %v5502_v1  ;;  %v5507_v22 = vadd.f32 %v15883_v36, %v5443_v50  ;;  %16077 = vmatprep.mubr.bf16.mxu0 %v17308_v19  ;;  %16194 = vmatpush3.bf16.msra.mxu0 %v17076_v20  ;;  %v17312_v50 = vld [vmem:[#allocation2 + $0xe0] sm:$0xff]   ;;  %v5455_v20 = vld [vmem:[#allocation4 + $0x91] sm:$0xff] }
 0x2eb   : > { %v5198_v54 = vpop.f32.mrf.mxu0  ;;  %v18369_v25 = vpop.f32.mrf.mxu1  ;;  %16195 = vmatprep.subr.bf16.mxu0 %v17079_v58 }
 0x2ec   : > { %5571 = vst [vmem:[#allocation4 + $0x31] sm:$0xff] %v5507_v22  ;;  %v5505_v16 = vadd.f32 %v5441_v23, %v5198_v54 }
 0x2ed   : > { %v15884_v41 = vpop.f32.mrf.mxu0  ;;  %v5744_v60 = vpop.f32.mrf.mxu1 }
 0x2ee   : > { %v5983_v62 = vld [vmem:[#allocation4] sm:$0xff]  ;;  %5569 = vst [vmem:[#allocation4 + $0x21] sm:$0xff] %v5505_v16  ;;  %v5508_v46 = vadd.f32 %v15884_v41, %v5444_v49  ;;  %16196 = vmatpush3.bf16.msra.mxu0 %v17079_v58 }
 0x2ef   : > { %v6047_v61 = vadd.f32 %v5983_v62, %v5728_v9  ;;  %v5201_v63 = vpop.f32.mrf.mxu0  ;;  %v5986_v2 = vld [vmem:[#allocation4 + $0x18] sm:$0xff]  ;;  %v15964_v57 = vpop.f32.mrf.mxu1 }
 0x2f0   : > { %5572 = vst [vmem:[#allocation4 + $0x39] sm:$0xff] %v5508_v46  ;;  %v5506_v13 = vadd.f32 %v5442_v59, %v5201_v63  ;;  %v6050_v11 = vadd.f32 %v15960_v6, %v5986_v2  ;;  %v17311_v6 = vld [vmem:[#allocation2 + $0xd8] sm:$0xff]  }
 0x2f1   : > { %6111 = vst [vmem:[#allocation4] sm:$0xff] %v6047_v61  ;;  %v5985_v8 = vld [vmem:[#allocation4 + $0x10] sm:$0xff]  ;;  %v15887_v15 = vpop.f32.mrf.mxu0  ;;  %v5984_v43 = vld [vmem:[#allocation4 + $0x8] sm:$0xff]  ;;  %16078 = vmatmul.mubr.bf16.gmra.mxu0 %v17309_v21  ;;  %v5747_v26 = vpop.f32.mrf.mxu1 }
 0x2f2   : > { %v6049_v30 = vadd.f32 %v18367_v34, %v5985_v8  ;;  %5570 = vst [vmem:[#allocation4 + $0x29] sm:$0xff] %v5506_v13  ;;  %6114 = vst [vmem:[#allocation4 + $0x18] sm:$0xff] %v6050_v11  ;;  %v5511_v24 = vadd.f32 %v15887_v15, %v5447_v37  ;;  %v6048_v28 = vadd.f32 %v5984_v43, %v5731_v55  ;;  %16081 = vmatprep.mubr.bf16.mxu0 %v17310_v44  ;;  %v5449_v55 = vld [vmem:[#allocation4 + $0x61] sm:$0xff]  ;;  %v17314_v21 = vld [vmem:[#allocation2 + $0xf0] sm:$0xff]  }
 0x2f3   : > { %v5214_v32 = vpop.f32.mrf.mxu0  ;;  %v18376_v18 = vpop.f32.mrf.mxu1  ;;  %7354 = vst [vmem:[#allocation4 + $0x18] sm:$0xff] %v17532_v3  ;;  %v17313_v11 = vld [vmem:[#allocation2 + $0xe8] sm:$0xff]  }
 0x2f4   : > { %6113 = vst [vmem:[#allocation4 + $0x10] sm:$0xff] %v6049_v30  ;;  %5575 = vst [vmem:[#allocation4 + $0x51] sm:$0xff] %v5511_v24  ;;  %v5509_v31 = vadd.f32 %v5445_v17, %v5214_v32  ;;  %v5453_v30 = vld [vmem:[#allocation4 + $0x81] sm:$0xff]  ;;  %v5456_v17 = vld [vmem:[#allocation4 + $0x99] sm:$0xff] }
 0x2f5   : > { %6112 = vst [vmem:[#allocation4 + $0x8] sm:$0xff] %v6048_v28  ;;  %v15888_v27 = vpop.f32.mrf.mxu0  ;;  %v5987_v33 = vld [vmem:[#allocation4 + $0x20] sm:$0xff]  ;;  %v5760_v52 = vpop.f32.mrf.mxu1  ;;  %7353 = vst [vmem:[#allocation4 + $0x10] sm:$0xff] %v17532_v3 }
 0x2f6   : > { %5573 = vst [vmem:[#allocation4 + $0x41] sm:$0xff] %v5509_v31  ;;  %v5512_v34 = vadd.f32 %v15888_v27, %v5448_v56  ;;  %v6051_v35 = vadd.f32 %v5987_v33, %v5744_v60  ;;  %v5450_v60 = vld [vmem:[#allocation4 + $0x69] sm:$0xff] }
 0x2f7   : > { %v5217_v40 = vpop.f32.mrf.mxu0  ;;  %v5990_v29 = vld [vmem:[#allocation4 + $0x38] sm:$0xff]  ;;  %v15968_v4 = vpop.f32.mrf.mxu1  ;;  %v5454_v56 = vld [vmem:[#allocation4 + $0x89] sm:$0xff] }
 0x2f8   : > { %v18382_v39 = vld [vmem:[#allocation4] sm:$0xff]  ;;  %5576 = vst [vmem:[#allocation4 + $0x59] sm:$0xff] %v5512_v34  ;;  %6115 = vst [vmem:[#allocation4 + $0x20] sm:$0xff] %v6051_v35  ;;  %v5510_v42 = vadd.f32 %v5446_v0, %v5217_v40  ;;  %v6054_v9 = vadd.f32 %v15964_v57, %v5990_v29  ;;  %v17080_v40 = vld [vmem:[#allocation10 + $0xb8] sm:$0xff]  }
 0x2f9   : > { %7351 = vst [vmem:[#allocation4] sm:$0xff] %v17532_v3  ;;  %v5989_v7 = vld [vmem:[#allocation4 + $0x30] sm:$0xff]  ;;  %v15891_v45 = vpop.f32.mrf.mxu0  ;;  %v5988_v5 = vld [vmem:[#allocation4 + $0x28] sm:$0xff]  ;;  %16082 = vmatmul.mubr.bf16.gmra.mxu0 %v17311_v6  ;;  %v5763_v47 = vpop.f32.mrf.mxu1  ;;  %16261 = vmatprep.subr.bf16.mxu1 %v17080_v40 }
 0x2fa   : > { %v6053_v48 = vadd.f32 %v18369_v25, %v5989_v7  ;;  %5574 = vst [vmem:[#allocation4 + $0x49] sm:$0xff] %v5510_v42  ;;  %6118 = vst [vmem:[#allocation4 + $0x38] sm:$0xff] %v6054_v9  ;;  %v5515_v1 = vadd.f32 %v15891_v45, %v5451_v38  ;;  %v6052_v36 = vadd.f32 %v5988_v5, %v5747_v26  ;;  %16085 = vmatprep.mubr.bf16.mxu0 %v17312_v50  ;;  %v5452_v25 = vld [vmem:[#allocation4 + $0x79] sm:$0xff]  ;;  %v5459_v9 = vld [vmem:[#allocation4 + $0xb1] sm:$0xff] }
 0x2fb   : > { %v5230_v51 = vpop.f32.mrf.mxu0  ;;  %v18386_v22 = vpop.f32.mrf.mxu1  ;;  %7358 = vst [vmem:[#allocation4 + $0x38] sm:$0xff] %v17532_v3  ;;  %v17315_v45 = vld [vmem:[#allocation2 + $0xf8] sm:$0xff]   ;;  %16262 = vmatpush3.bf16.msra.mxu1 %v17080_v40 }
 0x2fc   : > { %v18388_v19 = vld [vmem:[#allocation4 + $0x8] sm:$0xff]  ;;  %6117 = vst [vmem:[#allocation4 + $0x30] sm:$0xff] %v6053_v48  ;;  %5579 = vst [vmem:[#allocation4 + $0x71] sm:$0xff] %v5515_v1  ;;  %v5513_v54 = vadd.f32 %v5449_v55, %v5230_v51  ;;  %v17316_v48 = vld [vmem:[#allocation2 + $0x100] sm:$0xff]  }
 0x2fd   : > { %6116 = vst [vmem:[#allocation4 + $0x28] sm:$0xff] %v6052_v36  ;;  %7352 = vst [vmem:[#allocation4 + $0x8] sm:$0xff] %v17532_v3  ;;  %v15892_v23 = vpop.f32.mrf.mxu0  ;;  %v5991_v53 = vld [vmem:[#allocation4 + $0x40] sm:$0xff]  ;;  %v5776_v16 = vpop.f32.mrf.mxu1 }
 0x2fe   : > { %7357 = vst [vmem:[#allocation4 + $0x30] sm:$0xff] %v17532_v3  ;;  %5577 = vst [vmem:[#allocation4 + $0x61] sm:$0xff] %v5513_v54  ;;  %v5516_v41 = vadd.f32 %v15892_v23, %v5452_v25  ;;  %v6055_v49 = vadd.f32 %v5991_v53, %v5760_v52  ;;  %v5457_v36 = vld [vmem:[#allocation4 + $0xa1] sm:$0xff]  ;;  %v5460_v54 = vld [vmem:[#allocation4 + $0xb9] sm:$0xff] }
 0x2ff   : > { %v5233_v62 = vpop.f32.mrf.mxu0  ;;  %v5994_v46 = vld [vmem:[#allocation4 + $0x58] sm:$0xff]  ;;  %v15972_v61 = vpop.f32.mrf.mxu1  ;;  %v18393_v10 = vld [vmem:[#allocation4 + $0x20] sm:$0xff] }
 0x300   : > { %5580 = vst [vmem:[#allocation4 + $0x79] sm:$0xff] %v5516_v41  ;;  %6119 = vst [vmem:[#allocation4 + $0x40] sm:$0xff] %v6055_v49  ;;  %v5514_v63 = vadd.f32 %v5450_v60, %v5233_v62  ;;  %v6058_v59 = vadd.f32 %v15968_v4, %v5994_v46  ;;  %v5458_v49 = vld [vmem:[#allocation4 + $0xa9] sm:$0xff] }
 0x301   : > { %7355 = vst [vmem:[#allocation4 + $0x20] sm:$0xff] %v17532_v3  ;;  %v5993_v2 = vld [vmem:[#allocation4 + $0x50] sm:$0xff]  ;;  %v15895_v57 = vpop.f32.mrf.mxu0  ;;  %v5992_v13 = vld [vmem:[#allocation4 + $0x48] sm:$0xff]  ;;  %16086 = vmatmul.mubr.bf16.gmra.mxu0 %v17313_v11  ;;  %v5779_v8 = vpop.f32.mrf.mxu1 }
 0x302   : > { %v6057_v15 = vadd.f32 %v18376_v18, %v5993_v2  ;;  %5578 = vst [vmem:[#allocation4 + $0x69] sm:$0xff] %v5514_v63  ;;  %6122 = vst [vmem:[#allocation4 + $0x58] sm:$0xff] %v6058_v59  ;;  %v5519_v37 = vadd.f32 %v15895_v57, %v5455_v20  ;;  %v6056_v43 = vadd.f32 %v5992_v13, %v5763_v47  ;;  %16089 = vmatprep.mubr.bf16.mxu0 %v17314_v21  ;;  %v5463_v57 = vld [vmem:[#allocation4 + $0xd1] sm:$0xff]  ;;  %v17317_v13 = vld [vmem:[#allocation2 + $0x108] sm:$0xff]  }
 0x303   : > { %v5246_v26 = vpop.f32.mrf.mxu0  ;;  %v18397_v24 = vpop.f32.mrf.mxu1  ;;  %7362 = vst [vmem:[#allocation4 + $0x58] sm:$0xff] %v17532_v3 }
 0x304   : > { %v18399_v28 = vld [vmem:[#allocation4 + $0x28] sm:$0xff]  ;;  %6121 = vst [vmem:[#allocation4 + $0x50] sm:$0xff] %v6057_v15  ;;  %5583 = vst [vmem:[#allocation4 + $0x91] sm:$0xff] %v5519_v37  ;;  %v5517_v44 = vadd.f32 %v5453_v30, %v5246_v26 }
 0x305   : > { %6120 = vst [vmem:[#allocation4 + $0x48] sm:$0xff] %v6056_v43  ;;  %7356 = vst [vmem:[#allocation4 + $0x28] sm:$0xff] %v17532_v3  ;;  %v15896_v32 = vpop.f32.mrf.mxu0  ;;  %v5995_v18 = vld [vmem:[#allocation4 + $0x60] sm:$0xff]  ;;  %v5792_v58 = vpop.f32.mrf.mxu1  ;;  %v17318_v43 = vld [vmem:[#allocation2 + $0x110] sm:$0xff]  }
 0x306   : > { %7361 = vst [vmem:[#allocation4 + $0x50] sm:$0xff] %v17532_v3  ;;  %5581 = vst [vmem:[#allocation4 + $0x81] sm:$0xff] %v5517_v44  ;;  %v5520_v31 = vadd.f32 %v15896_v32, %v5456_v17  ;;  %v6059_v27 = vadd.f32 %v5995_v18, %v5776_v16  ;;  %v5461_v26 = vld [vmem:[#allocation4 + $0xc1] sm:$0xff]  ;;  %v5464_v17 = vld [vmem:[#allocation4 + $0xd9] sm:$0xff] }
 0x307   : > { %v5249_v33 = vpop.f32.mrf.mxu0  ;;  %v5998_v52 = vld [vmem:[#allocation4 + $0x78] sm:$0xff]  ;;  %v15976_v34 = vpop.f32.mrf.mxu1  ;;  %v18404_v35 = vld [vmem:[#allocation4 + $0x40] sm:$0xff] }
 0x308   : > { %5584 = vst [vmem:[#allocation4 + $0x99] sm:$0xff] %v5520_v31  ;;  %6123 = vst [vmem:[#allocation4 + $0x60] sm:$0xff] %v6059_v27  ;;  %v5518_v0 = vadd.f32 %v5454_v56, %v5249_v33  ;;  %v6062_v29 = vadd.f32 %v15972_v61, %v5998_v52  ;;  %v5462_v56 = vld [vmem:[#allocation4 + $0xc9] sm:$0xff] }
 0x309   : > { %7359 = vst [vmem:[#allocation4 + $0x40] sm:$0xff] %v17532_v3  ;;  %v5997_v4 = vld [vmem:[#allocation4 + $0x70] sm:$0xff]  ;;  %v15899_v42 = vpop.f32.mrf.mxu0  ;;  %v5996_v7 = vld [vmem:[#allocation4 + $0x68] sm:$0xff]  ;;  %16090 = vmatmul.mubr.bf16.gmra.mxu0 %v17315_v45  ;;  %v5795_v38 = vpop.f32.mrf.mxu1 }
 0x30a   : > { %v6061_v5 = vadd.f32 %v18386_v22, %v5997_v4  ;;  %5582 = vst [vmem:[#allocation4 + $0x89] sm:$0xff] %v5518_v0  ;;  %6126 = vst [vmem:[#allocation4 + $0x78] sm:$0xff] %v6062_v29  ;;  %v5523_v6 = vadd.f32 %v15899_v42, %v5459_v9  ;;  %v6060_v47 = vadd.f32 %v5996_v7, %v5779_v8  ;;  %16093 = vmatprep.mubr.bf16.mxu0 %v17316_v48  ;;  %v17085_v0 = vld [vmem:[#allocation10 + $0xb0] sm:$0xff]  }
 0x30b   : > { %v5262_v1 = vpop.f32.mrf.mxu0  ;;  %v18408_v50 = vpop.f32.mrf.mxu1  ;;  %7366 = vst [vmem:[#allocation4 + $0x78] sm:$0xff] %v17532_v3  ;;  %v5467_v7 = vld [vmem:[#allocation4 + $0xf1] sm:$0xff]  ;;  %16263 = vmatprep.subr.bf16.mxu1 %v17085_v0 }
 0x30c   : > { %v18410_v51 = vld [vmem:[#allocation4 + $0x48] sm:$0xff]  ;;  %6125 = vst [vmem:[#allocation4 + $0x70] sm:$0xff] %v6061_v5  ;;  %5587 = vst [vmem:[#allocation4 + $0xb1] sm:$0xff] %v5523_v6  ;;  %v5521_v55 = vadd.f32 %v5457_v36, %v5262_v1  ;;  %16264 = vmatpush3.bf16.msra.mxu1 %v17085_v0 }
 0x30d   : > { %6124 = vst [vmem:[#allocation4 + $0x68] sm:$0xff] %v6060_v47  ;;  %7360 = vst [vmem:[#allocation4 + $0x48] sm:$0xff] %v17532_v3  ;;  %v15900_v22 = vpop.f32.mrf.mxu0  ;;  %v5999_v23 = vld [vmem:[#allocation4 + $0x80] sm:$0xff]  ;;  %v5808_v25 = vpop.f32.mrf.mxu1  ;;  %v17090_v0 = vld [vmem:[#allocation10 + $0xa8] sm:$0xff]  }
 0x30e   : > { %7365 = vst [vmem:[#allocation4 + $0x70] sm:$0xff] %v17532_v3  ;;  %5585 = vst [vmem:[#allocation4 + $0xa1] sm:$0xff] %v5521_v55  ;;  %v5524_v53 = vadd.f32 %v15900_v22, %v5460_v54  ;;  %v6063_v16 = vadd.f32 %v5999_v23, %v5792_v58  ;;  %v5465_v36 = vld [vmem:[#allocation4 + $0xe1] sm:$0xff]  ;;  %v5468_v23 = vld [vmem:[#allocation4 + $0xf9] sm:$0xff]  ;;  %16265 = vmatprep.subr.bf16.mxu1 %v17090_v0 }
 0x30f   : > { %v5265_v41 = vpop.f32.mrf.mxu0  ;;  %v6002_v62 = vld [vmem:[#allocation4 + $0x98] sm:$0xff]  ;;  %v15980_v60 = vpop.f32.mrf.mxu1  ;;  %v18415_v46 = vld [vmem:[#allocation4 + $0x60] sm:$0xff] }
 0x310   : > { %5588 = vst [vmem:[#allocation4 + $0xb9] sm:$0xff] %v5524_v53  ;;  %6127 = vst [vmem:[#allocation4 + $0x80] sm:$0xff] %v6063_v16  ;;  %v5522_v61 = vadd.f32 %v5458_v49, %v5265_v41  ;;  %v6066_v63 = vadd.f32 %v15976_v34, %v6002_v62  ;;  %v5466_v49 = vld [vmem:[#allocation4 + $0xe9] sm:$0xff]  ;;  %16266 = vmatpush3.bf16.msra.mxu1 %v17090_v0 }
 0x311   : > { %7363 = vst [vmem:[#allocation4 + $0x60] sm:$0xff] %v17532_v3  ;;  %v6001_v59 = vld [vmem:[#allocation4 + $0x90] sm:$0xff]  ;;  %v15903_v2 = vpop.f32.mrf.mxu0  ;;  %v6000_v20 = vld [vmem:[#allocation4 + $0x88] sm:$0xff]  ;;  %16094 = vmatmul.mubr.bf16.gmra.mxu0 %v17317_v13  ;;  %v5811_v11 = vpop.f32.mrf.mxu1 }
 0x312   : > { %v6065_v8 = vadd.f32 %v18397_v24, %v6001_v59  ;;  %5586 = vst [vmem:[#allocation4 + $0xa9] sm:$0xff] %v5522_v61  ;;  %6130 = vst [vmem:[#allocation4 + $0x98] sm:$0xff] %v6066_v63  ;;  %v5527_v15 = vadd.f32 %v15903_v2, %v5463_v57  ;;  %v6064_v37 = vadd.f32 %v6000_v20, %v5795_v38  ;;  %16097 = vmatprep.mubr.bf16.mxu0 %v17318_v43  ;;  %v17319_v38 = vld [vmem:[#allocation2 + $0x118] sm:$0xff]  }
 0x313   : > { %v5278_v21 = vpop.f32.mrf.mxu0  ;;  %v18419_v30 = vpop.f32.mrf.mxu1  ;;  %7370 = vst [vmem:[#allocation4 + $0x98] sm:$0xff] %v17532_v3  ;;  %v5471_v20 = vld [vmem:[#allocation4 + $0x111] sm:$0xff] }
 0x314   : > { %v18421_v44 = vld [vmem:[#allocation4 + $0x68] sm:$0xff]  ;;  %6129 = vst [vmem:[#allocation4 + $0x90] sm:$0xff] %v6065_v8  ;;  %5591 = vst [vmem:[#allocation4 + $0xd1] sm:$0xff] %v5527_v15  ;;  %v5525_v32 = vadd.f32 %v5461_v26, %v5278_v21 }
 0x315   : > { %6128 = vst [vmem:[#allocation4 + $0x88] sm:$0xff] %v6064_v37  ;;  %7364 = vst [vmem:[#allocation4 + $0x68] sm:$0xff] %v17532_v3  ;;  %v15904_v24 = vpop.f32.mrf.mxu0  ;;  %v6003_v18 = vld [vmem:[#allocation4 + $0xa0] sm:$0xff]  ;;  %v5824_v58 = vpop.f32.mrf.mxu1 }
 0x316   : > { %7369 = vst [vmem:[#allocation4 + $0x90] sm:$0xff] %v17532_v3  ;;  %5589 = vst [vmem:[#allocation4 + $0xc1] sm:$0xff] %v5525_v32  ;;  %v5528_v31 = vadd.f32 %v15904_v24, %v5464_v17  ;;  %v6067_v27 = vadd.f32 %v6003_v18, %v5808_v25  ;;  %v5469_v21 = vld [vmem:[#allocation4 + $0x101] sm:$0xff] }
 0x317   : > { %v5281_v33 = vpop.f32.mrf.mxu0  ;;  %v6006_v52 = vld [vmem:[#allocation4 + $0xb8] sm:$0xff]  ;;  %v15984_v34 = vpop.f32.mrf.mxu1  ;;  %v18426_v40 = vld [vmem:[#allocation4 + $0x80] sm:$0xff] }
 0x318   : > { %5592 = vst [vmem:[#allocation4 + $0xd9] sm:$0xff] %v5528_v31  ;;  %6131 = vst [vmem:[#allocation4 + $0xa0] sm:$0xff] %v6067_v27  ;;  %v5526_v29 = vadd.f32 %v5462_v56, %v5281_v33  ;;  %v6070_v4 = vadd.f32 %v15980_v60, %v6006_v52  ;;  %v5470_v27 = vld [vmem:[#allocation4 + $0x109] sm:$0xff] }
 0x319   : > { %7367 = vst [vmem:[#allocation4 + $0x80] sm:$0xff] %v17532_v3  ;;  %v6005_v42 = vld [vmem:[#allocation4 + $0xb0] sm:$0xff]  ;;  %v15907_v9 = vpop.f32.mrf.mxu0  ;;  %v6004_v45 = vld [vmem:[#allocation4 + $0xa8] sm:$0xff]  ;;  %16098 = vmatmul.mubr.bf16.gmra.mxu0 %v17319_v38  ;;  %v5827_v5 = vpop.f32.mrf.mxu1 }
 0x31a   : > { %v6069_v6 = vadd.f32 %v18408_v50, %v6005_v42  ;;  %5590 = vst [vmem:[#allocation4 + $0xc9] sm:$0xff] %v5526_v29  ;;  %6134 = vst [vmem:[#allocation4 + $0xb8] sm:$0xff] %v6070_v4  ;;  %v5531_v47 = vadd.f32 %v15907_v9, %v5467_v7  ;;  %v6068_v48 = vadd.f32 %v6004_v45, %v5811_v11  ;;  %16197 = vmatprep.mubr.bf16.mxu0 %v18371_v14  ;;  %v5475_v7 = vld [vmem:[#allocation4 + $0x131] sm:$0xff] }
 0x31b   : > { %v5294_v1 = vpop.f32.mrf.mxu0  ;;  %v18431_v55 = vpop.f32.mrf.mxu1  ;;  %7374 = vst [vmem:[#allocation4 + $0xb8] sm:$0xff] %v17532_v3 }
 0x31c   : > { %v18433_v22 = vld [vmem:[#allocation4 + $0x88] sm:$0xff]  ;;  %6133 = vst [vmem:[#allocation4 + $0xb0] sm:$0xff] %v6069_v6  ;;  %5595 = vst [vmem:[#allocation4 + $0xf1] sm:$0xff] %v5531_v47  ;;  %v5529_v54 = vadd.f32 %v5465_v36, %v5294_v1 }
 0x31d   : > { %6132 = vst [vmem:[#allocation4 + $0xa8] sm:$0xff] %v6068_v48  ;;  %7368 = vst [vmem:[#allocation4 + $0x88] sm:$0xff] %v17532_v3  ;;  %v15908_v50 = vpop.f32.mrf.mxu0  ;;  %v6007_v25 = vld [vmem:[#allocation4 + $0xc0] sm:$0xff]  ;;  %v5840_v53 = vpop.f32.mrf.mxu1 }
 0x31e   : > { %7373 = vst [vmem:[#allocation4 + $0xb0] sm:$0xff] %v17532_v3  ;;  %5593 = vst [vmem:[#allocation4 + $0xe1] sm:$0xff] %v5529_v54  ;;  %v5532_v14 = vadd.f32 %v15908_v50, %v5468_v23  ;;  %v6071_v16 = vadd.f32 %v6007_v25, %v5824_v58  ;;  %v5473_v1 = vld [vmem:[#allocation4 + $0x121] sm:$0xff]  ;;  %v5476_v23 = vld [vmem:[#allocation4 + $0x139] sm:$0xff] }
 0x31f   : > { %v5297_v41 = vpop.f32.mrf.mxu0  ;;  %v6010_v62 = vld [vmem:[#allocation4 + $0xd8] sm:$0xff]  ;;  %v15988_v60 = vpop.f32.mrf.mxu1  ;;  %v18438_v61 = vld [vmem:[#allocation4 + $0xa0] sm:$0xff] }
 0x320   : > { %5596 = vst [vmem:[#allocation4 + $0xf9] sm:$0xff] %v5532_v14  ;;  %6135 = vst [vmem:[#allocation4 + $0xc0] sm:$0xff] %v6071_v16  ;;  %v5530_v63 = vadd.f32 %v5466_v49, %v5297_v41  ;;  %v6074_v59 = vadd.f32 %v15984_v34, %v6010_v62  ;;  %v5474_v49 = vld [vmem:[#allocation4 + $0x129] sm:$0xff] }
 0x321   : > { %7371 = vst [vmem:[#allocation4 + $0xa0] sm:$0xff] %v17532_v3  ;;  %v6009_v2 = vld [vmem:[#allocation4 + $0xd0] sm:$0xff]  ;;  %v15911_v57 = vpop.f32.mrf.mxu0  ;;  %v6008_v13 = vld [vmem:[#allocation4 + $0xc8] sm:$0xff]  ;;  %v5843_v11 = vpop.f32.mrf.mxu1  ;;  %16198 = vmatmul.mubr.bf16.vlgmr.msra.gmra.mxu0 %v18374_v12 }
 0x322   : > { %v6073_v8 = vadd.f32 %v18419_v30, %v6009_v2  ;;  %5594 = vst [vmem:[#allocation4 + $0xe9] sm:$0xff] %v5530_v63  ;;  %6138 = vst [vmem:[#allocation4 + $0xd8] sm:$0xff] %v6074_v59  ;;  %v5535_v15 = vadd.f32 %v15911_v57, %v5471_v20  ;;  %v6072_v37 = vadd.f32 %v6008_v13, %v5827_v5  ;;  %v5472_v30 = vld [vmem:[#allocation4 + $0x119] sm:$0xff]  ;;  %v5479_v13 = vld [vmem:[#allocation4 + $0x151] sm:$0xff] }
 0x323   : > { %v5310_v43 = vpop.f32.mrf.mxu0  ;;  %v18443_v26 = vpop.f32.mrf.mxu1  ;;  %7378 = vst [vmem:[#allocation4 + $0xd8] sm:$0xff] %v17532_v3 }
 0x324   : > { %v18445_v32 = vld [vmem:[#allocation4 + $0xa8] sm:$0xff]  ;;  %6137 = vst [vmem:[#allocation4 + $0xd0] sm:$0xff] %v6073_v8  ;;  %5599 = vst [vmem:[#allocation4 + $0x111] sm:$0xff] %v5535_v15  ;;  %v5533_v24 = vadd.f32 %v5469_v21, %v5310_v43 }
 0x325   : > { %6136 = vst [vmem:[#allocation4 + $0xc8] sm:$0xff] %v6072_v37  ;;  %7372 = vst [vmem:[#allocation4 + $0xa8] sm:$0xff] %v17532_v3  ;;  %v15912_v12 = vpop.f32.mrf.mxu0  ;;  %v6011_v17 = vld [vmem:[#allocation4 + $0xe0] sm:$0xff]  ;;  %v5856_v18 = vpop.f32.mrf.mxu1 }
 0x326   : > { %7377 = vst [vmem:[#allocation4 + $0xd0] sm:$0xff] %v17532_v3  ;;  %5597 = vst [vmem:[#allocation4 + $0x101] sm:$0xff] %v5533_v24  ;;  %v5536_v58 = vadd.f32 %v15912_v12, %v5472_v30  ;;  %v6075_v31 = vadd.f32 %v6011_v17, %v5840_v53  ;;  %v5477_v24 = vld [vmem:[#allocation4 + $0x141] sm:$0xff] }
 0x327   : > { %v5313_v56 = vpop.f32.mrf.mxu0  ;;  %v6014_v33 = vld [vmem:[#allocation4 + $0xf8] sm:$0xff]  ;;  %v15992_v52 = vpop.f32.mrf.mxu1  ;;  %v18450_v34 = vld [vmem:[#allocation4 + $0xc0] sm:$0xff] }
 0x328   : > { %5600 = vst [vmem:[#allocation4 + $0x119] sm:$0xff] %v5536_v58  ;;  %6139 = vst [vmem:[#allocation4 + $0xe0] sm:$0xff] %v6075_v31  ;;  %v5534_v29 = vadd.f32 %v5470_v27, %v5313_v56  ;;  %v6078_v4 = vadd.f32 %v15988_v60, %v6014_v33  ;;  %v5478_v33 = vld [vmem:[#allocation4 + $0x149] sm:$0xff] }
 0x329   : > { %7375 = vst [vmem:[#allocation4 + $0xc0] sm:$0xff] %v17532_v3  ;;  %v6013_v42 = vld [vmem:[#allocation4 + $0xf0] sm:$0xff]  ;;  %v15915_v9 = vpop.f32.mrf.mxu0  ;;  %v6012_v45 = vld [vmem:[#allocation4 + $0xe8] sm:$0xff]  ;;  %v5859_v38 = vpop.f32.mrf.mxu1 }
 0x32a   : > { %v6077_v5 = vadd.f32 %v18431_v55, %v6013_v42  ;;  %5598 = vst [vmem:[#allocation4 + $0x109] sm:$0xff] %v5534_v29  ;;  %6142 = vst [vmem:[#allocation4 + $0xf8] sm:$0xff] %v6078_v4  ;;  %v5539_v6 = vadd.f32 %v15915_v9, %v5475_v7  ;;  %v6076_v47 = vadd.f32 %v6012_v45, %v5843_v11  ;;  %v17095_v42 = vld [vmem:[#allocation10 + $0xa0] sm:$0xff]  }
 0x32b   : > { %v5326_v48 = vpop.f32.mrf.mxu0  ;;  %v18454_v36 = vpop.f32.mrf.mxu1  ;;  %7382 = vst [vmem:[#allocation4 + $0xf8] sm:$0xff] %v17532_v3  ;;  %16267 = vmatprep.subr.bf16.mxu1 %v17095_v42 }
 0x32c   : > { %v18456_v54 = vld [vmem:[#allocation4 + $0xc8] sm:$0xff]  ;;  %6141 = vst [vmem:[#allocation4 + $0xf0] sm:$0xff] %v6077_v5  ;;  %5603 = vst [vmem:[#allocation4 + $0x131] sm:$0xff] %v5539_v6  ;;  %v5537_v50 = vadd.f32 %v5473_v1, %v5326_v48  ;;  %v5483_v5 = vld [vmem:[#allocation4 + $0x171] sm:$0xff]  ;;  %16268 = vmatpush3.bf16.msra.mxu1 %v17095_v42 }
 0x32d   : > { %6140 = vst [vmem:[#allocation4 + $0xe8] sm:$0xff] %v6076_v47  ;;  %7376 = vst [vmem:[#allocation4 + $0xc8] sm:$0xff] %v17532_v3  ;;  %v15916_v55 = vpop.f32.mrf.mxu0  ;;  %v6015_v25 = vld [vmem:[#allocation4 + $0x100] sm:$0xff]  ;;  %v5872_v53 = vpop.f32.mrf.mxu1 }
 0x32e   : > { %7381 = vst [vmem:[#allocation4 + $0xf0] sm:$0xff] %v17532_v3  ;;  %5601 = vst [vmem:[#allocation4 + $0x121] sm:$0xff] %v5537_v50  ;;  %v5540_v14 = vadd.f32 %v15916_v55, %v5476_v23  ;;  %v6079_v16 = vadd.f32 %v6015_v25, %v5856_v18  ;;  %v5481_v23 = vld [vmem:[#allocation4 + $0x161] sm:$0xff] }
 0x32f   : > { %v5329_v41 = vpop.f32.mrf.mxu0  ;;  %v6018_v62 = vld [vmem:[#allocation4 + $0x118] sm:$0xff]  ;;  %v15996_v60 = vpop.f32.mrf.mxu1  ;;  %v18461_v63 = vld [vmem:[#allocation4 + $0xe0] sm:$0xff] }
 0x330   : > { %5604 = vst [vmem:[#allocation4 + $0x139] sm:$0xff] %v5540_v14  ;;  %6143 = vst [vmem:[#allocation4 + $0x100] sm:$0xff] %v6079_v16  ;;  %v5538_v59 = vadd.f32 %v5474_v49, %v5329_v41  ;;  %v6082_v2 = vadd.f32 %v15992_v52, %v6018_v62  ;;  %v5484_v16 = vld [vmem:[#allocation4 + $0x179] sm:$0xff] }
 0x331   : > { %7379 = vst [vmem:[#allocation4 + $0xe0] sm:$0xff] %v17532_v3  ;;  %v6017_v57 = vld [vmem:[#allocation4 + $0x110] sm:$0xff]  ;;  %v15919_v20 = vpop.f32.mrf.mxu0  ;;  %v6016_v11 = vld [vmem:[#allocation4 + $0x108] sm:$0xff]  ;;  %v5875_v8 = vpop.f32.mrf.mxu1 }
 0x332   : > { %v6081_v15 = vadd.f32 %v18443_v26, %v6017_v57  ;;  %5602 = vst [vmem:[#allocation4 + $0x129] sm:$0xff] %v5538_v59  ;;  %6146 = vst [vmem:[#allocation4 + $0x118] sm:$0xff] %v6082_v2  ;;  %v5543_v37 = vadd.f32 %v15919_v20, %v5479_v13  ;;  %v6080_v43 = vadd.f32 %v6016_v11, %v5859_v38  ;;  %v5480_v26 = vld [vmem:[#allocation4 + $0x159] sm:$0xff]  ;;  %v5482_v2 = vld [vmem:[#allocation4 + $0x169] sm:$0xff] }
 0x333   : > { %v5342_v21 = vpop.f32.mrf.mxu0  ;;  %v18465_v12 = vpop.f32.mrf.mxu1  ;;  %7386 = vst [vmem:[#allocation4 + $0x118] sm:$0xff] %v17532_v3 }
 0x334   : > { %v18467_v30 = vld [vmem:[#allocation4 + $0xe8] sm:$0xff]  ;;  %6145 = vst [vmem:[#allocation4 + $0x110] sm:$0xff] %v6081_v15  ;;  %5607 = vst [vmem:[#allocation4 + $0x151] sm:$0xff] %v5543_v37  ;;  %v5541_v17 = vadd.f32 %v5477_v24, %v5342_v21 }
 0x335   : > { %6144 = vst [vmem:[#allocation4 + $0x108] sm:$0xff] %v6080_v43  ;;  %7380 = vst [vmem:[#allocation4 + $0xe8] sm:$0xff] %v17532_v3  ;;  %v15920_v18 = vpop.f32.mrf.mxu0  ;;  %v6019_v58 = vld [vmem:[#allocation4 + $0x120] sm:$0xff]  ;;  %v5888_v31 = vpop.f32.mrf.mxu1  ;;  %v5487_v43 = vld [vmem:[#allocation4 + $0x191] sm:$0xff] }
 0x336   : > { %7385 = vst [vmem:[#allocation4 + $0x110] sm:$0xff] %v17532_v3  ;;  %5605 = vst [vmem:[#allocation4 + $0x141] sm:$0xff] %v5541_v17  ;;  %v5544_v27 = vadd.f32 %v15920_v18, %v5480_v26  ;;  %v6083_v56 = vadd.f32 %v6019_v58, %v5872_v53 }
 0x337   : > { %v5345_v52 = vpop.f32.mrf.mxu0  ;;  %v6022_v0 = vld [vmem:[#allocation4 + $0x138] sm:$0xff]  ;;  %v16000_v29 = vpop.f32.mrf.mxu1  ;;  %v18472_v4 = vld [vmem:[#allocation4 + $0x100] sm:$0xff] }
 0x338   : > { %5608 = vst [vmem:[#allocation4 + $0x159] sm:$0xff] %v5544_v27  ;;  %6147 = vst [vmem:[#allocation4 + $0x120] sm:$0xff] %v6083_v56  ;;  %v5542_v9 = vadd.f32 %v5478_v33, %v5345_v52  ;;  %v6086_v7 = vadd.f32 %v15996_v60, %v6022_v0 }
 0x339   : > { %7383 = vst [vmem:[#allocation4 + $0x100] sm:$0xff] %v17532_v3  ;;  %v6021_v45 = vld [vmem:[#allocation4 + $0x130] sm:$0xff]  ;;  %v15923_v38 = vpop.f32.mrf.mxu0  ;;  %v6020_v6 = vld [vmem:[#allocation4 + $0x128] sm:$0xff]  ;;  %v5891_v47 = vpop.f32.mrf.mxu1 }
 0x33a   : > { %v6085_v48 = vadd.f32 %v18454_v36, %v6021_v45  ;;  %5606 = vst [vmem:[#allocation4 + $0x149] sm:$0xff] %v5542_v9  ;;  %6150 = vst [vmem:[#allocation4 + $0x138] sm:$0xff] %v6086_v7  ;;  %v5547_v1 = vadd.f32 %v15923_v38, %v5483_v5  ;;  %v6084_v50 = vadd.f32 %v6020_v6, %v5875_v8  ;;  %v5486_v7 = vld [vmem:[#allocation4 + $0x189] sm:$0xff] }
 0x33b   : > { %v5358_v55 = vpop.f32.mrf.mxu0  ;;  %v18476_v25 = vpop.f32.mrf.mxu1  ;;  %7390 = vst [vmem:[#allocation4 + $0x138] sm:$0xff] %v17532_v3 }
 0x33c   : > { %v18478_v53 = vld [vmem:[#allocation4 + $0x108] sm:$0xff]  ;;  %6149 = vst [vmem:[#allocation4 + $0x130] sm:$0xff] %v6085_v48  ;;  %5611 = vst [vmem:[#allocation4 + $0x171] sm:$0xff] %v5547_v1  ;;  %v5545_v14 = vadd.f32 %v5481_v23, %v5358_v55  ;;  %v5491_v23 = vld [vmem:[#allocation4 + $0x1b1] sm:$0xff] }
 0x33d   : > { %6148 = vst [vmem:[#allocation4 + $0x128] sm:$0xff] %v6084_v50  ;;  %7384 = vst [vmem:[#allocation4 + $0x108] sm:$0xff] %v17532_v3  ;;  %v15924_v36 = vpop.f32.mrf.mxu0  ;;  %v6023_v41 = vld [vmem:[#allocation4 + $0x140] sm:$0xff]  ;;  %v5904_v49 = vpop.f32.mrf.mxu1 }
 0x33e   : > { %7389 = vst [vmem:[#allocation4 + $0x130] sm:$0xff] %v17532_v3  ;;  %5609 = vst [vmem:[#allocation4 + $0x161] sm:$0xff] %v5545_v14  ;;  %v5548_v62 = vadd.f32 %v15924_v36, %v5484_v16  ;;  %v6087_v60 = vadd.f32 %v6023_v41, %v5888_v31  ;;  %v5485_v31 = vld [vmem:[#allocation4 + $0x181] sm:$0xff] }
 0x33f   : > { %v5361_v59 = vpop.f32.mrf.mxu0  ;;  %v6026_v57 = vld [vmem:[#allocation4 + $0x158] sm:$0xff]  ;;  %v16004_v20 = vpop.f32.mrf.mxu1  ;;  %v18483_v13 = vld [vmem:[#allocation4 + $0x120] sm:$0xff] }
 0x340   : > { %5612 = vst [vmem:[#allocation4 + $0x179] sm:$0xff] %v5548_v62  ;;  %6151 = vst [vmem:[#allocation4 + $0x140] sm:$0xff] %v6087_v60  ;;  %v5546_v11 = vadd.f32 %v5482_v2, %v5361_v59  ;;  %v6090_v8 = vadd.f32 %v16000_v29, %v6026_v57  ;;  %v5489_v60 = vld [vmem:[#allocation4 + $0x1a1] sm:$0xff] }
 0x341   : > { %7387 = vst [vmem:[#allocation4 + $0x120] sm:$0xff] %v17532_v3  ;;  %v6025_v15 = vld [vmem:[#allocation4 + $0x150] sm:$0xff]  ;;  %v15927_v37 = vpop.f32.mrf.mxu0  ;;  %v6024_v21 = vld [vmem:[#allocation4 + $0x148] sm:$0xff]  ;;  %v5907_v24 = vpop.f32.mrf.mxu1 }
 0x342   : > { %v6089_v17 = vadd.f32 %v18465_v12, %v6025_v15  ;;  %5610 = vst [vmem:[#allocation4 + $0x169] sm:$0xff] %v5546_v11  ;;  %6154 = vst [vmem:[#allocation4 + $0x158] sm:$0xff] %v6090_v8  ;;  %v5551_v18 = vadd.f32 %v15927_v37, %v5487_v43  ;;  %v6088_v26 = vadd.f32 %v6024_v21, %v5891_v47  ;;  %v5488_v12 = vld [vmem:[#allocation4 + $0x199] sm:$0xff]  ;;  %v5490_v21 = vld [vmem:[#allocation4 + $0x1a9] sm:$0xff] }
 0x343   : > { %v5374_v58 = vpop.f32.mrf.mxu0  ;;  %v18487_v27 = vpop.f32.mrf.mxu1  ;;  %7394 = vst [vmem:[#allocation4 + $0x158] sm:$0xff] %v17532_v3  ;;  %v17100_v47 = vld [vmem:[#allocation10 + $0x98] sm:$0xff]  }
 0x344   : > { %v18489_v56 = vld [vmem:[#allocation4 + $0x128] sm:$0xff]  ;;  %6153 = vst [vmem:[#allocation4 + $0x150] sm:$0xff] %v6089_v17  ;;  %5615 = vst [vmem:[#allocation4 + $0x191] sm:$0xff] %v5551_v18  ;;  %v5549_v33 = vadd.f32 %v5485_v31, %v5374_v58  ;;  %16269 = vmatprep.subr.bf16.mxu1 %v17100_v47 }
 0x345   : > { %6152 = vst [vmem:[#allocation4 + $0x148] sm:$0xff] %v6088_v26  ;;  %7388 = vst [vmem:[#allocation4 + $0x128] sm:$0xff] %v17532_v3  ;;  %v15928_v52 = vpop.f32.mrf.mxu0  ;;  %v6027_v0 = vld [vmem:[#allocation4 + $0x160] sm:$0xff]  ;;  %v5920_v29 = vpop.f32.mrf.mxu1  ;;  %16270 = vmatpush3.bf16.msra.mxu1 %v17100_v47 }
 0x346   : > { %7393 = vst [vmem:[#allocation4 + $0x150] sm:$0xff] %v17532_v3  ;;  %5613 = vst [vmem:[#allocation4 + $0x181] sm:$0xff] %v5549_v33  ;;  %v5552_v42 = vadd.f32 %v15928_v52, %v5488_v12  ;;  %v6091_v9 = vadd.f32 %v6027_v0, %v5904_v49  ;;  %v5495_v52 = vld [vmem:[#allocation4 + $0x1d1] sm:$0xff] }
 0x347   : > { %v5377_v45 = vpop.f32.mrf.mxu0  ;;  %v6030_v38 = vld [vmem:[#allocation4 + $0x178] sm:$0xff]  ;;  %v16008_v5 = vpop.f32.mrf.mxu1  ;;  %v18494_v6 = vld [vmem:[#allocation4 + $0x140] sm:$0xff] }
 0x348   : > { %5616 = vst [vmem:[#allocation4 + $0x199] sm:$0xff] %v5552_v42  ;;  %6155 = vst [vmem:[#allocation4 + $0x160] sm:$0xff] %v6091_v9  ;;  %v5550_v48 = vadd.f32 %v5486_v7, %v5377_v45  ;;  %v6094_v1 = vadd.f32 %v16004_v20, %v6030_v38  ;;  %v5492_v20 = vld [vmem:[#allocation4 + $0x1b9] sm:$0xff]  ;;  %v5493_v45 = vld [vmem:[#allocation4 + $0x1c1] sm:$0xff] }
 0x349   : > { %7391 = vst [vmem:[#allocation4 + $0x140] sm:$0xff] %v17532_v3  ;;  %v6029_v50 = vld [vmem:[#allocation4 + $0x170] sm:$0xff]  ;;  %v15931_v55 = vpop.f32.mrf.mxu0  ;;  %v6028_v14 = vld [vmem:[#allocation4 + $0x168] sm:$0xff]  ;;  %v5923_v36 = vpop.f32.mrf.mxu1 }
 0x34a   : > { %v6093_v16 = vadd.f32 %v18476_v25, %v6029_v50  ;;  %5614 = vst [vmem:[#allocation4 + $0x189] sm:$0xff] %v5550_v48  ;;  %6158 = vst [vmem:[#allocation4 + $0x178] sm:$0xff] %v6094_v1  ;;  %v5555_v41 = vadd.f32 %v15931_v55, %v5491_v23  ;;  %v6092_v49 = vadd.f32 %v6028_v14, %v5907_v24  ;;  %v5494_v14 = vld [vmem:[#allocation4 + $0x1c9] sm:$0xff] }
 0x34b   : > { %v5390_v62 = vpop.f32.mrf.mxu0  ;;  %v18498_v59 = vpop.f32.mrf.mxu1  ;;  %7398 = vst [vmem:[#allocation4 + $0x178] sm:$0xff] %v17532_v3 }
 0x34c   : > { %v18500_v2 = vld [vmem:[#allocation4 + $0x148] sm:$0xff]  ;;  %6157 = vst [vmem:[#allocation4 + $0x170] sm:$0xff] %v6093_v16  ;;  %5619 = vst [vmem:[#allocation4 + $0x1b1] sm:$0xff] %v5555_v41  ;;  %v5553_v57 = vadd.f32 %v5489_v60, %v5390_v62  ;;  %v17105_v62 = vld [vmem:[#allocation10 + $0x90] sm:$0xff]  }
 0x34d   : > { %6156 = vst [vmem:[#allocation4 + $0x168] sm:$0xff] %v6092_v49  ;;  %7392 = vst [vmem:[#allocation4 + $0x148] sm:$0xff] %v17532_v3  ;;  %v15932_v25 = vpop.f32.mrf.mxu0  ;;  %v6031_v11 = vld [vmem:[#allocation4 + $0x180] sm:$0xff]  ;;  %v5936_v8 = vpop.f32.mrf.mxu1  ;;  %16271 = vmatprep.subr.bf16.mxu1 %v17105_v62 }
 0x34e   : > { %7397 = vst [vmem:[#allocation4 + $0x170] sm:$0xff] %v17532_v3  ;;  %5617 = vst [vmem:[#allocation4 + $0x1a1] sm:$0xff] %v5553_v57  ;;  %v5556_v15 = vadd.f32 %v15932_v25, %v5492_v20  ;;  %v6095_v37 = vadd.f32 %v6031_v11, %v5920_v29  ;;  %v17111_v25 = vld [vmem:[#allocation10 + $0xf8] sm:$0xff]   ;;  %16272 = vmatpush3.bf16.msra.mxu1 %v17105_v62 }
 0x34f   : > { %v5393_v43 = vpop.f32.mrf.mxu0  ;;  %v6034_v24 = vld [vmem:[#allocation4 + $0x198] sm:$0xff]  ;;  %v16012_v17 = vpop.f32.mrf.mxu1  ;;  %v18505_v18 = vld [vmem:[#allocation4 + $0x160] sm:$0xff]  ;;  %16341 = vmatprep.subr.bf16.mxu0 %v17111_v25 }
 0x350   : > { %5620 = vst [vmem:[#allocation4 + $0x1b9] sm:$0xff] %v5556_v15  ;;  %6159 = vst [vmem:[#allocation4 + $0x180] sm:$0xff] %v6095_v37  ;;  %v5554_v26 = vadd.f32 %v5490_v21, %v5393_v43  ;;  %v6098_v58 = vadd.f32 %v16008_v5, %v6034_v24  ;;  %v5499_v15 = vld [vmem:[#allocation4 + $0x1f1] sm:$0xff]  ;;  %16342 = vmatpush3.bf16.msra.mxu0 %v17111_v25 }
 0x351   : > { %7395 = vst [vmem:[#allocation4 + $0x160] sm:$0xff] %v17532_v3  ;;  %v6033_v31 = vld [vmem:[#allocation4 + $0x190] sm:$0xff]  ;;  %v15935_v33 = vpop.f32.mrf.mxu0  ;;  %v6032_v12 = vld [vmem:[#allocation4 + $0x188] sm:$0xff]  ;;  %v5939_v0 = vpop.f32.mrf.mxu1 }
 0x352   : > { %v6097_v42 = vadd.f32 %v18487_v27, %v6033_v31  ;;  %5618 = vst [vmem:[#allocation4 + $0x1a9] sm:$0xff] %v5554_v26  ;;  %6162 = vst [vmem:[#allocation4 + $0x198] sm:$0xff] %v6098_v58  ;;  %v5559_v29 = vadd.f32 %v15935_v33, %v5495_v52  ;;  %v6096_v9 = vadd.f32 %v6032_v12, %v5923_v36  ;;  %v5496_v27 = vld [vmem:[#allocation4 + $0x1d9] sm:$0xff]  ;;  %v5497_v58 = vld [vmem:[#allocation4 + $0x1e1] sm:$0xff] }
 0x353   : > { %v5406_v7 = vpop.f32.mrf.mxu0  ;;  %v18509_v38 = vpop.f32.mrf.mxu1  ;;  %7402 = vst [vmem:[#allocation4 + $0x198] sm:$0xff] %v17532_v3  ;;  %v18524_v31 = vld [vmem:[#allocation4 + $0x18] sm:$0xff]  ;;  %v17112_v33 = vld [vmem:[#allocation10 + $0xf0] sm:$0xff]  }
 0x354   : > { %v18511_v47 = vld [vmem:[#allocation4 + $0x168] sm:$0xff]  ;;  %6161 = vst [vmem:[#allocation4 + $0x190] sm:$0xff] %v6097_v42  ;;  %5623 = vst [vmem:[#allocation4 + $0x1d1] sm:$0xff] %v5559_v29  ;;  %v5557_v5 = vadd.f32 %v5493_v45, %v5406_v7  ;;  %v5500_v12 = vld [vmem:[#allocation4 + $0x1f9] sm:$0x7f]  ;;  %16343 = vmatprep.subr.bf16.mxu0 %v17112_v33 }
 0x355   : > { %6160 = vst [vmem:[#allocation4 + $0x188] sm:$0xff] %v6096_v9  ;;  %7396 = vst [vmem:[#allocation4 + $0x168] sm:$0xff] %v17532_v3  ;;  %v15936_v48 = vpop.f32.mrf.mxu0  ;;  %v6035_v1 = vld [vmem:[#allocation4 + $0x1a0] sm:$0xff]  ;;  %v5952_v50 = vpop.f32.mrf.mxu1  ;;  %v5498_v7 = vld [vmem:[#allocation4 + $0x1e9] sm:$0xff]  ;;  %16344 = vmatpush3.bf16.msra.mxu0 %v17112_v33 }
 0x356   : > { %7401 = vst [vmem:[#allocation4 + $0x190] sm:$0xff] %v17532_v3  ;;  %5621 = vst [vmem:[#allocation4 + $0x1c1] sm:$0xff] %v5557_v5  ;;  %v5560_v55 = vadd.f32 %v15936_v48, %v5496_v27  ;;  %v6099_v23 = vadd.f32 %v6035_v1, %v5936_v8  ;;  %v17119_v33 = vld [vmem:[#allocation10 + $0x80] sm:$0xff]  }
 0x357   : > { %v5409_v36 = vpop.f32.mrf.mxu0  ;;  %v6038_v16 = vld [vmem:[#allocation4 + $0x1b8] sm:$0xff]  ;;  %v16016_v41 = vpop.f32.mrf.mxu1  ;;  %v18516_v49 = vld [vmem:[#allocation4 + $0x180] sm:$0xff] }
 0x358   : > { %5624 = vst [vmem:[#allocation4 + $0x1d9] sm:$0xff] %v5560_v55  ;;  %6163 = vst [vmem:[#allocation4 + $0x1a0] sm:$0xff] %v6099_v23  ;;  %v5558_v60 = vadd.f32 %v5494_v14, %v5409_v36  ;;  %v6102_v57 = vadd.f32 %v16012_v17, %v6038_v16  ;;  %v17115_v55 = vld [vmem:[#allocation10 + $0xe8] sm:$0xff]  }
 0x359   : > { %7399 = vst [vmem:[#allocation4 + $0x180] sm:$0xff] %v17532_v3  ;;  %v6037_v20 = vld [vmem:[#allocation4 + $0x1b0] sm:$0xff]  ;;  %v15939_v11 = vpop.f32.mrf.mxu0  ;;  %v6036_v37 = vld [vmem:[#allocation4 + $0x1a8] sm:$0xff]  ;;  %v5955_v43 = vpop.f32.mrf.mxu1  ;;  %16345 = vmatprep.subr.bf16.mxu0 %v17115_v55 }
 0x35a   : > { %v6101_v8 = vadd.f32 %v18498_v59, %v6037_v20  ;;  %5622 = vst [vmem:[#allocation4 + $0x1c9] sm:$0xff] %v5558_v60  ;;  %6166 = vst [vmem:[#allocation4 + $0x1b8] sm:$0xff] %v6102_v57  ;;  %v5563_v21 = vadd.f32 %v15939_v11, %v5499_v15  ;;  %v6100_v24 = vadd.f32 %v6036_v37, %v5939_v0  ;;  %16346 = vmatpush3.bf16.msra.mxu0 %v17115_v55 }
 0x35b   : > { %v5422_v26 = vpop.f32.mrf.mxu0  ;;  %v18520_v17 = vpop.f32.mrf.mxu1  ;;  %7406 = vst [vmem:[#allocation4 + $0x1b8] sm:$0xff] %v18524_v31 }
 0x35c   : > { %v18522_v3 = vld [vmem:[#allocation4 + $0x188] sm:$0xff]  ;;  %6165 = vst [vmem:[#allocation4 + $0x1b0] sm:$0xff] %v6101_v8  ;;  %5627 = vst [vmem:[#allocation4 + $0x1f1] sm:$0xff] %v5563_v21  ;;  %v5561_v59 = vadd.f32 %v5497_v58, %v5422_v26 }
 0x35d   : > { %6164 = vst [vmem:[#allocation4 + $0x1a8] sm:$0xff] %v6100_v24  ;;  %7400 = vst [vmem:[#allocation4 + $0x188] sm:$0xff] %v18524_v31  ;;  %v15940_v52 = vpop.f32.mrf.mxu0  ;;  %v6039_v0 = vld [vmem:[#allocation4 + $0x1c0] sm:$0xff]  ;;  %v5968_v5 = vpop.f32.mrf.mxu1  ;;  %v17110_v8 = vld [vmem:[#allocation10 + $0x88] sm:$0xff]  }
 0x35e   : > { %7405 = vst [vmem:[#allocation4 + $0x1b0] sm:$0xff] %v18524_v31  ;;  %5625 = vst [vmem:[#allocation4 + $0x1e1] sm:$0xff] %v5561_v59  ;;  %v5564_v42 = vadd.f32 %v15940_v52, %v5500_v12  ;;  %v6103_v29 = vadd.f32 %v6039_v0, %v5952_v50  ;;  %v17120_v59 = vld [vmem:[#allocation10 + $0xd8] sm:$0xff]   ;;  %16273 = vmatprep.subr.bf16.mxu1 %v17110_v8 }
 0x35f   : > { %v5425_v9 = vpop.f32.mrf.mxu0  ;;  %v6042_v45 = vld [vmem:[#allocation4 + $0x1d8] sm:$0xff]  ;;  %v18529_v48 = vld [vmem:[#allocation4 + $0x1a0] sm:$0xff]  ;;  %v16020_v60 = vpop.f32.mrf.mxu1  ;;  %16274 = vmatpush3.bf16.msra.mxu1 %v17110_v8 }
 0x360   : > { %5628 = vst [vmem:[#allocation4 + $0x1f9] sm:$0x7f] %v5564_v42  ;;  %6167 = vst [vmem:[#allocation4 + $0x1c0] sm:$0xff] %v6103_v29  ;;  %v5562_v27 = vadd.f32 %v5498_v7, %v5425_v9  ;;  %v6106_v1 = vadd.f32 %v16016_v41, %v6042_v45  ;;  %v17116_v41 = vld [vmem:[#allocation10 + $0xe0] sm:$0xff]   ;;  %v17121_v42 = vld [vmem:[#allocation10 + $0xd0] sm:$0xff]   ;;  %16275 = vmatprep.subr.bf16.mxu1 %v17119_v33 }
 0x361   : > { %7403 = vst [vmem:[#allocation4 + $0x1a0] sm:$0xff] %v18524_v31  ;;  %v6041_v23 = vld [vmem:[#allocation4 + $0x1d0] sm:$0xff]  ;;  %v6040_v14 = vld [vmem:[#allocation4 + $0x1c8] sm:$0xff]  ;;  %v16039_v36 = vpop.f32.mrf.mxu0  ;;  %16347 = vmatprep.subr.bf16.mxu0 %v17116_v41  ;;  %v5971_v37 = vpop.f32.mrf.mxu1  ;;  %v18547_v45 = vld [vmem:[%s19645_s2] ss:$0 sm:$0xff] }
 0x362   : > { %v6105_v16 = vadd.f32 %v18509_v38, %v6041_v23  ;;  %5626 = vst [vmem:[#allocation4 + $0x1e9] sm:$0xff] %v5562_v27  ;;  %6170 = vst [vmem:[#allocation4 + $0x1d8] sm:$0xff] %v6106_v1  ;;  %v6104_v50 = vadd.f32 %v6040_v14, %v5955_v43  ;;  %16348 = vmatpush3.bf16.msra.mxu0 %v17116_v41  ;;  %v6660_v21 = vrot.slane %v16039_v36, 1 }
 0x363   : > { %v6274_v62 = vpop.f32.mrf.mxu0  ;;  %7410 = vst [vmem:[#allocation4 + $0x1d8] sm:$0xff] %v18524_v31  ;;  %16349 = vmatprep.subr.bf16.mxu0 %v17120_v59  ;;  %16276 = vmatpush3.bf16.msra.mxu1 %v17119_v33 }
 0x364   : > { %v18533_v57 = vld [vmem:[#allocation4 + $0x1a8] sm:$0xff]  ;;  %6169 = vst [vmem:[#allocation4 + $0x1d0] sm:$0xff] %v6105_v16  ;;  %6168 = vst [vmem:[#allocation4 + $0x1c8] sm:$0xff] %v6104_v50  ;;  %v6657_v24 = vrot.slane %v6274_v62, 1 }
 0x365   : > { %7404 = vst [vmem:[#allocation4 + $0x1a8] sm:$0xff] %v18524_v31  ;;  %v6043_v25 = vld [vmem:[#allocation4 + $0x1e0] sm:$0xff]  ;;  %v16040_v20 = vpop.f32.mrf.mxu0  ;;  %7409 = vst [vmem:[#allocation4 + $0x1d0] sm:$0xff] %v18524_v31 }
 0x366   : > { %v6107_v38 = vadd.f32 %v6043_v25, %v5968_v5  ;;  %16350 = vmatpush3.bf16.msra.mxu0 %v17120_v59 }
 0x367   : > { %v6046_v11 = vld [vmem:[#allocation4 + $0x1f8] sm:$0xff]  ;;  %v6277_v15 = vpop.f32.mrf.mxu0  ;;  %v18538_v43 = vld [vmem:[#allocation4 + $0x1c0] sm:$0xff]  ;;  %16351 = vmatprep.subr.bf16.mxu0 %v17121_v42 }
 0x368   : > { %6171 = vst [vmem:[#allocation4 + $0x1e0] sm:$0xff] %v6107_v38  ;;  %v6110_v26 = vadd.f32 %v16020_v60, %v6046_v11  ;;  %v6658_v58 = vrot.slane %v6277_v15, 1  ;;  %7407 = vst [vmem:[#allocation4 + $0x1c0] sm:$0xff] %v18524_v31  ;;  %v17124_v60 = vld [vmem:[#allocation10 + $0xc8] sm:$0xff]  }
 0x369   : > { %v6045_v52 = vld [vmem:[#allocation4 + $0x1f0] sm:$0xff]  ;;  %v6044_v12 = vld [vmem:[#allocation4 + $0x1e8] sm:$0xff]  ;;  %v16043_v0 = vpop.f32.mrf.mxu0 }
 0x36a   : > { %v6109_v29 = vadd.f32 %v18520_v17, %v6045_v52  ;;  %6174 = vst [vmem:[#allocation4 + $0x1f8] sm:$0xff] %v6110_v26  ;;  %v6659_v9 = vsel %vm2357_vm0, %v6657_v24, %v6658_v58  ;;  %v6661_v7 = vsel %vm2357_vm0, %v6658_v58, %v6660_v21  ;;  %v6108_v5 = vadd.f32 %v6044_v12, %v5971_v37  ;;  %v18556_v17 = vld [vmem:[%s19646_s3] ss:$0 sm:$0xff] }
 0x36b   : > { %v6848_v27 = vadd.f32 %v6659_v9, %v18382_v39  ;;  %v6849_v1 = vadd.f32 %v6661_v7, %v18388_v19  ;;  %v6290_v55 = vpop.f32.mrf.mxu0  ;;  %v18551_v23 = vld [vmem:[#allocation4 + $0x1c8] sm:$0xff]  ;;  %v6668_v41 = vrot.slane %v16043_v0, 1  ;;  %16352 = vmatpush3.bf16.msra.mxu0 %v17121_v42  ;;  %v17126_v37 = vld [vmem:[#allocation10 + $0xc0] sm:$0xff]  }
 0x36c   : > { %6173 = vst [vmem:[#allocation4 + $0x1f0] sm:$0xff] %v6109_v29  ;;  %6172 = vst [vmem:[#allocation4 + $0x1e8] sm:$0xff] %v6108_v5  ;;  %v6664_v25 = vrot.slane %v6290_v55, 1  ;;  %16353 = vmatprep.subr.bf16.mxu0 %v17124_v60 }
 0x36d   : > { %7408 = vst [vmem:[#allocation4 + $0x1c8] sm:$0xff] %v18524_v31  ;;  %v7015_v14 = vmul.f32 %v18547_v45, %v6848_v27  ;;  %v7016_v39 = vmul.f32 %v18547_v45, %v6849_v1  ;;  %v16044_v19 = vpop.f32.mrf.mxu0  ;;  %7413 = vst [vmem:[#allocation4 + $0x1f0] sm:$0xff] %v18524_v31 }
 0x36f   : > { %v7054_v36 = vadd.f32 %v18556_v17, %v7015_v14  ;;  %v7055_v16 = vadd.f32 %v18556_v17, %v7016_v39  ;;  %v6293_v50 = vpop.f32.mrf.mxu0  ;;  %v18564_v62 = vld [vmem:[#allocation4 + $0x1e0] sm:$0xff]  ;;  %16354 = vmatpush3.bf16.msra.mxu0 %v17124_v60 }
 0x370   : > { %v6666_v20 = vrot.slane %v6293_v50, 1  ;;  %7411 = vst [vmem:[#allocation4 + $0x1e0] sm:$0xff] %v18524_v31  ;;  %16355 = vmatprep.subr.bf16.mxu0 %v17126_v37 }
 0x371   : > { %v16047_v38 = vpop.f32.mrf.mxu0  ;;  %v7086_v11 = vmax.f32 %v7054_v36, 0.0  ;;  %v7087_v15 = vmax.f32 %v7055_v16, 0.0  ;;  %v18585_v16 = vld [vmem:[#allocation3 + $0x18] sm:$0xff]  }
 0x372   : > { %v6667_v8 = vsel %vm2357_vm0, %v6664_v25, %v6666_v20  ;;  %v6669_v21 = vsel %vm2357_vm0, %v6666_v20, %v6668_v41  ;;  %v6676_v9 = vrot.slane %v16047_v38, 1 }
 0x373   : > { %v6852_v24 = vadd.f32 %v6667_v8, %v18393_v10  ;;  %v6853_v26 = vadd.f32 %v6669_v21, %v18399_v28  ;;  %v6306_v58 = vpop.f32.mrf.mxu0  ;;  %v14569_v33 = vpack.c.bf16 %v7087_v15, %v7086_v11  ;;  %v18571_v59 = vld [vmem:[#allocation4 + $0x1e8] sm:$0xff]  ;;  %v18578_v28 = vld [vmem:[#allocation10 + $0x138] sm:$0xff]   ;;  %16356 = vmatpush3.bf16.msra.mxu0 %v17126_v37 }
 0x374   : > { %7412 = vst [vmem:[#allocation4 + $0x1e8] sm:$0xff] %v18524_v31  ;;  %v6672_v7 = vrot.slane %v6306_v58, 1  ;;  %16421 = vmatprep.subr.bf16.mxu1 %v18578_v28 }
 0x375   : > { %v7017_v52 = vmul.f32 %v18547_v45, %v6852_v24  ;;  %v7018_v12 = vmul.f32 %v18547_v45, %v6853_v26  ;;  %v16048_v0 = vpop.f32.mrf.mxu0  ;;  %14570 = vst [vmem:[#allocation3 + $0x10] sm:$0xff] %v14569_v33  }
 0x376   : > { %v18601_v0 = vld [vmem:[#allocation3 + $0x28] sm:$0xff]  }
 0x377   : > { %v7056_v42 = vadd.f32 %v18556_v17, %v7017_v52  ;;  %v7057_v10 = vadd.f32 %v18556_v17, %v7018_v12  ;;  %v6309_v29 = vpop.f32.mrf.mxu0 }
 0x378   : > { %v6674_v5 = vrot.slane %v6309_v29, 1 }
 0x379   : > { %v16051_v31 = vpop.f32.mrf.mxu0  ;;  %v7088_v27 = vmax.f32 %v7056_v42, 0.0  ;;  %v7089_v1 = vmax.f32 %v7057_v10, 0.0 }
 0x37a   : > { %v6675_v55 = vsel %vm2357_vm0, %v6672_v7, %v6674_v5  ;;  %v6677_v14 = vsel %vm2357_vm0, %v6674_v5, %v6676_v9  ;;  %v6684_v11 = vrot.slane %v16051_v31, 1 }
 0x37b   : > { %v6856_v39 = vadd.f32 %v6675_v55, %v18404_v35  ;;  %v6857_v19 = vadd.f32 %v6677_v14, %v18410_v51  ;;  %v6322_v36 = vpop.f32.mrf.mxu0  ;;  %v14574_v50 = vpack.c.bf16 %v7089_v1, %v7088_v27 }
 0x37c   : > { %v18587_v60 = vld [vmem:[#allocation3 + $0x10] sm:$0xff]   ;;  %v6680_v15 = vrot.slane %v6322_v36, 1 }
 0x37d   : > { %v7019_v41 = vmul.f32 %v18547_v45, %v6856_v39  ;;  %v7020_v25 = vmul.f32 %v18547_v45, %v6857_v19  ;;  %v16052_v20 = vpop.f32.mrf.mxu0  ;;  %14646 = vst [vmem:[#allocation3 + $0x20] sm:$0xff] %v14574_v50   ;;  %16121 = vmatprep.mubr.bf16.mxu1 %v18587_v60  ;;  %16201 = vmatprep.mubr.bf16.mxu0 %v18587_v60 }
 0x37e   : > { %16122 = vmatmul.mubr.bf16.gmra.mxu1 %v18585_v16  ;;  %16202 = vmatmul.mubr.bf16.gmra.mxu0 %v18585_v16  ;;  %v18617_v20 = vld [vmem:[#allocation3 + $0x38] sm:$0xff]  }
 0x37f   : > { %v7058_v35 = vadd.f32 %v18556_v17, %v7019_v41  ;;  %v7059_v51 = vadd.f32 %v18556_v17, %v7020_v25  ;;  %v6325_v38 = vpop.f32.mrf.mxu0 }
 0x380   : > { %v6682_v37 = vrot.slane %v6325_v38, 1 }
 0x381   : > { %v16055_v8 = vpop.f32.mrf.mxu0  ;;  %v7090_v21 = vmax.f32 %v7058_v35, 0.0  ;;  %v7091_v24 = vmax.f32 %v7059_v51, 0.0 }
 0x382   : > { %v6683_v26 = vsel %vm2357_vm0, %v6680_v15, %v6682_v37  ;;  %v6685_v58 = vsel %vm2357_vm0, %v6682_v37, %v6684_v11  ;;  %v6692_v31 = vrot.slane %v16055_v8, 1 }
 0x383   : > { %v6860_v33 = vadd.f32 %v6683_v26, %v18415_v46  ;;  %v6861_v52 = vadd.f32 %v6685_v58, %v18421_v44  ;;  %v6338_v12 = vpop.f32.mrf.mxu0  ;;  %v14579_v42 = vpack.c.bf16 %v7091_v24, %v7090_v21 }
 0x384   : > { %v18603_v10 = vld [vmem:[#allocation3 + $0x20] sm:$0xff]   ;;  %v6688_v27 = vrot.slane %v6338_v12, 1 }
 0x385   : > { %v7021_v29 = vmul.f32 %v18547_v45, %v6860_v33  ;;  %v7022_v9 = vmul.f32 %v18547_v45, %v6861_v52  ;;  %v16056_v7 = vpop.f32.mrf.mxu0  ;;  %14647 = vst [vmem:[#allocation3 + $0x30] sm:$0xff] %v14579_v42   ;;  %16125 = vmatprep.mubr.bf16.mxu1 %v18603_v10  ;;  %16205 = vmatprep.mubr.bf16.mxu0 %v18603_v10 }
 0x386   : > { %16126 = vmatmul.mubr.bf16.gmra.mxu1 %v18601_v0  ;;  %16206 = vmatmul.mubr.bf16.gmra.mxu0 %v18601_v0  ;;  %v18633_v7 = vld [vmem:[#allocation3 + $0x48] sm:$0xff]  }
 0x387   : > { %v7060_v46 = vadd.f32 %v18556_v17, %v7021_v29  ;;  %v7061_v44 = vadd.f32 %v18556_v17, %v7022_v9  ;;  %v6341_v5 = vpop.f32.mrf.mxu0 }
 0x388   : > { %v6690_v1 = vrot.slane %v6341_v5, 1 }
 0x389   : > { %v16059_v55 = vpop.f32.mrf.mxu0  ;;  %v7092_v14 = vmax.f32 %v7060_v46, 0.0  ;;  %v7093_v39 = vmax.f32 %v7061_v44, 0.0 }
 0x38a   : > { %v6691_v19 = vsel %vm2357_vm0, %v6688_v27, %v6690_v1  ;;  %v6693_v36 = vsel %vm2357_vm0, %v6690_v1, %v6692_v31  ;;  %v6700_v8 = vrot.slane %v16059_v55, 1 }
 0x38b   : > { %v6864_v50 = vadd.f32 %v6691_v19, %v18426_v40  ;;  %v6865_v41 = vadd.f32 %v6693_v36, %v18433_v22  ;;  %v6354_v25 = vpop.f32.mrf.mxu0  ;;  %v14584_v35 = vpack.c.bf16 %v7093_v39, %v7092_v14 }
 0x38c   : > { %v18619_v51 = vld [vmem:[#allocation3 + $0x30] sm:$0xff]   ;;  %v6696_v21 = vrot.slane %v6354_v25, 1 }
 0x38d   : > { %v7023_v38 = vmul.f32 %v18547_v45, %v6864_v50  ;;  %v7024_v11 = vmul.f32 %v18547_v45, %v6865_v41  ;;  %v16060_v15 = vpop.f32.mrf.mxu0  ;;  %14648 = vst [vmem:[#allocation3 + $0x40] sm:$0xff] %v14584_v35   ;;  %16129 = vmatprep.mubr.bf16.mxu1 %v18619_v51  ;;  %16209 = vmatprep.mubr.bf16.mxu0 %v18619_v51 }
 0x38e   : > { %16130 = vmatmul.mubr.bf16.gmra.mxu1 %v18617_v20  ;;  %16210 = vmatmul.mubr.bf16.gmra.mxu0 %v18617_v20  ;;  %v18649_v15 = vld [vmem:[#allocation3 + $0x58] sm:$0xff]  }
 0x38f   : > { %v7062_v40 = vadd.f32 %v18556_v17, %v7023_v38  ;;  %v7063_v22 = vadd.f32 %v18556_v17, %v7024_v11  ;;  %v6357_v37 = vpop.f32.mrf.mxu0 }
 0x390   : > { %v6698_v24 = vrot.slane %v6357_v37, 1 }
 0x391   : > { %v16063_v26 = vpop.f32.mrf.mxu0  ;;  %v7094_v58 = vmax.f32 %v7062_v40, 0.0  ;;  %v7095_v33 = vmax.f32 %v7063_v22, 0.0 }
 0x392   : > { %v6699_v52 = vsel %vm2357_vm0, %v6696_v21, %v6698_v24  ;;  %v6701_v12 = vsel %vm2357_vm0, %v6698_v24, %v6700_v8  ;;  %v6708_v55 = vrot.slane %v16063_v26, 1 }
 0x393   : > { %v6868_v42 = vadd.f32 %v6699_v52, %v18438_v61  ;;  %v6869_v29 = vadd.f32 %v6701_v12, %v18445_v32  ;;  %v6370_v9 = vpop.f32.mrf.mxu0  ;;  %v14589_v46 = vpack.c.bf16 %v7095_v33, %v7094_v58 }
 0x394   : > { %v18635_v44 = vld [vmem:[#allocation3 + $0x40] sm:$0xff]   ;;  %v6704_v14 = vrot.slane %v6370_v9, 1 }
 0x395   : > { %v7025_v5 = vmul.f32 %v18547_v45, %v6868_v42  ;;  %v7026_v31 = vmul.f32 %v18547_v45, %v6869_v29  ;;  %v16064_v27 = vpop.f32.mrf.mxu0  ;;  %14649 = vst [vmem:[#allocation3 + $0x50] sm:$0xff] %v14589_v46   ;;  %16133 = vmatprep.mubr.bf16.mxu1 %v18635_v44  ;;  %16213 = vmatprep.mubr.bf16.mxu0 %v18635_v44 }
 0x396   : > { %16134 = vmatmul.mubr.bf16.gmra.mxu1 %v18633_v7  ;;  %16214 = vmatmul.mubr.bf16.gmra.mxu0 %v18633_v7  ;;  %v18665_v27 = vld [vmem:[#allocation3 + $0x68] sm:$0xff]  }
 0x397   : > { %v7064_v61 = vadd.f32 %v18556_v17, %v7025_v5  ;;  %v7065_v32 = vadd.f32 %v18556_v17, %v7026_v31  ;;  %v6373_v1 = vpop.f32.mrf.mxu0 }
 0x398   : > { %v6706_v39 = vrot.slane %v6373_v1, 1 }
 0x399   : > { %v16067_v19 = vpop.f32.mrf.mxu0  ;;  %v7096_v36 = vmax.f32 %v7064_v61, 0.0  ;;  %v7097_v50 = vmax.f32 %v7065_v32, 0.0 }
 0x39a   : > { %v6707_v41 = vsel %vm2357_vm0, %v6704_v14, %v6706_v39  ;;  %v6709_v25 = vsel %vm2357_vm0, %v6706_v39, %v6708_v55  ;;  %v6716_v26 = vrot.slane %v16067_v19, 1 }
 0x39b   : > { %v6872_v35 = vadd.f32 %v6707_v41, %v18450_v34  ;;  %v6873_v38 = vadd.f32 %v6709_v25, %v18456_v54  ;;  %v6386_v11 = vpop.f32.mrf.mxu0  ;;  %v14594_v40 = vpack.c.bf16 %v7097_v50, %v7096_v36 }
 0x39c   : > { %v18651_v22 = vld [vmem:[#allocation3 + $0x50] sm:$0xff]   ;;  %v6712_v58 = vrot.slane %v6386_v11, 1 }
 0x39d   : > { %v7027_v37 = vmul.f32 %v18547_v45, %v6872_v35  ;;  %v7028_v8 = vmul.f32 %v18547_v45, %v6873_v38  ;;  %v16068_v21 = vpop.f32.mrf.mxu0  ;;  %14650 = vst [vmem:[#allocation3 + $0x60] sm:$0xff] %v14594_v40   ;;  %16137 = vmatprep.mubr.bf16.mxu1 %v18651_v22  ;;  %16217 = vmatprep.mubr.bf16.mxu0 %v18651_v22 }
 0x39e   : > { %16138 = vmatmul.mubr.bf16.gmra.mxu1 %v18649_v15  ;;  %16218 = vmatmul.mubr.bf16.gmra.mxu0 %v18649_v15  ;;  %v18681_v21 = vld [vmem:[#allocation3 + $0x78] sm:$0xff]  }
 0x39f   : > { %v7066_v34 = vadd.f32 %v18556_v17, %v7027_v37  ;;  %v7067_v54 = vadd.f32 %v18556_v17, %v7028_v8  ;;  %v6389_v24 = vpop.f32.mrf.mxu0 }
 0x3a0   : > { %v6714_v33 = vrot.slane %v6389_v24, 1 }
 0x3a1   : > { %v16071_v52 = vpop.f32.mrf.mxu0  ;;  %v7098_v12 = vmax.f32 %v7066_v34, 0.0  ;;  %v7099_v42 = vmax.f32 %v7067_v54, 0.0 }
 0x3a2   : > { %v6715_v29 = vsel %vm2357_vm0, %v6712_v58, %v6714_v33  ;;  %v6717_v9 = vsel %vm2357_vm0, %v6714_v33, %v6716_v26  ;;  %v6724_v19 = vrot.slane %v16071_v52, 1 }
 0x3a3   : > { %v6876_v46 = vadd.f32 %v6715_v29, %v18461_v63  ;;  %v6877_v5 = vadd.f32 %v6717_v9, %v18467_v30  ;;  %v6402_v31 = vpop.f32.mrf.mxu0  ;;  %v14599_v61 = vpack.c.bf16 %v7099_v42, %v7098_v12 }
 0x3a4   : > { %v18667_v32 = vld [vmem:[#allocation3 + $0x60] sm:$0xff]   ;;  %v6720_v36 = vrot.slane %v6402_v31, 1 }
 0x3a5   : > { %v7029_v1 = vmul.f32 %v18547_v45, %v6876_v46  ;;  %v7030_v55 = vmul.f32 %v18547_v45, %v6877_v5  ;;  %v16072_v14 = vpop.f32.mrf.mxu0  ;;  %14651 = vst [vmem:[#allocation3 + $0x70] sm:$0xff] %v14599_v61   ;;  %16141 = vmatprep.mubr.bf16.mxu1 %v18667_v32  ;;  %16221 = vmatprep.mubr.bf16.mxu0 %v18667_v32  ;;  %v8026_v61 = vld [vmem:[#allocation4 + $0x11] sm:$0xff] }
 0x3a6   : > { %16142 = vmatmul.mubr.bf16.gmra.mxu1 %v18665_v27  ;;  %16222 = vmatmul.mubr.bf16.gmra.mxu0 %v18665_v27 }
 0x3a7   : > { %v7068_v63 = vadd.f32 %v18556_v17, %v7029_v1  ;;  %v7069_v30 = vadd.f32 %v18556_v17, %v7030_v55  ;;  %v6405_v39 = vpop.f32.mrf.mxu0 }
 0x3a8   : > { %v6722_v50 = vrot.slane %v6405_v39, 1  ;;  %v8024_v39 = vld [vmem:[#allocation4 + $0x1] sm:$0xff] }
 0x3a9   : > { %v16075_v41 = vpop.f32.mrf.mxu0  ;;  %v7100_v25 = vmax.f32 %v7068_v63, 0.0  ;;  %v7101_v35 = vmax.f32 %v7069_v30, 0.0  ;;  %v18697_v63 = vld [vmem:[#allocation3 + $0x88] sm:$0xff]  }
 0x3aa   : > { %v6723_v38 = vsel %vm2357_vm0, %v6720_v36, %v6722_v50  ;;  %v6725_v11 = vsel %vm2357_vm0, %v6722_v50, %v6724_v19  ;;  %v6732_v52 = vrot.slane %v16075_v41, 1  ;;  %v16119_v36 = vpop.f32.mrf.mxu1 }
 0x3ab   : > { %v6880_v40 = vadd.f32 %v6723_v38, %v18472_v4  ;;  %v6881_v37 = vadd.f32 %v6725_v11, %v18478_v53  ;;  %v6418_v8 = vpop.f32.mrf.mxu0  ;;  %v14604_v34 = vpack.c.bf16 %v7101_v35, %v7100_v25  ;;  %v8090_v35 = vadd.f32 %v16119_v36, %v8026_v61 }
 0x3ac   : > { %v18683_v54 = vld [vmem:[#allocation3 + $0x70] sm:$0xff]   ;;  %v6728_v12 = vrot.slane %v6418_v8, 1 }
 0x3ad   : > { %v7031_v24 = vmul.f32 %v18547_v45, %v6880_v40  ;;  %v7032_v26 = vmul.f32 %v18547_v45, %v6881_v37  ;;  %v16076_v58 = vpop.f32.mrf.mxu0  ;;  %14652 = vst [vmem:[#allocation3 + $0x80] sm:$0xff] %v14604_v34   ;;  %16145 = vmatprep.mubr.bf16.mxu1 %v18683_v54  ;;  %16225 = vmatprep.mubr.bf16.mxu0 %v18683_v54  ;;  %8154 = vst [vmem:[#allocation4 + $0x11] sm:$0xff] %v8090_v35 }
 0x3ae   : > { %16146 = vmatmul.mubr.bf16.gmra.mxu1 %v18681_v21  ;;  %16226 = vmatmul.mubr.bf16.gmra.mxu0 %v18681_v21  ;;  %v8025_v58 = vld [vmem:[#allocation4 + $0x9] sm:$0xff] }
 0x3af   : > { %v7070_v4 = vadd.f32 %v18556_v17, %v7031_v24  ;;  %v7071_v53 = vadd.f32 %v18556_v17, %v7032_v26  ;;  %v6421_v33 = vpop.f32.mrf.mxu0 }
 0x3b0   : > { %v6730_v42 = vrot.slane %v6421_v33, 1 }
 0x3b1   : > { %v16079_v29 = vpop.f32.mrf.mxu0  ;;  %v7102_v9 = vmax.f32 %v7070_v4, 0.0  ;;  %v7103_v46 = vmax.f32 %v7071_v53, 0.0 }
 0x3b2   : > { %v6731_v5 = vsel %vm2357_vm0, %v6728_v12, %v6730_v42  ;;  %v6733_v31 = vsel %vm2357_vm0, %v6730_v42, %v6732_v52  ;;  %v6740_v8 = vrot.slane %v16079_v29, 1  ;;  %v18713_v29 = vld [vmem:[#allocation3 + $0x98] sm:$0xff]  }
 0x3b3   : > { %v6884_v1 = vadd.f32 %v6731_v5, %v18483_v13  ;;  %v6885_v55 = vadd.f32 %v6733_v31, %v18489_v56  ;;  %v6434_v14 = vpop.f32.mrf.mxu0  ;;  %v14609_v30 = vpack.c.bf16 %v7103_v46, %v7102_v9  ;;  %v7769_v13 = vpop.f32.mrf.mxu1  ;;  %v8027_v56 = vld [vmem:[#allocation4 + $0x19] sm:$0xff] }
 0x3b4   : > { %v18699_v19 = vld [vmem:[#allocation3 + $0x80] sm:$0xff]   ;;  %v8088_v37 = vadd.f32 %v8024_v39, %v7769_v13  ;;  %v6736_v34 = vrot.slane %v6434_v14, 1 }
 0x3b5   : > { %v7033_v50 = vmul.f32 %v18547_v45, %v6884_v1  ;;  %v7034_v41 = vmul.f32 %v18547_v45, %v6885_v55  ;;  %v16080_v25 = vpop.f32.mrf.mxu0  ;;  %14653 = vst [vmem:[#allocation3 + $0x90] sm:$0xff] %v14609_v30   ;;  %16149 = vmatprep.mubr.bf16.mxu1 %v18699_v19  ;;  %16229 = vmatprep.mubr.bf16.mxu0 %v18699_v19  ;;  %v16120_v26 = vpop.f32.mrf.mxu1 }
 0x3b6   : > { %16150 = vmatmul.mubr.bf16.gmra.mxu1 %v18697_v63  ;;  %16230 = vmatmul.mubr.bf16.gmra.mxu0 %v18697_v63  ;;  %8152 = vst [vmem:[#allocation4 + $0x1] sm:$0xff] %v8088_v37  ;;  %v8091_v52 = vadd.f32 %v16120_v26, %v8027_v56 }
 0x3b7   : > { %v7072_v38 = vadd.f32 %v18556_v17, %v7033_v50  ;;  %v7073_v11 = vadd.f32 %v18556_v17, %v7034_v41  ;;  %v6437_v40 = vpop.f32.mrf.mxu0  ;;  %v7772_v9 = vpop.f32.mrf.mxu1 }
 0x3b8   : > { %v6738_v24 = vrot.slane %v6437_v40, 1  ;;  %8155 = vst [vmem:[#allocation4 + $0x19] sm:$0xff] %v8091_v52  ;;  %v8089_v1 = vadd.f32 %v8025_v58, %v7772_v9 }
 0x3b9   : > { %v16083_v4 = vpop.f32.mrf.mxu0  ;;  %v7104_v53 = vmax.f32 %v7072_v38, 0.0  ;;  %v7105_v33 = vmax.f32 %v7073_v11, 0.0 }
 0x3ba   : > { %v6739_v12 = vsel %vm2357_vm0, %v6736_v34, %v6738_v24  ;;  %v6741_v42 = vsel %vm2357_vm0, %v6738_v24, %v6740_v8  ;;  %8153 = vst [vmem:[#allocation4 + $0x9] sm:$0xff] %v8089_v1  ;;  %v6748_v50 = vrot.slane %v16083_v4, 1  ;;  %v18729_v34 = vld [vmem:[#allocation3 + $0xa8] sm:$0xff]  }
 0x3bb   : > { %v6888_v46 = vadd.f32 %v6739_v12, %v18494_v6  ;;  %v6889_v5 = vadd.f32 %v6741_v42, %v18500_v2  ;;  %v6450_v31 = vpop.f32.mrf.mxu0  ;;  %v14614_v61 = vpack.c.bf16 %v7105_v33, %v7104_v53 }
 0x3bc   : > { %v18715_v55 = vld [vmem:[#allocation3 + $0x90] sm:$0xff]   ;;  %v6744_v41 = vrot.slane %v6450_v31, 1 }
 0x3bd   : > { %v7035_v14 = vmul.f32 %v18547_v45, %v6888_v46  ;;  %v7036_v30 = vmul.f32 %v18547_v45, %v6889_v5  ;;  %v16084_v39 = vpop.f32.mrf.mxu0  ;;  %14654 = vst [vmem:[#allocation3 + $0xa0] sm:$0xff] %v14614_v61   ;;  %16153 = vmatprep.mubr.bf16.mxu1 %v18715_v55  ;;  %16233 = vmatprep.mubr.bf16.mxu0 %v18715_v55 }
 0x3be   : > { %16154 = vmatmul.mubr.bf16.gmra.mxu1 %v18713_v29  ;;  %16234 = vmatmul.mubr.bf16.gmra.mxu0 %v18713_v29  ;;  %v18745_v39 = vld [vmem:[#allocation3 + $0xb8] sm:$0xff]  }
 0x3bf   : > { %v7074_v6 = vadd.f32 %v18556_v17, %v7035_v14  ;;  %v7075_v2 = vadd.f32 %v18556_v17, %v7036_v30  ;;  %v6453_v36 = vpop.f32.mrf.mxu0 }
 0x3c0   : > { %v6746_v25 = vrot.slane %v6453_v36, 1 }
 0x3c1   : > { %v16087_v35 = vpop.f32.mrf.mxu0  ;;  %v7106_v13 = vmax.f32 %v7074_v6, 0.0  ;;  %v7107_v56 = vmax.f32 %v7075_v2, 0.0 }
 0x3c2   : > { %v6747_v38 = vsel %vm2357_vm0, %v6744_v41, %v6746_v25  ;;  %v6749_v11 = vsel %vm2357_vm0, %v6746_v25, %v6748_v50  ;;  %v6756_v52 = vrot.slane %v16087_v35, 1 }
 0x3c3   : > { %v6892_v40 = vadd.f32 %v6747_v38, %v18505_v18  ;;  %v6893_v37 = vadd.f32 %v6749_v11, %v18511_v47  ;;  %v6466_v8 = vpop.f32.mrf.mxu0  ;;  %v14619_v24 = vpack.c.bf16 %v7107_v56, %v7106_v13 }
 0x3c4   : > { %v18731_v26 = vld [vmem:[#allocation3 + $0xa0] sm:$0xff]   ;;  %v6752_v12 = vrot.slane %v6466_v8, 1 }
 0x3c5   : > { %v7037_v58 = vmul.f32 %v18547_v45, %v6892_v40  ;;  %v7038_v4 = vmul.f32 %v18547_v45, %v6893_v37  ;;  %v16088_v53 = vpop.f32.mrf.mxu0  ;;  %14655 = vst [vmem:[#allocation3 + $0xb0] sm:$0xff] %v14619_v24   ;;  %16157 = vmatprep.mubr.bf16.mxu1 %v18731_v26  ;;  %16237 = vmatprep.mubr.bf16.mxu0 %v18731_v26 }
 0x3c6   : > { %16158 = vmatmul.mubr.bf16.gmra.mxu1 %v18729_v34  ;;  %16238 = vmatmul.mubr.bf16.gmra.mxu0 %v18729_v34  ;;  %v18761_v53 = vld [vmem:[#allocation3 + $0xc8] sm:$0xff]  }
 0x3c7   : > { %v7076_v18 = vadd.f32 %v18556_v17, %v7037_v58  ;;  %v7077_v47 = vadd.f32 %v18556_v17, %v7038_v4  ;;  %v6469_v33 = vpop.f32.mrf.mxu0 }
 0x3c8   : > { %v6754_v42 = vrot.slane %v6469_v33, 1 }
 0x3c9   : > { %v16091_v9 = vpop.f32.mrf.mxu0  ;;  %v7108_v46 = vmax.f32 %v7076_v18, 0.0  ;;  %v7109_v5 = vmax.f32 %v7077_v47, 0.0 }
 0x3ca   : > { %v6755_v31 = vsel %vm2357_vm0, %v6752_v12, %v6754_v42  ;;  %v6757_v61 = vsel %vm2357_vm0, %v6754_v42, %v6756_v52  ;;  %v6764_v35 = vrot.slane %v16091_v9, 1  ;;  %v18773_v9 = vld [vmem:[#allocation10 + $0x178] sm:$0xff]  }
 0x3cb   : > { %v6896_v1 = vadd.f32 %v6755_v31, %v18516_v49  ;;  %v6897_v14 = vadd.f32 %v6757_v61, %v18522_v3  ;;  %v6482_v30 = vpop.f32.mrf.mxu0  ;;  %v14624_v6 = vpack.c.bf16 %v7109_v5, %v7108_v46  ;;  %16501 = vmatprep.subr.bf16.mxu0 %v18773_v9 }
 0x3cc   : > { %v18747_v2 = vld [vmem:[#allocation3 + $0xb0] sm:$0xff]   ;;  %v6760_v13 = vrot.slane %v6482_v30, 1 }
 0x3cd   : > { %v7039_v36 = vmul.f32 %v18547_v45, %v6896_v1  ;;  %v7040_v50 = vmul.f32 %v18547_v45, %v6897_v14  ;;  %v16092_v41 = vpop.f32.mrf.mxu0  ;;  %14656 = vst [vmem:[#allocation3 + $0xc0] sm:$0xff] %v14624_v6   ;;  %16161 = vmatprep.mubr.bf16.mxu1 %v18747_v2  ;;  %16241 = vmatprep.mubr.bf16.mxu0 %v18747_v2 }
 0x3ce   : > { %16162 = vmatmul.mubr.bf16.gmra.mxu1 %v18745_v39  ;;  %16242 = vmatmul.mubr.bf16.gmra.mxu0 %v18745_v39 }
 0x3cf   : > { %v7078_v49 = vadd.f32 %v18556_v17, %v7039_v36  ;;  %v7079_v3 = vadd.f32 %v18556_v17, %v7040_v50  ;;  %v6485_v25 = vpop.f32.mrf.mxu0 }
 0x3d0   : > { %v6762_v56 = vrot.slane %v6485_v25, 1 }
 0x3d1   : > { %v16095_v38 = vpop.f32.mrf.mxu0  ;;  %v7110_v11 = vmax.f32 %v7078_v49, 0.0  ;;  %v7111_v40 = vmax.f32 %v7079_v3, 0.0  ;;  %v18780_v49 = vld [vmem:[#allocation3 + $0xd8] sm:$0xff]  }
 0x3d2   : > { %v6763_v37 = vsel %vm2357_vm0, %v6760_v13, %v6762_v56  ;;  %v6765_v8 = vsel %vm2357_vm0, %v6762_v56, %v6764_v35  ;;  %v6772_v46 = vrot.slane %v16095_v38, 1 }
 0x3d3   : > { %v6900_v24 = vadd.f32 %v6763_v37, %v18529_v48  ;;  %v6901_v58 = vadd.f32 %v6765_v8, %v18533_v57  ;;  %v6498_v4 = vpop.f32.mrf.mxu0  ;;  %v14629_v18 = vpack.c.bf16 %v7111_v40, %v7110_v11  ;;  %v6592_v37 = vld [vmem:[#allocation4 + $0x1f8] sm:$0x7f] }
 0x3d4   : > { %v18763_v47 = vld [vmem:[#allocation3 + $0xc0] sm:$0xff]   ;;  %v6768_v5 = vrot.slane %v6498_v4, 1 }
 0x3d5   : > { %v7041_v33 = vmul.f32 %v18547_v45, %v6900_v24  ;;  %v7042_v52 = vmul.f32 %v18547_v45, %v6901_v58  ;;  %v16096_v12 = vpop.f32.mrf.mxu0  ;;  %14657 = vst [vmem:[#allocation3 + $0xd0] sm:$0xff] %v14629_v18   ;;  %16165 = vmatprep.mubr.bf16.mxu1 %v18763_v47  ;;  %16245 = vmatprep.mubr.bf16.mxu0 %v18763_v47  ;;  %v8572_v24 = vld [vmem:[#allocation4 + $0x10] sm:$0xff] }
 0x3d6   : > { %16166 = vmatmul.mubr.bf16.gmra.mxu1 %v18761_v53  ;;  %16246 = vmatmul.mubr.bf16.gmra.mxu0 %v18761_v53  ;;  %v8570_v12 = vld [vmem:[#allocation4] sm:$0xff] }
 0x3d7   : > { %v7080_v48 = vadd.f32 %v18556_v17, %v7041_v33  ;;  %v7081_v57 = vadd.f32 %v18556_v17, %v7042_v52  ;;  %v6501_v42 = vpop.f32.mrf.mxu0 }
 0x3d8   : > { %v6770_v31 = vrot.slane %v6501_v42, 1 }
 0x3d9   : > { %v16099_v61 = vpop.f32.mrf.mxu0  ;;  %v7112_v1 = vmax.f32 %v7080_v48, 0.0  ;;  %v7113_v14 = vmax.f32 %v7081_v57, 0.0 }
 0x3da   : > { %v6771_v30 = vsel %vm2357_vm0, %v6768_v5, %v6770_v31  ;;  %v6773_v6 = vsel %vm2357_vm0, %v6770_v31, %v6772_v46  ;;  %v6780_v56 = vrot.slane %v16099_v61, 1  ;;  %v17321_v46 = vld [vmem:[#allocation4 + $0x38] sm:$0xff]  ;;  %v18796_v61 = vld [vmem:[#allocation3 + $0xe8] sm:$0xff]  }
 0x3db   : > { %v6904_v36 = vadd.f32 %v6771_v30, %v18538_v43  ;;  %v6905_v50 = vadd.f32 %v6773_v6, %v18551_v23  ;;  %v6514_v41 = vpop.f32.mrf.mxu0  ;;  %v14634_v3 = vpack.c.bf16 %v7113_v14, %v7112_v1  ;;  %v8573_v30 = vld [vmem:[#allocation4 + $0x18] sm:$0xff] }
 0x3dc   : > { %v18782_v25 = vld [vmem:[#allocation3 + $0xd0] sm:$0xff]   ;;  %v6776_v11 = vrot.slane %v6514_v41, 1 }
 0x3dd   : > { %v7043_v35 = vmul.f32 %v18547_v45, %v6904_v36  ;;  %v7044_v13 = vmul.f32 %v18547_v45, %v6905_v50  ;;  %v16100_v38 = vpop.f32.mrf.mxu0  ;;  %14658 = vst [vmem:[#allocation3 + $0xe0] sm:$0xff] %v14634_v3   ;;  %16169 = vmatprep.mubr.bf16.mxu1 %v18782_v25  ;;  %16249 = vmatprep.mubr.bf16.mxu0 %v18782_v25 }
 0x3de   : > { %v6782_v40 = vrot.slane %v16100_v38, 1  ;;  %16170 = vmatmul.mubr.bf16.gmra.mxu1 %v18780_v49  ;;  %16250 = vmatmul.mubr.bf16.gmra.mxu0 %v18780_v49 }
 0x3df   : > { %v7082_v43 = vadd.f32 %v18556_v17, %v7043_v35  ;;  %v7083_v23 = vadd.f32 %v18556_v17, %v7044_v13  ;;  %v6517_v8 = vpop.f32.mrf.mxu0  ;;  %v8571_v35 = vld [vmem:[#allocation4 + $0x8] sm:$0xff] }
 0x3e0   : > { %v6911_v58 = vadd.f32 %v6782_v40, %v6592_v37  ;;  %v6778_v4 = vrot.slane %v6517_v8, 1  ;;  %v18808_v40 = vld [vmem:[#allocation3 + $0xf8] sm:$0xff]   ;;  %v17322_v37 = vld [vmem:[#allocation3] sm:$0xff]  }
 0x3e1   : > { %v7114_v18 = vmax.f32 %v7082_v43, 0.0  ;;  %v7115_v33 = vmax.f32 %v7083_v23, 0.0  ;;  %v16199_v52 = vpop.f32.mrf.mxu0  ;;  %v18819_v8 = vld [vmem:[#allocation3 + $0x18] sm:$0xff]  }
 0x3e2   : > { %6975 = vst [vmem:[#allocation4 + $0x1f8] sm:$0x7f] %v6911_v58  ;;  %v6779_v48 = vsel %vm2357_vm0, %v6776_v11, %v6778_v4  ;;  %v6781_v57 = vsel %vm2357_vm0, %v6778_v4, %v6780_v56  ;;  %v8636_v42 = vadd.f32 %v16199_v52, %v8572_v24  ;;  %v18821_v24 = vld [vmem:[#allocation3 + $0x20] sm:$0xff]   ;;  %v17133_v58 = vld [vmem:[#allocation10 + $0x130] sm:$0xff]   ;;  %v17163_v52 = vld [vmem:[#allocation10 + $0x168] sm:$0xff]  }
 0x3e3   : > { %7414 = vst [vmem:[#allocation4 + $0x1f8] sm:$0xff] %v17321_v46  ;;  %v6908_v5 = vadd.f32 %v6779_v48, %v18564_v62  ;;  %v6909_v31 = vadd.f32 %v6781_v57, %v18571_v59  ;;  %v14639_v1 = vpack.c.bf16 %v7115_v33, %v7114_v18  ;;  %v8315_v14 = vpop.f32.mrf.mxu0  ;;  %v17161_v4 = vld [vmem:[#allocation10 + $0x170] sm:$0xff]   ;;  %v17323_v18 = vld [vmem:[#allocation3 + $0x8] sm:$0xff]   ;;  %v17143_v57 = vld [vmem:[#allocation10 + $0x120] sm:$0xff]  }
 0x3e4   : > { %v18798_v6 = vld [vmem:[#allocation3 + $0xe0] sm:$0xff]   ;;  %8700 = vst [vmem:[#allocation4 + $0x10] sm:$0xff] %v8636_v42  ;;  %v8634_v36 = vadd.f32 %v8570_v12, %v8315_v14  ;;  %v17138_v33 = vld [vmem:[#allocation10 + $0x128] sm:$0xff]   ;;  %v18830_v48 = vld [vmem:[#allocation3 + $0x30] sm:$0xff]  }
 0x3e5   : > { %v7045_v50 = vmul.f32 %v18547_v45, %v6908_v5  ;;  %v7046_v41 = vmul.f32 %v18547_v45, %v6909_v31  ;;  %14659 = vst [vmem:[#allocation3 + $0xf0] sm:$0xff] %v14639_v1   ;;  %v16200_v3 = vpop.f32.mrf.mxu0  ;;  %16173 = vmatprep.mubr.bf16.mxu1 %v18798_v6  ;;  %16253 = vmatprep.mubr.bf16.mxu0 %v18798_v6  ;;  %v18828_v12 = vld [vmem:[#allocation3 + $0x28] sm:$0xff]   ;;  %v18836_v42 = vld [vmem:[#allocation3 + $0x38] sm:$0xff]   ;;  %v18838_v46 = vld [vmem:[#allocation3 + $0x40] sm:$0xff]  }
 0x3e6   : > { %8698 = vst [vmem:[#allocation4] sm:$0xff] %v8634_v36  ;;  %v8637_v62 = vadd.f32 %v16200_v3, %v8573_v30  ;;  %16174 = vmatmul.mubr.bf16.gmra.mxu1 %v18796_v61  ;;  %16254 = vmatmul.mubr.bf16.gmra.mxu0 %v18796_v61  ;;  %v17170_v5 = vld [vmem:[#allocation10 + $0x150] sm:$0xff]   ;;  %v17172_v31 = vld [vmem:[#allocation10 + $0x148] sm:$0xff]   ;;  %v17173_v30 = vld [vmem:[#allocation10 + $0x140] sm:$0xff]  }
 0x3e7   : > { %v7084_v59 = vadd.f32 %v18556_v17, %v7045_v50  ;;  %v7085_v13 = vadd.f32 %v18556_v17, %v7046_v41  ;;  %v8318_v56 = vpop.f32.mrf.mxu0  ;;  %v18814_v17 = vld [vmem:[#allocation3 + $0x10] sm:$0xff]   ;;  %v18844_v1 = vld [vmem:[#allocation3 + $0x48] sm:$0xff]   ;;  %v18854_v36 = vld [vmem:[#allocation3 + $0x58] sm:$0xff]  }
 0x3e8   : > { %8701 = vst [vmem:[#allocation4 + $0x18] sm:$0xff] %v8637_v62  ;;  %v8635_v45 = vadd.f32 %v8571_v35, %v8318_v56  ;;  %v18846_v14 = vld [vmem:[#allocation3 + $0x50] sm:$0xff]   ;;  %v18856_v50 = vld [vmem:[#allocation3 + $0x60] sm:$0xff]   ;;  %v17142_v41 = vld [vmem:[#allocation3 + $0x78] sm:$0xff]  }
 0x3e9   : > { %v7116_v38 = vmax.f32 %v7084_v59, 0.0  ;;  %v7117_v11 = vmax.f32 %v7085_v13, 0.0  ;;  %v17146_v3 = vld [vmem:[#allocation3 + $0x90] sm:$0xff]   ;;  %v8028_v59 = vld [vmem:[#allocation4 + $0x21] sm:$0xff] }
 0x3ea   : > { %8699 = vst [vmem:[#allocation4 + $0x8] sm:$0xff] %v8635_v45  ;;  %v8030_v35 = vld [vmem:[#allocation4 + $0x31] sm:$0xff] }
 0x3eb   : > { %v14644_v43 = vpack.c.bf16 %v7117_v11, %v7116_v38  ;;  %v8029_v11 = vld [vmem:[#allocation4 + $0x29] sm:$0xff] }
 0x3ec   : > { %v18810_v23 = vld [vmem:[#allocation3 + $0xf0] sm:$0xff]  }
 0x3ed   : > { %14660 = vst [vmem:[#allocation3 + $0x100] sm:$0xff] %v14644_v43   ;;  %16177 = vmatprep.mubr.bf16.mxu1 %v18810_v23  ;;  %16257 = vmatprep.mubr.bf16.mxu0 %v18810_v23  ;;  %v17152_v43 = vld [vmem:[#allocation3 + $0xb8] sm:$0xff]  }
 0x3ee   : > { %16178 = vmatmul.mubr.bf16.gmra.mxu1 %v18808_v40  ;;  %16258 = vmatmul.mubr.bf16.gmra.mxu0 %v18808_v40 }
 0x3ef   : > { %16357 = vmatprep.mubr.bf16.mxu0 %v18814_v17  ;;  %16277 = vmatprep.mubr.bf16.mxu1 %v17322_v37 }
 0x3f6   : > { %16278 = vmatmul.mubr.bf16.vlgmr.msra.gmra.mxu1 %v17323_v18  ;;  %16358 = vmatmul.mubr.bf16.vlgmr.msra.gmra.mxu0 %v18819_v8 }
 0x3f7   : > { %16281 = vmatprep.mubr.bf16.mxu1 %v18587_v60  ;;  %16361 = vmatprep.mubr.bf16.mxu0 %v18821_v24  ;;  %v17165_v60 = vld [vmem:[#allocation10 + $0x160] sm:$0xff]  }
 0x3f8   : > { %16422 = vmatpush3.bf16.msra.mxu1 %v18578_v28  ;;  %16502 = vmatpush3.bf16.msra.mxu0 %v18773_v9  ;;  %v17148_v28 = vld [vmem:[#allocation10 + $0x118] sm:$0xff]  }
 0x3f9   : > { %16423 = vmatprep.subr.bf16.mxu1 %v17133_v58  ;;  %16503 = vmatprep.subr.bf16.mxu0 %v17161_v4  ;;  %v17168_v9 = vld [vmem:[#allocation10 + $0x158] sm:$0xff]  }
 0x3fc   : > { %16424 = vmatpush3.bf16.msra.mxu1 %v17133_v58  ;;  %16504 = vmatpush3.bf16.msra.mxu0 %v17161_v4  ;;  %v8034_v4 = vld [vmem:[#allocation4 + $0x51] sm:$0xff] }
 0x3fd   : > { %16425 = vmatprep.subr.bf16.mxu1 %v17138_v33  ;;  %16505 = vmatprep.subr.bf16.mxu0 %v17163_v52 }
 0x3fe   : > { %16282 = vmatmul.mubr.bf16.gmra.mxu1 %v18585_v16  ;;  %16362 = vmatmul.mubr.bf16.gmra.mxu0 %v18828_v12  ;;  %v17153_v16 = vld [vmem:[#allocation10 + $0x110] sm:$0xff]  }
 0x3ff   : > { %16285 = vmatprep.mubr.bf16.mxu1 %v18603_v10  ;;  %16365 = vmatprep.mubr.bf16.mxu0 %v18830_v48  ;;  %v17158_v10 = vld [vmem:[#allocation10 + $0x108] sm:$0xff]  }
 0x400   : > { %16426 = vmatpush3.bf16.msra.mxu1 %v17138_v33  ;;  %16506 = vmatpush3.bf16.msra.mxu0 %v17163_v52  ;;  %v17154_v33 = vld [vmem:[#allocation3 + $0xc0] sm:$0xff]  }
 0x401   : > { %16427 = vmatprep.subr.bf16.mxu1 %v17143_v57  ;;  %16507 = vmatprep.subr.bf16.mxu0 %v17165_v60 }
 0x404   : > { %16428 = vmatpush3.bf16.msra.mxu1 %v17143_v57  ;;  %16508 = vmatpush3.bf16.msra.mxu0 %v17165_v60  ;;  %v8032_v57 = vld [vmem:[#allocation4 + $0x41] sm:$0xff] }
 0x405   : > { %16429 = vmatprep.subr.bf16.mxu1 %v17148_v28  ;;  %16509 = vmatprep.subr.bf16.mxu0 %v17168_v9 }
 0x406   : > { %16286 = vmatmul.mubr.bf16.gmra.mxu1 %v18601_v0  ;;  %16366 = vmatmul.mubr.bf16.gmra.mxu0 %v18836_v42  ;;  %v17167_v0 = vld [vmem:[#allocation10 + $0x100] sm:$0xff]  }
 0x407   : > { %16289 = vmatprep.mubr.bf16.mxu1 %v18619_v51  ;;  %16369 = vmatprep.mubr.bf16.mxu0 %v18838_v46  ;;  %v18852_v51 = vld [vmem:[#allocation10 + $0x1b8] sm:$0xff]  }
 0x408   : > { %16430 = vmatpush3.bf16.msra.mxu1 %v17148_v28  ;;  %16510 = vmatpush3.bf16.msra.mxu0 %v17168_v9 }
 0x409   : > { %16431 = vmatprep.subr.bf16.mxu1 %v17153_v16  ;;  %16511 = vmatprep.subr.bf16.mxu0 %v17170_v5 }
 0x40c   : > { %16432 = vmatpush3.bf16.msra.mxu1 %v17153_v16  ;;  %16512 = vmatpush3.bf16.msra.mxu0 %v17170_v5  ;;  %v8035_v16 = vld [vmem:[#allocation4 + $0x59] sm:$0xff] }
 0x40d   : > { %16433 = vmatprep.subr.bf16.mxu1 %v17158_v10  ;;  %16513 = vmatprep.subr.bf16.mxu0 %v17172_v31 }
 0x40e   : > { %16290 = vmatmul.mubr.bf16.gmra.mxu1 %v18617_v20  ;;  %16370 = vmatmul.mubr.bf16.gmra.mxu0 %v18844_v1  ;;  %v18863_v20 = vld [vmem:[#allocation3 + $0x68] sm:$0xff]  }
 0x40f   : > { %16293 = vmatprep.mubr.bf16.mxu1 %v18635_v44  ;;  %16373 = vmatprep.mubr.bf16.mxu0 %v18846_v14  ;;  %v18865_v44 = vld [vmem:[#allocation3 + $0x70] sm:$0xff]  }
 0x410   : > { %16434 = vmatpush3.bf16.msra.mxu1 %v17158_v10  ;;  %16514 = vmatpush3.bf16.msra.mxu0 %v17172_v31 }
 0x411   : > { %16435 = vmatprep.subr.bf16.mxu1 %v17167_v0  ;;  %16515 = vmatprep.subr.bf16.mxu0 %v17173_v30 }
 0x414   : > { %16436 = vmatpush3.bf16.msra.mxu1 %v17167_v0  ;;  %16516 = vmatpush3.bf16.msra.mxu0 %v17173_v30  ;;  %v8033_v30 = vld [vmem:[#allocation4 + $0x49] sm:$0xff] }
 0x415   : > { %16581 = vmatprep.subr.bf16.mxu1 %v18852_v51 }
 0x416   : > { %16294 = vmatmul.mubr.bf16.gmra.mxu1 %v18633_v7  ;;  %16374 = vmatmul.mubr.bf16.gmra.mxu0 %v18854_v36  ;;  %v17144_v7 = vld [vmem:[#allocation3 + $0x80] sm:$0xff]  }
 0x417   : > { %16297 = vmatprep.mubr.bf16.mxu1 %v18651_v22  ;;  %16377 = vmatprep.mubr.bf16.mxu0 %v18856_v50  ;;  %v17145_v22 = vld [vmem:[#allocation3 + $0x88] sm:$0xff]  }
 0x41e   : > { %16298 = vmatmul.mubr.bf16.gmra.mxu1 %v18649_v15  ;;  %16378 = vmatmul.mubr.bf16.gmra.mxu0 %v18863_v20  ;;  %v17147_v15 = vld [vmem:[#allocation3 + $0x98] sm:$0xff]  }
 0x41f   : > { %16301 = vmatprep.mubr.bf16.mxu1 %v18667_v32  ;;  %16381 = vmatprep.mubr.bf16.mxu0 %v18865_v44  ;;  %v17149_v32 = vld [vmem:[#allocation3 + $0xa0] sm:$0xff]  }
 0x426   : > { %16302 = vmatmul.mubr.bf16.gmra.mxu1 %v18665_v27  ;;  %16382 = vmatmul.mubr.bf16.gmra.mxu0 %v17142_v41  ;;  %v17150_v27 = vld [vmem:[#allocation3 + $0xa8] sm:$0xff]  }
 0x427   : > { %16305 = vmatprep.mubr.bf16.mxu1 %v18683_v54  ;;  %16385 = vmatprep.mubr.bf16.mxu0 %v17144_v7  ;;  %v17151_v54 = vld [vmem:[#allocation3 + $0xb0] sm:$0xff]   ;;  %v17155_v41 = vld [vmem:[#allocation3 + $0xc8] sm:$0xff]  }
 0x42e   : > { %16306 = vmatmul.mubr.bf16.gmra.mxu1 %v18681_v21  ;;  %16386 = vmatmul.mubr.bf16.gmra.mxu0 %v17145_v22 }
 0x42f   : > { %16309 = vmatprep.mubr.bf16.mxu1 %v18699_v19  ;;  %16389 = vmatprep.mubr.bf16.mxu0 %v17146_v3 }
 0x436   : > { %16310 = vmatmul.mubr.bf16.gmra.mxu1 %v18697_v63  ;;  %16390 = vmatmul.mubr.bf16.gmra.mxu0 %v17147_v15  ;;  %v8031_v63 = vld [vmem:[#allocation4 + $0x39] sm:$0xff] }
 0x437   : > { %16313 = vmatprep.mubr.bf16.mxu1 %v18715_v55  ;;  %16393 = vmatprep.mubr.bf16.mxu0 %v17149_v32  ;;  %v8038_v32 = vld [vmem:[#allocation4 + $0x71] sm:$0xff] }
 0x43e   : > { %v16123_v62 = vpop.f32.mrf.mxu1  ;;  %16314 = vmatmul.mubr.bf16.gmra.mxu1 %v18713_v29  ;;  %16394 = vmatmul.mubr.bf16.gmra.mxu0 %v17150_v27  ;;  %v16203_v21 = vpop.f32.mrf.mxu0 }
 0x43f   : > { %v8094_v13 = vadd.f32 %v16123_v62, %v8030_v35  ;;  %16317 = vmatprep.mubr.bf16.mxu1 %v18731_v26  ;;  %16397 = vmatprep.mubr.bf16.mxu0 %v17151_v54  ;;  %v17156_v35 = vld [vmem:[#allocation3 + $0xd0] sm:$0xff]  }
 0x440   : > { %v7785_v19 = vpop.f32.mrf.mxu1  ;;  %v8331_v56 = vpop.f32.mrf.mxu0 }
 0x441   : > { %8158 = vst [vmem:[#allocation4 + $0x31] sm:$0xff] %v8094_v13  ;;  %v8092_v45 = vadd.f32 %v8028_v59, %v7785_v19  ;;  %v8036_v19 = vld [vmem:[#allocation4 + $0x61] sm:$0xff] }
 0x442   : > { %v16124_v55 = vpop.f32.mrf.mxu1  ;;  %v16204_v38 = vpop.f32.mrf.mxu0 }
 0x443   : > { %8156 = vst [vmem:[#allocation4 + $0x21] sm:$0xff] %v8092_v45  ;;  %v8095_v37 = vadd.f32 %v16124_v55, %v8031_v63 }
 0x444   : > { %v7788_v58 = vpop.f32.mrf.mxu1  ;;  %v8334_v29 = vpop.f32.mrf.mxu0 }
 0x445   : > { %8159 = vst [vmem:[#allocation4 + $0x39] sm:$0xff] %v8095_v37  ;;  %v8093_v18 = vadd.f32 %v8029_v11, %v7788_v58  ;;  %v8039_v11 = vld [vmem:[#allocation4 + $0x79] sm:$0xff] }
 0x446   : > { %v16127_v52 = vpop.f32.mrf.mxu1  ;;  %16318 = vmatmul.mubr.bf16.gmra.mxu1 %v18729_v34  ;;  %16398 = vmatmul.mubr.bf16.gmra.mxu0 %v17152_v43  ;;  %v18880_v26 = vpop.f32.mrf.mxu0 }
 0x447   : > { %8157 = vst [vmem:[#allocation4 + $0x29] sm:$0xff] %v8093_v18  ;;  %v8098_v60 = vadd.f32 %v16127_v52, %v8034_v4  ;;  %16321 = vmatprep.mubr.bf16.mxu1 %v18747_v2  ;;  %16401 = vmatprep.mubr.bf16.mxu0 %v17154_v33  ;;  %v8037_v4 = vld [vmem:[#allocation4 + $0x69] sm:$0xff]  ;;  %v17157_v18 = vld [vmem:[#allocation3 + $0xd8] sm:$0xff]  }
 0x448   : > { %v7801_v28 = vpop.f32.mrf.mxu1  ;;  %v8347_v9 = vpop.f32.mrf.mxu0 }
 0x449   : > { %8162 = vst [vmem:[#allocation4 + $0x51] sm:$0xff] %v8098_v60  ;;  %v8096_v5 = vadd.f32 %v8032_v57, %v7801_v28 }
 0x44a   : > { %v8574_v10 = vld [vmem:[#allocation4 + $0x20] sm:$0xff]  ;;  %v16128_v31 = vpop.f32.mrf.mxu1  ;;  %v16208_v0 = vpop.f32.mrf.mxu0 }
 0x44b   : > { %v8638_v34 = vadd.f32 %v8574_v10, %v8331_v56  ;;  %8160 = vst [vmem:[#allocation4 + $0x41] sm:$0xff] %v8096_v5  ;;  %v8099_v7 = vadd.f32 %v16128_v31, %v8035_v16  ;;  %v17160_v16 = vld [vmem:[#allocation3 + $0xe0] sm:$0xff]  }
 0x44c   : > { %v8577_v22 = vld [vmem:[#allocation4 + $0x38] sm:$0xff]  ;;  %v7804_v3 = vpop.f32.mrf.mxu1  ;;  %v8350_v15 = vpop.f32.mrf.mxu0 }
 0x44d   : > { %8702 = vst [vmem:[#allocation4 + $0x20] sm:$0xff] %v8638_v34  ;;  %v8641_v2 = vadd.f32 %v16204_v38, %v8577_v22  ;;  %8163 = vst [vmem:[#allocation4 + $0x59] sm:$0xff] %v8099_v7  ;;  %v8097_v27 = vadd.f32 %v8033_v30, %v7804_v3 }
 0x44e   : > { %v8576_v54 = vld [vmem:[#allocation4 + $0x30] sm:$0xff]  ;;  %v8575_v62 = vld [vmem:[#allocation4 + $0x28] sm:$0xff]  ;;  %v16131_v59 = vpop.f32.mrf.mxu1  ;;  %16322 = vmatmul.mubr.bf16.gmra.mxu1 %v18745_v39  ;;  %16402 = vmatmul.mubr.bf16.gmra.mxu0 %v17155_v41  ;;  %v18884_v13 = vpop.f32.mrf.mxu0 }
 0x44f   : > { %8705 = vst [vmem:[#allocation4 + $0x38] sm:$0xff] %v8641_v2  ;;  %v8640_v56 = vadd.f32 %v16203_v21, %v8576_v54  ;;  %v8639_v63 = vadd.f32 %v8575_v62, %v8334_v29  ;;  %8161 = vst [vmem:[#allocation4 + $0x49] sm:$0xff] %v8097_v27  ;;  %v8102_v45 = vadd.f32 %v16131_v59, %v8038_v32  ;;  %16325 = vmatprep.mubr.bf16.mxu1 %v18763_v47  ;;  %v8042_v47 = vld [vmem:[#allocation4 + $0x91] sm:$0xff]  ;;  %v8043_v32 = vld [vmem:[#allocation4 + $0x99] sm:$0xff] }
 0x450   : > { %16405 = vmatprep.mubr.bf16.mxu0 %v17156_v35  ;;  %v7817_v55 = vpop.f32.mrf.mxu1  ;;  %v8363_v38 = vpop.f32.mrf.mxu0  ;;  %v17162_v35 = vld [vmem:[#allocation3 + $0xe8] sm:$0xff]  }
 0x451   : > { %8704 = vst [vmem:[#allocation4 + $0x30] sm:$0xff] %v8640_v56  ;;  %8703 = vst [vmem:[#allocation4 + $0x28] sm:$0xff] %v8639_v63  ;;  %v8100_v43 = vadd.f32 %v8036_v19, %v7817_v55  ;;  %v8046_v56 = vld [vmem:[#allocation4 + $0xb1] sm:$0xff] }
 0x452   : > { %8166 = vst [vmem:[#allocation4 + $0x71] sm:$0xff] %v8102_v45  ;;  %v8578_v39 = vld [vmem:[#allocation4 + $0x40] sm:$0xff]  ;;  %v16132_v37 = vpop.f32.mrf.mxu1  ;;  %v16212_v58 = vpop.f32.mrf.mxu0  ;;  %v17164_v55 = vld [vmem:[#allocation3 + $0xf0] sm:$0xff]  }
 0x453   : > { %v8642_v33 = vadd.f32 %v8578_v39, %v8347_v9  ;;  %8164 = vst [vmem:[#allocation4 + $0x61] sm:$0xff] %v8100_v43  ;;  %v8103_v21 = vadd.f32 %v16132_v37, %v8039_v11  ;;  %v8040_v9 = vld [vmem:[#allocation4 + $0x81] sm:$0xff] }
 0x454   : > { %v8581_v29 = vld [vmem:[#allocation4 + $0x58] sm:$0xff]  ;;  %v7820_v52 = vpop.f32.mrf.mxu1  ;;  %v8366_v57 = vpop.f32.mrf.mxu0 }
 0x455   : > { %8706 = vst [vmem:[#allocation4 + $0x40] sm:$0xff] %v8642_v33  ;;  %v8645_v60 = vadd.f32 %v16208_v0, %v8581_v29  ;;  %8167 = vst [vmem:[#allocation4 + $0x79] sm:$0xff] %v8103_v21  ;;  %v8101_v28 = vadd.f32 %v8037_v4, %v7820_v52  ;;  %v18892_v0 = vld [vmem:[#allocation10 + $0x1f8] sm:$0xff]  }
 0x456   : > { %v8580_v5 = vld [vmem:[#allocation4 + $0x50] sm:$0xff]  ;;  %v8579_v10 = vld [vmem:[#allocation4 + $0x48] sm:$0xff]  ;;  %v16135_v31 = vpop.f32.mrf.mxu1  ;;  %16326 = vmatmul.mubr.bf16.gmra.mxu1 %v18761_v53  ;;  %16406 = vmatmul.mubr.bf16.gmra.mxu0 %v17157_v18  ;;  %v18888_v30 = vpop.f32.mrf.mxu0  ;;  %v8047_v29 = vld [vmem:[#allocation4 + $0xb9] sm:$0xff] }
 0x457   : > { %8709 = vst [vmem:[#allocation4 + $0x58] sm:$0xff] %v8645_v60  ;;  %v8644_v41 = vadd.f32 %v18880_v26, %v8580_v5  ;;  %v8643_v34 = vadd.f32 %v8579_v10, %v8350_v15  ;;  %8165 = vst [vmem:[#allocation4 + $0x69] sm:$0xff] %v8101_v28  ;;  %v8106_v7 = vadd.f32 %v16135_v31, %v8042_v47  ;;  %16329 = vmatprep.mubr.bf16.mxu1 %v18782_v25  ;;  %v8041_v15 = vld [vmem:[#allocation4 + $0x89] sm:$0xff] }
 0x458   : > { %16409 = vmatprep.mubr.bf16.mxu0 %v17160_v16  ;;  %v7833_v22 = vpop.f32.mrf.mxu1  ;;  %v8379_v3 = vpop.f32.mrf.mxu0  ;;  %16661 = vmatprep.subr.bf16.mxu0 %v18892_v0  ;;  %v8045_v28 = vld [vmem:[#allocation4 + $0xa9] sm:$0xff]  ;;  %v17166_v16 = vld [vmem:[#allocation3 + $0xf8] sm:$0xff]  }
 0x459   : > { %8708 = vst [vmem:[#allocation4 + $0x50] sm:$0xff] %v8644_v41  ;;  %8707 = vst [vmem:[#allocation4 + $0x48] sm:$0xff] %v8643_v34  ;;  %v8104_v53 = vadd.f32 %v8040_v9, %v7833_v22  ;;  %v17169_v34 = vld [vmem:[#allocation3 + $0x100] sm:$0xff]  }
 0x45a   : > { %8170 = vst [vmem:[#allocation4 + $0x91] sm:$0xff] %v8106_v7  ;;  %v8582_v2 = vld [vmem:[#allocation4 + $0x60] sm:$0xff]  ;;  %v16136_v27 = vpop.f32.mrf.mxu1  ;;  %v16216_v26 = vpop.f32.mrf.mxu0 }
 0x45b   : > { %v8646_v54 = vadd.f32 %v8582_v2, %v8363_v38  ;;  %8168 = vst [vmem:[#allocation4 + $0x81] sm:$0xff] %v8104_v53  ;;  %v8107_v25 = vadd.f32 %v16136_v27, %v8043_v32  ;;  %v8044_v38 = vld [vmem:[#allocation4 + $0xa1] sm:$0xff] }
 0x45c   : > { %v8585_v62 = vld [vmem:[#allocation4 + $0x78] sm:$0xff]  ;;  %v7836_v59 = vpop.f32.mrf.mxu1  ;;  %v8382_v19 = vpop.f32.mrf.mxu0 }
 0x45d   : > { %8710 = vst [vmem:[#allocation4 + $0x60] sm:$0xff] %v8646_v54  ;;  %v8649_v63 = vadd.f32 %v16212_v58, %v8585_v62  ;;  %8171 = vst [vmem:[#allocation4 + $0x99] sm:$0xff] %v8107_v25  ;;  %v8105_v45 = vadd.f32 %v8041_v15, %v7836_v59  ;;  %v8051_v54 = vld [vmem:[#allocation4 + $0xd9] sm:$0xff] }
 0x45e   : > { %v8584_v11 = vld [vmem:[#allocation4 + $0x70] sm:$0xff]  ;;  %v8583_v43 = vld [vmem:[#allocation4 + $0x68] sm:$0xff]  ;;  %v16139_v39 = vpop.f32.mrf.mxu1  ;;  %16330 = vmatmul.mubr.bf16.gmra.mxu1 %v18780_v49  ;;  %16410 = vmatmul.mubr.bf16.gmra.mxu0 %v17162_v35  ;;  %v18896_v37 = vpop.f32.mrf.mxu0 }
 0x45f   : > { %8713 = vst [vmem:[#allocation4 + $0x78] sm:$0xff] %v8649_v63  ;;  %v8648_v4 = vadd.f32 %v18884_v13, %v8584_v11  ;;  %v8647_v18 = vadd.f32 %v8583_v43, %v8366_v57  ;;  %8169 = vst [vmem:[#allocation4 + $0x89] sm:$0xff] %v8105_v45  ;;  %v8110_v33 = vadd.f32 %v16139_v39, %v8046_v56  ;;  %16333 = vmatprep.mubr.bf16.mxu1 %v18798_v6  ;;  %v8050_v6 = vld [vmem:[#allocation4 + $0xd1] sm:$0xff]  ;;  %v8049_v56 = vld [vmem:[#allocation4 + $0xc9] sm:$0xff] }
 0x460   : > { %16413 = vmatprep.mubr.bf16.mxu0 %v17164_v55  ;;  %v7849_v58 = vpop.f32.mrf.mxu1  ;;  %v8395_v21 = vpop.f32.mrf.mxu0  ;;  %v17171_v63 = vld [vmem:[#allocation3 + $0x108] sm:$0xff]  }
 0x461   : > { %8712 = vst [vmem:[#allocation4 + $0x70] sm:$0xff] %v8648_v4  ;;  %8711 = vst [vmem:[#allocation4 + $0x68] sm:$0xff] %v8647_v18  ;;  %v8108_v49 = vadd.f32 %v8044_v38, %v7849_v58  ;;  %v8052_v58 = vld [vmem:[#allocation4 + $0xe1] sm:$0xff] }
 0x462   : > { %8174 = vst [vmem:[#allocation4 + $0xb1] sm:$0xff] %v8110_v33  ;;  %v8586_v52 = vld [vmem:[#allocation4 + $0x80] sm:$0xff]  ;;  %v16140_v47 = vpop.f32.mrf.mxu1  ;;  %v16220_v60 = vpop.f32.mrf.mxu0 }
 0x463   : > { %v8650_v5 = vadd.f32 %v8586_v52, %v8379_v3  ;;  %8172 = vst [vmem:[#allocation4 + $0xa1] sm:$0xff] %v8108_v49  ;;  %v8111_v13 = vadd.f32 %v16140_v47, %v8047_v29  ;;  %v8048_v3 = vld [vmem:[#allocation4 + $0xc1] sm:$0xff] }
 0x464   : > { %v8589_v57 = vld [vmem:[#allocation4 + $0x98] sm:$0xff]  ;;  %v7852_v10 = vpop.f32.mrf.mxu1  ;;  %v8398_v31 = vpop.f32.mrf.mxu0 }
 0x465   : > { %8714 = vst [vmem:[#allocation4 + $0x80] sm:$0xff] %v8650_v5  ;;  %v8653_v9 = vadd.f32 %v16216_v26, %v8589_v57  ;;  %8175 = vst [vmem:[#allocation4 + $0xb9] sm:$0xff] %v8111_v13  ;;  %v8109_v41 = vadd.f32 %v8045_v28, %v7852_v10  ;;  %v8053_v13 = vld [vmem:[#allocation4 + $0xe9] sm:$0xff] }
 0x466   : > { %v8588_v7 = vld [vmem:[#allocation4 + $0x90] sm:$0xff]  ;;  %v8587_v22 = vld [vmem:[#allocation4 + $0x88] sm:$0xff]  ;;  %v16143_v32 = vpop.f32.mrf.mxu1  ;;  %16334 = vmatmul.mubr.bf16.gmra.mxu1 %v18796_v61  ;;  %16414 = vmatmul.mubr.bf16.gmra.mxu0 %v17166_v16  ;;  %v18901_v53 = vpop.f32.mrf.mxu0 }
 0x467   : > { %8717 = vst [vmem:[#allocation4 + $0x98] sm:$0xff] %v8653_v9  ;;  %v8652_v2 = vadd.f32 %v18888_v30, %v8588_v7  ;;  %v8651_v27 = vadd.f32 %v8587_v22, %v8382_v19  ;;  %8173 = vst [vmem:[#allocation4 + $0xa9] sm:$0xff] %v8109_v41  ;;  %v8114_v15 = vadd.f32 %v16143_v32, %v8050_v6  ;;  %16337 = vmatprep.mubr.bf16.mxu1 %v18810_v23  ;;  %v8054_v23 = vld [vmem:[#allocation4 + $0xf1] sm:$0xff] }
 0x468   : > { %16417 = vmatprep.mubr.bf16.mxu0 %v17169_v34  ;;  %v7865_v26 = vpop.f32.mrf.mxu1  ;;  %v8411_v35 = vpop.f32.mrf.mxu0  ;;  %v8058_v9 = vld [vmem:[#allocation4 + $0x111] sm:$0xff] }
 0x469   : > { %8716 = vst [vmem:[#allocation4 + $0x90] sm:$0xff] %v8652_v2  ;;  %8715 = vst [vmem:[#allocation4 + $0x88] sm:$0xff] %v8651_v27  ;;  %v8112_v61 = vadd.f32 %v8048_v3, %v7865_v26  ;;  %v17175_v34 = vld [vmem:[#allocation10 + $0x1b0] sm:$0xff]   ;;  %v8056_v27 = vld [vmem:[#allocation4 + $0x101] sm:$0xff] }
 0x46a   : > { %8178 = vst [vmem:[#allocation4 + $0xd1] sm:$0xff] %v8114_v15  ;;  %v8590_v25 = vld [vmem:[#allocation4 + $0xa0] sm:$0xff]  ;;  %v16144_v62 = vpop.f32.mrf.mxu1  ;;  %v16224_v59 = vpop.f32.mrf.mxu0  ;;  %v17182_v7 = vld [vmem:[#allocation10 + $0x1f0] sm:$0xff]  }
 0x46b   : > { %v8654_v45 = vadd.f32 %v8590_v25, %v8395_v21  ;;  %8176 = vst [vmem:[#allocation4 + $0xc1] sm:$0xff] %v8112_v61  ;;  %v8115_v30 = vadd.f32 %v16144_v62, %v8051_v54  ;;  %v8059_v25 = vld [vmem:[#allocation4 + $0x119] sm:$0xff]  ;;  %v17183_v62 = vld [vmem:[#allocation10 + $0x1e8] sm:$0xff]  }
 0x46c   : > { %v8593_v19 = vld [vmem:[#allocation4 + $0xb8] sm:$0xff]  ;;  %v7868_v55 = vpop.f32.mrf.mxu1  ;;  %v8414_v11 = vpop.f32.mrf.mxu0 }
 0x46d   : > { %8718 = vst [vmem:[#allocation4 + $0xa0] sm:$0xff] %v8654_v45  ;;  %v8657_v43 = vadd.f32 %v16220_v60, %v8593_v19  ;;  %8179 = vst [vmem:[#allocation4 + $0xd9] sm:$0xff] %v8115_v30  ;;  %v8113_v39 = vadd.f32 %v8049_v56, %v7868_v55  ;;  %v8055_v60 = vld [vmem:[#allocation4 + $0xf9] sm:$0xff] }
 0x46e   : > { %v8592_v38 = vld [vmem:[#allocation4 + $0xb0] sm:$0xff]  ;;  %v8591_v4 = vld [vmem:[#allocation4 + $0xa8] sm:$0xff]  ;;  %v16147_v18 = vpop.f32.mrf.mxu1  ;;  %16338 = vmatmul.mubr.bf16.gmra.mxu1 %v18808_v40  ;;  %16418 = vmatmul.mubr.bf16.gmra.mxu0 %v17171_v63  ;;  %v18906_v33 = vpop.f32.mrf.mxu0 }
 0x46f   : > { %8721 = vst [vmem:[#allocation4 + $0xb8] sm:$0xff] %v8657_v43  ;;  %v8656_v21 = vadd.f32 %v18896_v37, %v8592_v38  ;;  %v8655_v29 = vadd.f32 %v8591_v4, %v8398_v31  ;;  %8177 = vst [vmem:[#allocation4 + $0xc9] sm:$0xff] %v8113_v39  ;;  %v8118_v49 = vadd.f32 %v16147_v18, %v8054_v23  ;;  %16437 = vmatprep.mubr.bf16.mxu1 %v18814_v17  ;;  %v17177_v43 = vld [vmem:[#allocation10 + $0x1a0] sm:$0xff]  }
 0x470   : > { %16517 = vmatprep.mubr.bf16.mxu0 %v18814_v17  ;;  %v7881_v52 = vpop.f32.mrf.mxu1  ;;  %v8427_v47 = vpop.f32.mrf.mxu0  ;;  %v17184_v39 = vld [vmem:[#allocation10 + $0x1e0] sm:$0xff]  }
 0x471   : > { %8720 = vst [vmem:[#allocation4 + $0xb0] sm:$0xff] %v8656_v21  ;;  %8719 = vst [vmem:[#allocation4 + $0xa8] sm:$0xff] %v8655_v29  ;;  %v8116_v40 = vadd.f32 %v8052_v58, %v7881_v52  ;;  %v8060_v21 = vld [vmem:[#allocation4 + $0x121] sm:$0xff] }
 0x472   : > { %8182 = vst [vmem:[#allocation4 + $0xf1] sm:$0xff] %v8118_v49  ;;  %v8594_v28 = vld [vmem:[#allocation4 + $0xc0] sm:$0xff]  ;;  %v16148_v16 = vpop.f32.mrf.mxu1  ;;  %v16228_v5 = vpop.f32.mrf.mxu0 }
 0x473   : > { %v8658_v57 = vadd.f32 %v8594_v28, %v8411_v35  ;;  %8180 = vst [vmem:[#allocation4 + $0xe1] sm:$0xff] %v8116_v40  ;;  %v8119_v37 = vadd.f32 %v16148_v16, %v8055_v60  ;;  %v8063_v40 = vld [vmem:[#allocation4 + $0x139] sm:$0xff] }
 0x474   : > { %v8597_v10 = vld [vmem:[#allocation4 + $0xd8] sm:$0xff]  ;;  %v7884_v31 = vpop.f32.mrf.mxu1  ;;  %v18911_v6 = vpop.f32.mrf.mxu0 }
 0x475   : > { %8722 = vst [vmem:[#allocation4 + $0xc0] sm:$0xff] %v8658_v57  ;;  %v8661_v17 = vadd.f32 %v16224_v59, %v8597_v10  ;;  %8183 = vst [vmem:[#allocation4 + $0xf9] sm:$0xff] %v8119_v37  ;;  %v8117_v41 = vadd.f32 %v8053_v13, %v7884_v31  ;;  %v17186_v28 = vld [vmem:[#allocation10 + $0x1d8] sm:$0xff]   ;;  %v8061_v57 = vld [vmem:[#allocation4 + $0x129] sm:$0xff] }
 0x476   : > { %v8596_v22 = vld [vmem:[#allocation4 + $0xd0] sm:$0xff]  ;;  %v8595_v32 = vld [vmem:[#allocation4 + $0xc8] sm:$0xff]  ;;  %v16151_v3 = vpop.f32.mrf.mxu1  ;;  %16438 = vmatmul.mubr.bf16.vlgmr.msra.gmra.mxu1 %v18819_v8  ;;  %16518 = vmatmul.mubr.bf16.vlgmr.msra.gmra.mxu0 %v18819_v8  ;;  %v18915_v2 = vpop.f32.mrf.mxu0 }
 0x477   : > { %8725 = vst [vmem:[#allocation4 + $0xd8] sm:$0xff] %v8661_v17  ;;  %v8660_v15 = vadd.f32 %v18901_v53, %v8596_v22  ;;  %v8659_v26 = vadd.f32 %v8595_v32, %v8414_v11  ;;  %8181 = vst [vmem:[#allocation4 + $0xe9] sm:$0xff] %v8117_v41  ;;  %v8122_v35 = vadd.f32 %v16151_v3, %v8058_v9  ;;  %16441 = vmatprep.mubr.bf16.mxu1 %v18821_v24  ;;  %v17176_v53 = vld [vmem:[#allocation10 + $0x1a8] sm:$0xff]   ;;  %v8066_v9 = vld [vmem:[#allocation4 + $0x151] sm:$0xff] }
 0x478   : > { %16521 = vmatprep.mubr.bf16.mxu0 %v18821_v24  ;;  %16582 = vmatpush3.bf16.msra.mxu1 %v18852_v51  ;;  %v7897_v54 = vpop.f32.mrf.mxu1  ;;  %v18921_v61 = vpop.f32.mrf.mxu0  ;;  %v8057_v24 = vld [vmem:[#allocation4 + $0x109] sm:$0xff] }
 0x479   : > { %16662 = vmatpush3.bf16.msra.mxu0 %v18892_v0  ;;  %8724 = vst [vmem:[#allocation4 + $0xd0] sm:$0xff] %v8660_v15  ;;  %8723 = vst [vmem:[#allocation4 + $0xc8] sm:$0xff] %v8659_v26  ;;  %v8120_v8 = vadd.f32 %v8056_v27, %v7897_v54  ;;  %16583 = vmatprep.subr.bf16.mxu1 %v17175_v34  ;;  %v8062_v0 = vld [vmem:[#allocation4 + $0x131] sm:$0xff]  ;;  %v8064_v15 = vld [vmem:[#allocation4 + $0x141] sm:$0xff] }
 0x47a   : > { %8186 = vst [vmem:[#allocation4 + $0x111] sm:$0xff] %v8122_v35  ;;  %16663 = vmatprep.subr.bf16.mxu0 %v17182_v7  ;;  %v8598_v59 = vld [vmem:[#allocation4 + $0xe0] sm:$0xff]  ;;  %v16152_v56 = vpop.f32.mrf.mxu1  ;;  %v16232_v63 = vpop.f32.mrf.mxu0 }
 0x47b   : > { %v8662_v45 = vadd.f32 %v8598_v59, %v8427_v47  ;;  %8184 = vst [vmem:[#allocation4 + $0x101] sm:$0xff] %v8120_v8  ;;  %v8123_v51 = vadd.f32 %v16152_v56, %v8059_v25  ;;  %v8067_v8 = vld [vmem:[#allocation4 + $0x159] sm:$0xff] }
 0x47c   : > { %v8601_v30 = vld [vmem:[#allocation4 + $0xf8] sm:$0xff]  ;;  %v7900_v19 = vpop.f32.mrf.mxu1  ;;  %v18924_v55 = vpop.f32.mrf.mxu0  ;;  %16584 = vmatpush3.bf16.msra.mxu1 %v17175_v34  ;;  %v17179_v34 = vld [vmem:[#allocation10 + $0x190] sm:$0xff]  }
 0x47d   : > { %16664 = vmatpush3.bf16.msra.mxu0 %v17182_v7  ;;  %8726 = vst [vmem:[#allocation4 + $0xe0] sm:$0xff] %v8662_v45  ;;  %v8665_v11 = vadd.f32 %v16228_v5, %v8601_v30  ;;  %8187 = vst [vmem:[#allocation4 + $0x119] sm:$0xff] %v8123_v51  ;;  %v8121_v23 = vadd.f32 %v8057_v24, %v7900_v19  ;;  %16585 = vmatprep.subr.bf16.mxu1 %v17176_v53  ;;  %v17187_v7 = vld [vmem:[#allocation10 + $0x1d0] sm:$0xff]  }
 0x47e   : > { %16665 = vmatprep.subr.bf16.mxu0 %v17183_v62  ;;  %v8600_v38 = vld [vmem:[#allocation4 + $0xf0] sm:$0xff]  ;;  %v8599_v4 = vld [vmem:[#allocation4 + $0xe8] sm:$0xff]  ;;  %v16155_v18 = vpop.f32.mrf.mxu1  ;;  %16442 = vmatmul.mubr.bf16.gmra.mxu1 %v18828_v12  ;;  %v18928_v58 = vpop.f32.mrf.mxu0 }
 0x47f   : > { %16522 = vmatmul.mubr.bf16.gmra.mxu0 %v18828_v12  ;;  %8729 = vst [vmem:[#allocation4 + $0xf8] sm:$0xff] %v8665_v11  ;;  %v8664_v29 = vadd.f32 %v18906_v33, %v8600_v38  ;;  %v8663_v49 = vadd.f32 %v8599_v4, %v18911_v6  ;;  %8185 = vst [vmem:[#allocation4 + $0x109] sm:$0xff] %v8121_v23  ;;  %v8126_v52 = vadd.f32 %v16155_v18, %v8062_v0  ;;  %v17178_v33 = vld [vmem:[#allocation10 + $0x198] sm:$0xff]   ;;  %v17185_v11 = vld [vmem:[#allocation10 + $0x180] sm:$0xff]  }
 0x480   : > { %16445 = vmatprep.mubr.bf16.mxu1 %v18830_v48  ;;  %16525 = vmatprep.mubr.bf16.mxu0 %v18830_v48  ;;  %v7913_v47 = vpop.f32.mrf.mxu1  ;;  %v18934_v60 = vpop.f32.mrf.mxu0  ;;  %v8070_v19 = vld [vmem:[#allocation4 + $0x171] sm:$0xff]  ;;  %v17190_v23 = vld [vmem:[#allocation10 + $0x1c0] sm:$0xff]  }
 0x481   : > { %16586 = vmatpush3.bf16.msra.mxu1 %v17176_v53  ;;  %16666 = vmatpush3.bf16.msra.mxu0 %v17183_v62  ;;  %8728 = vst [vmem:[#allocation4 + $0xf0] sm:$0xff] %v8664_v29  ;;  %8727 = vst [vmem:[#allocation4 + $0xe8] sm:$0xff] %v8663_v49  ;;  %v8124_v12 = vadd.f32 %v8060_v21, %v7913_v47  ;;  %v17188_v53 = vld [vmem:[#allocation10 + $0x1c8] sm:$0xff]  }
 0x482   : > { %8190 = vst [vmem:[#allocation4 + $0x131] sm:$0xff] %v8126_v52  ;;  %16587 = vmatprep.subr.bf16.mxu1 %v17177_v43  ;;  %16667 = vmatprep.subr.bf16.mxu0 %v17184_v39  ;;  %v8602_v16 = vld [vmem:[#allocation4 + $0x100] sm:$0xff]  ;;  %v16156_v5 = vpop.f32.mrf.mxu1  ;;  %v16236_v13 = vpop.f32.mrf.mxu0 }
 0x483   : > { %v8666_v48 = vadd.f32 %v8602_v16, %v18921_v61  ;;  %8188 = vst [vmem:[#allocation4 + $0x121] sm:$0xff] %v8124_v12  ;;  %v8127_v37 = vadd.f32 %v16156_v5, %v8063_v40  ;;  %v8068_v18 = vld [vmem:[#allocation4 + $0x161] sm:$0xff] }
 0x484   : > { %v8605_v10 = vld [vmem:[#allocation4 + $0x118] sm:$0xff]  ;;  %v7916_v31 = vpop.f32.mrf.mxu1  ;;  %v18937_v6 = vpop.f32.mrf.mxu0 }
 0x485   : > { %16588 = vmatpush3.bf16.msra.mxu1 %v17177_v43  ;;  %16668 = vmatpush3.bf16.msra.mxu0 %v17184_v39  ;;  %8730 = vst [vmem:[#allocation4 + $0x100] sm:$0xff] %v8666_v48  ;;  %v8669_v17 = vadd.f32 %v16232_v63, %v8605_v10  ;;  %8191 = vst [vmem:[#allocation4 + $0x139] sm:$0xff] %v8127_v37  ;;  %v8125_v41 = vadd.f32 %v8061_v57, %v7916_v31  ;;  %v8065_v63 = vld [vmem:[#allocation4 + $0x149] sm:$0xff]  ;;  %v8074_v48 = vld [vmem:[#allocation4 + $0x191] sm:$0xff] }
 0x486   : > { %16589 = vmatprep.subr.bf16.mxu1 %v17178_v33  ;;  %16669 = vmatprep.subr.bf16.mxu0 %v17186_v28  ;;  %v8604_v22 = vld [vmem:[#allocation4 + $0x110] sm:$0xff]  ;;  %v8603_v32 = vld [vmem:[#allocation4 + $0x108] sm:$0xff]  ;;  %v16159_v3 = vpop.f32.mrf.mxu1  ;;  %v18941_v27 = vpop.f32.mrf.mxu0 }
 0x487   : > { %16446 = vmatmul.mubr.bf16.gmra.mxu1 %v18836_v42  ;;  %16526 = vmatmul.mubr.bf16.gmra.mxu0 %v18836_v42  ;;  %8733 = vst [vmem:[#allocation4 + $0x118] sm:$0xff] %v8669_v17  ;;  %v8668_v26 = vadd.f32 %v18915_v2, %v8604_v22  ;;  %v8667_v35 = vadd.f32 %v8603_v32, %v18924_v55  ;;  %8189 = vst [vmem:[#allocation4 + $0x129] sm:$0xff] %v8125_v41  ;;  %v17180_v2 = vld [vmem:[#allocation10 + $0x188] sm:$0xff]  }
 0x488   : > { %v8130_v54 = vadd.f32 %v16159_v3, %v8066_v9  ;;  %16449 = vmatprep.mubr.bf16.mxu1 %v18838_v46  ;;  %16529 = vmatprep.mubr.bf16.mxu0 %v18838_v46  ;;  %v7929_v61 = vpop.f32.mrf.mxu1  ;;  %v18947_v25 = vpop.f32.mrf.mxu0  ;;  %v8072_v41 = vld [vmem:[#allocation4 + $0x181] sm:$0xff] }
 0x489   : > { %16590 = vmatpush3.bf16.msra.mxu1 %v17178_v33  ;;  %16670 = vmatpush3.bf16.msra.mxu0 %v17186_v28  ;;  %8732 = vst [vmem:[#allocation4 + $0x110] sm:$0xff] %v8668_v26  ;;  %8731 = vst [vmem:[#allocation4 + $0x108] sm:$0xff] %v8667_v35  ;;  %v8128_v42 = vadd.f32 %v8064_v15, %v7929_v61  ;;  %v8069_v28 = vld [vmem:[#allocation4 + $0x169] sm:$0xff]  ;;  %v8075_v15 = vld [vmem:[#allocation4 + $0x199] sm:$0xff] }
 0x48a   : > { %8194 = vst [vmem:[#allocation4 + $0x151] sm:$0xff] %v8130_v54  ;;  %16591 = vmatprep.subr.bf16.mxu1 %v17179_v34  ;;  %16671 = vmatprep.subr.bf16.mxu0 %v17187_v7  ;;  %v8606_v62 = vld [vmem:[#allocation4 + $0x120] sm:$0xff]  ;;  %v16160_v59 = vpop.f32.mrf.mxu1  ;;  %v16240_v56 = vpop.f32.mrf.mxu0  ;;  %v8073_v61 = vld [vmem:[#allocation4 + $0x189] sm:$0xff] }
 0x48b   : > { %v8670_v46 = vadd.f32 %v8606_v62, %v18934_v60  ;;  %8192 = vst [vmem:[#allocation4 + $0x141] sm:$0xff] %v8128_v42  ;;  %v8131_v24 = vadd.f32 %v16160_v59, %v8067_v8  ;;  %v8071_v60 = vld [vmem:[#allocation4 + $0x179] sm:$0xff] }
 0x48c   : > { %v8609_v45 = vld [vmem:[#allocation4 + $0x138] sm:$0xff]  ;;  %v7932_v51 = vpop.f32.mrf.mxu1  ;;  %v18950_v30 = vpop.f32.mrf.mxu0 }
 0x48d   : > { %16592 = vmatpush3.bf16.msra.mxu1 %v17179_v34  ;;  %16672 = vmatpush3.bf16.msra.mxu0 %v17187_v7  ;;  %8734 = vst [vmem:[#allocation4 + $0x120] sm:$0xff] %v8670_v46  ;;  %v8673_v55 = vadd.f32 %v16236_v13, %v8609_v45  ;;  %8195 = vst [vmem:[#allocation4 + $0x159] sm:$0xff] %v8131_v24  ;;  %v8129_v0 = vadd.f32 %v8065_v63, %v7932_v51  ;;  %v8076_v24 = vld [vmem:[#allocation4 + $0x1a1] sm:$0xff] }
 0x48e   : > { %16593 = vmatprep.subr.bf16.mxu1 %v17180_v2  ;;  %16673 = vmatprep.subr.bf16.mxu0 %v17188_v53  ;;  %v8608_v43 = vld [vmem:[#allocation4 + $0x130] sm:$0xff]  ;;  %v8607_v39 = vld [vmem:[#allocation4 + $0x128] sm:$0xff]  ;;  %v16163_v38 = vpop.f32.mrf.mxu1  ;;  %v18954_v4 = vpop.f32.mrf.mxu0 }
 0x48f   : > { %16450 = vmatmul.mubr.bf16.gmra.mxu1 %v18844_v1  ;;  %16530 = vmatmul.mubr.bf16.gmra.mxu0 %v18844_v1  ;;  %8737 = vst [vmem:[#allocation4 + $0x138] sm:$0xff] %v8673_v55  ;;  %v8672_v21 = vadd.f32 %v18928_v58, %v8608_v43  ;;  %v8671_v29 = vadd.f32 %v8607_v39, %v18937_v6  ;;  %8193 = vst [vmem:[#allocation4 + $0x149] sm:$0xff] %v8129_v0  ;;  %v18960_v58 = vld [vmem:[#allocation10 + $0x238] sm:$0xff]   ;;  %v8077_v39 = vld [vmem:[#allocation4 + $0x1a9] sm:$0xff] }
 0x490   : > { %v8134_v49 = vadd.f32 %v16163_v38, %v8070_v19  ;;  %16453 = vmatprep.mubr.bf16.mxu1 %v18846_v14  ;;  %16533 = vmatprep.mubr.bf16.mxu0 %v18846_v14  ;;  %v7945_v52 = vpop.f32.mrf.mxu1  ;;  %v8491_v47 = vpop.f32.mrf.mxu0  ;;  %v8079_v0 = vld [vmem:[#allocation4 + $0x1b9] sm:$0xff] }
 0x491   : > { %16594 = vmatpush3.bf16.msra.mxu1 %v17180_v2  ;;  %16674 = vmatpush3.bf16.msra.mxu0 %v17188_v53  ;;  %8736 = vst [vmem:[#allocation4 + $0x130] sm:$0xff] %v8672_v21  ;;  %8735 = vst [vmem:[#allocation4 + $0x128] sm:$0xff] %v8671_v29  ;;  %v8132_v1 = vadd.f32 %v8068_v18, %v7945_v52  ;;  %v8078_v53 = vld [vmem:[#allocation4 + $0x1b1] sm:$0xff] }
 0x492   : > { %8198 = vst [vmem:[#allocation4 + $0x171] sm:$0xff] %v8134_v49  ;;  %16595 = vmatprep.subr.bf16.mxu1 %v17185_v11  ;;  %16675 = vmatprep.subr.bf16.mxu0 %v17190_v23  ;;  %v8610_v40 = vld [vmem:[#allocation4 + $0x140] sm:$0xff]  ;;  %v16164_v12 = vpop.f32.mrf.mxu1  ;;  %v16244_v33 = vpop.f32.mrf.mxu0  ;;  %v8082_v49 = vld [vmem:[#allocation4 + $0x1d1] sm:$0xff] }
 0x493   : > { %v8674_v16 = vadd.f32 %v8610_v40, %v18947_v25  ;;  %8196 = vst [vmem:[#allocation4 + $0x161] sm:$0xff] %v8132_v1  ;;  %v8135_v14 = vadd.f32 %v16164_v12, %v8071_v60  ;;  %v17324_v40 = vld [vmem:[#allocation3 + $0x78] sm:$0xff]  }
 0x494   : > { %v8613_v5 = vld [vmem:[#allocation4 + $0x158] sm:$0xff]  ;;  %v7948_v13 = vpop.f32.mrf.mxu1  ;;  %v8494_v57 = vpop.f32.mrf.mxu0 }
 0x495   : > { %16596 = vmatpush3.bf16.msra.mxu1 %v17185_v11  ;;  %16676 = vmatpush3.bf16.msra.mxu0 %v17190_v23  ;;  %8738 = vst [vmem:[#allocation4 + $0x140] sm:$0xff] %v8674_v16  ;;  %v8677_v37 = vadd.f32 %v16240_v56, %v8613_v5  ;;  %8199 = vst [vmem:[#allocation4 + $0x179] sm:$0xff] %v8135_v14  ;;  %v8133_v10 = vadd.f32 %v8069_v28, %v7948_v13  ;;  %v17325_v5 = vld [vmem:[#allocation3 + $0x80] sm:$0xff]  }
 0x496   : > { %16741 = vmatprep.subr.bf16.mxu1 %v18960_v58  ;;  %v8612_v31 = vld [vmem:[#allocation4 + $0x150] sm:$0xff]  ;;  %v8611_v6 = vld [vmem:[#allocation4 + $0x148] sm:$0xff]  ;;  %v16167_v9 = vpop.f32.mrf.mxu1  ;;  %v18966_v17 = vpop.f32.mrf.mxu0 }
 0x497   : > { %16454 = vmatmul.mubr.bf16.gmra.mxu1 %v18854_v36  ;;  %16534 = vmatmul.mubr.bf16.gmra.mxu0 %v18854_v36  ;;  %8741 = vst [vmem:[#allocation4 + $0x158] sm:$0xff] %v8677_v37  ;;  %v8676_v34 = vadd.f32 %v18941_v27, %v8612_v31  ;;  %v8675_v7 = vadd.f32 %v8611_v6, %v18950_v30  ;;  %8197 = vst [vmem:[#allocation4 + $0x169] sm:$0xff] %v8133_v10 }
 0x498   : > { %v8138_v22 = vadd.f32 %v16167_v9, %v8074_v48  ;;  %16457 = vmatprep.mubr.bf16.mxu1 %v18856_v50  ;;  %16537 = vmatprep.mubr.bf16.mxu0 %v18856_v50  ;;  %v7961_v32 = vpop.f32.mrf.mxu1  ;;  %v8507_v3 = vpop.f32.mrf.mxu0  ;;  %v8083_v48 = vld [vmem:[#allocation4 + $0x1d9] sm:$0xff]  ;;  %v8081_v9 = vld [vmem:[#allocation4 + $0x1c9] sm:$0xff] }
 0x499   : > { %8740 = vst [vmem:[#allocation4 + $0x150] sm:$0xff] %v8676_v34  ;;  %8739 = vst [vmem:[#allocation4 + $0x148] sm:$0xff] %v8675_v7  ;;  %v8136_v36 = vadd.f32 %v8072_v41, %v7961_v32  ;;  %v8086_v32 = vld [vmem:[#allocation4 + $0x1f1] sm:$0xff] }
 0x49a   : > { %8202 = vst [vmem:[#allocation4 + $0x191] sm:$0xff] %v8138_v22  ;;  %v8614_v26 = vld [vmem:[#allocation4 + $0x160] sm:$0xff]  ;;  %v16168_v35 = vpop.f32.mrf.mxu1  ;;  %v16248_v54 = vpop.f32.mrf.mxu0 }
 0x49b   : > { %v8678_v27 = vadd.f32 %v8614_v26, %v8491_v47  ;;  %8200 = vst [vmem:[#allocation4 + $0x181] sm:$0xff] %v8136_v36  ;;  %v8139_v25 = vadd.f32 %v16168_v35, %v8075_v15 }
 0x49c   : > { %v8617_v8 = vld [vmem:[#allocation4 + $0x178] sm:$0xff]  ;;  %v7964_v42 = vpop.f32.mrf.mxu1  ;;  %v8510_v2 = vpop.f32.mrf.mxu0 }
 0x49d   : > { %8742 = vst [vmem:[#allocation4 + $0x160] sm:$0xff] %v8678_v27  ;;  %v8681_v50 = vadd.f32 %v16244_v33, %v8617_v8  ;;  %8203 = vst [vmem:[#allocation4 + $0x199] sm:$0xff] %v8139_v25  ;;  %v8137_v62 = vadd.f32 %v8073_v61, %v7964_v42  ;;  %v8080_v33 = vld [vmem:[#allocation4 + $0x1c1] sm:$0xff] }
 0x49e   : > { %v8616_v59 = vld [vmem:[#allocation4 + $0x170] sm:$0xff]  ;;  %v8615_v56 = vld [vmem:[#allocation4 + $0x168] sm:$0xff]  ;;  %v16171_v63 = vpop.f32.mrf.mxu1  ;;  %v18974_v46 = vpop.f32.mrf.mxu0 }
 0x49f   : > { %16458 = vmatmul.mubr.bf16.gmra.mxu1 %v18863_v20  ;;  %16538 = vmatmul.mubr.bf16.gmra.mxu0 %v18863_v20  ;;  %8745 = vst [vmem:[#allocation4 + $0x178] sm:$0xff] %v8681_v50  ;;  %v8680_v45 = vadd.f32 %v18954_v4, %v8616_v59  ;;  %v8679_v51 = vadd.f32 %v8615_v56, %v8494_v57  ;;  %8201 = vst [vmem:[#allocation4 + $0x189] sm:$0xff] %v8137_v62  ;;  %v8084_v27 = vld [vmem:[#allocation4 + $0x1e1] sm:$0xff]  ;;  %v8087_v62 = vld [vmem:[#allocation4 + $0x1f9] sm:$0x7f] }
 0x4a0   : > { %v8142_v30 = vadd.f32 %v16171_v63, %v8078_v53  ;;  %16461 = vmatprep.mubr.bf16.mxu1 %v18865_v44  ;;  %16541 = vmatprep.mubr.bf16.mxu0 %v18865_v44  ;;  %v7977_v19 = vpop.f32.mrf.mxu1  ;;  %v8523_v55 = vpop.f32.mrf.mxu0 }
 0x4a1   : > { %8744 = vst [vmem:[#allocation4 + $0x170] sm:$0xff] %v8680_v45  ;;  %8743 = vst [vmem:[#allocation4 + $0x168] sm:$0xff] %v8679_v51  ;;  %v8140_v20 = vadd.f32 %v8076_v24, %v7977_v19  ;;  %v8085_v45 = vld [vmem:[#allocation4 + $0x1e9] sm:$0xff] }
 0x4a2   : > { %8206 = vst [vmem:[#allocation4 + $0x1b1] sm:$0xff] %v8142_v30  ;;  %v8618_v11 = vld [vmem:[#allocation4 + $0x180] sm:$0xff]  ;;  %v16172_v23 = vpop.f32.mrf.mxu1  ;;  %v16252_v43 = vpop.f32.mrf.mxu0 }
 0x4a3   : > { %v8682_v38 = vadd.f32 %v8618_v11, %v8507_v3  ;;  %8204 = vst [vmem:[#allocation4 + $0x1a1] sm:$0xff] %v8140_v20  ;;  %v8143_v4 = vadd.f32 %v16172_v23, %v8079_v0 }
 0x4a4   : > { %v8621_v18 = vld [vmem:[#allocation4 + $0x198] sm:$0xff]  ;;  %v7980_v21 = vpop.f32.mrf.mxu1  ;;  %v8526_v29 = vpop.f32.mrf.mxu0 }
 0x4a5   : > { %8746 = vst [vmem:[#allocation4 + $0x180] sm:$0xff] %v8682_v38  ;;  %v8685_v44 = vadd.f32 %v16248_v54, %v8621_v18  ;;  %8207 = vst [vmem:[#allocation4 + $0x1b9] sm:$0xff] %v8143_v4  ;;  %v8141_v52 = vadd.f32 %v8077_v39, %v7980_v21  ;;  %v17326_v54 = vld [vmem:[#allocation3 + $0x88] sm:$0xff]   ;;  %v17328_v39 = vld [vmem:[#allocation3 + $0x98] sm:$0xff]  }
 0x4a6   : > { %v8620_v47 = vld [vmem:[#allocation4 + $0x190] sm:$0xff]  ;;  %v8619_v60 = vld [vmem:[#allocation4 + $0x188] sm:$0xff]  ;;  %v16175_v1 = vpop.f32.mrf.mxu1  ;;  %v18979_v12 = vpop.f32.mrf.mxu0  ;;  %v17329_v21 = vld [vmem:[#allocation3 + $0xa0] sm:$0xff]  }
 0x4a7   : > { %16462 = vmatmul.mubr.bf16.gmra.mxu1 %v17324_v40  ;;  %16542 = vmatmul.mubr.bf16.gmra.mxu0 %v17324_v40  ;;  %8749 = vst [vmem:[#allocation4 + $0x198] sm:$0xff] %v8685_v44  ;;  %v8684_v28 = vadd.f32 %v18966_v17, %v8620_v47  ;;  %v8683_v16 = vadd.f32 %v8619_v60, %v8510_v2  ;;  %8205 = vst [vmem:[#allocation4 + $0x1a9] sm:$0xff] %v8141_v52  ;;  %v17327_v2 = vld [vmem:[#allocation3 + $0x90] sm:$0xff]  }
 0x4a8   : > { %v8146_v14 = vadd.f32 %v16175_v1, %v8082_v49  ;;  %16465 = vmatprep.mubr.bf16.mxu1 %v17325_v5  ;;  %16545 = vmatprep.mubr.bf16.mxu0 %v17325_v5  ;;  %v7993_v13 = vpop.f32.mrf.mxu1  ;;  %v8539_v57 = vpop.f32.mrf.mxu0  ;;  %v9118_v5 = vld [vmem:[#allocation4 + $0x10] sm:$0xff] }
 0x4a9   : > { %8748 = vst [vmem:[#allocation4 + $0x190] sm:$0xff] %v8684_v28  ;;  %8747 = vst [vmem:[#allocation4 + $0x188] sm:$0xff] %v8683_v16  ;;  %v8144_v37 = vadd.f32 %v8080_v33, %v7993_v13 }
 0x4aa   : > { %8210 = vst [vmem:[#allocation4 + $0x1d1] sm:$0xff] %v8146_v14  ;;  %v8622_v10 = vld [vmem:[#allocation4 + $0x1a0] sm:$0xff]  ;;  %v16176_v31 = vpop.f32.mrf.mxu1  ;;  %v16256_v6 = vpop.f32.mrf.mxu0 }
 0x4ab   : > { %v8686_v41 = vadd.f32 %v8622_v10, %v8523_v55  ;;  %8208 = vst [vmem:[#allocation4 + $0x1c1] sm:$0xff] %v8144_v37  ;;  %v8147_v17 = vadd.f32 %v16176_v31, %v8083_v48 }
 0x4ac   : > { %v8625_v34 = vld [vmem:[#allocation4 + $0x1b8] sm:$0xff]  ;;  %v7996_v7 = vpop.f32.mrf.mxu1  ;;  %v8542_v22 = vpop.f32.mrf.mxu0 }
 0x4ad   : > { %8750 = vst [vmem:[#allocation4 + $0x1a0] sm:$0xff] %v8686_v41  ;;  %v8689_v3 = vadd.f32 %v16252_v43, %v8625_v34  ;;  %8211 = vst [vmem:[#allocation4 + $0x1d9] sm:$0xff] %v8147_v17  ;;  %v8145_v15 = vadd.f32 %v8081_v9, %v7996_v7  ;;  %v9116_v34 = vld [vmem:[#allocation4] sm:$0xff]  ;;  %v9117_v7 = vld [vmem:[#allocation4 + $0x8] sm:$0xff] }
 0x4ae   : > { %v8624_v36 = vld [vmem:[#allocation4 + $0x1b0] sm:$0xff]  ;;  %v8623_v26 = vld [vmem:[#allocation4 + $0x1a8] sm:$0xff]  ;;  %v16179_v35 = vpop.f32.mrf.mxu1  ;;  %v18982_v61 = vpop.f32.mrf.mxu0 }
 0x4af   : > { %16466 = vmatmul.mubr.bf16.gmra.mxu1 %v17326_v54  ;;  %16546 = vmatmul.mubr.bf16.gmra.mxu0 %v17326_v54  ;;  %8753 = vst [vmem:[#allocation4 + $0x1b8] sm:$0xff] %v8689_v3  ;;  %v8688_v25 = vadd.f32 %v18974_v46, %v8624_v36  ;;  %v8687_v8 = vadd.f32 %v8623_v26, %v8526_v29  ;;  %8209 = vst [vmem:[#allocation4 + $0x1c9] sm:$0xff] %v8145_v15  ;;  %v17331_v3 = vld [vmem:[#allocation3 + $0xb0] sm:$0xff]  }
 0x4b0   : > { %v8150_v42 = vadd.f32 %v16179_v35, %v8086_v32  ;;  %16469 = vmatprep.mubr.bf16.mxu1 %v17327_v2  ;;  %16549 = vmatprep.mubr.bf16.mxu0 %v17327_v2  ;;  %v8009_v53 = vpop.f32.mrf.mxu1  ;;  %v8555_v50 = vpop.f32.mrf.mxu0 }
 0x4b1   : > { %8752 = vst [vmem:[#allocation4 + $0x1b0] sm:$0xff] %v8688_v25  ;;  %8751 = vst [vmem:[#allocation4 + $0x1a8] sm:$0xff] %v8687_v8  ;;  %v8148_v59 = vadd.f32 %v8084_v27, %v8009_v53  ;;  %v9119_v8 = vld [vmem:[#allocation4 + $0x18] sm:$0xff] }
 0x4b2   : > { %8214 = vst [vmem:[#allocation4 + $0x1f1] sm:$0xff] %v8150_v42  ;;  %v8626_v56 = vld [vmem:[#allocation4 + $0x1c0] sm:$0xff]  ;;  %v16180_v63 = vpop.f32.mrf.mxu1  ;;  %v16260_v24 = vpop.f32.mrf.mxu0 }
 0x4b3   : > { %v8690_v51 = vadd.f32 %v8626_v56, %v8539_v57  ;;  %8212 = vst [vmem:[#allocation4 + $0x1e1] sm:$0xff] %v8148_v59  ;;  %v8151_v46 = vadd.f32 %v16180_v63, %v8087_v62  ;;  %v9122_v59 = vld [vmem:[#allocation4 + $0x30] sm:$0xff] }
 0x4b4   : > { %v8629_v30 = vld [vmem:[#allocation4 + $0x1d8] sm:$0xff]  ;;  %v8012_v19 = vpop.f32.mrf.mxu1  ;;  %v8558_v55 = vpop.f32.mrf.mxu0 }
 0x4b5   : > { %8754 = vst [vmem:[#allocation4 + $0x1c0] sm:$0xff] %v8690_v51  ;;  %v8693_v0 = vadd.f32 %v16256_v6, %v8629_v30  ;;  %8215 = vst [vmem:[#allocation4 + $0x1f9] sm:$0x7f] %v8151_v46  ;;  %v8149_v20 = vadd.f32 %v8085_v45, %v8012_v19  ;;  %v17330_v6 = vld [vmem:[#allocation3 + $0xa8] sm:$0xff]   ;;  %v17332_v51 = vld [vmem:[#allocation3 + $0xb8] sm:$0xff]  }
 0x4b6   : > { %v8628_v11 = vld [vmem:[#allocation4 + $0x1d0] sm:$0xff]  ;;  %v8627_v23 = vld [vmem:[#allocation4 + $0x1c8] sm:$0xff]  ;;  %v16279_v43 = vpop.f32.mrf.mxu1  ;;  %v18985_v38 = vpop.f32.mrf.mxu0  ;;  %v9120_v30 = vld [vmem:[#allocation4 + $0x20] sm:$0xff] }
 0x4b7   : > { %16470 = vmatmul.mubr.bf16.gmra.mxu1 %v17328_v39  ;;  %16550 = vmatmul.mubr.bf16.gmra.mxu0 %v17328_v39  ;;  %8757 = vst [vmem:[#allocation4 + $0x1d8] sm:$0xff] %v8693_v0  ;;  %v8692_v4 = vadd.f32 %v18979_v12, %v8628_v11  ;;  %v8691_v18 = vadd.f32 %v8627_v23, %v8542_v22  ;;  %8213 = vst [vmem:[#allocation4 + $0x1e9] sm:$0xff] %v8149_v20  ;;  %v9247_v1 = vrot.slane %v16279_v43, 1  ;;  %v9121_v19 = vld [vmem:[#allocation4 + $0x28] sm:$0xff]  ;;  %v17333_v20 = vld [vmem:[#allocation3 + $0xc0] sm:$0xff]  }
 0x4b8   : > { %16473 = vmatprep.mubr.bf16.mxu1 %v17329_v21  ;;  %16553 = vmatprep.mubr.bf16.mxu0 %v17329_v21  ;;  %v8861_v29 = vpop.f32.mrf.mxu1  ;;  %v18988_v49 = vpop.f32.mrf.mxu0 }
 0x4b9   : > { %8756 = vst [vmem:[#allocation4 + $0x1d0] sm:$0xff] %v8692_v4  ;;  %8755 = vst [vmem:[#allocation4 + $0x1c8] sm:$0xff] %v8691_v18  ;;  %v9244_v14 = vrot.slane %v8861_v29, 1 }
 0x4ba   : > { %v8630_v44 = vld [vmem:[#allocation4 + $0x1e0] sm:$0xff]  ;;  %v16280_v52 = vpop.f32.mrf.mxu1  ;;  %v18990_v47 = vpop.f32.mrf.mxu0 }
 0x4bb   : > { %v8694_v60 = vadd.f32 %v8630_v44, %v8555_v50  ;;  %v9249_v40 = vrot.slane %v16280_v52, 1 }
 0x4bc   : > { %v8633_v33 = vld [vmem:[#allocation4 + $0x1f8] sm:$0xff]  ;;  %v8864_v28 = vpop.f32.mrf.mxu1  ;;  %v18992_v12 = vpop.f32.mrf.mxu0 }
 0x4bd   : > { %8758 = vst [vmem:[#allocation4 + $0x1e0] sm:$0xff] %v8694_v60  ;;  %v8697_v16 = vadd.f32 %v16260_v24, %v8633_v33  ;;  %v9250_v13 = vsel %vm2357_vm0, %v9247_v1, %v9249_v40  ;;  %v9245_v57 = vrot.slane %v8864_v28, 1 }
 0x4be   : > { %v8632_v48 = vld [vmem:[#allocation4 + $0x1f0] sm:$0xff]  ;;  %v8631_v37 = vld [vmem:[#allocation4 + $0x1e8] sm:$0xff]  ;;  %v9437_v10 = vadd.f32 %v9250_v13, %v9118_v5  ;;  %v16283_v31 = vpop.f32.mrf.mxu1  ;;  %v18995_v9 = vpop.f32.mrf.mxu0 }
 0x4bf   : > { %16474 = vmatmul.mubr.bf16.gmra.mxu1 %v17330_v6  ;;  %16554 = vmatmul.mubr.bf16.gmra.mxu0 %v17330_v6  ;;  %8761 = vst [vmem:[#allocation4 + $0x1f8] sm:$0xff] %v8697_v16  ;;  %v8696_v41 = vadd.f32 %v18982_v61, %v8632_v48  ;;  %v8695_v17 = vadd.f32 %v8631_v37, %v8558_v55  ;;  %v9255_v25 = vrot.slane %v16283_v31, 1  ;;  %v9126_v13 = vld [vmem:[#allocation4 + $0x50] sm:$0xff] }
 0x4c0   : > { %v9246_v22 = vsel %vm2357_vm0, %v9244_v14, %v9245_v57  ;;  %v9248_v32 = vsel %vm2357_vm0, %v9245_v57, %v9247_v1  ;;  %16477 = vmatprep.mubr.bf16.mxu1 %v17331_v3  ;;  %9501 = vst [vmem:[#allocation4 + $0x10] sm:$0xff] %v9437_v10  ;;  %16557 = vmatprep.mubr.bf16.mxu0 %v17331_v3  ;;  %v8877_v26 = vpop.f32.mrf.mxu1  ;;  %v19000_v35 = vpop.f32.mrf.mxu0 }
 0x4c1   : > { %v9435_v15 = vadd.f32 %v9246_v22, %v9116_v34  ;;  %v9436_v36 = vadd.f32 %v9248_v32, %v9117_v7  ;;  %8760 = vst [vmem:[#allocation4 + $0x1f0] sm:$0xff] %v8696_v41  ;;  %8759 = vst [vmem:[#allocation4 + $0x1e8] sm:$0xff] %v8695_v17  ;;  %v9251_v54 = vrot.slane %v8877_v26, 1  ;;  %v9124_v41 = vld [vmem:[#allocation4 + $0x40] sm:$0xff]  ;;  %v9125_v17 = vld [vmem:[#allocation4 + $0x48] sm:$0xff] }
 0x4c2   : > { %v16284_v61 = vpop.f32.mrf.mxu1  ;;  %v19002_v27 = vpop.f32.mrf.mxu0  ;;  %v17335_v22 = vld [vmem:[#allocation3 + $0xd0] sm:$0xff]  }
 0x4c3   : > { %9499 = vst [vmem:[#allocation4] sm:$0xff] %v9435_v15  ;;  %9500 = vst [vmem:[#allocation4 + $0x8] sm:$0xff] %v9436_v36  ;;  %v9252_v42 = vsel %vm2357_vm0, %v9249_v40, %v9251_v54  ;;  %v9257_v2 = vrot.slane %v16284_v61, 1  ;;  %v9123_v40 = vld [vmem:[#allocation4 + $0x38] sm:$0xff] }
 0x4c4   : > { %v9438_v53 = vadd.f32 %v9252_v42, %v9119_v8  ;;  %v8880_v50 = vpop.f32.mrf.mxu1  ;;  %v19005_v62 = vpop.f32.mrf.mxu0 }
 0x4c5   : > { %v9258_v56 = vsel %vm2357_vm0, %v9255_v25, %v9257_v2  ;;  %v9253_v63 = vrot.slane %v8880_v50, 1 }
 0x4c6   : > { %9502 = vst [vmem:[#allocation4 + $0x18] sm:$0xff] %v9438_v53  ;;  %v9441_v24 = vadd.f32 %v9258_v56, %v9122_v59  ;;  %v16287_v45 = vpop.f32.mrf.mxu1  ;;  %v19008_v46 = vpop.f32.mrf.mxu0  ;;  %v9127_v59 = vld [vmem:[#allocation4 + $0x58] sm:$0xff] }
 0x4c7   : > { %16478 = vmatmul.mubr.bf16.gmra.mxu1 %v17332_v51  ;;  %16558 = vmatmul.mubr.bf16.gmra.mxu0 %v17332_v51  ;;  %v9254_v55 = vsel %vm2357_vm0, %v9251_v54, %v9253_v63  ;;  %v9256_v0 = vsel %vm2357_vm0, %v9253_v63, %v9255_v25  ;;  %v9263_v1 = vrot.slane %v16287_v45, 1 }
 0x4c8   : > { %16481 = vmatprep.mubr.bf16.mxu1 %v17333_v20  ;;  %16561 = vmatprep.mubr.bf16.mxu0 %v17333_v20  ;;  %9505 = vst [vmem:[#allocation4 + $0x30] sm:$0xff] %v9441_v24  ;;  %v9439_v11 = vadd.f32 %v9254_v55, %v9120_v30  ;;  %v9440_v23 = vadd.f32 %v9256_v0, %v9121_v19  ;;  %v8893_v43 = vpop.f32.mrf.mxu1  ;;  %v19012_v39 = vpop.f32.mrf.mxu0  ;;  %v17336_v0 = vld [vmem:[#allocation3 + $0xd8] sm:$0xff]  }
 0x4c9   : > { %v9259_v18 = vrot.slane %v8893_v43, 1  ;;  %v9129_v43 = vld [vmem:[#allocation4 + $0x68] sm:$0xff] }
 0x4ca   : > { %v10174_v4 = vld [vmem:[#allocation4 + $0x9] sm:$0xff]  ;;  %v10173_v21 = vld [vmem:[#allocation4 + $0x1] sm:$0xff]  ;;  %9503 = vst [vmem:[#allocation4 + $0x20] sm:$0xff] %v9439_v11  ;;  %9504 = vst [vmem:[#allocation4 + $0x28] sm:$0xff] %v9440_v23  ;;  %v16288_v44 = vpop.f32.mrf.mxu1  ;;  %v19015_v52 = vpop.f32.mrf.mxu0 }
 0x4cb   : > { %v10238_v29 = vadd.f32 %v10174_v4, %v18992_v12  ;;  %v10237_v60 = vadd.f32 %v10173_v21, %v18988_v49  ;;  %v9260_v33 = vsel %vm2357_vm0, %v9257_v2, %v9259_v18  ;;  %v9265_v28 = vrot.slane %v16288_v44, 1  ;;  %v17334_v49 = vld [vmem:[#allocation3 + $0xc8] sm:$0xff]   ;;  %v9128_v23 = vld [vmem:[#allocation4 + $0x60] sm:$0xff] }
 0x4cc   : > { %v9442_v16 = vadd.f32 %v9260_v33, %v9123_v40  ;;  %v8896_v14 = vpop.f32.mrf.mxu1  ;;  %v19019_v5 = vpop.f32.mrf.mxu0  ;;  %v17337_v21 = vld [vmem:[#allocation3 + $0xe0] sm:$0xff]  }
 0x4cd   : > { %10302 = vst [vmem:[#allocation4 + $0x9] sm:$0xff] %v10238_v29  ;;  %10301 = vst [vmem:[#allocation4 + $0x1] sm:$0xff] %v10237_v60  ;;  %v9266_v12 = vsel %vm2357_vm0, %v9263_v1, %v9265_v28  ;;  %v9261_v57 = vrot.slane %v8896_v14, 1  ;;  %v10175_v48 = vld [vmem:[#allocation4 + $0x11] sm:$0xff] }
 0x4ce   : > { %9506 = vst [vmem:[#allocation4 + $0x38] sm:$0xff] %v9442_v16  ;;  %v9445_v37 = vadd.f32 %v9266_v12, %v9126_v13  ;;  %v16291_v10 = vpop.f32.mrf.mxu1  ;;  %v19022_v31 = vpop.f32.mrf.mxu0  ;;  %v10239_v6 = vadd.f32 %v18985_v38, %v10175_v48 }
 0x4cf   : > { %16482 = vmatmul.mubr.bf16.gmra.mxu1 %v17334_v49  ;;  %16562 = vmatmul.mubr.bf16.gmra.mxu0 %v17334_v49  ;;  %v9262_v34 = vsel %vm2357_vm0, %v9259_v18, %v9261_v57  ;;  %v9264_v7 = vsel %vm2357_vm0, %v9261_v57, %v9263_v1  ;;  %v9271_v50 = vrot.slane %v16291_v10, 1 }
 0x4d0   : > { %16485 = vmatprep.mubr.bf16.mxu1 %v17335_v22  ;;  %16565 = vmatprep.mubr.bf16.mxu0 %v17335_v22  ;;  %9509 = vst [vmem:[#allocation4 + $0x50] sm:$0xff] %v9445_v37  ;;  %v9443_v32 = vadd.f32 %v9262_v34, %v9124_v41  ;;  %v9444_v3 = vadd.f32 %v9264_v7, %v9125_v17  ;;  %v8909_v15 = vpop.f32.mrf.mxu1  ;;  %v19027_v36 = vpop.f32.mrf.mxu0  ;;  %10303 = vst [vmem:[#allocation4 + $0x11] sm:$0xff] %v10239_v6  ;;  %v9131_v37 = vld [vmem:[#allocation4 + $0x78] sm:$0xff] }
 0x4d1   : > { %v10178_v26 = vld [vmem:[#allocation4 + $0x29] sm:$0xff]  ;;  %v9267_v54 = vrot.slane %v8909_v15, 1  ;;  %v10176_v61 = vld [vmem:[#allocation4 + $0x19] sm:$0xff]  ;;  %v10177_v38 = vld [vmem:[#allocation4 + $0x21] sm:$0xff] }
 0x4d2   : > { %v10242_v25 = vadd.f32 %v10178_v26, %v19005_v62  ;;  %9507 = vst [vmem:[#allocation4 + $0x40] sm:$0xff] %v9443_v32  ;;  %9508 = vst [vmem:[#allocation4 + $0x48] sm:$0xff] %v9444_v3  ;;  %v16292_v8 = vpop.f32.mrf.mxu1  ;;  %v19030_v42 = vpop.f32.mrf.mxu0  ;;  %v10240_v2 = vadd.f32 %v18990_v47, %v10176_v61  ;;  %v10241_v53 = vadd.f32 %v10177_v38, %v19000_v35  ;;  %v9130_v62 = vld [vmem:[#allocation4 + $0x70] sm:$0xff]  ;;  %v17338_v32 = vld [vmem:[#allocation3 + $0xe8] sm:$0xff]  }
 0x4d3   : > { %v9268_v56 = vsel %vm2357_vm0, %v9265_v28, %v9267_v54  ;;  %v9273_v63 = vrot.slane %v16292_v8, 1  ;;  %v9132_v26 = vld [vmem:[#allocation4 + $0x80] sm:$0xff] }
 0x4d4   : > { %10306 = vst [vmem:[#allocation4 + $0x29] sm:$0xff] %v10242_v25  ;;  %v9446_v24 = vadd.f32 %v9268_v56, %v9127_v59  ;;  %v8912_v45 = vpop.f32.mrf.mxu1  ;;  %v19035_v51 = vpop.f32.mrf.mxu0  ;;  %10304 = vst [vmem:[#allocation4 + $0x19] sm:$0xff] %v10240_v2  ;;  %v17339_v25 = vld [vmem:[#allocation3 + $0xf0] sm:$0xff]  }
 0x4d5   : > { %10305 = vst [vmem:[#allocation4 + $0x21] sm:$0xff] %v10241_v53  ;;  %v9274_v30 = vsel %vm2357_vm0, %v9271_v50, %v9273_v63  ;;  %v9269_v19 = vrot.slane %v8912_v45, 1  ;;  %v10179_v55 = vld [vmem:[#allocation4 + $0x31] sm:$0xff] }
 0x4d6   : > { %9510 = vst [vmem:[#allocation4 + $0x58] sm:$0xff] %v9446_v24  ;;  %v9449_v47 = vadd.f32 %v9274_v30, %v9130_v62  ;;  %v16295_v35 = vpop.f32.mrf.mxu1  ;;  %v19038_v20 = vpop.f32.mrf.mxu0  ;;  %v10243_v11 = vadd.f32 %v18995_v9, %v10179_v55 }
 0x4d7   : > { %16486 = vmatmul.mubr.bf16.gmra.mxu1 %v17336_v0  ;;  %16566 = vmatmul.mubr.bf16.gmra.mxu0 %v17336_v0  ;;  %v9270_v4 = vsel %vm2357_vm0, %v9267_v54, %v9269_v19  ;;  %v9272_v18 = vsel %vm2357_vm0, %v9269_v19, %v9271_v50  ;;  %v9279_v48 = vrot.slane %v16295_v35, 1  ;;  %v9133_v54 = vld [vmem:[#allocation4 + $0x88] sm:$0xff] }
 0x4d8   : > { %16489 = vmatprep.mubr.bf16.mxu1 %v17337_v21  ;;  %16569 = vmatprep.mubr.bf16.mxu0 %v17337_v21  ;;  %9513 = vst [vmem:[#allocation4 + $0x70] sm:$0xff] %v9449_v47  ;;  %v9447_v29 = vadd.f32 %v9270_v4, %v9128_v23  ;;  %v9448_v44 = vadd.f32 %v9272_v18, %v9129_v43  ;;  %v8925_v60 = vpop.f32.mrf.mxu1  ;;  %v19043_v1 = vpop.f32.mrf.mxu0  ;;  %10307 = vst [vmem:[#allocation4 + $0x31] sm:$0xff] %v10243_v11  ;;  %v9135_v47 = vld [vmem:[#allocation4 + $0x98] sm:$0xff] }
 0x4d9   : > { %v10182_v40 = vld [vmem:[#allocation4 + $0x49] sm:$0xff]  ;;  %v9275_v33 = vrot.slane %v8925_v60, 1  ;;  %v10180_v28 = vld [vmem:[#allocation4 + $0x39] sm:$0xff]  ;;  %v10181_v9 = vld [vmem:[#allocation4 + $0x41] sm:$0xff] }
 0x4da   : > { %v10246_v16 = vadd.f32 %v10182_v40, %v19019_v5  ;;  %9511 = vst [vmem:[#allocation4 + $0x60] sm:$0xff] %v9447_v29  ;;  %9512 = vst [vmem:[#allocation4 + $0x68] sm:$0xff] %v9448_v44  ;;  %v16296_v14 = vpop.f32.mrf.mxu1  ;;  %v19046_v13 = vpop.f32.mrf.mxu0  ;;  %v10244_v12 = vadd.f32 %v19002_v27, %v10180_v28  ;;  %v10245_v57 = vadd.f32 %v10181_v9, %v19012_v39  ;;  %v9134_v5 = vld [vmem:[#allocation4 + $0x90] sm:$0xff]  ;;  %v17340_v29 = vld [vmem:[#allocation3 + $0xf8] sm:$0xff]  }
 0x4db   : > { %v9276_v10 = vsel %vm2357_vm0, %v9273_v63, %v9275_v33  ;;  %v9281_v49 = vrot.slane %v16296_v14, 1  ;;  %v9136_v40 = vld [vmem:[#allocation4 + $0xa0] sm:$0xff] }
 0x4dc   : > { %10310 = vst [vmem:[#allocation4 + $0x49] sm:$0xff] %v10246_v16  ;;  %v9450_v6 = vadd.f32 %v9276_v10, %v9131_v37  ;;  %v8928_v41 = vpop.f32.mrf.mxu1  ;;  %v19051_v17 = vpop.f32.mrf.mxu0  ;;  %10308 = vst [vmem:[#allocation4 + $0x39] sm:$0xff] %v10244_v12  ;;  %v17341_v16 = vld [vmem:[#allocation3 + $0x100] sm:$0xff]  }
 0x4dd   : > { %10309 = vst [vmem:[#allocation4 + $0x41] sm:$0xff] %v10245_v57  ;;  %v9282_v34 = vsel %vm2357_vm0, %v9279_v48, %v9281_v49  ;;  %v9277_v7 = vrot.slane %v8928_v41, 1  ;;  %v10183_v22 = vld [vmem:[#allocation4 + $0x51] sm:$0xff] }
 0x4de   : > { %9514 = vst [vmem:[#allocation4 + $0x78] sm:$0xff] %v9450_v6  ;;  %v9453_v27 = vadd.f32 %v9282_v34, %v9134_v5  ;;  %v16299_v39 = vpop.f32.mrf.mxu1  ;;  %v19054_v3 = vpop.f32.mrf.mxu0  ;;  %v10247_v15 = vadd.f32 %v19008_v46, %v10183_v22 }
 0x4df   : > { %16490 = vmatmul.mubr.bf16.gmra.mxu1 %v17338_v32  ;;  %16570 = vmatmul.mubr.bf16.gmra.mxu0 %v17338_v32  ;;  %v9278_v61 = vsel %vm2357_vm0, %v9275_v33, %v9277_v7  ;;  %v9280_v38 = vsel %vm2357_vm0, %v9277_v7, %v9279_v48  ;;  %v9287_v55 = vrot.slane %v16299_v39, 1  ;;  %v9137_v33 = vld [vmem:[#allocation4 + $0xa8] sm:$0xff] }
 0x4e0   : > { %16493 = vmatprep.mubr.bf16.mxu1 %v17339_v25  ;;  %16573 = vmatprep.mubr.bf16.mxu0 %v17339_v25  ;;  %9517 = vst [vmem:[#allocation4 + $0x90] sm:$0xff] %v9453_v27  ;;  %v9451_v8 = vadd.f32 %v9278_v61, %v9132_v26  ;;  %v9452_v2 = vadd.f32 %v9280_v38, %v9133_v54  ;;  %v8941_v53 = vpop.f32.mrf.mxu1  ;;  %v19059_v50 = vpop.f32.mrf.mxu0  ;;  %10311 = vst [vmem:[#allocation4 + $0x51] sm:$0xff] %v10247_v15  ;;  %v9139_v27 = vld [vmem:[#allocation4 + $0xb8] sm:$0xff]  ;;  %v17189_v25 = vld [vmem:[#allocation3 + $0x20] sm:$0xff]  }
 0x4e1   : > { %v10186_v59 = vld [vmem:[#allocation4 + $0x69] sm:$0xff]  ;;  %v9283_v56 = vrot.slane %v8941_v53, 1  ;;  %v10184_v63 = vld [vmem:[#allocation4 + $0x59] sm:$0xff]  ;;  %v10185_v46 = vld [vmem:[#allocation4 + $0x61] sm:$0xff] }
 0x4e2   : > { %v10250_v24 = vadd.f32 %v10186_v59, %v19035_v51  ;;  %9515 = vst [vmem:[#allocation4 + $0x80] sm:$0xff] %v9451_v8  ;;  %9516 = vst [vmem:[#allocation4 + $0x88] sm:$0xff] %v9452_v2  ;;  %v16300_v45 = vpop.f32.mrf.mxu1  ;;  %v19062_v62 = vpop.f32.mrf.mxu0  ;;  %v10248_v30 = vadd.f32 %v19015_v52, %v10184_v63  ;;  %v10249_v19 = vadd.f32 %v10185_v46, %v19027_v36  ;;  %v9138_v51 = vld [vmem:[#allocation4 + $0xb0] sm:$0xff]  ;;  %v17342_v2 = vld [vmem:[#allocation3 + $0x108] sm:$0xff]  }
 0x4e3   : > { %v9284_v35 = vsel %vm2357_vm0, %v9281_v49, %v9283_v56  ;;  %v9289_v0 = vrot.slane %v16300_v45, 1  ;;  %v9141_v63 = vld [vmem:[#allocation4 + $0xc8] sm:$0xff] }
 0x4e4   : > { %10314 = vst [vmem:[#allocation4 + $0x69] sm:$0xff] %v10250_v24  ;;  %v9454_v11 = vadd.f32 %v9284_v35, %v9135_v47  ;;  %v8944_v23 = vpop.f32.mrf.mxu1  ;;  %v19067_v43 = vpop.f32.mrf.mxu0  ;;  %10312 = vst [vmem:[#allocation4 + $0x59] sm:$0xff] %v10248_v30 }
 0x4e5   : > { %10313 = vst [vmem:[#allocation4 + $0x61] sm:$0xff] %v10249_v19  ;;  %v9290_v4 = vsel %vm2357_vm0, %v9287_v55, %v9289_v0  ;;  %v9285_v18 = vrot.slane %v8944_v23, 1  ;;  %v10187_v21 = vld [vmem:[#allocation4 + $0x71] sm:$0xff] }
 0x4e6   : > { %9518 = vst [vmem:[#allocation4 + $0x98] sm:$0xff] %v9454_v11  ;;  %v9457_v52 = vadd.f32 %v9290_v4, %v9138_v51  ;;  %v16303_v36 = vpop.f32.mrf.mxu1  ;;  %v19070_v44 = vpop.f32.mrf.mxu0  ;;  %v10251_v60 = vadd.f32 %v19022_v31, %v10187_v21  ;;  %v17191_v4 = vld [vmem:[#allocation3 + $0x28] sm:$0xff]  }
 0x4e7   : > { %16494 = vmatmul.mubr.bf16.gmra.mxu1 %v17340_v29  ;;  %16574 = vmatmul.mubr.bf16.gmra.mxu0 %v17340_v29  ;;  %v9286_v28 = vsel %vm2357_vm0, %v9283_v56, %v9285_v18  ;;  %v9288_v9 = vsel %vm2357_vm0, %v9285_v18, %v9287_v55  ;;  %v9295_v22 = vrot.slane %v16303_v36, 1  ;;  %v9140_v56 = vld [vmem:[#allocation4 + $0xc0] sm:$0xff]  ;;  %v9143_v36 = vld [vmem:[#allocation4 + $0xd8] sm:$0xff] }
 0x4e8   : > { %16497 = vmatprep.mubr.bf16.mxu1 %v17341_v16  ;;  %16577 = vmatprep.mubr.bf16.mxu0 %v17341_v16  ;;  %9521 = vst [vmem:[#allocation4 + $0xb0] sm:$0xff] %v9457_v52  ;;  %v9455_v14 = vadd.f32 %v9286_v28, %v9136_v40  ;;  %v9456_v12 = vadd.f32 %v9288_v9, %v9137_v33  ;;  %v8957_v57 = vpop.f32.mrf.mxu1  ;;  %v19075_v48 = vpop.f32.mrf.mxu0  ;;  %10315 = vst [vmem:[#allocation4 + $0x71] sm:$0xff] %v10251_v60  ;;  %v9146_v9 = vld [vmem:[#allocation4 + $0xf0] sm:$0xff] }
 0x4e9   : > { %v10190_v37 = vld [vmem:[#allocation4 + $0x89] sm:$0xff]  ;;  %v9291_v10 = vrot.slane %v8957_v57, 1  ;;  %v10188_v49 = vld [vmem:[#allocation4 + $0x79] sm:$0xff]  ;;  %v10189_v31 = vld [vmem:[#allocation4 + $0x81] sm:$0xff] }
 0x4ea   : > { %v10254_v6 = vadd.f32 %v10190_v37, %v19051_v17  ;;  %9519 = vst [vmem:[#allocation4 + $0xa0] sm:$0xff] %v9455_v14  ;;  %9520 = vst [vmem:[#allocation4 + $0xa8] sm:$0xff] %v9456_v12  ;;  %v16304_v41 = vpop.f32.mrf.mxu1  ;;  %v19078_v5 = vpop.f32.mrf.mxu0  ;;  %v10252_v34 = vadd.f32 %v19030_v42, %v10188_v49  ;;  %v10253_v7 = vadd.f32 %v10189_v31, %v19043_v1  ;;  %v9142_v17 = vld [vmem:[#allocation4 + $0xd0] sm:$0xff]  ;;  %v9144_v49 = vld [vmem:[#allocation4 + $0xe0] sm:$0xff] }
 0x4eb   : > { %v9292_v39 = vsel %vm2357_vm0, %v9289_v0, %v9291_v10  ;;  %v9297_v32 = vrot.slane %v16304_v41, 1  ;;  %v9145_v31 = vld [vmem:[#allocation4 + $0xe8] sm:$0xff] }
 0x4ec   : > { %10318 = vst [vmem:[#allocation4 + $0x89] sm:$0xff] %v10254_v6  ;;  %v9458_v15 = vadd.f32 %v9292_v39, %v9139_v27  ;;  %v8960_v26 = vpop.f32.mrf.mxu1  ;;  %v19083_v54 = vpop.f32.mrf.mxu0  ;;  %10316 = vst [vmem:[#allocation4 + $0x79] sm:$0xff] %v10252_v34  ;;  %v17202_v39 = vld [vmem:[#allocation10 + $0x228] sm:$0xff]  }
 0x4ed   : > { %10317 = vst [vmem:[#allocation4 + $0x81] sm:$0xff] %v10253_v7  ;;  %v9298_v61 = vsel %vm2357_vm0, %v9295_v22, %v9297_v32  ;;  %v9293_v38 = vrot.slane %v8960_v26, 1  ;;  %v10191_v42 = vld [vmem:[#allocation4 + $0x91] sm:$0xff] }
 0x4ee   : > { %9522 = vst [vmem:[#allocation4 + $0xb8] sm:$0xff] %v9458_v15  ;;  %v9461_v1 = vadd.f32 %v9298_v61, %v9142_v17  ;;  %v16307_v8 = vpop.f32.mrf.mxu1  ;;  %v19086_v53 = vpop.f32.mrf.mxu0  ;;  %v10255_v59 = vadd.f32 %v19038_v20, %v10191_v42 }
 0x4ef   : > { %16498 = vmatmul.mubr.bf16.gmra.mxu1 %v17342_v2  ;;  %16578 = vmatmul.mubr.bf16.gmra.mxu0 %v17342_v2  ;;  %v9294_v46 = vsel %vm2357_vm0, %v9291_v10, %v9293_v38  ;;  %v9296_v24 = vsel %vm2357_vm0, %v9293_v38, %v9295_v22  ;;  %v9303_v52 = vrot.slane %v16307_v8, 1  ;;  %v9147_v8 = vld [vmem:[#allocation4 + $0xf8] sm:$0xff] }
 0x4f0   : > { %16597 = vmatprep.mubr.bf16.mxu1 %v17189_v25  ;;  %16677 = vmatprep.mubr.bf16.mxu0 %v17189_v25  ;;  %9525 = vst [vmem:[#allocation4 + $0xd0] sm:$0xff] %v9461_v1  ;;  %v9459_v45 = vadd.f32 %v9294_v46, %v9140_v56  ;;  %v9460_v30 = vadd.f32 %v9296_v24, %v9141_v63  ;;  %v8973_v19 = vpop.f32.mrf.mxu1  ;;  %v19091_v55 = vpop.f32.mrf.mxu0  ;;  %10319 = vst [vmem:[#allocation4 + $0x91] sm:$0xff] %v10255_v59  ;;  %v17194_v25 = vld [vmem:[#allocation3 + $0x38] sm:$0xff]   ;;  %v9150_v24 = vld [vmem:[#allocation4 + $0x110] sm:$0xff] }
 0x4f1   : > { %v10194_v47 = vld [vmem:[#allocation4 + $0xa9] sm:$0xff]  ;;  %v9299_v35 = vrot.slane %v8973_v19, 1  ;;  %v10192_v0 = vld [vmem:[#allocation4 + $0x99] sm:$0xff]  ;;  %v10193_v11 = vld [vmem:[#allocation4 + $0xa1] sm:$0xff] }
 0x4f2   : > { %v10258_v20 = vadd.f32 %v10194_v47, %v19067_v43  ;;  %9523 = vst [vmem:[#allocation4 + $0xc0] sm:$0xff] %v9459_v45  ;;  %9524 = vst [vmem:[#allocation4 + $0xc8] sm:$0xff] %v9460_v30  ;;  %v16308_v23 = vpop.f32.mrf.mxu1  ;;  %v19094_v51 = vpop.f32.mrf.mxu0  ;;  %v10256_v18 = vadd.f32 %v19046_v13, %v10192_v0  ;;  %v10257_v21 = vadd.f32 %v10193_v11, %v19059_v50  ;;  %v17193_v43 = vld [vmem:[#allocation3 + $0x30] sm:$0xff]   ;;  %v9148_v11 = vld [vmem:[#allocation4 + $0x100] sm:$0xff] }
 0x4f3   : > { %v9300_v29 = vsel %vm2357_vm0, %v9297_v32, %v9299_v35  ;;  %v9305_v60 = vrot.slane %v16308_v23, 1  ;;  %v17197_v13 = vld [vmem:[#allocation10 + $0x230] sm:$0xff]  }
 0x4f4   : > { %10322 = vst [vmem:[#allocation4 + $0xa9] sm:$0xff] %v10258_v20  ;;  %v9462_v40 = vadd.f32 %v9300_v29, %v9143_v36  ;;  %v8976_v33 = vpop.f32.mrf.mxu1  ;;  %v19099_v28 = vpop.f32.mrf.mxu0  ;;  %10320 = vst [vmem:[#allocation4 + $0x99] sm:$0xff] %v10256_v18  ;;  %v9149_v20 = vld [vmem:[#allocation4 + $0x108] sm:$0xff]  ;;  %v17212_v29 = vld [vmem:[#allocation10 + $0x218] sm:$0xff]  }
 0x4f5   : > { %10321 = vst [vmem:[#allocation4 + $0xa1] sm:$0xff] %v10257_v21  ;;  %v9306_v16 = vsel %vm2357_vm0, %v9303_v52, %v9305_v60  ;;  %v9301_v14 = vrot.slane %v8976_v33, 1  ;;  %v10195_v12 = vld [vmem:[#allocation4 + $0xb1] sm:$0xff] }
 0x4f6   : > { %9526 = vst [vmem:[#allocation4 + $0xd8] sm:$0xff] %v9462_v40  ;;  %v9465_v50 = vadd.f32 %v9306_v16, %v9146_v9  ;;  %v16311_v57 = vpop.f32.mrf.mxu1  ;;  %v19102_v37 = vpop.f32.mrf.mxu0  ;;  %v10259_v10 = vadd.f32 %v19054_v3, %v10195_v12 }
 0x4f7   : > { %16598 = vmatmul.mubr.bf16.vlgmr.msra.gmra.mxu1 %v17191_v4  ;;  %16678 = vmatmul.mubr.bf16.vlgmr.msra.gmra.mxu0 %v17191_v4  ;;  %v9302_v6 = vsel %vm2357_vm0, %v9299_v35, %v9301_v14  ;;  %v9304_v41 = vsel %vm2357_vm0, %v9301_v14, %v9303_v52  ;;  %v9311_v1 = vrot.slane %v16311_v57, 1  ;;  %v17196_v14 = vld [vmem:[#allocation3 + $0x48] sm:$0xff]   ;;  %v9151_v57 = vld [vmem:[#allocation4 + $0x118] sm:$0xff] }
 0x4f8   : > { %16601 = vmatprep.mubr.bf16.mxu1 %v17193_v43  ;;  %16681 = vmatprep.mubr.bf16.mxu0 %v17193_v43  ;;  %9529 = vst [vmem:[#allocation4 + $0xf0] sm:$0xff] %v9465_v50  ;;  %v9463_v34 = vadd.f32 %v9302_v6, %v9144_v49  ;;  %v9464_v7 = vadd.f32 %v9304_v41, %v9145_v31  ;;  %v8989_v22 = vpop.f32.mrf.mxu1  ;;  %v19108_v27 = vpop.f32.mrf.mxu0  ;;  %10323 = vst [vmem:[#allocation4 + $0xb1] sm:$0xff] %v10259_v10 }
 0x4f9   : > { %16742 = vmatpush3.bf16.msra.mxu1 %v18960_v58  ;;  %v10198_v32 = vld [vmem:[#allocation4 + $0xc9] sm:$0xff]  ;;  %v9307_v3 = vrot.slane %v8989_v22, 1  ;;  %v10196_v15 = vld [vmem:[#allocation4 + $0xb9] sm:$0xff]  ;;  %v10197_v26 = vld [vmem:[#allocation4 + $0xc1] sm:$0xff] }
 0x4fa   : > { %16743 = vmatprep.subr.bf16.mxu1 %v17197_v13  ;;  %v10262_v17 = vadd.f32 %v10198_v32, %v19083_v54  ;;  %9527 = vst [vmem:[#allocation4 + $0xe0] sm:$0xff] %v9463_v34  ;;  %9528 = vst [vmem:[#allocation4 + $0xe8] sm:$0xff] %v9464_v7  ;;  %v16312_v61 = vpop.f32.mrf.mxu1  ;;  %v19111_v38 = vpop.f32.mrf.mxu0  ;;  %v10260_v58 = vadd.f32 %v19062_v62, %v10196_v15  ;;  %v10261_v42 = vadd.f32 %v10197_v26, %v19075_v48  ;;  %v17195_v54 = vld [vmem:[#allocation3 + $0x40] sm:$0xff]   ;;  %v9154_v34 = vld [vmem:[#allocation4 + $0x130] sm:$0xff] }
 0x4fb   : > { %v9308_v2 = vsel %vm2357_vm0, %v9305_v60, %v9307_v3  ;;  %v9313_v59 = vrot.slane %v16312_v61, 1  ;;  %v17207_v48 = vld [vmem:[#allocation10 + $0x220] sm:$0xff]  }
 0x4fc   : > { %10326 = vst [vmem:[#allocation4 + $0xc9] sm:$0xff] %v10262_v17  ;;  %v9466_v56 = vadd.f32 %v9308_v2, %v9147_v8  ;;  %v8992_v63 = vpop.f32.mrf.mxu1  ;;  %v19116_v46 = vpop.f32.mrf.mxu0  ;;  %10324 = vst [vmem:[#allocation4 + $0xb9] sm:$0xff] %v10260_v58  ;;  %v9152_v26 = vld [vmem:[#allocation4 + $0x120] sm:$0xff]  ;;  %v9153_v17 = vld [vmem:[#allocation4 + $0x128] sm:$0xff] }
 0x4fd   : > { %16744 = vmatpush3.bf16.msra.mxu1 %v17197_v13  ;;  %10325 = vst [vmem:[#allocation4 + $0xc1] sm:$0xff] %v10261_v42  ;;  %v9314_v45 = vsel %vm2357_vm0, %v9311_v1, %v9313_v59  ;;  %v9309_v62 = vrot.slane %v8992_v63, 1  ;;  %v10199_v30 = vld [vmem:[#allocation4 + $0xd1] sm:$0xff]  ;;  %v17222_v2 = vld [vmem:[#allocation10 + $0x208] sm:$0xff]  }
 0x4fe   : > { %16745 = vmatprep.subr.bf16.mxu1 %v17202_v39  ;;  %9530 = vst [vmem:[#allocation4 + $0xf8] sm:$0xff] %v9466_v56  ;;  %v9469_v19 = vadd.f32 %v9314_v45, %v9150_v24  ;;  %v16315_v47 = vpop.f32.mrf.mxu1  ;;  %v19119_v35 = vpop.f32.mrf.mxu0  ;;  %v10263_v0 = vadd.f32 %v19070_v44, %v10199_v30 }
 0x4ff   : > { %16602 = vmatmul.mubr.bf16.gmra.mxu1 %v17194_v25  ;;  %16682 = vmatmul.mubr.bf16.gmra.mxu0 %v17194_v25  ;;  %v9310_v23 = vsel %vm2357_vm0, %v9307_v3, %v9309_v62  ;;  %v9312_v4 = vsel %vm2357_vm0, %v9309_v62, %v9311_v1  ;;  %v9319_v50 = vrot.slane %v16315_v47, 1  ;;  %v17199_v62 = vld [vmem:[#allocation3 + $0x58] sm:$0xff]  }
 0x500   : > { %16605 = vmatprep.mubr.bf16.mxu1 %v17195_v54  ;;  %16685 = vmatprep.mubr.bf16.mxu0 %v17195_v54  ;;  %9533 = vst [vmem:[#allocation4 + $0x110] sm:$0xff] %v9469_v19  ;;  %v9467_v18 = vadd.f32 %v9310_v23, %v9148_v11  ;;  %v9468_v21 = vadd.f32 %v9312_v4, %v9149_v20  ;;  %v9005_v52 = vpop.f32.mrf.mxu1  ;;  %v19124_v36 = vpop.f32.mrf.mxu0  ;;  %10327 = vst [vmem:[#allocation4 + $0xd1] sm:$0xff] %v10263_v0  ;;  %v9155_v47 = vld [vmem:[#allocation4 + $0x138] sm:$0xff] }
 0x501   : > { %16746 = vmatpush3.bf16.msra.mxu1 %v17202_v39  ;;  %v10202_v60 = vld [vmem:[#allocation4 + $0xe9] sm:$0xff]  ;;  %v9315_v40 = vrot.slane %v9005_v52, 1  ;;  %v10200_v44 = vld [vmem:[#allocation4 + $0xd9] sm:$0xff]  ;;  %v10201_v33 = vld [vmem:[#allocation4 + $0xe1] sm:$0xff] }
 0x502   : > { %16747 = vmatprep.subr.bf16.mxu1 %v17207_v48  ;;  %v10266_v43 = vadd.f32 %v10202_v60, %v19099_v28  ;;  %9531 = vst [vmem:[#allocation4 + $0x100] sm:$0xff] %v9467_v18  ;;  %9532 = vst [vmem:[#allocation4 + $0x108] sm:$0xff] %v9468_v21  ;;  %v16316_v9 = vpop.f32.mrf.mxu1  ;;  %v19127_v16 = vpop.f32.mrf.mxu0  ;;  %v10264_v13 = vadd.f32 %v19078_v5, %v10200_v44  ;;  %v10265_v12 = vadd.f32 %v10201_v33, %v19091_v55  ;;  %v17198_v28 = vld [vmem:[#allocation3 + $0x50] sm:$0xff]   ;;  %v9156_v33 = vld [vmem:[#allocation4 + $0x140] sm:$0xff] }
 0x503   : > { %v9316_v10 = vsel %vm2357_vm0, %v9313_v59, %v9315_v40  ;;  %v9321_v49 = vrot.slane %v16316_v9, 1  ;;  %v17217_v55 = vld [vmem:[#allocation10 + $0x210] sm:$0xff]  }
 0x504   : > { %10330 = vst [vmem:[#allocation4 + $0xe9] sm:$0xff] %v10266_v43  ;;  %v9470_v31 = vadd.f32 %v9316_v10, %v9151_v57  ;;  %v9008_v6 = vpop.f32.mrf.mxu1  ;;  %v19132_v41 = vpop.f32.mrf.mxu0  ;;  %10328 = vst [vmem:[#allocation4 + $0xd9] sm:$0xff] %v10264_v13  ;;  %v9158_v18 = vld [vmem:[#allocation4 + $0x150] sm:$0xff]  ;;  %v9157_v43 = vld [vmem:[#allocation4 + $0x148] sm:$0xff] }
 0x505   : > { %16748 = vmatpush3.bf16.msra.mxu1 %v17207_v48  ;;  %10329 = vst [vmem:[#allocation4 + $0xe1] sm:$0xff] %v10265_v12  ;;  %v9322_v7 = vsel %vm2357_vm0, %v9319_v50, %v9321_v49  ;;  %v9317_v5 = vrot.slane %v9008_v6, 1  ;;  %v10203_v22 = vld [vmem:[#allocation4 + $0xf1] sm:$0xff] }
 0x506   : > { %16749 = vmatprep.subr.bf16.mxu1 %v17212_v29  ;;  %9534 = vst [vmem:[#allocation4 + $0x118] sm:$0xff] %v9470_v31  ;;  %v9473_v39 = vadd.f32 %v9322_v7, %v9154_v34  ;;  %v16319_v32 = vpop.f32.mrf.mxu1  ;;  %v19135_v3 = vpop.f32.mrf.mxu0  ;;  %v10267_v15 = vadd.f32 %v19086_v53, %v10203_v22  ;;  %v17201_v7 = vld [vmem:[#allocation3 + $0x68] sm:$0xff]  }
 0x507   : > { %16606 = vmatmul.mubr.bf16.gmra.mxu1 %v17196_v14  ;;  %16686 = vmatmul.mubr.bf16.gmra.mxu0 %v17196_v14  ;;  %v9318_v61 = vsel %vm2357_vm0, %v9315_v40, %v9317_v5  ;;  %v9320_v25 = vsel %vm2357_vm0, %v9317_v5, %v9319_v50  ;;  %v9327_v19 = vrot.slane %v16319_v32, 1 }
 0x508   : > { %16609 = vmatprep.mubr.bf16.mxu1 %v17198_v28  ;;  %16689 = vmatprep.mubr.bf16.mxu0 %v17198_v28  ;;  %9537 = vst [vmem:[#allocation4 + $0x130] sm:$0xff] %v9473_v39  ;;  %v9471_v58 = vadd.f32 %v9318_v61, %v9152_v26  ;;  %v9472_v42 = vadd.f32 %v9320_v25, %v9153_v17  ;;  %v9021_v1 = vpop.f32.mrf.mxu1  ;;  %v19140_v8 = vpop.f32.mrf.mxu0  ;;  %10331 = vst [vmem:[#allocation4 + $0xf1] sm:$0xff] %v10267_v15  ;;  %v9159_v39 = vld [vmem:[#allocation4 + $0x158] sm:$0xff] }
 0x509   : > { %16750 = vmatpush3.bf16.msra.mxu1 %v17212_v29  ;;  %v10206_v59 = vld [vmem:[#allocation4 + $0x109] sm:$0xff]  ;;  %v9323_v56 = vrot.slane %v9021_v1, 1  ;;  %v10204_v53 = vld [vmem:[#allocation4 + $0xf9] sm:$0xff]  ;;  %v10205_v63 = vld [vmem:[#allocation4 + $0x101] sm:$0xff] }
 0x50a   : > { %16751 = vmatprep.subr.bf16.mxu1 %v17217_v55  ;;  %v10270_v54 = vadd.f32 %v10206_v59, %v19116_v46  ;;  %9535 = vst [vmem:[#allocation4 + $0x120] sm:$0xff] %v9471_v58  ;;  %9536 = vst [vmem:[#allocation4 + $0x128] sm:$0xff] %v9472_v42  ;;  %v16320_v24 = vpop.f32.mrf.mxu1  ;;  %v19143_v45 = vpop.f32.mrf.mxu0  ;;  %v10268_v48 = vadd.f32 %v19094_v51, %v10204_v53  ;;  %v10269_v30 = vadd.f32 %v10205_v63, %v19108_v27  ;;  %v17200_v46 = vld [vmem:[#allocation3 + $0x60] sm:$0xff]   ;;  %v9161_v53 = vld [vmem:[#allocation4 + $0x168] sm:$0xff] }
 0x50b   : > { %v9324_v0 = vsel %vm2357_vm0, %v9321_v49, %v9323_v56  ;;  %v9329_v11 = vrot.slane %v16320_v24, 1  ;;  %v17227_v27 = vld [vmem:[#allocation10 + $0x200] sm:$0xff]  }
 0x50c   : > { %10334 = vst [vmem:[#allocation4 + $0x109] sm:$0xff] %v10270_v54  ;;  %v9474_v20 = vadd.f32 %v9324_v0, %v9155_v47  ;;  %v9024_v23 = vpop.f32.mrf.mxu1  ;;  %v19148_v4 = vpop.f32.mrf.mxu0  ;;  %10332 = vst [vmem:[#allocation4 + $0xf9] sm:$0xff] %v10268_v48 }
 0x50d   : > { %16752 = vmatpush3.bf16.msra.mxu1 %v17217_v55  ;;  %10333 = vst [vmem:[#allocation4 + $0x101] sm:$0xff] %v10269_v30  ;;  %v9330_v21 = vsel %vm2357_vm0, %v9327_v19, %v9329_v11  ;;  %v9325_v51 = vrot.slane %v9024_v23, 1  ;;  %v10207_v52 = vld [vmem:[#allocation4 + $0x111] sm:$0xff] }
 0x50e   : > { %16753 = vmatprep.subr.bf16.mxu1 %v17222_v2  ;;  %9538 = vst [vmem:[#allocation4 + $0x138] sm:$0xff] %v9474_v20  ;;  %v9477_v29 = vadd.f32 %v9330_v21, %v9158_v18  ;;  %v16323_v60 = vpop.f32.mrf.mxu1  ;;  %v19151_v40 = vpop.f32.mrf.mxu0  ;;  %v10271_v44 = vadd.f32 %v19102_v37, %v10207_v52 }
 0x50f   : > { %16610 = vmatmul.mubr.bf16.gmra.mxu1 %v17199_v62  ;;  %16690 = vmatmul.mubr.bf16.gmra.mxu0 %v17199_v62  ;;  %v9326_v9 = vsel %vm2357_vm0, %v9323_v56, %v9325_v51  ;;  %v9328_v14 = vsel %vm2357_vm0, %v9325_v51, %v9327_v19  ;;  %v9335_v22 = vrot.slane %v16323_v60, 1  ;;  %v9160_v56 = vld [vmem:[#allocation4 + $0x160] sm:$0xff] }
 0x510   : > { %16613 = vmatprep.mubr.bf16.mxu1 %v17200_v46  ;;  %16693 = vmatprep.mubr.bf16.mxu0 %v17200_v46  ;;  %9541 = vst [vmem:[#allocation4 + $0x150] sm:$0xff] %v9477_v29  ;;  %v9475_v13 = vadd.f32 %v9326_v9, %v9156_v33  ;;  %v9476_v12 = vadd.f32 %v9328_v14, %v9157_v43  ;;  %v9037_v50 = vpop.f32.mrf.mxu1  ;;  %v19156_v57 = vpop.f32.mrf.mxu0  ;;  %10335 = vst [vmem:[#allocation4 + $0x111] sm:$0xff] %v10271_v44  ;;  %v17204_v46 = vld [vmem:[#allocation3 + $0x78] sm:$0xff]   ;;  %v17205_v14 = vld [vmem:[#allocation3 + $0x80] sm:$0xff]  }
 0x511   : > { %16754 = vmatpush3.bf16.msra.mxu1 %v17222_v2  ;;  %v10210_v10 = vld [vmem:[#allocation4 + $0x129] sm:$0xff]  ;;  %v9331_v49 = vrot.slane %v9037_v50, 1  ;;  %v10208_v37 = vld [vmem:[#allocation4 + $0x119] sm:$0xff]  ;;  %v10209_v31 = vld [vmem:[#allocation4 + $0x121] sm:$0xff] }
 0x512   : > { %16755 = vmatprep.subr.bf16.mxu1 %v17227_v27  ;;  %v10274_v6 = vadd.f32 %v10210_v10, %v19132_v41  ;;  %9539 = vst [vmem:[#allocation4 + $0x140] sm:$0xff] %v9475_v13  ;;  %9540 = vst [vmem:[#allocation4 + $0x148] sm:$0xff] %v9476_v12  ;;  %v16324_v28 = vpop.f32.mrf.mxu1  ;;  %v19159_v34 = vpop.f32.mrf.mxu0  ;;  %v10272_v5 = vadd.f32 %v19111_v38, %v10208_v37  ;;  %v10273_v55 = vadd.f32 %v10209_v31, %v19124_v36  ;;  %v9162_v41 = vld [vmem:[#allocation4 + $0x170] sm:$0xff]  ;;  %v9164_v10 = vld [vmem:[#allocation4 + $0x180] sm:$0xff] }
 0x513   : > { %v9332_v32 = vsel %vm2357_vm0, %v9329_v11, %v9331_v49  ;;  %v9337_v15 = vrot.slane %v16324_v28, 1  ;;  %v17203_v38 = vld [vmem:[#allocation3 + $0x70] sm:$0xff]  }
 0x514   : > { %10338 = vst [vmem:[#allocation4 + $0x129] sm:$0xff] %v10274_v6  ;;  %v9478_v26 = vadd.f32 %v9332_v32, %v9159_v39  ;;  %v9040_v17 = vpop.f32.mrf.mxu1  ;;  %v19164_v61 = vpop.f32.mrf.mxu0  ;;  %10336 = vst [vmem:[#allocation4 + $0x119] sm:$0xff] %v10272_v5 }
 0x515   : > { %16756 = vmatpush3.bf16.msra.mxu1 %v17227_v27  ;;  %10337 = vst [vmem:[#allocation4 + $0x121] sm:$0xff] %v10273_v55  ;;  %v9338_v25 = vsel %vm2357_vm0, %v9335_v22, %v9337_v15  ;;  %v9333_v58 = vrot.slane %v9040_v17, 1  ;;  %v10211_v42 = vld [vmem:[#allocation4 + $0x131] sm:$0xff]  ;;  %v17206_v17 = vld [vmem:[#allocation3 + $0x88] sm:$0xff]  }
 0x516   : > { %9542 = vst [vmem:[#allocation4 + $0x158] sm:$0xff] %v9478_v26  ;;  %v9481_v36 = vadd.f32 %v9338_v25, %v9162_v41  ;;  %v16327_v1 = vpop.f32.mrf.mxu1  ;;  %v19167_v2 = vpop.f32.mrf.mxu0  ;;  %v10275_v59 = vadd.f32 %v19119_v35, %v10211_v42  ;;  %v9163_v27 = vld [vmem:[#allocation4 + $0x178] sm:$0xff] }
 0x517   : > { %16614 = vmatmul.mubr.bf16.gmra.mxu1 %v17201_v7  ;;  %16694 = vmatmul.mubr.bf16.gmra.mxu0 %v17201_v7  ;;  %v9334_v63 = vsel %vm2357_vm0, %v9331_v49, %v9333_v58  ;;  %v9336_v54 = vsel %vm2357_vm0, %v9333_v58, %v9335_v22  ;;  %v9343_v51 = vrot.slane %v16327_v1, 1  ;;  %v9165_v49 = vld [vmem:[#allocation4 + $0x188] sm:$0xff] }
 0x518   : > { %16617 = vmatprep.mubr.bf16.mxu1 %v17203_v38  ;;  %16697 = vmatprep.mubr.bf16.mxu0 %v17203_v38  ;;  %9545 = vst [vmem:[#allocation4 + $0x170] sm:$0xff] %v9481_v36  ;;  %v9479_v24 = vadd.f32 %v9334_v63, %v9160_v56  ;;  %v9480_v62 = vadd.f32 %v9336_v54, %v9161_v53  ;;  %v9053_v48 = vpop.f32.mrf.mxu1  ;;  %v19172_v30 = vpop.f32.mrf.mxu0  ;;  %10339 = vst [vmem:[#allocation4 + $0x131] sm:$0xff] %v10275_v59  ;;  %v9167_v38 = vld [vmem:[#allocation4 + $0x198] sm:$0xff]  ;;  %v17208_v54 = vld [vmem:[#allocation3 + $0x90] sm:$0xff]  }
 0x519   : > { %v10214_v19 = vld [vmem:[#allocation4 + $0x149] sm:$0xff]  ;;  %v9339_v47 = vrot.slane %v9053_v48, 1  ;;  %v10212_v0 = vld [vmem:[#allocation4 + $0x139] sm:$0xff]  ;;  %v10213_v11 = vld [vmem:[#allocation4 + $0x141] sm:$0xff] }
 0x51a   : > { %v10278_v35 = vadd.f32 %v10214_v19, %v19148_v4  ;;  %9543 = vst [vmem:[#allocation4 + $0x160] sm:$0xff] %v9479_v24  ;;  %9544 = vst [vmem:[#allocation4 + $0x168] sm:$0xff] %v9480_v62  ;;  %v16328_v20 = vpop.f32.mrf.mxu1  ;;  %v19175_v23 = vpop.f32.mrf.mxu0  ;;  %v10276_v18 = vadd.f32 %v19127_v16, %v10212_v0  ;;  %v10277_v21 = vadd.f32 %v10213_v11, %v19140_v8  ;;  %v9166_v4 = vld [vmem:[#allocation4 + $0x190] sm:$0xff]  ;;  %v9168_v19 = vld [vmem:[#allocation4 + $0x1a0] sm:$0xff] }
 0x51b   : > { %v9340_v52 = vsel %vm2357_vm0, %v9337_v15, %v9339_v47  ;;  %v9345_v29 = vrot.slane %v16328_v20, 1 }
 0x51c   : > { %10342 = vst [vmem:[#allocation4 + $0x149] sm:$0xff] %v10278_v35  ;;  %v9482_v60 = vadd.f32 %v9340_v52, %v9163_v27  ;;  %v9056_v44 = vpop.f32.mrf.mxu1  ;;  %v19180_v33 = vpop.f32.mrf.mxu0  ;;  %10340 = vst [vmem:[#allocation4 + $0x139] sm:$0xff] %v10276_v18 }
 0x51d   : > { %10341 = vst [vmem:[#allocation4 + $0x141] sm:$0xff] %v10277_v21  ;;  %v9346_v43 = vsel %vm2357_vm0, %v9343_v51, %v9345_v29  ;;  %v9341_v9 = vrot.slane %v9056_v44, 1  ;;  %v10215_v16 = vld [vmem:[#allocation4 + $0x151] sm:$0xff] }
 0x51e   : > { %9546 = vst [vmem:[#allocation4 + $0x178] sm:$0xff] %v9482_v60  ;;  %v9485_v8 = vadd.f32 %v9346_v43, %v9166_v4  ;;  %v16331_v13 = vpop.f32.mrf.mxu1  ;;  %v19183_v12 = vpop.f32.mrf.mxu0  ;;  %v10279_v50 = vadd.f32 %v19135_v3, %v10215_v16  ;;  %v17209_v44 = vld [vmem:[#allocation3 + $0x98] sm:$0xff]  }
 0x51f   : > { %16618 = vmatmul.mubr.bf16.gmra.mxu1 %v17204_v46  ;;  %16698 = vmatmul.mubr.bf16.gmra.mxu0 %v17204_v46  ;;  %v9342_v37 = vsel %vm2357_vm0, %v9339_v47, %v9341_v9  ;;  %v9344_v31 = vsel %vm2357_vm0, %v9341_v9, %v9343_v51  ;;  %v9351_v58 = vrot.slane %v16331_v13, 1  ;;  %v9169_v47 = vld [vmem:[#allocation4 + $0x1a8] sm:$0xff] }
 0x520   : > { %16621 = vmatprep.mubr.bf16.mxu1 %v17205_v14  ;;  %16701 = vmatprep.mubr.bf16.mxu0 %v17205_v14  ;;  %9549 = vst [vmem:[#allocation4 + $0x190] sm:$0xff] %v9485_v8  ;;  %v9483_v6 = vadd.f32 %v9342_v37, %v9164_v10  ;;  %v9484_v28 = vadd.f32 %v9344_v31, %v9165_v49  ;;  %v9069_v7 = vpop.f32.mrf.mxu1  ;;  %v19188_v5 = vpop.f32.mrf.mxu0  ;;  %10343 = vst [vmem:[#allocation4 + $0x151] sm:$0xff] %v10279_v50  ;;  %v9171_v14 = vld [vmem:[#allocation4 + $0x1b8] sm:$0xff]  ;;  %v17210_v31 = vld [vmem:[#allocation3 + $0xa0] sm:$0xff]  }
 0x521   : > { %v10218_v55 = vld [vmem:[#allocation4 + $0x169] sm:$0xff]  ;;  %v9347_v22 = vrot.slane %v9069_v7, 1  ;;  %v10216_v39 = vld [vmem:[#allocation4 + $0x159] sm:$0xff]  ;;  %v10217_v32 = vld [vmem:[#allocation4 + $0x161] sm:$0xff] }
 0x522   : > { %v10282_v3 = vadd.f32 %v10218_v55, %v19164_v61  ;;  %9547 = vst [vmem:[#allocation4 + $0x180] sm:$0xff] %v9483_v6  ;;  %9548 = vst [vmem:[#allocation4 + $0x188] sm:$0xff] %v9484_v28  ;;  %v16332_v15 = vpop.f32.mrf.mxu1  ;;  %v19191_v26 = vpop.f32.mrf.mxu0  ;;  %v10280_v41 = vadd.f32 %v19143_v45, %v10216_v39  ;;  %v10281_v25 = vadd.f32 %v10217_v32, %v19156_v57  ;;  %v9170_v61 = vld [vmem:[#allocation4 + $0x1b0] sm:$0xff]  ;;  %v9172_v55 = vld [vmem:[#allocation4 + $0x1c0] sm:$0xff] }
 0x523   : > { %v9348_v42 = vsel %vm2357_vm0, %v9345_v29, %v9347_v22  ;;  %v9353_v36 = vrot.slane %v16332_v15, 1 }
 0x524   : > { %10346 = vst [vmem:[#allocation4 + $0x169] sm:$0xff] %v10282_v3  ;;  %v9486_v1 = vadd.f32 %v9348_v42, %v9167_v38  ;;  %v9072_v59 = vpop.f32.mrf.mxu1  ;;  %v19196_v56 = vpop.f32.mrf.mxu0  ;;  %10344 = vst [vmem:[#allocation4 + $0x159] sm:$0xff] %v10280_v41 }
 0x525   : > { %10345 = vst [vmem:[#allocation4 + $0x161] sm:$0xff] %v10281_v25  ;;  %v9354_v53 = vsel %vm2357_vm0, %v9351_v58, %v9353_v36  ;;  %v9349_v63 = vrot.slane %v9072_v59, 1  ;;  %v10219_v45 = vld [vmem:[#allocation4 + $0x171] sm:$0xff]  ;;  %v17211_v59 = vld [vmem:[#allocation3 + $0xa8] sm:$0xff]  }
 0x526   : > { %9550 = vst [vmem:[#allocation4 + $0x198] sm:$0xff] %v9486_v1  ;;  %v9489_v57 = vadd.f32 %v9354_v53, %v9170_v61  ;;  %v16335_v24 = vpop.f32.mrf.mxu1  ;;  %v19199_v62 = vpop.f32.mrf.mxu0  ;;  %v10283_v48 = vadd.f32 %v19151_v40, %v10219_v45 }
 0x527   : > { %16622 = vmatmul.mubr.bf16.gmra.mxu1 %v17206_v17  ;;  %16702 = vmatmul.mubr.bf16.gmra.mxu0 %v17206_v17  ;;  %v9350_v0 = vsel %vm2357_vm0, %v9347_v22, %v9349_v63  ;;  %v9352_v11 = vsel %vm2357_vm0, %v9349_v63, %v9351_v58  ;;  %v9359_v9 = vrot.slane %v16335_v24, 1  ;;  %v9173_v22 = vld [vmem:[#allocation4 + $0x1c8] sm:$0xff] }
 0x528   : > { %16625 = vmatprep.mubr.bf16.mxu1 %v17208_v54  ;;  %16705 = vmatprep.mubr.bf16.mxu0 %v17208_v54  ;;  %9553 = vst [vmem:[#allocation4 + $0x1b0] sm:$0xff] %v9489_v57  ;;  %v9487_v35 = vadd.f32 %v9350_v0, %v9168_v19  ;;  %v9488_v20 = vadd.f32 %v9352_v11, %v9169_v47  ;;  %v9085_v46 = vpop.f32.mrf.mxu1  ;;  %v19204_v18 = vpop.f32.mrf.mxu0  ;;  %10347 = vst [vmem:[#allocation4 + $0x171] sm:$0xff] %v10283_v48  ;;  %v9175_v54 = vld [vmem:[#allocation4 + $0x1d8] sm:$0xff]  ;;  %v9178_v47 = vld [vmem:[#allocation4 + $0x1f0] sm:$0xff] }
 0x529   : > { %v10222_v21 = vld [vmem:[#allocation4 + $0x189] sm:$0xff]  ;;  %v9355_v51 = vrot.slane %v9085_v46, 1  ;;  %v10220_v27 = vld [vmem:[#allocation4 + $0x179] sm:$0xff]  ;;  %v10221_v52 = vld [vmem:[#allocation4 + $0x181] sm:$0xff] }
 0x52a   : > { %v10286_v40 = vadd.f32 %v10222_v21, %v19180_v33  ;;  %9551 = vst [vmem:[#allocation4 + $0x1a0] sm:$0xff] %v9487_v35  ;;  %9552 = vst [vmem:[#allocation4 + $0x1a8] sm:$0xff] %v9488_v20  ;;  %v16336_v29 = vpop.f32.mrf.mxu1  ;;  %v19207_v60 = vpop.f32.mrf.mxu0  ;;  %v10284_v4 = vadd.f32 %v19159_v34, %v10220_v27  ;;  %v10285_v43 = vadd.f32 %v10221_v52, %v19172_v30  ;;  %v9174_v33 = vld [vmem:[#allocation4 + $0x1d0] sm:$0xff]  ;;  %v9179_v48 = vld [vmem:[#allocation4 + $0x1f8] sm:$0x7f] }
 0x52b   : > { %v9356_v16 = vsel %vm2357_vm0, %v9353_v36, %v9355_v51  ;;  %v9361_v8 = vrot.slane %v16336_v29, 1  ;;  %v17213_v35 = vld [vmem:[#allocation3 + $0xb0] sm:$0xff]   ;;  %v9176_v27 = vld [vmem:[#allocation4 + $0x1e0] sm:$0xff]  ;;  %v9177_v52 = vld [vmem:[#allocation4 + $0x1e8] sm:$0xff] }
 0x52c   : > { %10350 = vst [vmem:[#allocation4 + $0x189] sm:$0xff] %v10286_v40  ;;  %v9490_v13 = vadd.f32 %v9356_v16, %v9171_v14  ;;  %v9088_v50 = vpop.f32.mrf.mxu1  ;;  %v19212_v10 = vpop.f32.mrf.mxu0  ;;  %10348 = vst [vmem:[#allocation4 + $0x179] sm:$0xff] %v10284_v4 }
 0x52d   : > { %10349 = vst [vmem:[#allocation4 + $0x181] sm:$0xff] %v10285_v43  ;;  %v9362_v49 = vsel %vm2357_vm0, %v9359_v9, %v9361_v8  ;;  %v9357_v37 = vrot.slane %v9088_v50, 1  ;;  %v10223_v34 = vld [vmem:[#allocation4 + $0x191] sm:$0xff] }
 0x52e   : > { %9554 = vst [vmem:[#allocation4 + $0x1b8] sm:$0xff] %v9490_v13  ;;  %v9493_v30 = vadd.f32 %v9362_v49, %v9174_v33  ;;  %v16339_v6 = vpop.f32.mrf.mxu1  ;;  %v19215_v28 = vpop.f32.mrf.mxu0  ;;  %v10287_v7 = vadd.f32 %v19167_v2, %v10223_v34  ;;  %v17214_v49 = vld [vmem:[#allocation3 + $0xb8] sm:$0xff]   ;;  %v10721_v34 = vld [vmem:[#allocation4 + $0x10] sm:$0xff] }
 0x52f   : > { %16626 = vmatmul.mubr.bf16.gmra.mxu1 %v17209_v44  ;;  %16706 = vmatmul.mubr.bf16.gmra.mxu0 %v17209_v44  ;;  %v9358_v39 = vsel %vm2357_vm0, %v9355_v51, %v9357_v37  ;;  %v9360_v32 = vsel %vm2357_vm0, %v9357_v37, %v9359_v9  ;;  %v9367_v63 = vrot.slane %v16339_v6, 1 }
 0x530   : > { %16629 = vmatprep.mubr.bf16.mxu1 %v17210_v31  ;;  %16709 = vmatprep.mubr.bf16.mxu0 %v17210_v31  ;;  %9557 = vst [vmem:[#allocation4 + $0x1d0] sm:$0xff] %v9493_v30  ;;  %v9491_v3 = vadd.f32 %v9358_v39, %v9172_v55  ;;  %v9492_v15 = vadd.f32 %v9360_v32, %v9173_v22  ;;  %v9101_v17 = vpop.f32.mrf.mxu1  ;;  %v19220_v41 = vpop.f32.mrf.mxu0  ;;  %10351 = vst [vmem:[#allocation4 + $0x191] sm:$0xff] %v10287_v7  ;;  %v10720_v22 = vld [vmem:[#allocation4 + $0x8] sm:$0xff] }
 0x531   : > { %v10226_v25 = vld [vmem:[#allocation4 + $0x1a9] sm:$0xff]  ;;  %v9363_v58 = vrot.slane %v9101_v17, 1  ;;  %v10224_v38 = vld [vmem:[#allocation4 + $0x199] sm:$0xff]  ;;  %v10225_v42 = vld [vmem:[#allocation4 + $0x1a1] sm:$0xff] }
 0x532   : > { %v10290_v2 = vadd.f32 %v10226_v25, %v19196_v56  ;;  %9555 = vst [vmem:[#allocation4 + $0x1c0] sm:$0xff] %v9491_v3  ;;  %9556 = vst [vmem:[#allocation4 + $0x1c8] sm:$0xff] %v9492_v15  ;;  %v16340_v36 = vpop.f32.mrf.mxu1  ;;  %v19223_v1 = vpop.f32.mrf.mxu0  ;;  %v10288_v61 = vadd.f32 %v19175_v23, %v10224_v38  ;;  %v10289_v53 = vadd.f32 %v10225_v42, %v19188_v5  ;;  %v17215_v17 = vld [vmem:[#allocation3 + $0xc0] sm:$0xff]  }
 0x533   : > { %v9364_v45 = vsel %vm2357_vm0, %v9361_v8, %v9363_v58  ;;  %v9369_v57 = vrot.slane %v16340_v36, 1 }
 0x534   : > { %10354 = vst [vmem:[#allocation4 + $0x1a9] sm:$0xff] %v10290_v2  ;;  %v9494_v24 = vadd.f32 %v9364_v45, %v9175_v54  ;;  %v9104_v19 = vpop.f32.mrf.mxu1  ;;  %v19228_v56 = vpop.f32.mrf.mxu0  ;;  %10352 = vst [vmem:[#allocation4 + $0x199] sm:$0xff] %v10288_v61 }
 0x535   : > { %10353 = vst [vmem:[#allocation4 + $0x1a1] sm:$0xff] %v10289_v53  ;;  %v9370_v0 = vsel %vm2357_vm0, %v9367_v63, %v9369_v57  ;;  %v9498_v11 = vadd.f32 %v9369_v57, %v9179_v48  ;;  %v9365_v23 = vrot.slane %v9104_v19, 1  ;;  %v10227_v5 = vld [vmem:[#allocation4 + $0x1b1] sm:$0xff] }
 0x536   : > { %9558 = vst [vmem:[#allocation4 + $0x1d8] sm:$0xff] %v9494_v24  ;;  %v9497_v20 = vadd.f32 %v9370_v0, %v9178_v47  ;;  %v16439_v46 = vpop.f32.mrf.mxu1  ;;  %v16519_v21 = vpop.f32.mrf.mxu0  ;;  %v10291_v51 = vadd.f32 %v19183_v12, %v10227_v5 }
 0x537   : > { %16630 = vmatmul.mubr.bf16.gmra.mxu1 %v17211_v59  ;;  %16710 = vmatmul.mubr.bf16.gmra.mxu0 %v17211_v59  ;;  %9562 = vst [vmem:[#allocation4 + $0x1f8] sm:$0x7f] %v9498_v11  ;;  %v9366_v40 = vsel %vm2357_vm0, %v9363_v58, %v9365_v23  ;;  %v9368_v29 = vsel %vm2357_vm0, %v9365_v23, %v9367_v63  ;;  %v11396_v16 = vrot.slane %v16519_v21, 1  ;;  %v10722_v63 = vld [vmem:[#allocation4 + $0x18] sm:$0xff] }
 0x538   : > { %16633 = vmatprep.mubr.bf16.mxu1 %v17213_v35  ;;  %16713 = vmatprep.mubr.bf16.mxu0 %v17213_v35  ;;  %9561 = vst [vmem:[#allocation4 + $0x1f0] sm:$0xff] %v9497_v20  ;;  %v9495_v44 = vadd.f32 %v9366_v40, %v9176_v27  ;;  %v9496_v4 = vadd.f32 %v9368_v29, %v9177_v52  ;;  %v10464_v43 = vpop.f32.mrf.mxu1  ;;  %v11010_v9 = vpop.f32.mrf.mxu0  ;;  %10355 = vst [vmem:[#allocation4 + $0x1b1] sm:$0xff] %v10291_v51  ;;  %v17216_v20 = vld [vmem:[#allocation3 + $0xc8] sm:$0xff]  }
 0x539   : > { %v10230_v14 = vld [vmem:[#allocation4 + $0x1c9] sm:$0xff]  ;;  %v10228_v8 = vld [vmem:[#allocation4 + $0x1b9] sm:$0xff]  ;;  %v10229_v13 = vld [vmem:[#allocation4 + $0x1c1] sm:$0xff]  ;;  %v11393_v30 = vrot.slane %v11010_v9, 1  ;;  %v10785_v7 = vadd.f32 %v16439_v46, %v10721_v34 }
 0x53a   : > { %v10294_v12 = vadd.f32 %v10230_v14, %v19212_v10  ;;  %9559 = vst [vmem:[#allocation4 + $0x1e0] sm:$0xff] %v9495_v44  ;;  %9560 = vst [vmem:[#allocation4 + $0x1e8] sm:$0xff] %v9496_v4  ;;  %v16440_v50 = vpop.f32.mrf.mxu1  ;;  %v16520_v33 = vpop.f32.mrf.mxu0  ;;  %v10292_v37 = vadd.f32 %v19191_v26, %v10228_v8  ;;  %v10293_v31 = vadd.f32 %v10229_v13, %v19204_v18  ;;  %v10719_v10 = vld [vmem:[#allocation4] sm:$0xff]  ;;  %v17218_v14 = vld [vmem:[#allocation3 + $0xd0] sm:$0xff]  }
 0x53b   : > { %v11398_v6 = vrot.slane %v16520_v33, 1  ;;  %v10783_v58 = vadd.f32 %v10719_v10, %v10464_v43  ;;  %v10786_v23 = vadd.f32 %v16440_v50, %v10722_v63  ;;  %v10723_v4 = vld [vmem:[#allocation4 + $0x20] sm:$0xff]  ;;  %v10726_v34 = vld [vmem:[#allocation4 + $0x38] sm:$0xff]  ;;  %v10729_v10 = vld [vmem:[#allocation4 + $0x50] sm:$0xff] }
 0x53c   : > { %10358 = vst [vmem:[#allocation4 + $0x1c9] sm:$0xff] %v10294_v12  ;;  %v10467_v55 = vpop.f32.mrf.mxu1  ;;  %v11013_v39 = vpop.f32.mrf.mxu0  ;;  %10356 = vst [vmem:[#allocation4 + $0x1b9] sm:$0xff] %v10292_v37 }
 0x53d   : > { %10357 = vst [vmem:[#allocation4 + $0x1c1] sm:$0xff] %v10293_v31  ;;  %v11399_v32 = vsel %vm2357_vm0, %v11396_v16, %v11398_v6  ;;  %v10784_v3 = vadd.f32 %v10720_v22, %v10467_v55  ;;  %v11394_v15 = vrot.slane %v11013_v39, 1  ;;  %v10231_v25 = vld [vmem:[#allocation4 + $0x1d1] sm:$0xff] }
 0x53e   : > { %v10236_v26 = vld [vmem:[#allocation4 + $0x1f9] sm:$0x7f]  ;;  %v11586_v18 = vadd.f32 %v11399_v32, %v10785_v7  ;;  %v16443_v38 = vpop.f32.mrf.mxu1  ;;  %v10295_v2 = vadd.f32 %v19199_v62, %v10231_v25 }
 0x53f   : > { %16634 = vmatmul.mubr.bf16.gmra.mxu1 %v17214_v49  ;;  %16714 = vmatmul.mubr.bf16.gmra.mxu0 %v17214_v49  ;;  %v16523_v42 = vpop.f32.mrf.mxu0  ;;  %v10300_v36 = vadd.f32 %v19223_v1, %v10236_v26  ;;  %v11395_v59 = vsel %vm2357_vm0, %v11393_v30, %v11394_v15  ;;  %v11397_v61 = vsel %vm2357_vm0, %v11394_v15, %v11396_v16  ;;  %v10235_v53 = vld [vmem:[#allocation4 + $0x1f1] sm:$0xff]  ;;  %v10728_v26 = vld [vmem:[#allocation4 + $0x48] sm:$0xff] }
 0x540   : > { %16637 = vmatprep.mubr.bf16.mxu1 %v17215_v17  ;;  %11650 = vst [vmem:[#allocation4 + $0x10] sm:$0xff] %v11586_v18  ;;  %v11584_v54 = vadd.f32 %v11395_v59, %v10783_v58  ;;  %v11585_v45 = vadd.f32 %v11397_v61, %v10784_v3  ;;  %16717 = vmatprep.mubr.bf16.mxu0 %v17215_v17  ;;  %v10480_v57 = vpop.f32.mrf.mxu1  ;;  %10359 = vst [vmem:[#allocation4 + $0x1d1] sm:$0xff] %v10295_v2  ;;  %v11404_v19 = vrot.slane %v16523_v42, 1  ;;  %v17219_v39 = vld [vmem:[#allocation3 + $0xd8] sm:$0xff]   ;;  %v10727_v18 = vld [vmem:[#allocation4 + $0x40] sm:$0xff] }
 0x541   : > { %v11026_v24 = vpop.f32.mrf.mxu0  ;;  %v10299_v48 = vadd.f32 %v19215_v28, %v10235_v53  ;;  %10364 = vst [vmem:[#allocation4 + $0x1f9] sm:$0x7f] %v10300_v36  ;;  %v10234_v62 = vld [vmem:[#allocation4 + $0x1e9] sm:$0xff]  ;;  %v10232_v47 = vld [vmem:[#allocation4 + $0x1d9] sm:$0xff]  ;;  %v10233_v0 = vld [vmem:[#allocation4 + $0x1e1] sm:$0xff]  ;;  %v10787_v16 = vadd.f32 %v10723_v4, %v10480_v57 }
 0x542   : > { %v11400_v1 = vrot.slane %v11026_v24, 1  ;;  %v10298_v11 = vadd.f32 %v10234_v62, %v19228_v56  ;;  %11648 = vst [vmem:[#allocation4] sm:$0xff] %v11584_v54  ;;  %11649 = vst [vmem:[#allocation4 + $0x8] sm:$0xff] %v11585_v45  ;;  %v16444_v35 = vpop.f32.mrf.mxu1  ;;  %v10296_v46 = vadd.f32 %v19207_v60, %v10232_v47  ;;  %v10297_v21 = vadd.f32 %v10233_v0, %v19220_v41  ;;  %v10725_v28 = vld [vmem:[#allocation4 + $0x30] sm:$0xff]  ;;  %v10724_v56 = vld [vmem:[#allocation4 + $0x28] sm:$0xff] }
 0x543   : > { %v16524_v5 = vpop.f32.mrf.mxu0  ;;  %10363 = vst [vmem:[#allocation4 + $0x1f1] sm:$0xff] %v10299_v48  ;;  %v10789_v52 = vadd.f32 %v16443_v38, %v10725_v28  ;;  %v10790_v7 = vadd.f32 %v16444_v35, %v10726_v34  ;;  %v17220_v36 = vld [vmem:[#allocation3 + $0xe0] sm:$0xff]   ;;  %v17221_v35 = vld [vmem:[#allocation3 + $0xe8] sm:$0xff]   ;;  %v17223_v4 = vld [vmem:[#allocation3 + $0xf0] sm:$0xff]  }
 0x544   : > { %v11401_v51 = vsel %vm2357_vm0, %v11398_v6, %v11400_v1  ;;  %v11406_v27 = vrot.slane %v16524_v5, 1  ;;  %10362 = vst [vmem:[#allocation4 + $0x1e9] sm:$0xff] %v10298_v11  ;;  %v10483_v29 = vpop.f32.mrf.mxu1  ;;  %10360 = vst [vmem:[#allocation4 + $0x1d9] sm:$0xff] %v10296_v46  ;;  %v10733_v5 = vld [vmem:[#allocation4 + $0x70] sm:$0xff] }
 0x545   : > { %v11587_v40 = vadd.f32 %v11401_v51, %v10786_v23  ;;  %v11029_v44 = vpop.f32.mrf.mxu0  ;;  %10361 = vst [vmem:[#allocation4 + $0x1e1] sm:$0xff] %v10297_v21  ;;  %v10788_v9 = vadd.f32 %v10724_v56, %v10483_v29 }
 0x546   : > { %v11407_v43 = vsel %vm2357_vm0, %v11404_v19, %v11406_v27  ;;  %v11402_v60 = vrot.slane %v11029_v44, 1 }
 0x547   : > { %11651 = vst [vmem:[#allocation4 + $0x18] sm:$0xff] %v11587_v40  ;;  %v11590_v41 = vadd.f32 %v11407_v43, %v10789_v52  ;;  %v16447_v8 = vpop.f32.mrf.mxu1  ;;  %16638 = vmatmul.mubr.bf16.gmra.mxu1 %v17216_v20  ;;  %16718 = vmatmul.mubr.bf16.gmra.mxu0 %v17216_v20  ;;  %v16527_v13 = vpop.f32.mrf.mxu0  ;;  %v10731_v40 = vld [vmem:[#allocation4 + $0x60] sm:$0xff] }
 0x548   : > { %v11403_v12 = vsel %vm2357_vm0, %v11400_v1, %v11402_v60  ;;  %v11405_v50 = vsel %vm2357_vm0, %v11402_v60, %v11404_v19  ;;  %16641 = vmatprep.mubr.bf16.mxu1 %v17218_v14  ;;  %16721 = vmatprep.mubr.bf16.mxu0 %v17218_v14  ;;  %v11412_v30 = vrot.slane %v16527_v13, 1  ;;  %v10793_v15 = vadd.f32 %v16447_v8, %v10729_v10  ;;  %v10730_v19 = vld [vmem:[#allocation4 + $0x58] sm:$0xff] }
 0x549   : > { %11654 = vst [vmem:[#allocation4 + $0x30] sm:$0xff] %v11590_v41  ;;  %v11588_v33 = vadd.f32 %v11403_v12, %v10787_v16  ;;  %v11589_v49 = vadd.f32 %v11405_v50, %v10788_v9  ;;  %v10496_v37 = vpop.f32.mrf.mxu1  ;;  %v11042_v31 = vpop.f32.mrf.mxu0 }
 0x54a   : > { %v11408_v6 = vrot.slane %v11042_v31, 1  ;;  %v10791_v59 = vadd.f32 %v10727_v18, %v10496_v37  ;;  %v17225_v18 = vld [vmem:[#allocation3 + $0x100] sm:$0xff]  }
 0x54b   : > { %11652 = vst [vmem:[#allocation4 + $0x20] sm:$0xff] %v11588_v33  ;;  %11653 = vst [vmem:[#allocation4 + $0x28] sm:$0xff] %v11589_v49  ;;  %v16448_v55 = vpop.f32.mrf.mxu1  ;;  %v16528_v22 = vpop.f32.mrf.mxu0  ;;  %v10734_v33 = vld [vmem:[#allocation4 + $0x78] sm:$0xff] }
 0x54c   : > { %v11409_v32 = vsel %vm2357_vm0, %v11406_v27, %v11408_v6  ;;  %v11414_v3 = vrot.slane %v16528_v22, 1  ;;  %v10794_v0 = vadd.f32 %v16448_v55, %v10730_v19  ;;  %v10732_v27 = vld [vmem:[#allocation4 + $0x68] sm:$0xff] }
 0x54d   : > { %v11591_v17 = vadd.f32 %v11409_v32, %v10790_v7  ;;  %v10499_v25 = vpop.f32.mrf.mxu1  ;;  %v11045_v58 = vpop.f32.mrf.mxu0  ;;  %v10737_v7 = vld [vmem:[#allocation4 + $0x90] sm:$0xff] }
 0x54e   : > { %v11415_v38 = vsel %vm2357_vm0, %v11412_v30, %v11414_v3  ;;  %v10792_v42 = vadd.f32 %v10728_v26, %v10499_v25  ;;  %v11410_v2 = vrot.slane %v11045_v58, 1 }
 0x54f   : > { %11655 = vst [vmem:[#allocation4 + $0x38] sm:$0xff] %v11591_v17  ;;  %v11594_v61 = vadd.f32 %v11415_v38, %v10793_v15  ;;  %v16451_v53 = vpop.f32.mrf.mxu1  ;;  %16642 = vmatmul.mubr.bf16.gmra.mxu1 %v17219_v39  ;;  %16722 = vmatmul.mubr.bf16.gmra.mxu0 %v17219_v39  ;;  %v16531_v63 = vpop.f32.mrf.mxu0  ;;  %v10735_v17 = vld [vmem:[#allocation4 + $0x80] sm:$0xff] }
 0x550   : > { %v11411_v54 = vsel %vm2357_vm0, %v11408_v6, %v11410_v2  ;;  %v11413_v45 = vsel %vm2357_vm0, %v11410_v2, %v11412_v30  ;;  %16645 = vmatprep.mubr.bf16.mxu1 %v17220_v36  ;;  %16725 = vmatprep.mubr.bf16.mxu0 %v17220_v36  ;;  %v11420_v1 = vrot.slane %v16531_v63, 1  ;;  %v10797_v21 = vadd.f32 %v16451_v53, %v10733_v5  ;;  %v17224_v6 = vld [vmem:[#allocation3 + $0xf8] sm:$0xff]  }
 0x551   : > { %11658 = vst [vmem:[#allocation4 + $0x50] sm:$0xff] %v11594_v61  ;;  %v11592_v57 = vadd.f32 %v11411_v54, %v10791_v59  ;;  %v11593_v24 = vadd.f32 %v11413_v45, %v10792_v42  ;;  %v10512_v48 = vpop.f32.mrf.mxu1  ;;  %v11058_v62 = vpop.f32.mrf.mxu0 }
 0x552   : > { %v11416_v47 = vrot.slane %v11058_v62, 1  ;;  %v10795_v43 = vadd.f32 %v10731_v40, %v10512_v48 }
 0x553   : > { %11656 = vst [vmem:[#allocation4 + $0x40] sm:$0xff] %v11592_v57  ;;  %11657 = vst [vmem:[#allocation4 + $0x48] sm:$0xff] %v11593_v24  ;;  %v16452_v11 = vpop.f32.mrf.mxu1  ;;  %v16532_v23 = vpop.f32.mrf.mxu0  ;;  %v10738_v57 = vld [vmem:[#allocation4 + $0x98] sm:$0xff] }
 0x554   : > { %v11417_v20 = vsel %vm2357_vm0, %v11414_v3, %v11416_v47  ;;  %v11422_v46 = vrot.slane %v16532_v23, 1  ;;  %v10798_v31 = vadd.f32 %v16452_v11, %v10734_v33  ;;  %v10736_v3 = vld [vmem:[#allocation4 + $0x88] sm:$0xff] }
 0x555   : > { %v11595_v28 = vadd.f32 %v11417_v20, %v10794_v0  ;;  %v10515_v51 = vpop.f32.mrf.mxu1  ;;  %v11061_v52 = vpop.f32.mrf.mxu0  ;;  %v10741_v0 = vld [vmem:[#allocation4 + $0xb0] sm:$0xff] }
 0x556   : > { %v11423_v29 = vsel %vm2357_vm0, %v11420_v1, %v11422_v46  ;;  %v10796_v56 = vadd.f32 %v10732_v27, %v10515_v51  ;;  %v11418_v44 = vrot.slane %v11061_v52, 1  ;;  %v10739_v51 = vld [vmem:[#allocation4 + $0xa0] sm:$0xff] }
 0x557   : > { %11659 = vst [vmem:[#allocation4 + $0x58] sm:$0xff] %v11595_v28  ;;  %v11598_v9 = vadd.f32 %v11423_v29, %v10797_v21  ;;  %v16455_v60 = vpop.f32.mrf.mxu1  ;;  %16646 = vmatmul.mubr.bf16.gmra.mxu1 %v17221_v35  ;;  %16726 = vmatmul.mubr.bf16.gmra.mxu0 %v17221_v35  ;;  %v16535_v14 = vpop.f32.mrf.mxu0  ;;  %v17228_v35 = vld [vmem:[#allocation3 + $0x110] sm:$0xff]   ;;  %v10740_v21 = vld [vmem:[#allocation4 + $0xa8] sm:$0xff] }
 0x558   : > { %v11419_v16 = vsel %vm2357_vm0, %v11416_v47, %v11418_v44  ;;  %v11421_v41 = vsel %vm2357_vm0, %v11418_v44, %v11420_v1  ;;  %16649 = vmatprep.mubr.bf16.mxu1 %v17223_v4  ;;  %16729 = vmatprep.mubr.bf16.mxu0 %v17223_v4  ;;  %v11428_v49 = vrot.slane %v16535_v14, 1  ;;  %v10801_v39 = vadd.f32 %v16455_v60, %v10737_v7  ;;  %v17226_v47 = vld [vmem:[#allocation3 + $0x108] sm:$0xff]  }
 0x559   : > { %11662 = vst [vmem:[#allocation4 + $0x70] sm:$0xff] %v11598_v9  ;;  %v11596_v8 = vadd.f32 %v11419_v16, %v10795_v43  ;;  %v11597_v13 = vadd.f32 %v11421_v41, %v10796_v56  ;;  %v10528_v12 = vpop.f32.mrf.mxu1  ;;  %v11074_v50 = vpop.f32.mrf.mxu0 }
 0x55a   : > { %v11424_v37 = vrot.slane %v11074_v50, 1  ;;  %v10799_v38 = vadd.f32 %v10735_v17, %v10528_v12 }
 0x55b   : > { %11660 = vst [vmem:[#allocation4 + $0x60] sm:$0xff] %v11596_v8  ;;  %11661 = vst [vmem:[#allocation4 + $0x68] sm:$0xff] %v11597_v13  ;;  %v16456_v34 = vpop.f32.mrf.mxu1  ;;  %v16536_v30 = vpop.f32.mrf.mxu0  ;;  %v10742_v8 = vld [vmem:[#allocation4 + $0xb8] sm:$0xff] }
 0x55c   : > { %v11425_v55 = vsel %vm2357_vm0, %v11422_v46, %v11424_v37  ;;  %v11430_v22 = vrot.slane %v16536_v30, 1  ;;  %v10802_v62 = vadd.f32 %v16456_v34, %v10738_v57 }
 0x55d   : > { %v11599_v10 = vadd.f32 %v11425_v55, %v10798_v31  ;;  %v10531_v32 = vpop.f32.mrf.mxu1  ;;  %v11077_v15 = vpop.f32.mrf.mxu0  ;;  %v10745_v31 = vld [vmem:[#allocation4 + $0xd0] sm:$0xff] }
 0x55e   : > { %v11431_v25 = vsel %vm2357_vm0, %v11428_v49, %v11430_v22  ;;  %v10800_v26 = vadd.f32 %v10736_v3, %v10531_v32  ;;  %v11426_v58 = vrot.slane %v11077_v15, 1 }
 0x55f   : > { %11663 = vst [vmem:[#allocation4 + $0x78] sm:$0xff] %v11599_v10  ;;  %v11602_v42 = vadd.f32 %v11431_v25, %v10801_v39  ;;  %v16459_v2 = vpop.f32.mrf.mxu1  ;;  %16650 = vmatmul.mubr.bf16.gmra.mxu1 %v17224_v6  ;;  %16730 = vmatmul.mubr.bf16.gmra.mxu0 %v17224_v6  ;;  %v16539_v36 = vpop.f32.mrf.mxu0  ;;  %v10743_v10 = vld [vmem:[#allocation4 + $0xc0] sm:$0xff] }
 0x560   : > { %v11427_v59 = vsel %vm2357_vm0, %v11424_v37, %v11426_v58  ;;  %v11429_v61 = vsel %vm2357_vm0, %v11426_v58, %v11428_v49  ;;  %16653 = vmatprep.mubr.bf16.mxu1 %v17225_v18  ;;  %16733 = vmatprep.mubr.bf16.mxu0 %v17225_v18  ;;  %v11436_v24 = vrot.slane %v16539_v36, 1  ;;  %v10805_v5 = vadd.f32 %v16459_v2, %v10741_v0  ;;  %v19266_v37 = vld [vmem:[#allocation3 + $0x118] sm:$0xff]  }
 0x561   : > { %11666 = vst [vmem:[#allocation4 + $0x90] sm:$0xff] %v11602_v42  ;;  %v11600_v53 = vadd.f32 %v11427_v59, %v10799_v38  ;;  %v11601_v63 = vadd.f32 %v11429_v61, %v10800_v26  ;;  %v10544_v54 = vpop.f32.mrf.mxu1  ;;  %v11090_v45 = vpop.f32.mrf.mxu0  ;;  %v17343_v42 = vld [vmem:[#allocation3 + $0x20] sm:$0xff]  }
 0x562   : > { %v11432_v48 = vrot.slane %v11090_v45, 1  ;;  %v10803_v29 = vadd.f32 %v10739_v51, %v10544_v54 }
 0x563   : > { %11664 = vst [vmem:[#allocation4 + $0x80] sm:$0xff] %v11600_v53  ;;  %11665 = vst [vmem:[#allocation4 + $0x88] sm:$0xff] %v11601_v63  ;;  %v16460_v19 = vpop.f32.mrf.mxu1  ;;  %v16540_v1 = vpop.f32.mrf.mxu0  ;;  %v10746_v53 = vld [vmem:[#allocation4 + $0xd8] sm:$0xff] }
 0x564   : > { %v11433_v11 = vsel %vm2357_vm0, %v11430_v22, %v11432_v48  ;;  %v11438_v23 = vrot.slane %v16540_v1, 1  ;;  %v10806_v50 = vadd.f32 %v16460_v19, %v10742_v8  ;;  %v10744_v22 = vld [vmem:[#allocation4 + $0xc8] sm:$0xff] }
 0x565   : > { %v11603_v20 = vadd.f32 %v11433_v11, %v10802_v62  ;;  %v10547_v46 = vpop.f32.mrf.mxu1  ;;  %v11093_v28 = vpop.f32.mrf.mxu0  ;;  %v10748_v11 = vld [vmem:[#allocation4 + $0xe8] sm:$0xff] }
 0x566   : > { %v11439_v27 = vsel %vm2357_vm0, %v11436_v24, %v11438_v23  ;;  %v10804_v52 = vadd.f32 %v10740_v21, %v10547_v46  ;;  %v11434_v40 = vrot.slane %v11093_v28, 1 }
 0x567   : > { %11667 = vst [vmem:[#allocation4 + $0x98] sm:$0xff] %v11603_v20  ;;  %v11606_v56 = vadd.f32 %v11439_v27, %v10805_v5  ;;  %v16463_v44 = vpop.f32.mrf.mxu1  ;;  %16654 = vmatmul.mubr.bf16.gmra.mxu1 %v17226_v47  ;;  %v16543_v4 = vpop.f32.mrf.mxu0  ;;  %16734 = vmatmul.mubr.bf16.gmra.mxu0 %v17226_v47  ;;  %v17344_v27 = vld [vmem:[#allocation3 + $0x28] sm:$0xff]  }
 0x568   : > { %v11435_v43 = vsel %vm2357_vm0, %v11432_v48, %v11434_v40  ;;  %v11437_v9 = vsel %vm2357_vm0, %v11434_v40, %v11436_v24  ;;  %16657 = vmatprep.mubr.bf16.mxu1 %v17228_v35  ;;  %16737 = vmatprep.mubr.bf16.mxu0 %v17228_v35  ;;  %v11444_v13 = vrot.slane %v16543_v4, 1  ;;  %v10809_v6 = vadd.f32 %v16463_v44, %v10745_v31  ;;  %v10749_v48 = vld [vmem:[#allocation4 + $0xf0] sm:$0xff]  ;;  %v10747_v35 = vld [vmem:[#allocation4 + $0xe0] sm:$0xff] }
 0x569   : > { %11670 = vst [vmem:[#allocation4 + $0xb0] sm:$0xff] %v11606_v56  ;;  %v11604_v60 = vadd.f32 %v11435_v43, %v10803_v29  ;;  %v11605_v14 = vadd.f32 %v11437_v9, %v10804_v52  ;;  %v10560_v16 = vpop.f32.mrf.mxu1  ;;  %v11106_v41 = vpop.f32.mrf.mxu0  ;;  %v17345_v56 = vld [vmem:[#allocation3 + $0x30] sm:$0xff]  }
 0x56a   : > { %v11440_v12 = vrot.slane %v11106_v41, 1  ;;  %v10807_v17 = vadd.f32 %v10743_v10, %v10560_v16 }
 0x56b   : > { %11668 = vst [vmem:[#allocation4 + $0xa0] sm:$0xff] %v11604_v60  ;;  %11669 = vst [vmem:[#allocation4 + $0xa8] sm:$0xff] %v11605_v14  ;;  %v16464_v33 = vpop.f32.mrf.mxu1  ;;  %v16544_v49 = vpop.f32.mrf.mxu0  ;;  %v10750_v60 = vld [vmem:[#allocation4 + $0xf8] sm:$0xff] }
 0x56c   : > { %v11441_v34 = vsel %vm2357_vm0, %v11438_v23, %v11440_v12  ;;  %v11446_v30 = vrot.slane %v16544_v49, 1  ;;  %v10810_v45 = vadd.f32 %v16464_v33, %v10746_v53 }
 0x56d   : > { %v11607_v7 = vadd.f32 %v11441_v34, %v10806_v50  ;;  %v10563_v55 = vpop.f32.mrf.mxu1  ;;  %v11109_v39 = vpop.f32.mrf.mxu0 }
 0x56e   : > { %v11447_v32 = vsel %vm2357_vm0, %v11444_v13, %v11446_v30  ;;  %v10808_v3 = vadd.f32 %v10744_v22, %v10563_v55  ;;  %v11442_v15 = vrot.slane %v11109_v39, 1 }
 0x56f   : > { %11671 = vst [vmem:[#allocation4 + $0xb8] sm:$0xff] %v11607_v7  ;;  %v11610_v25 = vadd.f32 %v11447_v32, %v10809_v6  ;;  %v16467_v26 = vpop.f32.mrf.mxu1  ;;  %16658 = vmatmul.mubr.bf16.gmra.mxu1 %v19266_v37  ;;  %v16547_v58 = vpop.f32.mrf.mxu0  ;;  %16738 = vmatmul.mubr.bf16.gmra.mxu0 %v19266_v37  ;;  %v10751_v7 = vld [vmem:[#allocation4 + $0x100] sm:$0xff] }
 0x570   : > { %v11443_v18 = vsel %vm2357_vm0, %v11440_v12, %v11442_v15  ;;  %v11445_v38 = vsel %vm2357_vm0, %v11442_v15, %v11444_v13  ;;  %16757 = vmatprep.mubr.bf16.mxu1 %v17343_v42  ;;  %v11452_v63 = vrot.slane %v16547_v58, 1  ;;  %v10813_v1 = vadd.f32 %v16467_v26, %v10749_v48  ;;  %v10753_v12 = vld [vmem:[#allocation4 + $0x110] sm:$0xff]  ;;  %v17346_v15 = vld [vmem:[#allocation3 + $0x38] sm:$0xff]   ;;  %v17347_v58 = vld [vmem:[#allocation3 + $0x40] sm:$0xff]  }
 0x571   : > { %11674 = vst [vmem:[#allocation4 + $0xd0] sm:$0xff] %v11610_v25  ;;  %v11608_v2 = vadd.f32 %v11443_v18, %v10807_v17  ;;  %v11609_v36 = vadd.f32 %v11445_v38, %v10808_v3  ;;  %v10576_v59 = vpop.f32.mrf.mxu1  ;;  %v11122_v61 = vpop.f32.mrf.mxu0 }
 0x572   : > { %v11448_v54 = vrot.slane %v11122_v61, 1  ;;  %v10811_v21 = vadd.f32 %v10747_v35, %v10576_v59 }
 0x573   : > { %11672 = vst [vmem:[#allocation4 + $0xc0] sm:$0xff] %v11608_v2  ;;  %11673 = vst [vmem:[#allocation4 + $0xc8] sm:$0xff] %v11609_v36  ;;  %v16468_v57 = vpop.f32.mrf.mxu1  ;;  %v16548_v24 = vpop.f32.mrf.mxu0  ;;  %v10754_v36 = vld [vmem:[#allocation4 + $0x118] sm:$0xff] }
 0x574   : > { %v11449_v62 = vsel %vm2357_vm0, %v11446_v30, %v11448_v54  ;;  %v11454_v19 = vrot.slane %v16548_v24, 1  ;;  %v10814_v41 = vadd.f32 %v16468_v57, %v10750_v60  ;;  %v10752_v30 = vld [vmem:[#allocation4 + $0x108] sm:$0xff] }
 0x575   : > { %v11611_v47 = vadd.f32 %v11449_v62, %v10810_v45  ;;  %v10579_v0 = vpop.f32.mrf.mxu1  ;;  %v11125_v23 = vpop.f32.mrf.mxu0  ;;  %v10757_v45 = vld [vmem:[#allocation4 + $0x130] sm:$0xff] }
 0x576   : > { %v11455_v5 = vsel %vm2357_vm0, %v11452_v63, %v11454_v19  ;;  %v10812_v20 = vadd.f32 %v10748_v11, %v10579_v0  ;;  %v11450_v46 = vrot.slane %v11125_v23, 1  ;;  %v10755_v0 = vld [vmem:[#allocation4 + $0x120] sm:$0xff] }
 0x577   : > { %11675 = vst [vmem:[#allocation4 + $0xd8] sm:$0xff] %v11611_v47  ;;  %v11614_v28 = vadd.f32 %v11455_v5, %v10813_v1  ;;  %v16471_v51 = vpop.f32.mrf.mxu1  ;;  %16758 = vmatmul.mubr.bf16.vlgmr.msra.gmra.mxu1 %v17344_v27  ;;  %v16551_v52 = vpop.f32.mrf.mxu0  ;;  %v10756_v1 = vld [vmem:[#allocation4 + $0x128] sm:$0xff] }
 0x578   : > { %v11451_v40 = vsel %vm2357_vm0, %v11448_v54, %v11450_v46  ;;  %v11453_v29 = vsel %vm2357_vm0, %v11450_v46, %v11452_v63  ;;  %16761 = vmatprep.mubr.bf16.mxu1 %v17345_v56  ;;  %v11460_v14 = vrot.slane %v16551_v52, 1  ;;  %v10817_v49 = vadd.f32 %v16471_v51, %v10753_v12  ;;  %v17349_v52 = vld [vmem:[#allocation3 + $0x50] sm:$0xff]  }
 0x579   : > { %11678 = vst [vmem:[#allocation4 + $0xf0] sm:$0xff] %v11614_v28  ;;  %v11612_v44 = vadd.f32 %v11451_v40, %v10811_v21  ;;  %v11613_v4 = vadd.f32 %v11453_v29, %v10812_v20  ;;  %v10592_v43 = vpop.f32.mrf.mxu1  ;;  %v11138_v9 = vpop.f32.mrf.mxu0  ;;  %v17348_v21 = vld [vmem:[#allocation3 + $0x48] sm:$0xff]  }
 0x57a   : > { %v11456_v16 = vrot.slane %v11138_v9, 1  ;;  %v10815_v10 = vadd.f32 %v10751_v7, %v10592_v43 }
 0x57b   : > { %11676 = vst [vmem:[#allocation4 + $0xe0] sm:$0xff] %v11612_v44  ;;  %11677 = vst [vmem:[#allocation4 + $0xe8] sm:$0xff] %v11613_v4  ;;  %v16472_v8 = vpop.f32.mrf.mxu1  ;;  %v16552_v13 = vpop.f32.mrf.mxu0  ;;  %v10758_v4 = vld [vmem:[#allocation4 + $0x138] sm:$0xff] }
 0x57c   : > { %v11457_v50 = vsel %vm2357_vm0, %v11454_v19, %v11456_v16  ;;  %v11462_v33 = vrot.slane %v16552_v13, 1  ;;  %v10818_v53 = vadd.f32 %v16472_v8, %v10754_v36 }
 0x57d   : > { %v11615_v31 = vadd.f32 %v11457_v50, %v10814_v41  ;;  %v10595_v34 = vpop.f32.mrf.mxu1  ;;  %v11141_v6 = vpop.f32.mrf.mxu0  ;;  %v10761_v41 = vld [vmem:[#allocation4 + $0x150] sm:$0xff] }
 0x57e   : > { %v11463_v55 = vsel %vm2357_vm0, %v11460_v14, %v11462_v33  ;;  %v10816_v22 = vadd.f32 %v10752_v30, %v10595_v34  ;;  %v11458_v39 = vrot.slane %v11141_v6, 1  ;;  %v10759_v34 = vld [vmem:[#allocation4 + $0x140] sm:$0xff] }
 0x57f   : > { %11679 = vst [vmem:[#allocation4 + $0xf8] sm:$0xff] %v11615_v31  ;;  %v11618_v32 = vadd.f32 %v11463_v55, %v10817_v49  ;;  %v16475_v3 = vpop.f32.mrf.mxu1  ;;  %16762 = vmatmul.mubr.bf16.gmra.mxu1 %v17346_v15  ;;  %v16555_v17 = vpop.f32.mrf.mxu0  ;;  %v10760_v49 = vld [vmem:[#allocation4 + $0x148] sm:$0xff] }
 0x580   : > { %v11459_v25 = vsel %vm2357_vm0, %v11456_v16, %v11458_v39  ;;  %v11461_v26 = vsel %vm2357_vm0, %v11458_v39, %v11460_v14  ;;  %16765 = vmatprep.mubr.bf16.mxu1 %v17347_v58  ;;  %v11468_v59 = vrot.slane %v16555_v17, 1  ;;  %v10821_v48 = vadd.f32 %v16475_v3, %v10757_v45  ;;  %v17351_v17 = vld [vmem:[#allocation3 + $0x60] sm:$0xff]  }
 0x581   : > { %11682 = vst [vmem:[#allocation4 + $0x110] sm:$0xff] %v11618_v32  ;;  %v11616_v18 = vadd.f32 %v11459_v25, %v10815_v10  ;;  %v11617_v38 = vadd.f32 %v11461_v26, %v10816_v22  ;;  %v10608_v42 = vpop.f32.mrf.mxu1  ;;  %v11154_v2 = vpop.f32.mrf.mxu0  ;;  %v17350_v10 = vld [vmem:[#allocation3 + $0x58] sm:$0xff]  }
 0x582   : > { %v11464_v61 = vrot.slane %v11154_v2, 1  ;;  %v10819_v5 = vadd.f32 %v10755_v0, %v10608_v42 }
 0x583   : > { %11680 = vst [vmem:[#allocation4 + $0x100] sm:$0xff] %v11616_v18  ;;  %11681 = vst [vmem:[#allocation4 + $0x108] sm:$0xff] %v11617_v38  ;;  %v16476_v63 = vpop.f32.mrf.mxu1  ;;  %v16556_v54 = vpop.f32.mrf.mxu0  ;;  %v10762_v38 = vld [vmem:[#allocation4 + $0x158] sm:$0xff] }
 0x584   : > { %v11465_v57 = vsel %vm2357_vm0, %v11462_v33, %v11464_v61  ;;  %v11470_v24 = vrot.slane %v16556_v54, 1  ;;  %v10822_v60 = vadd.f32 %v16476_v63, %v10758_v4 }
 0x585   : > { %v11619_v62 = vadd.f32 %v11465_v57, %v10818_v53  ;;  %v10611_v19 = vpop.f32.mrf.mxu1  ;;  %v11157_v47 = vpop.f32.mrf.mxu0  ;;  %v10765_v53 = vld [vmem:[#allocation4 + $0x170] sm:$0xff] }
 0x586   : > { %v11471_v11 = vsel %vm2357_vm0, %v11468_v59, %v11470_v24  ;;  %v10820_v23 = vadd.f32 %v10756_v1, %v10611_v19  ;;  %v11466_v35 = vrot.slane %v11157_v47, 1  ;;  %v10763_v19 = vld [vmem:[#allocation4 + $0x160] sm:$0xff] }
 0x587   : > { %11683 = vst [vmem:[#allocation4 + $0x118] sm:$0xff] %v11619_v62  ;;  %v11622_v20 = vadd.f32 %v11471_v11, %v10821_v48  ;;  %v16479_v46 = vpop.f32.mrf.mxu1  ;;  %16766 = vmatmul.mubr.bf16.gmra.mxu1 %v17348_v21  ;;  %v16559_v28 = vpop.f32.mrf.mxu0  ;;  %v10764_v48 = vld [vmem:[#allocation4 + $0x168] sm:$0xff] }
 0x588   : > { %v11467_v51 = vsel %vm2357_vm0, %v11464_v61, %v11466_v35  ;;  %v11469_v27 = vsel %vm2357_vm0, %v11466_v35, %v11468_v59  ;;  %16769 = vmatprep.mubr.bf16.mxu1 %v17349_v52  ;;  %v11476_v43 = vrot.slane %v16559_v28, 1  ;;  %v10825_v12 = vadd.f32 %v16479_v46, %v10761_v41  ;;  %v17353_v28 = vld [vmem:[#allocation3 + $0x70] sm:$0xff]  }
 0x589   : > { %11686 = vst [vmem:[#allocation4 + $0x130] sm:$0xff] %v11622_v20  ;;  %v11620_v40 = vadd.f32 %v11467_v51, %v10819_v5  ;;  %v11621_v29 = vadd.f32 %v11469_v27, %v10820_v23  ;;  %v10624_v56 = vpop.f32.mrf.mxu1  ;;  %v11170_v44 = vpop.f32.mrf.mxu0  ;;  %v17352_v5 = vld [vmem:[#allocation3 + $0x68] sm:$0xff]  }
 0x58a   : > { %v11472_v9 = vrot.slane %v11170_v44, 1  ;;  %v10823_v55 = vadd.f32 %v10759_v34, %v10624_v56 }
 0x58b   : > { %11684 = vst [vmem:[#allocation4 + $0x120] sm:$0xff] %v11620_v40  ;;  %11685 = vst [vmem:[#allocation4 + $0x128] sm:$0xff] %v11621_v29  ;;  %v16480_v14 = vpop.f32.mrf.mxu1  ;;  %v16560_v16 = vpop.f32.mrf.mxu0  ;;  %v10766_v29 = vld [vmem:[#allocation4 + $0x178] sm:$0xff] }
 0x58c   : > { %v11473_v8 = vsel %vm2357_vm0, %v11470_v24, %v11472_v9  ;;  %v11478_v13 = vrot.slane %v16560_v16, 1  ;;  %v10826_v36 = vadd.f32 %v16480_v14, %v10762_v38 }
 0x58d   : > { %v11623_v50 = vadd.f32 %v11473_v8, %v10822_v60  ;;  %v10627_v33 = vpop.f32.mrf.mxu1  ;;  %v11173_v31 = vpop.f32.mrf.mxu0  ;;  %v10769_v60 = vld [vmem:[#allocation4 + $0x190] sm:$0xff] }
 0x58e   : > { %v11479_v30 = vsel %vm2357_vm0, %v11476_v43, %v11478_v13  ;;  %v10824_v6 = vadd.f32 %v10760_v49, %v10627_v33  ;;  %v11474_v7 = vrot.slane %v11173_v31, 1  ;;  %v10767_v33 = vld [vmem:[#allocation4 + $0x180] sm:$0xff] }
 0x58f   : > { %11687 = vst [vmem:[#allocation4 + $0x138] sm:$0xff] %v11623_v50  ;;  %v11626_v22 = vadd.f32 %v11479_v30, %v10825_v12  ;;  %v16483_v39 = vpop.f32.mrf.mxu1  ;;  %16770 = vmatmul.mubr.bf16.gmra.mxu1 %v17350_v10  ;;  %v16563_v32 = vpop.f32.mrf.mxu0  ;;  %v10768_v12 = vld [vmem:[#allocation4 + $0x188] sm:$0xff] }
 0x590   : > { %v11475_v3 = vsel %vm2357_vm0, %v11472_v9, %v11474_v7  ;;  %v11477_v15 = vsel %vm2357_vm0, %v11474_v7, %v11476_v43  ;;  %16773 = vmatprep.mubr.bf16.mxu1 %v17351_v17  ;;  %v11484_v42 = vrot.slane %v16563_v32, 1  ;;  %v10829_v45 = vadd.f32 %v16483_v39, %v10765_v53  ;;  %v17355_v32 = vld [vmem:[#allocation3 + $0x80] sm:$0xff]  }
 0x591   : > { %11690 = vst [vmem:[#allocation4 + $0x150] sm:$0xff] %v11626_v22  ;;  %v11624_v25 = vadd.f32 %v11475_v3, %v10823_v55  ;;  %v11625_v26 = vadd.f32 %v11477_v15, %v10824_v6  ;;  %v10640_v58 = vpop.f32.mrf.mxu1  ;;  %v11186_v18 = vpop.f32.mrf.mxu0  ;;  %v17354_v55 = vld [vmem:[#allocation3 + $0x78] sm:$0xff]  }
 0x592   : > { %v11480_v2 = vrot.slane %v11186_v18, 1  ;;  %v10827_v11 = vadd.f32 %v10763_v19, %v10640_v58 }
 0x593   : > { %11688 = vst [vmem:[#allocation4 + $0x140] sm:$0xff] %v11624_v25  ;;  %11689 = vst [vmem:[#allocation4 + $0x148] sm:$0xff] %v11625_v26  ;;  %v16484_v59 = vpop.f32.mrf.mxu1  ;;  %v16564_v61 = vpop.f32.mrf.mxu0  ;;  %v10770_v26 = vld [vmem:[#allocation4 + $0x198] sm:$0xff] }
 0x594   : > { %v11481_v63 = vsel %vm2357_vm0, %v11478_v13, %v11480_v2  ;;  %v11486_v54 = vrot.slane %v16564_v61, 1  ;;  %v10830_v4 = vadd.f32 %v16484_v59, %v10766_v29 }
 0x595   : > { %v11627_v57 = vadd.f32 %v11481_v63, %v10826_v36  ;;  %v10643_v24 = vpop.f32.mrf.mxu1  ;;  %v11189_v62 = vpop.f32.mrf.mxu0  ;;  %v10773_v36 = vld [vmem:[#allocation4 + $0x1b0] sm:$0xff] }
 0x596   : > { %v11487_v1 = vsel %vm2357_vm0, %v11484_v42, %v11486_v54  ;;  %v10828_v47 = vadd.f32 %v10764_v48, %v10643_v24  ;;  %v11482_v0 = vrot.slane %v11189_v62, 1  ;;  %v10771_v24 = vld [vmem:[#allocation4 + $0x1a0] sm:$0xff] }
 0x597   : > { %11691 = vst [vmem:[#allocation4 + $0x158] sm:$0xff] %v11627_v57  ;;  %v11630_v23 = vadd.f32 %v11487_v1, %v10829_v45  ;;  %v16487_v35 = vpop.f32.mrf.mxu1  ;;  %16774 = vmatmul.mubr.bf16.gmra.mxu1 %v17352_v5  ;;  %v16567_v20 = vpop.f32.mrf.mxu0  ;;  %v10772_v45 = vld [vmem:[#allocation4 + $0x1a8] sm:$0xff] }
 0x598   : > { %v11483_v46 = vsel %vm2357_vm0, %v11480_v2, %v11482_v0  ;;  %v11485_v21 = vsel %vm2357_vm0, %v11482_v0, %v11484_v42  ;;  %16777 = vmatprep.mubr.bf16.mxu1 %v17353_v28  ;;  %v11492_v56 = vrot.slane %v16567_v20, 1  ;;  %v10833_v41 = vadd.f32 %v16487_v35, %v10769_v60  ;;  %v17357_v20 = vld [vmem:[#allocation3 + $0x90] sm:$0xff]  }
 0x599   : > { %11694 = vst [vmem:[#allocation4 + $0x170] sm:$0xff] %v11630_v23  ;;  %v11628_v51 = vadd.f32 %v11483_v46, %v10827_v11  ;;  %v11629_v27 = vadd.f32 %v11485_v21, %v10828_v47  ;;  %v10656_v52 = vpop.f32.mrf.mxu1  ;;  %v11202_v40 = vpop.f32.mrf.mxu0  ;;  %v17356_v11 = vld [vmem:[#allocation3 + $0x88] sm:$0xff]  }
 0x59a   : > { %v11488_v44 = vrot.slane %v11202_v40, 1  ;;  %v10831_v30 = vadd.f32 %v10767_v33, %v10656_v52 }
 0x59b   : > { %11692 = vst [vmem:[#allocation4 + $0x160] sm:$0xff] %v11628_v51  ;;  %11693 = vst [vmem:[#allocation4 + $0x168] sm:$0xff] %v11629_v27  ;;  %v16488_v43 = vpop.f32.mrf.mxu1  ;;  %v16568_v9 = vpop.f32.mrf.mxu0  ;;  %v10774_v27 = vld [vmem:[#allocation4 + $0x1b8] sm:$0xff] }
 0x59c   : > { %v11489_v14 = vsel %vm2357_vm0, %v11486_v54, %v11488_v44  ;;  %v11494_v16 = vrot.slane %v16568_v9, 1  ;;  %v10834_v38 = vadd.f32 %v16488_v43, %v10770_v26 }
 0x59d   : > { %v11631_v8 = vadd.f32 %v11489_v14, %v10830_v4  ;;  %v10659_v13 = vpop.f32.mrf.mxu1  ;;  %v11205_v50 = vpop.f32.mrf.mxu0  ;;  %v10777_v4 = vld [vmem:[#allocation4 + $0x1d0] sm:$0xff] }
 0x59e   : > { %v11495_v49 = vsel %vm2357_vm0, %v11492_v56, %v11494_v16  ;;  %v10832_v31 = vadd.f32 %v10768_v12, %v10659_v13  ;;  %v11490_v34 = vrot.slane %v11205_v50, 1  ;;  %v10775_v13 = vld [vmem:[#allocation4 + $0x1c0] sm:$0xff] }
 0x59f   : > { %11695 = vst [vmem:[#allocation4 + $0x178] sm:$0xff] %v11631_v8  ;;  %v11634_v6 = vadd.f32 %v11495_v49, %v10833_v41  ;;  %v16491_v7 = vpop.f32.mrf.mxu1  ;;  %16778 = vmatmul.mubr.bf16.gmra.mxu1 %v17354_v55  ;;  %v16571_v22 = vpop.f32.mrf.mxu0  ;;  %v10776_v41 = vld [vmem:[#allocation4 + $0x1c8] sm:$0xff] }
 0x5a0   : > { %v11491_v39 = vsel %vm2357_vm0, %v11488_v44, %v11490_v34  ;;  %v11493_v10 = vsel %vm2357_vm0, %v11490_v34, %v11492_v56  ;;  %16781 = vmatprep.mubr.bf16.mxu1 %v17355_v32  ;;  %v11500_v58 = vrot.slane %v16571_v22, 1  ;;  %v10837_v53 = vadd.f32 %v16491_v7, %v10773_v36  ;;  %v17359_v22 = vld [vmem:[#allocation3 + $0xa0] sm:$0xff]  }
 0x5a1   : > { %11698 = vst [vmem:[#allocation4 + $0x190] sm:$0xff] %v11634_v6  ;;  %v11632_v3 = vadd.f32 %v11491_v39, %v10831_v30  ;;  %v11633_v15 = vadd.f32 %v11493_v10, %v10832_v31  ;;  %v10672_v17 = vpop.f32.mrf.mxu1  ;;  %v11218_v25 = vpop.f32.mrf.mxu0  ;;  %v17358_v30 = vld [vmem:[#allocation3 + $0x98] sm:$0xff]  }
 0x5a2   : > { %v11496_v18 = vrot.slane %v11218_v25, 1  ;;  %v10835_v1 = vadd.f32 %v10771_v24, %v10672_v17 }
 0x5a3   : > { %11696 = vst [vmem:[#allocation4 + $0x180] sm:$0xff] %v11632_v3  ;;  %11697 = vst [vmem:[#allocation4 + $0x188] sm:$0xff] %v11633_v15  ;;  %v16492_v42 = vpop.f32.mrf.mxu1  ;;  %v16572_v2 = vpop.f32.mrf.mxu0  ;;  %v10778_v15 = vld [vmem:[#allocation4 + $0x1d8] sm:$0xff] }
 0x5a4   : > { %v11497_v59 = vsel %vm2357_vm0, %v11494_v16, %v11496_v18  ;;  %v11502_v61 = vrot.slane %v16572_v2, 1  ;;  %v10838_v29 = vadd.f32 %v16492_v42, %v10774_v27  ;;  %v10781_v42 = vld [vmem:[#allocation4 + $0x1f0] sm:$0xff]  ;;  %v12323_v27 = vld [vmem:[#allocation4 + $0x1] sm:$0xff] }
 0x5a5   : > { %v11635_v63 = vadd.f32 %v11497_v59, %v10834_v38  ;;  %v10675_v54 = vpop.f32.mrf.mxu1  ;;  %v11221_v57 = vpop.f32.mrf.mxu0 }
 0x5a6   : > { %v11503_v48 = vsel %vm2357_vm0, %v11500_v58, %v11502_v61  ;;  %v10836_v62 = vadd.f32 %v10772_v45, %v10675_v54  ;;  %v11498_v19 = vrot.slane %v11221_v57, 1  ;;  %v10780_v54 = vld [vmem:[#allocation4 + $0x1e8] sm:$0xff]  ;;  %v10779_v57 = vld [vmem:[#allocation4 + $0x1e0] sm:$0xff] }
 0x5a7   : > { %11699 = vst [vmem:[#allocation4 + $0x198] sm:$0xff] %v11635_v63  ;;  %v11638_v47 = vadd.f32 %v11503_v48, %v10837_v53  ;;  %v16495_v0 = vpop.f32.mrf.mxu1  ;;  %16782 = vmatmul.mubr.bf16.gmra.mxu1 %v17356_v11  ;;  %v16575_v23 = vpop.f32.mrf.mxu0  ;;  %v17360_v11 = vld [vmem:[#allocation3 + $0xa8] sm:$0xff]  }
 0x5a8   : > { %v11499_v35 = vsel %vm2357_vm0, %v11496_v18, %v11498_v19  ;;  %v11501_v5 = vsel %vm2357_vm0, %v11498_v19, %v11500_v58  ;;  %16785 = vmatprep.mubr.bf16.mxu1 %v17357_v20  ;;  %v11508_v52 = vrot.slane %v16575_v23, 1  ;;  %v10841_v60 = vadd.f32 %v16495_v0, %v10777_v4  ;;  %v10782_v18 = vld [vmem:[#allocation4 + $0x1f8] sm:$0xff] }
 0x5a9   : > { %11702 = vst [vmem:[#allocation4 + $0x1b0] sm:$0xff] %v11638_v47  ;;  %v11636_v46 = vadd.f32 %v11499_v35, %v10835_v1  ;;  %v11637_v21 = vadd.f32 %v11501_v5, %v10836_v62  ;;  %v10688_v28 = vpop.f32.mrf.mxu1  ;;  %v11234_v51 = vpop.f32.mrf.mxu0  ;;  %v12325_v0 = vld [vmem:[#allocation4 + $0x11] sm:$0xff] }
 0x5aa   : > { %v11504_v40 = vrot.slane %v11234_v51, 1  ;;  %v10839_v49 = vadd.f32 %v10775_v13, %v10688_v28  ;;  %v12329_v13 = vld [vmem:[#allocation4 + $0x31] sm:$0xff] }
 0x5ab   : > { %11700 = vst [vmem:[#allocation4 + $0x1a0] sm:$0xff] %v11636_v46  ;;  %11701 = vst [vmem:[#allocation4 + $0x1a8] sm:$0xff] %v11637_v21  ;;  %v16496_v56 = vpop.f32.mrf.mxu1  ;;  %v16576_v44 = vpop.f32.mrf.mxu0  ;;  %v17361_v46 = vld [vmem:[#allocation3 + $0xb0] sm:$0xff]  }
 0x5ac   : > { %v11505_v43 = vsel %vm2357_vm0, %v11502_v61, %v11504_v40  ;;  %v11510_v9 = vrot.slane %v16576_v44, 1  ;;  %v10842_v26 = vadd.f32 %v16496_v56, %v10778_v15  ;;  %v12326_v56 = vld [vmem:[#allocation4 + $0x19] sm:$0xff] }
 0x5ad   : > { %v11639_v14 = vadd.f32 %v11505_v43, %v10838_v29  ;;  %v10691_v16 = vpop.f32.mrf.mxu1  ;;  %v11237_v8 = vpop.f32.mrf.mxu0 }
 0x5ae   : > { %v11511_v12 = vsel %vm2357_vm0, %v11508_v52, %v11510_v9  ;;  %v10840_v50 = vadd.f32 %v10776_v41, %v10691_v16  ;;  %v11506_v33 = vrot.slane %v11237_v8, 1 }
 0x5af   : > { %11703 = vst [vmem:[#allocation4 + $0x1b8] sm:$0xff] %v11639_v14  ;;  %v11642_v31 = vadd.f32 %v11511_v12, %v10841_v60  ;;  %v16499_v34 = vpop.f32.mrf.mxu1  ;;  %16786 = vmatmul.mubr.bf16.gmra.mxu1 %v17358_v30  ;;  %v16579_v6 = vpop.f32.mrf.mxu0  ;;  %v12324_v60 = vld [vmem:[#allocation4 + $0x9] sm:$0xff]  ;;  %v17362_v12 = vld [vmem:[#allocation3 + $0xb8] sm:$0xff]  }
 0x5b0   : > { %v11507_v7 = vsel %vm2357_vm0, %v11504_v40, %v11506_v33  ;;  %v11509_v55 = vsel %vm2357_vm0, %v11506_v33, %v11508_v52  ;;  %16789 = vmatprep.mubr.bf16.mxu1 %v17359_v22  ;;  %v11516_v17 = vrot.slane %v16579_v6, 1  ;;  %v10845_v61 = vadd.f32 %v16499_v34, %v10781_v42  ;;  %v12327_v34 = vld [vmem:[#allocation4 + $0x21] sm:$0xff] }
 0x5b1   : > { %11706 = vst [vmem:[#allocation4 + $0x1d0] sm:$0xff] %v11642_v31  ;;  %v11640_v39 = vadd.f32 %v11507_v7, %v10839_v49  ;;  %v11641_v10 = vadd.f32 %v11509_v55, %v10840_v50  ;;  %v10704_v32 = vpop.f32.mrf.mxu1  ;;  %v11250_v3 = vpop.f32.mrf.mxu0  ;;  %v17363_v49 = vld [vmem:[#allocation3 + $0xc0] sm:$0xff]  }
 0x5b2   : > { %v11512_v25 = vrot.slane %v11250_v3, 1  ;;  %v10843_v19 = vadd.f32 %v10779_v57, %v10704_v32  ;;  %v12330_v55 = vld [vmem:[#allocation4 + $0x39] sm:$0xff]  ;;  %v12328_v32 = vld [vmem:[#allocation4 + $0x29] sm:$0xff] }
 0x5b3   : > { %11704 = vst [vmem:[#allocation4 + $0x1c0] sm:$0xff] %v11640_v39  ;;  %11705 = vst [vmem:[#allocation4 + $0x1c8] sm:$0xff] %v11641_v10  ;;  %v16500_v58 = vpop.f32.mrf.mxu1  ;;  %v16580_v38 = vpop.f32.mrf.mxu0 }
 0x5b4   : > { %v11513_v2 = vsel %vm2357_vm0, %v11510_v9, %v11512_v25  ;;  %v10846_v36 = vadd.f32 %v16500_v58, %v10782_v18  ;;  %v11518_v59 = vrot.slane %v16580_v38, 1  ;;  %v12333_v58 = vld [vmem:[#allocation4 + $0x51] sm:$0xff]  ;;  %v17364_v18 = vld [vmem:[#allocation3 + $0xc8] sm:$0xff]  }
 0x5b5   : > { %v11643_v53 = vadd.f32 %v11513_v2, %v10842_v26  ;;  %v10707_v63 = vpop.f32.mrf.mxu1  ;;  %v11253_v45 = vpop.f32.mrf.mxu0  ;;  %v17365_v2 = vld [vmem:[#allocation3 + $0xd0] sm:$0xff]  }
 0x5b6   : > { %10910 = vst [vmem:[#allocation4 + $0x1f8] sm:$0xff] %v10846_v36  ;;  %v10844_v24 = vadd.f32 %v10780_v54, %v10707_v63  ;;  %v11519_v48 = vsel %vm2357_vm0, %v11516_v17, %v11518_v59  ;;  %v11514_v62 = vrot.slane %v11253_v45, 1  ;;  %v12334_v54 = vld [vmem:[#allocation4 + $0x59] sm:$0xff] }
 0x5b7   : > { %11707 = vst [vmem:[#allocation4 + $0x1d8] sm:$0xff] %v11643_v53  ;;  %v11646_v1 = vadd.f32 %v11519_v48, %v10845_v61  ;;  %v16599_v47 = vpop.f32.mrf.mxu1  ;;  %16790 = vmatmul.mubr.bf16.gmra.mxu1 %v17360_v11  ;;  %v19308_v23 = vpop.f32.mrf.mxu0  ;;  %v12332_v48 = vld [vmem:[#allocation4 + $0x49] sm:$0xff]  ;;  %v12337_v11 = vld [vmem:[#allocation4 + $0x71] sm:$0xff] }
 0x5b8   : > { %v12389_v35 = vadd.f32 %v16599_v47, %v12325_v0  ;;  %v11515_v5 = vsel %vm2357_vm0, %v11512_v25, %v11514_v62  ;;  %v11517_v20 = vsel %vm2357_vm0, %v11514_v62, %v11516_v17  ;;  %16793 = vmatprep.mubr.bf16.mxu1 %v17361_v46  ;;  %v17367_v46 = vld [vmem:[#allocation3 + $0xe0] sm:$0xff]  }
 0x5b9   : > { %11710 = vst [vmem:[#allocation4 + $0x1f0] sm:$0xff] %v11646_v1  ;;  %v11644_v21 = vadd.f32 %v11515_v5, %v10843_v19  ;;  %v11645_v28 = vadd.f32 %v11517_v20, %v10844_v24  ;;  %v12068_v51 = vpop.f32.mrf.mxu1  ;;  %v19312_v52 = vpop.f32.mrf.mxu0 }
 0x5ba   : > { %12453 = vst [vmem:[#allocation4 + $0x11] sm:$0xff] %v12389_v35  ;;  %v12387_v40 = vadd.f32 %v12323_v27, %v12068_v51  ;;  %v17366_v35 = vld [vmem:[#allocation3 + $0xd8] sm:$0xff]  }
 0x5bb   : > { %11708 = vst [vmem:[#allocation4 + $0x1e0] sm:$0xff] %v11644_v21  ;;  %11709 = vst [vmem:[#allocation4 + $0x1e8] sm:$0xff] %v11645_v28  ;;  %v16600_v29 = vpop.f32.mrf.mxu1  ;;  %v16680_v44 = vpop.f32.mrf.mxu0  ;;  %v12335_v28 = vld [vmem:[#allocation4 + $0x61] sm:$0xff] }
 0x5bc   : > { %12451 = vst [vmem:[#allocation4 + $0x1] sm:$0xff] %v12387_v40  ;;  %v12390_v4 = vadd.f32 %v16600_v29, %v12326_v56  ;;  %v12338_v29 = vld [vmem:[#allocation4 + $0x79] sm:$0xff] }
 0x5bd   : > { %v11328_v43 = vld [vmem:[#allocation4 + $0x1f8] sm:$0x7f]  ;;  %v12071_v9 = vpop.f32.mrf.mxu1  ;;  %v19314_v14 = vpop.f32.mrf.mxu0 }
 0x5be   : > { %v11647_v16 = vadd.f32 %v11518_v59, %v11328_v43  ;;  %12454 = vst [vmem:[#allocation4 + $0x19] sm:$0xff] %v12390_v4  ;;  %v12388_v41 = vadd.f32 %v12324_v60, %v12071_v9  ;;  %v12331_v59 = vld [vmem:[#allocation4 + $0x41] sm:$0xff]  ;;  %v12336_v43 = vld [vmem:[#allocation4 + $0x69] sm:$0xff] }
 0x5bf   : > { %v16603_v8 = vpop.f32.mrf.mxu1  ;;  %16794 = vmatmul.mubr.bf16.gmra.mxu1 %v17362_v12  ;;  %v19316_v50 = vpop.f32.mrf.mxu0  ;;  %v17368_v12 = vld [vmem:[#allocation3 + $0xe8] sm:$0xff]  }
 0x5c0   : > { %11711 = vst [vmem:[#allocation4 + $0x1f8] sm:$0x7f] %v11647_v16  ;;  %12452 = vst [vmem:[#allocation4 + $0x9] sm:$0xff] %v12388_v41  ;;  %v12393_v33 = vadd.f32 %v16603_v8, %v12329_v13  ;;  %16797 = vmatprep.mubr.bf16.mxu1 %v17363_v49  ;;  %v12341_v13 = vld [vmem:[#allocation4 + $0x91] sm:$0xff] }
 0x5c1   : > { %v12084_v31 = vpop.f32.mrf.mxu1  ;;  %v19318_v30 = vpop.f32.mrf.mxu0 }
 0x5c2   : > { %12457 = vst [vmem:[#allocation4 + $0x31] sm:$0xff] %v12393_v33  ;;  %v12391_v6 = vadd.f32 %v12327_v34, %v12084_v31  ;;  %v17369_v31 = vld [vmem:[#allocation3 + $0xf0] sm:$0xff]  }
 0x5c3   : > { %v16604_v7 = vpop.f32.mrf.mxu1  ;;  %v16684_v22 = vpop.f32.mrf.mxu0 }
 0x5c4   : > { %12455 = vst [vmem:[#allocation4 + $0x21] sm:$0xff] %v12391_v6  ;;  %v12394_v39 = vadd.f32 %v16604_v7, %v12330_v55  ;;  %v12339_v6 = vld [vmem:[#allocation4 + $0x81] sm:$0xff] }
 0x5c5   : > { %v12087_v10 = vpop.f32.mrf.mxu1  ;;  %v12872_v3 = vld [vmem:[#allocation4 + $0x18] sm:$0xff]  ;;  %v19320_v15 = vpop.f32.mrf.mxu0 }
 0x5c6   : > { %12458 = vst [vmem:[#allocation4 + $0x39] sm:$0xff] %v12394_v39  ;;  %v12392_v17 = vadd.f32 %v12328_v32, %v12087_v10  ;;  %v12936_v25 = vadd.f32 %v16680_v44, %v12872_v3  ;;  %v12342_v39 = vld [vmem:[#allocation4 + $0x99] sm:$0xff] }
 0x5c7   : > { %v16607_v26 = vpop.f32.mrf.mxu1  ;;  %16798 = vmatmul.mubr.bf16.gmra.mxu1 %v17364_v18  ;;  %v19322_v38 = vpop.f32.mrf.mxu0 }
 0x5c8   : > { %12456 = vst [vmem:[#allocation4 + $0x29] sm:$0xff] %v12392_v17  ;;  %13000 = vst [vmem:[#allocation4 + $0x18] sm:$0xff] %v12936_v25  ;;  %v12397_v42 = vadd.f32 %v16607_v26, %v12333_v58  ;;  %16801 = vmatprep.mubr.bf16.mxu1 %v17365_v2  ;;  %v12340_v17 = vld [vmem:[#allocation4 + $0x89] sm:$0xff]  ;;  %v12345_v2 = vld [vmem:[#allocation4 + $0xb1] sm:$0xff] }
 0x5c9   : > { %v12100_v36 = vpop.f32.mrf.mxu1  ;;  %v19324_v61 = vpop.f32.mrf.mxu0 }
 0x5ca   : > { %12461 = vst [vmem:[#allocation4 + $0x51] sm:$0xff] %v12397_v42  ;;  %v12395_v53 = vadd.f32 %v12331_v59, %v12100_v36  ;;  %v17370_v36 = vld [vmem:[#allocation3 + $0xf8] sm:$0xff]  }
 0x5cb   : > { %v16608_v63 = vpop.f32.mrf.mxu1  ;;  %v16688_v45 = vpop.f32.mrf.mxu0 }
 0x5cc   : > { %12459 = vst [vmem:[#allocation4 + $0x41] sm:$0xff] %v12395_v53  ;;  %v12398_v57 = vadd.f32 %v16608_v63, %v12334_v54  ;;  %v17371_v63 = vld [vmem:[#allocation3 + $0x100] sm:$0xff]  }
 0x5cd   : > { %v12103_v24 = vpop.f32.mrf.mxu1  ;;  %v12876_v62 = vld [vmem:[#allocation4 + $0x38] sm:$0xff]  ;;  %v19326_v19 = vpop.f32.mrf.mxu0 }
 0x5ce   : > { %12462 = vst [vmem:[#allocation4 + $0x59] sm:$0xff] %v12398_v57  ;;  %v12396_v1 = vadd.f32 %v12332_v48, %v12103_v24  ;;  %v12940_v47 = vadd.f32 %v16684_v22, %v12876_v62  ;;  %v12346_v62 = vld [vmem:[#allocation4 + $0xb9] sm:$0xff] }
 0x5cf   : > { %v16611_v0 = vpop.f32.mrf.mxu1  ;;  %16802 = vmatmul.mubr.bf16.gmra.mxu1 %v17366_v35  ;;  %v19328_v5 = vpop.f32.mrf.mxu0 }
 0x5d0   : > { %12460 = vst [vmem:[#allocation4 + $0x49] sm:$0xff] %v12396_v1  ;;  %13004 = vst [vmem:[#allocation4 + $0x38] sm:$0xff] %v12940_v47  ;;  %v12401_v20 = vadd.f32 %v16611_v0, %v12337_v11  ;;  %16805 = vmatprep.mubr.bf16.mxu1 %v17367_v46  ;;  %v12344_v11 = vld [vmem:[#allocation4 + $0xa9] sm:$0xff] }
 0x5d1   : > { %v12116_v21 = vpop.f32.mrf.mxu1  ;;  %v19330_v51 = vpop.f32.mrf.mxu0 }
 0x5d2   : > { %12465 = vst [vmem:[#allocation4 + $0x71] sm:$0xff] %v12401_v20  ;;  %v12399_v27 = vadd.f32 %v12335_v28, %v12116_v21 }
 0x5d3   : > { %v16612_v40 = vpop.f32.mrf.mxu1  ;;  %v16692_v56 = vpop.f32.mrf.mxu0 }
 0x5d4   : > { %12463 = vst [vmem:[#allocation4 + $0x61] sm:$0xff] %v12399_v27  ;;  %v12402_v44 = vadd.f32 %v16612_v40, %v12338_v29  ;;  %v12349_v27 = vld [vmem:[#allocation4 + $0xd1] sm:$0xff]  ;;  %v17372_v40 = vld [vmem:[#allocation3 + $0x108] sm:$0xff]  }
 0x5d5   : > { %v12119_v4 = vpop.f32.mrf.mxu1  ;;  %v12880_v9 = vld [vmem:[#allocation4 + $0x58] sm:$0xff]  ;;  %v19332_v60 = vpop.f32.mrf.mxu0 }
 0x5d6   : > { %12466 = vst [vmem:[#allocation4 + $0x79] sm:$0xff] %v12402_v44  ;;  %v12400_v16 = vadd.f32 %v12336_v43, %v12119_v4  ;;  %v12944_v41 = vadd.f32 %v16688_v45, %v12880_v9  ;;  %v12343_v45 = vld [vmem:[#allocation4 + $0xa1] sm:$0xff]  ;;  %v17373_v44 = vld [vmem:[#allocation3 + $0x110] sm:$0xff]  }
 0x5d7   : > { %v16615_v8 = vpop.f32.mrf.mxu1  ;;  %16806 = vmatmul.mubr.bf16.gmra.mxu1 %v17368_v12  ;;  %v19334_v33 = vpop.f32.mrf.mxu0  ;;  %v12347_v43 = vld [vmem:[#allocation4 + $0xc1] sm:$0xff] }
 0x5d8   : > { %12464 = vst [vmem:[#allocation4 + $0x69] sm:$0xff] %v12400_v16  ;;  %13008 = vst [vmem:[#allocation4 + $0x58] sm:$0xff] %v12944_v41  ;;  %v12405_v49 = vadd.f32 %v16615_v8, %v12341_v13  ;;  %16809 = vmatprep.mubr.bf16.mxu1 %v17369_v31  ;;  %v12350_v8 = vld [vmem:[#allocation4 + $0xd9] sm:$0xff]  ;;  %v12348_v31 = vld [vmem:[#allocation4 + $0xc9] sm:$0xff] }
 0x5d9   : > { %v12132_v34 = vpop.f32.mrf.mxu1  ;;  %v19336_v7 = vpop.f32.mrf.mxu0 }
 0x5da   : > { %12469 = vst [vmem:[#allocation4 + $0x91] sm:$0xff] %v12405_v49  ;;  %v12403_v55 = vadd.f32 %v12339_v6, %v12132_v34 }
 0x5db   : > { %v16616_v22 = vpop.f32.mrf.mxu1  ;;  %v16696_v10 = vpop.f32.mrf.mxu0 }
 0x5dc   : > { %12467 = vst [vmem:[#allocation4 + $0x81] sm:$0xff] %v12403_v55  ;;  %v12406_v32 = vadd.f32 %v16616_v22, %v12342_v39 }
 0x5dd   : > { %v12135_v3 = vpop.f32.mrf.mxu1  ;;  %v12884_v25 = vld [vmem:[#allocation4 + $0x78] sm:$0xff]  ;;  %v19338_v26 = vpop.f32.mrf.mxu0 }
 0x5de   : > { %12470 = vst [vmem:[#allocation4 + $0x99] sm:$0xff] %v12406_v32  ;;  %v12404_v58 = vadd.f32 %v12340_v17, %v12135_v3  ;;  %v12948_v18 = vadd.f32 %v16692_v56, %v12884_v25  ;;  %v12351_v25 = vld [vmem:[#allocation4 + $0xe1] sm:$0xff] }
 0x5df   : > { %v16619_v42 = vpop.f32.mrf.mxu1  ;;  %16810 = vmatmul.mubr.bf16.gmra.mxu1 %v17370_v36  ;;  %v19340_v59 = vpop.f32.mrf.mxu0 }
 0x5e0   : > { %12468 = vst [vmem:[#allocation4 + $0x89] sm:$0xff] %v12404_v58  ;;  %13012 = vst [vmem:[#allocation4 + $0x78] sm:$0xff] %v12948_v18  ;;  %v12409_v53 = vadd.f32 %v16619_v42, %v12345_v2  ;;  %16813 = vmatprep.mubr.bf16.mxu1 %v17371_v63  ;;  %v12354_v2 = vld [vmem:[#allocation4 + $0xf9] sm:$0xff] }
 0x5e1   : > { %v12148_v54 = vpop.f32.mrf.mxu1  ;;  %v19342_v57 = vpop.f32.mrf.mxu0 }
 0x5e2   : > { %12473 = vst [vmem:[#allocation4 + $0xb1] sm:$0xff] %v12409_v53  ;;  %v12407_v24 = vadd.f32 %v12343_v45, %v12148_v54  ;;  %v12352_v54 = vld [vmem:[#allocation4 + $0xe9] sm:$0xff] }
 0x5e3   : > { %v16620_v48 = vpop.f32.mrf.mxu1  ;;  %v16700_v1 = vpop.f32.mrf.mxu0 }
 0x5e4   : > { %12471 = vst [vmem:[#allocation4 + $0xa1] sm:$0xff] %v12407_v24  ;;  %v12410_v47 = vadd.f32 %v16620_v48, %v12346_v62 }
 0x5e5   : > { %v12151_v0 = vpop.f32.mrf.mxu1  ;;  %v12888_v35 = vld [vmem:[#allocation4 + $0x98] sm:$0xff]  ;;  %v19344_v20 = vpop.f32.mrf.mxu0 }
 0x5e6   : > { %12474 = vst [vmem:[#allocation4 + $0xb9] sm:$0xff] %v12410_v47  ;;  %v12408_v46 = vadd.f32 %v12344_v11, %v12151_v0  ;;  %v12952_v21 = vadd.f32 %v16696_v10, %v12888_v35  ;;  %v12353_v10 = vld [vmem:[#allocation4 + $0xf1] sm:$0xff]  ;;  %v12355_v35 = vld [vmem:[#allocation4 + $0x101] sm:$0xff] }
 0x5e7   : > { %v16623_v28 = vpop.f32.mrf.mxu1  ;;  %16814 = vmatmul.mubr.bf16.gmra.mxu1 %v17372_v40  ;;  %v19346_v29 = vpop.f32.mrf.mxu0 }
 0x5e8   : > { %12472 = vst [vmem:[#allocation4 + $0xa9] sm:$0xff] %v12408_v46  ;;  %13016 = vst [vmem:[#allocation4 + $0x98] sm:$0xff] %v12952_v21  ;;  %v12413_v56 = vadd.f32 %v16623_v28, %v12349_v27  ;;  %16817 = vmatprep.mubr.bf16.mxu1 %v17373_v44  ;;  %v12358_v27 = vld [vmem:[#allocation4 + $0x119] sm:$0xff] }
 0x5e9   : > { %v12164_v4 = vpop.f32.mrf.mxu1  ;;  %v19348_v9 = vpop.f32.mrf.mxu0 }
 0x5ea   : > { %12477 = vst [vmem:[#allocation4 + $0xd1] sm:$0xff] %v12413_v56  ;;  %v12411_v16 = vadd.f32 %v12347_v43, %v12164_v4  ;;  %v12356_v4 = vld [vmem:[#allocation4 + $0x109] sm:$0xff] }
 0x5eb   : > { %v16624_v41 = vpop.f32.mrf.mxu1  ;;  %v16704_v13 = vpop.f32.mrf.mxu0 }
 0x5ec   : > { %12475 = vst [vmem:[#allocation4 + $0xc1] sm:$0xff] %v12411_v16  ;;  %v12414_v12 = vadd.f32 %v16624_v41, %v12350_v8 }
 0x5ed   : > { %v12167_v49 = vpop.f32.mrf.mxu1  ;;  %v12892_v34 = vld [vmem:[#allocation4 + $0xb8] sm:$0xff]  ;;  %v19350_v6 = vpop.f32.mrf.mxu0 }
 0x5ee   : > { %12478 = vst [vmem:[#allocation4 + $0xd9] sm:$0xff] %v12414_v12  ;;  %v12412_v55 = vadd.f32 %v12348_v31, %v12167_v49  ;;  %v12956_v22 = vadd.f32 %v16700_v1, %v12892_v34  ;;  %v12357_v1 = vld [vmem:[#allocation4 + $0x111] sm:$0xff] }
 0x5ef   : > { %v16627_v39 = vpop.f32.mrf.mxu1  ;;  %16818 = vmatmul.mubr.bf16.gmra.mxu1 %v19266_v37  ;;  %v19353_v32 = vpop.f32.mrf.mxu0  ;;  %v12361_v12 = vld [vmem:[#allocation4 + $0x131] sm:$0xff] }
 0x5f0   : > { %12476 = vst [vmem:[#allocation4 + $0xc9] sm:$0xff] %v12412_v55  ;;  %13020 = vst [vmem:[#allocation4 + $0xb8] sm:$0xff] %v12956_v22  ;;  %v12417_v3 = vadd.f32 %v16627_v39, %v12353_v10  ;;  %v12359_v55 = vld [vmem:[#allocation4 + $0x121] sm:$0xff] }
 0x5f1   : > { %v12180_v17 = vpop.f32.mrf.mxu1  ;;  %v19355_v58 = vpop.f32.mrf.mxu0 }
 0x5f2   : > { %12481 = vst [vmem:[#allocation4 + $0xf1] sm:$0xff] %v12417_v3  ;;  %v12415_v18 = vadd.f32 %v12351_v25, %v12180_v17  ;;  %v12362_v3 = vld [vmem:[#allocation4 + $0x139] sm:$0xff] }
 0x5f3   : > { %v16628_v42 = vpop.f32.mrf.mxu1  ;;  %v16708_v36 = vpop.f32.mrf.mxu0 }
 0x5f4   : > { %12479 = vst [vmem:[#allocation4 + $0xe1] sm:$0xff] %v12415_v18  ;;  %v12418_v53 = vadd.f32 %v16628_v42, %v12354_v2  ;;  %v12360_v42 = vld [vmem:[#allocation4 + $0x129] sm:$0xff] }
 0x5f5   : > { %v12183_v63 = vpop.f32.mrf.mxu1  ;;  %v12896_v45 = vld [vmem:[#allocation4 + $0xd8] sm:$0xff]  ;;  %v19357_v37 = vpop.f32.mrf.mxu0 }
 0x5f6   : > { %12482 = vst [vmem:[#allocation4 + $0xf9] sm:$0xff] %v12418_v53  ;;  %v12416_v24 = vadd.f32 %v12352_v54, %v12183_v63  ;;  %v12960_v48 = vadd.f32 %v16704_v13, %v12896_v45  ;;  %v12365_v45 = vld [vmem:[#allocation4 + $0x151] sm:$0xff] }
 0x5f7   : > { %v16631_v62 = vpop.f32.mrf.mxu1  ;;  %v19359_v47 = vpop.f32.mrf.mxu0 }
 0x5f8   : > { %12480 = vst [vmem:[#allocation4 + $0xe9] sm:$0xff] %v12416_v24  ;;  %13024 = vst [vmem:[#allocation4 + $0xd8] sm:$0xff] %v12960_v48  ;;  %v12421_v0 = vadd.f32 %v16631_v62, %v12357_v1  ;;  %v12363_v1 = vld [vmem:[#allocation4 + $0x141] sm:$0xff] }
 0x5f9   : > { %v12196_v11 = vpop.f32.mrf.mxu1  ;;  %v19361_v46 = vpop.f32.mrf.mxu0 }
 0x5fa   : > { %12485 = vst [vmem:[#allocation4 + $0x111] sm:$0xff] %v12421_v0  ;;  %v12419_v21 = vadd.f32 %v12355_v35, %v12196_v11 }
 0x5fb   : > { %v16632_v28 = vpop.f32.mrf.mxu1  ;;  %v16712_v40 = vpop.f32.mrf.mxu0 }
 0x5fc   : > { %12483 = vst [vmem:[#allocation4 + $0x101] sm:$0xff] %v12419_v21  ;;  %v12422_v56 = vadd.f32 %v16632_v28, %v12358_v27  ;;  %v12366_v21 = vld [vmem:[#allocation4 + $0x159] sm:$0xff] }
 0x5fd   : > { %v12199_v44 = vpop.f32.mrf.mxu1  ;;  %v12900_v43 = vld [vmem:[#allocation4 + $0xf8] sm:$0xff]  ;;  %v19363_v16 = vpop.f32.mrf.mxu0 }
 0x5fe   : > { %12486 = vst [vmem:[#allocation4 + $0x119] sm:$0xff] %v12422_v56  ;;  %v12420_v41 = vadd.f32 %v12356_v4, %v12199_v44  ;;  %v12964_v8 = vadd.f32 %v16708_v36, %v12900_v43  ;;  %v12364_v44 = vld [vmem:[#allocation4 + $0x149] sm:$0xff] }
 0x5ff   : > { %v16635_v13 = vpop.f32.mrf.mxu1  ;;  %v19365_v49 = vpop.f32.mrf.mxu0 }
 0x600   : > { %12484 = vst [vmem:[#allocation4 + $0x109] sm:$0xff] %v12420_v41  ;;  %13028 = vst [vmem:[#allocation4 + $0xf8] sm:$0xff] %v12964_v8  ;;  %v12425_v31 = vadd.f32 %v16635_v13, %v12361_v12  ;;  %v12369_v13 = vld [vmem:[#allocation4 + $0x171] sm:$0xff] }
 0x601   : > { %v12212_v34 = vpop.f32.mrf.mxu1  ;;  %v19367_v22 = vpop.f32.mrf.mxu0 }
 0x602   : > { %12489 = vst [vmem:[#allocation4 + $0x131] sm:$0xff] %v12425_v31  ;;  %v12423_v39 = vadd.f32 %v12359_v55, %v12212_v34  ;;  %v12367_v55 = vld [vmem:[#allocation4 + $0x161] sm:$0xff] }
 0x603   : > { %v16636_v10 = vpop.f32.mrf.mxu1  ;;  %v16716_v17 = vpop.f32.mrf.mxu0 }
 0x604   : > { %12487 = vst [vmem:[#allocation4 + $0x121] sm:$0xff] %v12423_v39  ;;  %v12426_v25 = vadd.f32 %v16636_v10, %v12362_v3 }
 0x605   : > { %v12215_v18 = vpop.f32.mrf.mxu1  ;;  %v12904_v2 = vld [vmem:[#allocation4 + $0x118] sm:$0xff]  ;;  %v19369_v36 = vpop.f32.mrf.mxu0 }
 0x606   : > { %12490 = vst [vmem:[#allocation4 + $0x139] sm:$0xff] %v12426_v25  ;;  %v12424_v53 = vadd.f32 %v12360_v42, %v12215_v18  ;;  %v12968_v63 = vadd.f32 %v16712_v40, %v12904_v2  ;;  %v12370_v25 = vld [vmem:[#allocation4 + $0x179] sm:$0xff] }
 0x607   : > { %v16639_v54 = vpop.f32.mrf.mxu1  ;;  %v16719_v24 = vpop.f32.mrf.mxu0 }
 0x608   : > { %12488 = vst [vmem:[#allocation4 + $0x129] sm:$0xff] %v12424_v53  ;;  %13032 = vst [vmem:[#allocation4 + $0x118] sm:$0xff] %v12968_v63  ;;  %v12429_v48 = vadd.f32 %v16639_v54, %v12365_v45  ;;  %v12368_v53 = vld [vmem:[#allocation4 + $0x169] sm:$0xff] }
 0x609   : > { %v12228_v62 = vpop.f32.mrf.mxu1  ;;  %v19371_v0 = vpop.f32.mrf.mxu0 }
 0x60a   : > { %12493 = vst [vmem:[#allocation4 + $0x151] sm:$0xff] %v12429_v48  ;;  %v12427_v11 = vadd.f32 %v12363_v1, %v12228_v62  ;;  %v12373_v1 = vld [vmem:[#allocation4 + $0x191] sm:$0xff] }
 0x60b   : > { %v16640_v35 = vpop.f32.mrf.mxu1  ;;  %v16720_v28 = vpop.f32.mrf.mxu0 }
 0x60c   : > { %12491 = vst [vmem:[#allocation4 + $0x141] sm:$0xff] %v12427_v11  ;;  %v12430_v27 = vadd.f32 %v16640_v35, %v12366_v21 }
 0x60d   : > { %v12231_v56 = vpop.f32.mrf.mxu1  ;;  %v12908_v40 = vld [vmem:[#allocation4 + $0x138] sm:$0xff]  ;;  %v19373_v4 = vpop.f32.mrf.mxu0 }
 0x60e   : > { %12494 = vst [vmem:[#allocation4 + $0x159] sm:$0xff] %v12430_v27  ;;  %v12428_v43 = vadd.f32 %v12364_v44, %v12231_v56  ;;  %v12972_v41 = vadd.f32 %v16716_v17, %v12908_v40  ;;  %v12371_v56 = vld [vmem:[#allocation4 + $0x181] sm:$0xff] }
 0x60f   : > { %v16643_v8 = vpop.f32.mrf.mxu1  ;;  %v16723_v12 = vpop.f32.mrf.mxu0 }
 0x610   : > { %12492 = vst [vmem:[#allocation4 + $0x149] sm:$0xff] %v12428_v43  ;;  %13036 = vst [vmem:[#allocation4 + $0x138] sm:$0xff] %v12972_v41  ;;  %v12433_v31 = vadd.f32 %v16643_v8, %v12369_v13  ;;  %v12374_v41 = vld [vmem:[#allocation4 + $0x199] sm:$0xff] }
 0x611   : > { %v12244_v34 = vpop.f32.mrf.mxu1  ;;  %v12790_v39 = vpop.f32.mrf.mxu0 }
 0x612   : > { %12497 = vst [vmem:[#allocation4 + $0x171] sm:$0xff] %v12433_v31  ;;  %v12431_v10 = vadd.f32 %v12367_v55, %v12244_v34  ;;  %v12372_v55 = vld [vmem:[#allocation4 + $0x189] sm:$0xff] }
 0x613   : > { %v16644_v3 = vpop.f32.mrf.mxu1  ;;  %v16724_v18 = vpop.f32.mrf.mxu0 }
 0x614   : > { %12495 = vst [vmem:[#allocation4 + $0x161] sm:$0xff] %v12431_v10  ;;  %v12434_v42 = vadd.f32 %v16644_v3, %v12370_v25 }
 0x615   : > { %v12247_v2 = vpop.f32.mrf.mxu1  ;;  %v12912_v63 = vld [vmem:[#allocation4 + $0x158] sm:$0xff]  ;;  %v19375_v17 = vpop.f32.mrf.mxu0 }
 0x616   : > { %12498 = vst [vmem:[#allocation4 + $0x179] sm:$0xff] %v12434_v42  ;;  %v12432_v54 = vadd.f32 %v12368_v53, %v12247_v2  ;;  %v12976_v45 = vadd.f32 %v16720_v28, %v12912_v63  ;;  %v12377_v53 = vld [vmem:[#allocation4 + $0x1b1] sm:$0xff] }
 0x617   : > { %v12911_v48 = vld [vmem:[#allocation4 + $0x150] sm:$0xff]  ;;  %v16647_v62 = vpop.f32.mrf.mxu1  ;;  %v16727_v11 = vpop.f32.mrf.mxu0 }
 0x618   : > { %v12975_v35 = vadd.f32 %v16719_v24, %v12911_v48  ;;  %12496 = vst [vmem:[#allocation4 + $0x169] sm:$0xff] %v12432_v54  ;;  %13040 = vst [vmem:[#allocation4 + $0x158] sm:$0xff] %v12976_v45  ;;  %v12437_v21 = vadd.f32 %v16647_v62, %v12373_v1  ;;  %v12375_v62 = vld [vmem:[#allocation4 + $0x1a1] sm:$0xff] }
 0x619   : > { %v12260_v27 = vpop.f32.mrf.mxu1  ;;  %v12806_v44 = vpop.f32.mrf.mxu0 }
 0x61a   : > { %13039 = vst [vmem:[#allocation4 + $0x150] sm:$0xff] %v12975_v35  ;;  %12501 = vst [vmem:[#allocation4 + $0x191] sm:$0xff] %v12437_v21  ;;  %v12435_v40 = vadd.f32 %v12371_v56, %v12260_v27  ;;  %v12378_v21 = vld [vmem:[#allocation4 + $0x1b9] sm:$0xff] }
 0x61b   : > { %v16648_v43 = vpop.f32.mrf.mxu1  ;;  %v12913_v8 = vld [vmem:[#allocation4 + $0x160] sm:$0xff]  ;;  %v16728_v13 = vpop.f32.mrf.mxu0 }
 0x61c   : > { %12499 = vst [vmem:[#allocation4 + $0x181] sm:$0xff] %v12435_v40  ;;  %v12438_v28 = vadd.f32 %v16648_v43, %v12374_v41  ;;  %v12977_v31 = vadd.f32 %v12913_v8, %v12790_v39  ;;  %v12376_v41 = vld [vmem:[#allocation4 + $0x1a9] sm:$0xff] }
 0x61d   : > { %v12263_v34 = vpop.f32.mrf.mxu1  ;;  %v12916_v10 = vld [vmem:[#allocation4 + $0x178] sm:$0xff]  ;;  %v19377_v24 = vpop.f32.mrf.mxu0 }
 0x61e   : > { %12502 = vst [vmem:[#allocation4 + $0x199] sm:$0xff] %v12438_v28  ;;  %13041 = vst [vmem:[#allocation4 + $0x160] sm:$0xff] %v12977_v31  ;;  %v12436_v3 = vadd.f32 %v12372_v55, %v12263_v34  ;;  %v12980_v25 = vadd.f32 %v16724_v18, %v12916_v10  ;;  %v12381_v10 = vld [vmem:[#allocation4 + $0x1d1] sm:$0xff] }
 0x61f   : > { %v12915_v42 = vld [vmem:[#allocation4 + $0x170] sm:$0xff]  ;;  %v16651_v2 = vpop.f32.mrf.mxu1  ;;  %v16731_v63 = vpop.f32.mrf.mxu0 }
 0x620   : > { %v12979_v54 = vadd.f32 %v16723_v12, %v12915_v42  ;;  %12500 = vst [vmem:[#allocation4 + $0x189] sm:$0xff] %v12436_v3  ;;  %13044 = vst [vmem:[#allocation4 + $0x178] sm:$0xff] %v12980_v25  ;;  %v12441_v45 = vadd.f32 %v16651_v2, %v12377_v53  ;;  %v12379_v53 = vld [vmem:[#allocation4 + $0x1c1] sm:$0xff] }
 0x621   : > { %v12276_v48 = vpop.f32.mrf.mxu1  ;;  %v12822_v39 = vpop.f32.mrf.mxu0 }
 0x622   : > { %13043 = vst [vmem:[#allocation4 + $0x170] sm:$0xff] %v12979_v54  ;;  %12505 = vst [vmem:[#allocation4 + $0x1b1] sm:$0xff] %v12441_v45  ;;  %v12439_v1 = vadd.f32 %v12375_v62, %v12276_v48  ;;  %v12382_v48 = vld [vmem:[#allocation4 + $0x1d9] sm:$0xff] }
 0x623   : > { %v16652_v35 = vpop.f32.mrf.mxu1  ;;  %v12917_v27 = vld [vmem:[#allocation4 + $0x180] sm:$0xff]  ;;  %v16732_v56 = vpop.f32.mrf.mxu0 }
 0x624   : > { %12503 = vst [vmem:[#allocation4 + $0x1a1] sm:$0xff] %v12439_v1  ;;  %v12442_v18 = vadd.f32 %v16652_v35, %v12378_v21  ;;  %v12981_v40 = vadd.f32 %v12917_v27, %v12806_v44  ;;  %v12380_v27 = vld [vmem:[#allocation4 + $0x1c9] sm:$0xff] }
 0x625   : > { %v12279_v43 = vpop.f32.mrf.mxu1  ;;  %v12920_v8 = vld [vmem:[#allocation4 + $0x198] sm:$0xff]  ;;  %v19379_v12 = vpop.f32.mrf.mxu0 }
 0x626   : > { %12506 = vst [vmem:[#allocation4 + $0x1b9] sm:$0xff] %v12442_v18  ;;  %13045 = vst [vmem:[#allocation4 + $0x180] sm:$0xff] %v12981_v40  ;;  %v12440_v28 = vadd.f32 %v12376_v41, %v12279_v43  ;;  %v12984_v31 = vadd.f32 %v16728_v13, %v12920_v8  ;;  %v12385_v8 = vld [vmem:[#allocation4 + $0x1f1] sm:$0xff] }
 0x627   : > { %v12919_v34 = vld [vmem:[#allocation4 + $0x190] sm:$0xff]  ;;  %v16655_v55 = vpop.f32.mrf.mxu1  ;;  %v16735_v3 = vpop.f32.mrf.mxu0 }
 0x628   : > { %v12983_v25 = vadd.f32 %v16727_v11, %v12919_v34  ;;  %12504 = vst [vmem:[#allocation4 + $0x1a9] sm:$0xff] %v12440_v28  ;;  %13048 = vst [vmem:[#allocation4 + $0x198] sm:$0xff] %v12984_v31  ;;  %v12445_v42 = vadd.f32 %v16655_v55, %v12381_v10  ;;  %v12383_v10 = vld [vmem:[#allocation4 + $0x1e1] sm:$0xff] }
 0x629   : > { %v12292_v2 = vpop.f32.mrf.mxu1  ;;  %v12838_v44 = vpop.f32.mrf.mxu0 }
 0x62a   : > { %13047 = vst [vmem:[#allocation4 + $0x190] sm:$0xff] %v12983_v25  ;;  %12509 = vst [vmem:[#allocation4 + $0x1d1] sm:$0xff] %v12445_v42  ;;  %v12443_v54 = vadd.f32 %v12379_v53, %v12292_v2  ;;  %v12386_v42 = vld [vmem:[#allocation4 + $0x1f9] sm:$0x7f] }
 0x62b   : > { %v16656_v45 = vpop.f32.mrf.mxu1  ;;  %v12921_v62 = vld [vmem:[#allocation4 + $0x1a0] sm:$0xff]  ;;  %v16736_v1 = vpop.f32.mrf.mxu0 }
 0x62c   : > { %12507 = vst [vmem:[#allocation4 + $0x1c1] sm:$0xff] %v12443_v54  ;;  %v12446_v13 = vadd.f32 %v16656_v45, %v12382_v48  ;;  %v12985_v35 = vadd.f32 %v12921_v62, %v12822_v39  ;;  %v12384_v48 = vld [vmem:[#allocation4 + $0x1e9] sm:$0xff] }
 0x62d   : > { %v12295_v21 = vpop.f32.mrf.mxu1  ;;  %v12924_v18 = vld [vmem:[#allocation4 + $0x1b8] sm:$0xff]  ;;  %v19381_v28 = vpop.f32.mrf.mxu0 }
 0x62e   : > { %12510 = vst [vmem:[#allocation4 + $0x1d9] sm:$0xff] %v12446_v13  ;;  %13049 = vst [vmem:[#allocation4 + $0x1a0] sm:$0xff] %v12985_v35  ;;  %v12444_v11 = vadd.f32 %v12380_v27, %v12295_v21  ;;  %v12988_v40 = vadd.f32 %v16732_v56, %v12924_v18 }
 0x62f   : > { %v12923_v43 = vld [vmem:[#allocation4 + $0x1b0] sm:$0xff]  ;;  %v16659_v41 = vpop.f32.mrf.mxu1  ;;  %v16739_v53 = vpop.f32.mrf.mxu0 }
 0x630   : > { %v12987_v31 = vadd.f32 %v16731_v63, %v12923_v43  ;;  %12508 = vst [vmem:[#allocation4 + $0x1c9] sm:$0xff] %v12444_v11  ;;  %13052 = vst [vmem:[#allocation4 + $0x1b8] sm:$0xff] %v12988_v40  ;;  %v12449_v34 = vadd.f32 %v16659_v41, %v12385_v8  ;;  %v12871_v40 = vld [vmem:[#allocation4 + $0x10] sm:$0xff] }
 0x631   : > { %v12308_v55 = vpop.f32.mrf.mxu1  ;;  %v12854_v27 = vpop.f32.mrf.mxu0 }
 0x632   : > { %13051 = vst [vmem:[#allocation4 + $0x1b0] sm:$0xff] %v12987_v31  ;;  %12513 = vst [vmem:[#allocation4 + $0x1f1] sm:$0xff] %v12449_v34  ;;  %v12447_v39 = vadd.f32 %v12383_v10, %v12308_v55  ;;  %v12870_v31 = vld [vmem:[#allocation4 + $0x8] sm:$0xff] }
 0x633   : > { %v16660_v25 = vpop.f32.mrf.mxu1  ;;  %v12925_v2 = vld [vmem:[#allocation4 + $0x1c0] sm:$0xff]  ;;  %v16740_v8 = vpop.f32.mrf.mxu0 }
 0x634   : > { %12511 = vst [vmem:[#allocation4 + $0x1e1] sm:$0xff] %v12447_v39  ;;  %v12450_v56 = vadd.f32 %v16660_v25, %v12386_v42  ;;  %v12989_v54 = vadd.f32 %v12925_v2, %v12838_v44  ;;  %v12869_v44 = vld [vmem:[#allocation4] sm:$0xff]  ;;  %v12935_v39 = vadd.f32 %v19308_v23, %v12871_v40 }
 0x635   : > { %v12311_v45 = vpop.f32.mrf.mxu1  ;;  %v12928_v62 = vld [vmem:[#allocation4 + $0x1d8] sm:$0xff]  ;;  %v12873_v40 = vld [vmem:[#allocation4 + $0x20] sm:$0xff] }
 0x636   : > { %12514 = vst [vmem:[#allocation4 + $0x1f9] sm:$0x7f] %v12450_v56  ;;  %13053 = vst [vmem:[#allocation4 + $0x1c0] sm:$0xff] %v12989_v54  ;;  %v12448_v63 = vadd.f32 %v12384_v48, %v12311_v45  ;;  %v12992_v13 = vadd.f32 %v16736_v1, %v12928_v62  ;;  %v12933_v54 = vadd.f32 %v12869_v44, %v19312_v52  ;;  %v12874_v44 = vld [vmem:[#allocation4 + $0x28] sm:$0xff] }
 0x637   : > { %v12927_v35 = vld [vmem:[#allocation4 + $0x1d0] sm:$0xff]  ;;  %v16759_v21 = vpop.f32.mrf.mxu1  ;;  %v12934_v45 = vadd.f32 %v12870_v31, %v19314_v14 }
 0x638   : > { %v12991_v18 = vadd.f32 %v16735_v3, %v12927_v35  ;;  %12512 = vst [vmem:[#allocation4 + $0x1e9] sm:$0xff] %v12448_v63  ;;  %13056 = vst [vmem:[#allocation4 + $0x1d8] sm:$0xff] %v12992_v13  ;;  %v13546_v34 = vrot.slane %v16759_v21, 1  ;;  %v19392_v21 = vld [vmem:[%s19648_s5] ss:$0 sm:$0xff]  ;;  %v12875_v14 = vld [vmem:[#allocation4 + $0x30] sm:$0xff] }
 0x639   : > { %v13160_v11 = vpop.f32.mrf.mxu1 }
 0x63a   : > { %13055 = vst [vmem:[#allocation4 + $0x1d0] sm:$0xff] %v12991_v18  ;;  %v13543_v42 = vrot.slane %v13160_v11, 1 }
 0x63b   : > { %v12929_v43 = vld [vmem:[#allocation4 + $0x1e0] sm:$0xff]  ;;  %v16760_v41 = vpop.f32.mrf.mxu1 }
 0x63c   : > { %v12993_v55 = vadd.f32 %v12929_v43, %v12854_v27  ;;  %v13548_v10 = vrot.slane %v16760_v41, 1 }
 0x63d   : > { %v12932_v1 = vld [vmem:[#allocation4 + $0x1f8] sm:$0xff]  ;;  %v13163_v25 = vpop.f32.mrf.mxu1 }
 0x63e   : > { %13057 = vst [vmem:[#allocation4 + $0x1e0] sm:$0xff] %v12993_v55  ;;  %v13549_v3 = vsel %vm2357_vm0, %v13546_v34, %v13548_v10  ;;  %v12996_v2 = vadd.f32 %v16740_v8, %v12932_v1  ;;  %v13544_v56 = vrot.slane %v13163_v25, 1  ;;  %v12939_v1 = vadd.f32 %v19316_v50, %v12875_v14 }
 0x63f   : > { %v12931_v48 = vld [vmem:[#allocation4 + $0x1f0] sm:$0xff]  ;;  %v13736_v62 = vadd.f32 %v13549_v3, %v12935_v39  ;;  %v16763_v63 = vpop.f32.mrf.mxu1 }
 0x640   : > { %v12995_v13 = vadd.f32 %v16739_v53, %v12931_v48  ;;  %13060 = vst [vmem:[#allocation4 + $0x1f8] sm:$0xff] %v12996_v2  ;;  %v13545_v23 = vsel %vm2357_vm0, %v13543_v42, %v13544_v56  ;;  %v13547_v35 = vsel %vm2357_vm0, %v13544_v56, %v13546_v34  ;;  %v19397_v53 = vld [vmem:[%s19649_s6] ss:$0 sm:$0xff]  ;;  %v13554_v31 = vrot.slane %v16763_v63, 1  ;;  %v13418_v34 = vld [vmem:[#allocation4 + $0x18] sm:$0xff] }
 0x641   : > { %13800 = vst [vmem:[#allocation4 + $0x10] sm:$0xff] %v13736_v62  ;;  %v13734_v27 = vadd.f32 %v13545_v23, %v12933_v54  ;;  %v13735_v52 = vadd.f32 %v13547_v35, %v12934_v45  ;;  %v13176_v18 = vpop.f32.mrf.mxu1  ;;  %v12937_v56 = vadd.f32 %v12873_v40, %v19318_v30  ;;  %v12938_v48 = vadd.f32 %v12874_v44, %v19320_v15  ;;  %v12879_v15 = vld [vmem:[#allocation4 + $0x50] sm:$0xff] }
 0x642   : > { %13059 = vst [vmem:[#allocation4 + $0x1f0] sm:$0xff] %v12995_v13  ;;  %v13550_v11 = vrot.slane %v13176_v18, 1  ;;  %v12877_v18 = vld [vmem:[#allocation4 + $0x40] sm:$0xff] }
 0x643   : > { %13798 = vst [vmem:[#allocation4] sm:$0xff] %v13734_v27  ;;  %13799 = vst [vmem:[#allocation4 + $0x8] sm:$0xff] %v13735_v52  ;;  %v13901_v43 = vmul.f32 %v19392_v21, %v13734_v27  ;;  %v13902_v41 = vmul.f32 %v19392_v21, %v13735_v52  ;;  %v16764_v8 = vpop.f32.mrf.mxu1 }
 0x644   : > { %v13551_v55 = vsel %vm2357_vm0, %v13548_v10, %v13550_v11  ;;  %v13556_v39 = vrot.slane %v16764_v8, 1  ;;  %v13422_v8 = vld [vmem:[#allocation4 + $0x38] sm:$0xff] }
 0x645   : > { %v13940_v25 = vadd.f32 %v19397_v53, %v13901_v43  ;;  %v13941_v42 = vadd.f32 %v19397_v53, %v13902_v41  ;;  %v13737_v3 = vadd.f32 %v13551_v55, %v13418_v34  ;;  %v13179_v2 = vpop.f32.mrf.mxu1  ;;  %v12878_v43 = vld [vmem:[#allocation4 + $0x48] sm:$0xff]  ;;  %v12943_v34 = vadd.f32 %v19322_v38, %v12879_v15 }
 0x646   : > { %v13557_v54 = vsel %vm2357_vm0, %v13554_v31, %v13556_v39  ;;  %v13552_v45 = vrot.slane %v13179_v2, 1  ;;  %v12882_v15 = vld [vmem:[#allocation4 + $0x68] sm:$0xff] }
 0x647   : > { %v13972_v62 = vmax.f32 %v13940_v25, 0.0  ;;  %v13973_v63 = vmax.f32 %v13941_v42, 0.0  ;;  %13801 = vst [vmem:[#allocation4 + $0x18] sm:$0xff] %v13737_v3  ;;  %v13740_v10 = vadd.f32 %v13557_v54, %v12939_v1  ;;  %v16767_v13 = vpop.f32.mrf.mxu1  ;;  %v12941_v3 = vadd.f32 %v12877_v18, %v19324_v61  ;;  %v13426_v18 = vld [vmem:[#allocation4 + $0x58] sm:$0xff] }
 0x648   : > { %v13553_v50 = vsel %vm2357_vm0, %v13550_v11, %v13552_v45  ;;  %v13555_v23 = vsel %vm2357_vm0, %v13552_v45, %v13554_v31  ;;  %v13562_v41 = vrot.slane %v16767_v13, 1  ;;  %v12942_v54 = vadd.f32 %v12878_v43, %v19326_v19 }
 0x649   : > { %14004 = vst [vmem:[%s19411_s16] sm:$0xff] %v13972_v62  ;;  %14005 = vst [vmem:[%s19411_s16 + $0x8] sm:$0xff] %v13973_v63  ;;  %v13738_v30 = vadd.f32 %v13553_v50, %v12937_v56  ;;  %v13739_v35 = vadd.f32 %v13555_v23, %v12938_v48  ;;  %v13192_v27 = vpop.f32.mrf.mxu1  ;;  %v12883_v50 = vld [vmem:[#allocation4 + $0x70] sm:$0xff] }
 0x64a   : > { %13804 = vst [vmem:[#allocation4 + $0x30] sm:$0xff] %v13740_v10  ;;  %v13558_v52 = vrot.slane %v13192_v27, 1 }
 0x64b   : > { %13802 = vst [vmem:[#allocation4 + $0x20] sm:$0xff] %v13738_v30  ;;  %13803 = vst [vmem:[#allocation4 + $0x28] sm:$0xff] %v13739_v35  ;;  %v13903_v14 = vmul.f32 %v19392_v21, %v13738_v30  ;;  %v13904_v11 = vmul.f32 %v19392_v21, %v13739_v35  ;;  %v16768_v40 = vpop.f32.mrf.mxu1  ;;  %v12881_v30 = vld [vmem:[#allocation4 + $0x60] sm:$0xff] }
 0x64c   : > { %v13559_v44 = vsel %vm2357_vm0, %v13556_v39, %v13558_v52  ;;  %v13564_v31 = vrot.slane %v16768_v40, 1  ;;  %v12947_v40 = vadd.f32 %v19328_v5, %v12883_v50 }
 0x64d   : > { %v13942_v55 = vadd.f32 %v19397_v53, %v13903_v14  ;;  %v13943_v1 = vadd.f32 %v19397_v53, %v13904_v11  ;;  %v13741_v25 = vadd.f32 %v13559_v44, %v13422_v8  ;;  %v13195_v42 = vpop.f32.mrf.mxu1 }
 0x64e   : > { %v13565_v2 = vsel %vm2357_vm0, %v13562_v41, %v13564_v31  ;;  %v13560_v56 = vrot.slane %v13195_v42, 1 }
 0x64f   : > { %v13974_v45 = vmax.f32 %v13942_v55, 0.0  ;;  %v13975_v39 = vmax.f32 %v13943_v1, 0.0  ;;  %13805 = vst [vmem:[#allocation4 + $0x38] sm:$0xff] %v13741_v25  ;;  %v13744_v48 = vadd.f32 %v13565_v2, %v12943_v34  ;;  %v16771_v38 = vpop.f32.mrf.mxu1  ;;  %v12945_v34 = vadd.f32 %v12881_v30, %v19330_v51 }
 0x650   : > { %v13561_v62 = vsel %vm2357_vm0, %v13558_v52, %v13560_v56  ;;  %v13563_v63 = vsel %vm2357_vm0, %v13560_v56, %v13562_v41  ;;  %v13570_v52 = vrot.slane %v16771_v38, 1  ;;  %v12946_v25 = vadd.f32 %v12882_v15, %v19332_v60  ;;  %v12885_v38 = vld [vmem:[#allocation4 + $0x80] sm:$0xff] }
 0x651   : > { %14006 = vst [vmem:[%s19411_s16 + $0x10] sm:$0xff] %v13974_v45  ;;  %14007 = vst [vmem:[%s19411_s16 + $0x18] sm:$0xff] %v13975_v39  ;;  %v13742_v10 = vadd.f32 %v13561_v62, %v12941_v3  ;;  %v13743_v13 = vadd.f32 %v13563_v63, %v12942_v54  ;;  %v13208_v61 = vpop.f32.mrf.mxu1  ;;  %v12887_v39 = vld [vmem:[#allocation4 + $0x90] sm:$0xff] }
 0x652   : > { %13808 = vst [vmem:[#allocation4 + $0x50] sm:$0xff] %v13744_v48  ;;  %v13566_v23 = vrot.slane %v13208_v61, 1  ;;  %v13430_v61 = vld [vmem:[#allocation4 + $0x78] sm:$0xff]  ;;  %v12951_v30 = vadd.f32 %v19334_v33, %v12887_v39 }
 0x653   : > { %13806 = vst [vmem:[#allocation4 + $0x40] sm:$0xff] %v13742_v10  ;;  %13807 = vst [vmem:[#allocation4 + $0x48] sm:$0xff] %v13743_v13  ;;  %v13905_v19 = vmul.f32 %v19392_v21, %v13742_v10  ;;  %v13906_v35 = vmul.f32 %v19392_v21, %v13743_v13  ;;  %v16772_v27 = vpop.f32.mrf.mxu1  ;;  %v12886_v10 = vld [vmem:[#allocation4 + $0x88] sm:$0xff] }
 0x654   : > { %v13567_v14 = vsel %vm2357_vm0, %v13564_v31, %v13566_v23  ;;  %v13572_v11 = vrot.slane %v16772_v27, 1 }
 0x655   : > { %v13944_v43 = vadd.f32 %v19397_v53, %v13905_v19  ;;  %v13945_v41 = vadd.f32 %v19397_v53, %v13906_v35  ;;  %v13745_v8 = vadd.f32 %v13567_v14, %v13426_v18  ;;  %v13211_v44 = vpop.f32.mrf.mxu1 }
 0x656   : > { %v13573_v55 = vsel %vm2357_vm0, %v13570_v52, %v13572_v11  ;;  %v13568_v1 = vrot.slane %v13211_v44, 1 }
 0x657   : > { %v13976_v42 = vmax.f32 %v13944_v43, 0.0  ;;  %v13977_v31 = vmax.f32 %v13945_v41, 0.0  ;;  %13809 = vst [vmem:[#allocation4 + $0x58] sm:$0xff] %v13745_v8  ;;  %v13748_v3 = vadd.f32 %v13573_v55, %v12947_v40  ;;  %v16775_v5 = vpop.f32.mrf.mxu1  ;;  %v12950_v40 = vadd.f32 %v12886_v10, %v19338_v26 }
 0x658   : > { %v13569_v2 = vsel %vm2357_vm0, %v13566_v23, %v13568_v1  ;;  %v13571_v56 = vsel %vm2357_vm0, %v13568_v1, %v13570_v52  ;;  %v13578_v13 = vrot.slane %v16775_v5, 1  ;;  %v12949_v52 = vadd.f32 %v12885_v38, %v19336_v7  ;;  %v12891_v1 = vld [vmem:[#allocation4 + $0xb0] sm:$0xff]  ;;  %v12890_v5 = vld [vmem:[#allocation4 + $0xa8] sm:$0xff] }
 0x659   : > { %14008 = vst [vmem:[%s19411_s16 + $0x20] sm:$0xff] %v13976_v42  ;;  %14009 = vst [vmem:[%s19411_s16 + $0x28] sm:$0xff] %v13977_v31  ;;  %v13746_v54 = vadd.f32 %v13569_v2, %v12945_v34  ;;  %v13747_v45 = vadd.f32 %v13571_v56, %v12946_v25  ;;  %v13224_v51 = vpop.f32.mrf.mxu1  ;;  %v12889_v42 = vld [vmem:[#allocation4 + $0xa0] sm:$0xff]  ;;  %v13434_v56 = vld [vmem:[#allocation4 + $0x98] sm:$0xff] }
 0x65a   : > { %13812 = vst [vmem:[#allocation4 + $0x70] sm:$0xff] %v13748_v3  ;;  %v13574_v48 = vrot.slane %v13224_v51, 1  ;;  %v12955_v51 = vadd.f32 %v19340_v59, %v12891_v1 }
 0x65b   : > { %13810 = vst [vmem:[#allocation4 + $0x60] sm:$0xff] %v13746_v54  ;;  %13811 = vst [vmem:[#allocation4 + $0x68] sm:$0xff] %v13747_v45  ;;  %v13907_v60 = vmul.f32 %v19392_v21, %v13746_v54  ;;  %v13908_v62 = vmul.f32 %v19392_v21, %v13747_v45  ;;  %v16776_v63 = vpop.f32.mrf.mxu1 }
 0x65c   : > { %v13575_v50 = vsel %vm2357_vm0, %v13572_v11, %v13574_v48  ;;  %v13580_v23 = vrot.slane %v16776_v63, 1 }
 0x65d   : > { %v13946_v19 = vadd.f32 %v19397_v53, %v13907_v60  ;;  %v13947_v35 = vadd.f32 %v19397_v53, %v13908_v62  ;;  %v13749_v27 = vadd.f32 %v13575_v50, %v13430_v61  ;;  %v13227_v15 = vpop.f32.mrf.mxu1  ;;  %v12953_v62 = vadd.f32 %v12889_v42, %v19342_v57 }
 0x65e   : > { %v13581_v18 = vsel %vm2357_vm0, %v13578_v13, %v13580_v23  ;;  %v13576_v14 = vrot.slane %v13227_v15, 1  ;;  %v12895_v15 = vld [vmem:[#allocation4 + $0xd0] sm:$0xff] }
 0x65f   : > { %v13978_v43 = vmax.f32 %v13946_v19, 0.0  ;;  %v13979_v11 = vmax.f32 %v13947_v35, 0.0  ;;  %13813 = vst [vmem:[#allocation4 + $0x78] sm:$0xff] %v13749_v27  ;;  %v13752_v41 = vadd.f32 %v13581_v18, %v12951_v30  ;;  %v16779_v33 = vpop.f32.mrf.mxu1  ;;  %v12893_v18 = vld [vmem:[#allocation4 + $0xc0] sm:$0xff] }
 0x660   : > { %v13577_v8 = vsel %vm2357_vm0, %v13574_v48, %v13576_v14  ;;  %v13579_v44 = vsel %vm2357_vm0, %v13576_v14, %v13578_v13  ;;  %v13586_v2 = vrot.slane %v16779_v33, 1  ;;  %v12954_v13 = vadd.f32 %v12890_v5, %v19344_v20 }
 0x661   : > { %14010 = vst [vmem:[%s19411_s16 + $0x30] sm:$0xff] %v13978_v43  ;;  %14011 = vst [vmem:[%s19411_s16 + $0x38] sm:$0xff] %v13979_v11  ;;  %v13750_v34 = vadd.f32 %v13577_v8, %v12949_v52  ;;  %v13751_v55 = vadd.f32 %v13579_v44, %v12950_v40  ;;  %v13240_v7 = vpop.f32.mrf.mxu1  ;;  %v12894_v43 = vld [vmem:[#allocation4 + $0xc8] sm:$0xff]  ;;  %v12959_v44 = vadd.f32 %v19346_v29, %v12895_v15 }
 0x662   : > { %13816 = vst [vmem:[#allocation4 + $0x90] sm:$0xff] %v13752_v41  ;;  %v13582_v25 = vrot.slane %v13240_v7, 1  ;;  %v13438_v41 = vld [vmem:[#allocation4 + $0xb8] sm:$0xff] }
 0x663   : > { %13814 = vst [vmem:[#allocation4 + $0x80] sm:$0xff] %v13750_v34  ;;  %13815 = vst [vmem:[#allocation4 + $0x88] sm:$0xff] %v13751_v55  ;;  %v13909_v26 = vmul.f32 %v19392_v21, %v13750_v34  ;;  %v13910_v31 = vmul.f32 %v19392_v21, %v13751_v55  ;;  %v16780_v3 = vpop.f32.mrf.mxu1 }
 0x664   : > { %v13583_v54 = vsel %vm2357_vm0, %v13580_v23, %v13582_v25  ;;  %v13588_v45 = vrot.slane %v16780_v3, 1 }
 0x665   : > { %v13948_v39 = vadd.f32 %v19397_v53, %v13909_v26  ;;  %v13949_v48 = vadd.f32 %v19397_v53, %v13910_v31  ;;  %v13753_v38 = vadd.f32 %v13583_v54, %v13434_v56  ;;  %v13243_v60 = vpop.f32.mrf.mxu1  ;;  %v12958_v31 = vadd.f32 %v12894_v43, %v19350_v6 }
 0x666   : > { %v13589_v63 = vsel %vm2357_vm0, %v13586_v2, %v13588_v45  ;;  %v13584_v10 = vrot.slane %v13243_v60, 1 }
 0x667   : > { %v13980_v61 = vmax.f32 %v13948_v39, 0.0  ;;  %v13981_v50 = vmax.f32 %v13949_v48, 0.0  ;;  %13817 = vst [vmem:[#allocation4 + $0x98] sm:$0xff] %v13753_v38  ;;  %v13756_v23 = vadd.f32 %v13589_v63, %v12955_v51  ;;  %v16783_v59 = vpop.f32.mrf.mxu1  ;;  %v12899_v39 = vld [vmem:[#allocation4 + $0xf0] sm:$0xff]  ;;  %v12897_v38 = vld [vmem:[#allocation4 + $0xe0] sm:$0xff]  ;;  %v12898_v63 = vld [vmem:[#allocation4 + $0xe8] sm:$0xff] }
 0x668   : > { %v13585_v30 = vsel %vm2357_vm0, %v13582_v25, %v13584_v10  ;;  %v13587_v19 = vsel %vm2357_vm0, %v13584_v10, %v13586_v2  ;;  %v13594_v11 = vrot.slane %v16783_v59, 1  ;;  %v12957_v25 = vadd.f32 %v12893_v18, %v19348_v9 }
 0x669   : > { %14012 = vst [vmem:[%s19411_s16 + $0x40] sm:$0xff] %v13980_v61  ;;  %14013 = vst [vmem:[%s19411_s16 + $0x48] sm:$0xff] %v13981_v50  ;;  %v13754_v35 = vadd.f32 %v13585_v30, %v12953_v62  ;;  %v13755_v27 = vadd.f32 %v13587_v19, %v12954_v13  ;;  %v13256_v57 = vpop.f32.mrf.mxu1  ;;  %v13442_v13 = vld [vmem:[#allocation4 + $0xd8] sm:$0xff] }
 0x66a   : > { %13820 = vst [vmem:[#allocation4 + $0xb0] sm:$0xff] %v13756_v23  ;;  %v13590_v52 = vrot.slane %v13256_v57, 1  ;;  %v12963_v23 = vadd.f32 %v19353_v32, %v12899_v39 }
 0x66b   : > { %13818 = vst [vmem:[#allocation4 + $0xa0] sm:$0xff] %v13754_v35  ;;  %13819 = vst [vmem:[#allocation4 + $0xa8] sm:$0xff] %v13755_v27  ;;  %v13911_v20 = vmul.f32 %v19392_v21, %v13754_v35  ;;  %v13912_v14 = vmul.f32 %v19392_v21, %v13755_v27  ;;  %v16784_v40 = vpop.f32.mrf.mxu1  ;;  %v12961_v27 = vadd.f32 %v12897_v38, %v19355_v58 }
 0x66c   : > { %v13591_v33 = vsel %vm2357_vm0, %v13588_v45, %v13590_v52  ;;  %v13596_v8 = vrot.slane %v16784_v40, 1 }
 0x66d   : > { %v13950_v34 = vadd.f32 %v19397_v53, %v13911_v20  ;;  %v13951_v55 = vadd.f32 %v19397_v53, %v13912_v14  ;;  %v13757_v7 = vadd.f32 %v13591_v33, %v13438_v41  ;;  %v13259_v1 = vpop.f32.mrf.mxu1  ;;  %v12903_v33 = vld [vmem:[#allocation4 + $0x110] sm:$0xff] }
 0x66e   : > { %v13597_v42 = vsel %vm2357_vm0, %v13594_v11, %v13596_v8  ;;  %v13592_v26 = vrot.slane %v13259_v1, 1 }
 0x66f   : > { %v13982_v3 = vmax.f32 %v13950_v34, 0.0  ;;  %v13983_v5 = vmax.f32 %v13951_v55, 0.0  ;;  %13821 = vst [vmem:[#allocation4 + $0xb8] sm:$0xff] %v13757_v7  ;;  %v13760_v2 = vadd.f32 %v13597_v42, %v12959_v44  ;;  %v16787_v29 = vpop.f32.mrf.mxu1  ;;  %v12901_v44 = vld [vmem:[#allocation4 + $0x100] sm:$0xff]  ;;  %v12902_v7 = vld [vmem:[#allocation4 + $0x108] sm:$0xff] }
 0x670   : > { %v13593_v56 = vsel %vm2357_vm0, %v13590_v52, %v13592_v26  ;;  %v13595_v54 = vsel %vm2357_vm0, %v13592_v26, %v13594_v11  ;;  %v13602_v10 = vrot.slane %v16787_v29, 1  ;;  %v12962_v52 = vadd.f32 %v12898_v63, %v19357_v37  ;;  %v12907_v63 = vld [vmem:[#allocation4 + $0x130] sm:$0xff] }
 0x671   : > { %14014 = vst [vmem:[%s19411_s16 + $0x50] sm:$0xff] %v13982_v3  ;;  %14015 = vst [vmem:[%s19411_s16 + $0x58] sm:$0xff] %v13983_v5  ;;  %v13758_v45 = vadd.f32 %v13593_v56, %v12957_v25  ;;  %v13759_v51 = vadd.f32 %v13595_v54, %v12958_v31  ;;  %v13272_v9 = vpop.f32.mrf.mxu1  ;;  %v13446_v25 = vld [vmem:[#allocation4 + $0xf8] sm:$0xff]  ;;  %v12967_v31 = vadd.f32 %v19359_v47, %v12903_v33 }
 0x672   : > { %13824 = vst [vmem:[#allocation4 + $0xd0] sm:$0xff] %v13760_v2  ;;  %v13598_v48 = vrot.slane %v13272_v9, 1  ;;  %v12965_v56 = vadd.f32 %v12901_v44, %v19361_v46 }
 0x673   : > { %13822 = vst [vmem:[#allocation4 + $0xc0] sm:$0xff] %v13758_v45  ;;  %13823 = vst [vmem:[#allocation4 + $0xc8] sm:$0xff] %v13759_v51  ;;  %v13913_v6 = vmul.f32 %v19392_v21, %v13758_v45  ;;  %v13914_v60 = vmul.f32 %v19392_v21, %v13759_v51  ;;  %v16788_v62 = vpop.f32.mrf.mxu1  ;;  %v12966_v51 = vadd.f32 %v12902_v7, %v19363_v16 }
 0x674   : > { %v13599_v61 = vsel %vm2357_vm0, %v13596_v8, %v13598_v48  ;;  %v13604_v50 = vrot.slane %v16788_v62, 1 }
 0x675   : > { %v13952_v59 = vadd.f32 %v19397_v53, %v13913_v6  ;;  %v13953_v30 = vadd.f32 %v19397_v53, %v13914_v60  ;;  %v13761_v19 = vadd.f32 %v13599_v61, %v13442_v13  ;;  %v13275_v35 = vpop.f32.mrf.mxu1  ;;  %v12905_v13 = vld [vmem:[#allocation4 + $0x120] sm:$0xff] }
 0x676   : > { %v13605_v57 = vsel %vm2357_vm0, %v13602_v10, %v13604_v50  ;;  %v13600_v15 = vrot.slane %v13275_v35, 1 }
 0x677   : > { %v13984_v18 = vmax.f32 %v13952_v59, 0.0  ;;  %v13985_v20 = vmax.f32 %v13953_v30, 0.0  ;;  %13825 = vst [vmem:[#allocation4 + $0xd8] sm:$0xff] %v13761_v19  ;;  %v13764_v14 = vadd.f32 %v13605_v57, %v12963_v23  ;;  %v16791_v32 = vpop.f32.mrf.mxu1  ;;  %v12906_v23 = vld [vmem:[#allocation4 + $0x128] sm:$0xff]  ;;  %v13450_v30 = vld [vmem:[#allocation4 + $0x118] sm:$0xff] }
 0x678   : > { %v13601_v40 = vsel %vm2357_vm0, %v13598_v48, %v13600_v15  ;;  %v13603_v43 = vsel %vm2357_vm0, %v13600_v15, %v13602_v10  ;;  %v13610_v1 = vrot.slane %v16791_v32, 1 }
 0x679   : > { %14016 = vst [vmem:[%s19411_s16 + $0x60] sm:$0xff] %v13984_v18  ;;  %14017 = vst [vmem:[%s19411_s16 + $0x68] sm:$0xff] %v13985_v20  ;;  %v13762_v11 = vadd.f32 %v13601_v40, %v12961_v27  ;;  %v13763_v41 = vadd.f32 %v13603_v43, %v12962_v52  ;;  %v13288_v58 = vpop.f32.mrf.mxu1  ;;  %v12971_v27 = vadd.f32 %v19365_v49, %v12907_v63 }
 0x67a   : > { %13828 = vst [vmem:[#allocation4 + $0xf0] sm:$0xff] %v13764_v14  ;;  %v13606_v8 = vrot.slane %v13288_v58, 1  ;;  %v12969_v20 = vadd.f32 %v12905_v13, %v19367_v22  ;;  %v12970_v40 = vadd.f32 %v12906_v23, %v19369_v36 }
 0x67b   : > { %13826 = vst [vmem:[#allocation4 + $0xe0] sm:$0xff] %v13762_v11  ;;  %13827 = vst [vmem:[#allocation4 + $0xe8] sm:$0xff] %v13763_v41  ;;  %v13915_v37 = vmul.f32 %v19392_v21, %v13762_v11  ;;  %v13916_v34 = vmul.f32 %v19392_v21, %v13763_v41  ;;  %v16792_v55 = vpop.f32.mrf.mxu1 }
 0x67c   : > { %v13607_v42 = vsel %vm2357_vm0, %v13604_v50, %v13606_v8  ;;  %v13612_v26 = vrot.slane %v16792_v55, 1 }
 0x67d   : > { %v13954_v3 = vadd.f32 %v19397_v53, %v13915_v37  ;;  %v13955_v5 = vadd.f32 %v19397_v53, %v13916_v34  ;;  %v13765_v2 = vadd.f32 %v13607_v42, %v13446_v25  ;;  %v13291_v29 = vpop.f32.mrf.mxu1  ;;  %v12909_v34 = vld [vmem:[#allocation4 + $0x140] sm:$0xff]  ;;  %v13454_v42 = vld [vmem:[#allocation4 + $0x138] sm:$0xff] }
 0x67e   : > { %v13613_v54 = vsel %vm2357_vm0, %v13610_v1, %v13612_v26  ;;  %v13608_v45 = vrot.slane %v13291_v29, 1 }
 0x67f   : > { %v13986_v9 = vmax.f32 %v13954_v3, 0.0  ;;  %v13987_v39 = vmax.f32 %v13955_v5, 0.0  ;;  %13829 = vst [vmem:[#allocation4 + $0xf8] sm:$0xff] %v13765_v2  ;;  %v13768_v48 = vadd.f32 %v13613_v54, %v12967_v31  ;;  %v16795_v47 = vpop.f32.mrf.mxu1  ;;  %v13457_v54 = vld [vmem:[#allocation4 + $0x150] sm:$0xff] }
 0x680   : > { %v13609_v38 = vsel %vm2357_vm0, %v13606_v8, %v13608_v45  ;;  %v13611_v6 = vsel %vm2357_vm0, %v13608_v45, %v13610_v1  ;;  %v13618_v59 = vrot.slane %v16795_v47, 1  ;;  %v12910_v1 = vld [vmem:[#allocation4 + $0x148] sm:$0xff] }
 0x681   : > { %14018 = vst [vmem:[%s19411_s16 + $0x70] sm:$0xff] %v13986_v9  ;;  %14019 = vst [vmem:[%s19411_s16 + $0x78] sm:$0xff] %v13987_v39  ;;  %v13766_v60 = vadd.f32 %v13609_v38, %v12965_v56  ;;  %v13767_v62 = vadd.f32 %v13611_v6, %v12966_v51  ;;  %v13304_v46 = vpop.f32.mrf.mxu1  ;;  %v12973_v56 = vadd.f32 %v12909_v34, %v19371_v0 }
 0x682   : > { %13832 = vst [vmem:[#allocation4 + $0x110] sm:$0xff] %v13768_v48  ;;  %v13614_v10 = vrot.slane %v13304_v46, 1  ;;  %v12974_v9 = vadd.f32 %v12910_v1, %v19373_v4 }
 0x683   : > { %13830 = vst [vmem:[#allocation4 + $0x100] sm:$0xff] %v13766_v60  ;;  %13831 = vst [vmem:[#allocation4 + $0x108] sm:$0xff] %v13767_v62  ;;  %v13917_v16 = vmul.f32 %v19392_v21, %v13766_v60  ;;  %v13918_v61 = vmul.f32 %v19392_v21, %v13767_v62  ;;  %v16796_v50 = vpop.f32.mrf.mxu1 }
 0x684   : > { %v13615_v19 = vsel %vm2357_vm0, %v13612_v26, %v13614_v10  ;;  %v13620_v35 = vrot.slane %v16796_v50, 1  ;;  %v13458_v50 = vld [vmem:[#allocation4 + $0x158] sm:$0xff] }
 0x685   : > { %v13956_v57 = vadd.f32 %v19397_v53, %v13917_v16  ;;  %v13957_v15 = vadd.f32 %v19397_v53, %v13918_v61  ;;  %v13769_v52 = vadd.f32 %v13615_v19, %v13450_v30  ;;  %v13307_v18 = vpop.f32.mrf.mxu1  ;;  %v12914_v16 = vld [vmem:[#allocation4 + $0x168] sm:$0xff] }
 0x686   : > { %v13621_v14 = vsel %vm2357_vm0, %v13618_v59, %v13620_v35  ;;  %v13616_v32 = vrot.slane %v13307_v18, 1  ;;  %v12978_v18 = vadd.f32 %v12914_v16, %v19375_v17 }
 0x687   : > { %v13988_v43 = vmax.f32 %v13956_v57, 0.0  ;;  %v13989_v11 = vmax.f32 %v13957_v15, 0.0  ;;  %13833 = vst [vmem:[#allocation4 + $0x118] sm:$0xff] %v13769_v52  ;;  %v13772_v41 = vadd.f32 %v13621_v14, %v12971_v27  ;;  %v16799_v49 = vpop.f32.mrf.mxu1  ;;  %v13461_v57 = vld [vmem:[#allocation4 + $0x170] sm:$0xff] }
 0x688   : > { %v13617_v58 = vsel %vm2357_vm0, %v13614_v10, %v13616_v32  ;;  %v13619_v33 = vsel %vm2357_vm0, %v13616_v32, %v13618_v59  ;;  %v13626_v25 = vrot.slane %v16799_v49, 1 }
 0x689   : > { %14020 = vst [vmem:[%s19411_s16 + $0x80] sm:$0xff] %v13988_v43  ;;  %14021 = vst [vmem:[%s19411_s16 + $0x88] sm:$0xff] %v13989_v11  ;;  %v13770_v8 = vadd.f32 %v13617_v58, %v12969_v20  ;;  %v13771_v44 = vadd.f32 %v13619_v33, %v12970_v40  ;;  %v13320_v22 = vpop.f32.mrf.mxu1  ;;  %v13459_v43 = vld [vmem:[#allocation4 + $0x160] sm:$0xff] }
 0x68a   : > { %13836 = vst [vmem:[#allocation4 + $0x130] sm:$0xff] %v13772_v41  ;;  %v13622_v37 = vrot.slane %v13320_v22, 1 }
 0x68b   : > { %13834 = vst [vmem:[#allocation4 + $0x120] sm:$0xff] %v13770_v8  ;;  %13835 = vst [vmem:[#allocation4 + $0x128] sm:$0xff] %v13771_v44  ;;  %v13919_v36 = vmul.f32 %v19392_v21, %v13770_v8  ;;  %v13920_v55 = vmul.f32 %v19392_v21, %v13771_v44  ;;  %v16800_v7 = vpop.f32.mrf.mxu1 }
 0x68c   : > { %v13623_v26 = vsel %vm2357_vm0, %v13620_v35, %v13622_v37  ;;  %v13628_v31 = vrot.slane %v16800_v7, 1 }
 0x68d   : > { %v13958_v3 = vadd.f32 %v19397_v53, %v13919_v36  ;;  %v13959_v5 = vadd.f32 %v19397_v53, %v13920_v55  ;;  %v13773_v2 = vadd.f32 %v13623_v26, %v13454_v42  ;;  %v13323_v29 = vpop.f32.mrf.mxu1  ;;  %v13462_v36 = vld [vmem:[#allocation4 + $0x178] sm:$0xff] }
 0x68e   : > { %v13629_v45 = vsel %vm2357_vm0, %v13626_v25, %v13628_v31  ;;  %v13624_v51 = vrot.slane %v13323_v29, 1 }
 0x68f   : > { %v13990_v39 = vmax.f32 %v13958_v3, 0.0  ;;  %v13991_v48 = vmax.f32 %v13959_v5, 0.0  ;;  %13837 = vst [vmem:[#allocation4 + $0x138] sm:$0xff] %v13773_v2  ;;  %v13776_v47 = vadd.f32 %v13629_v45, %v13457_v54  ;;  %v16803_v38 = vpop.f32.mrf.mxu1 }
 0x690   : > { %v13625_v6 = vsel %vm2357_vm0, %v13622_v37, %v13624_v51  ;;  %v13627_v60 = vsel %vm2357_vm0, %v13624_v51, %v13626_v25  ;;  %v13634_v61 = vrot.slane %v16803_v38, 1  ;;  %v12918_v37 = vld [vmem:[#allocation4 + $0x188] sm:$0xff]  ;;  %v13463_v51 = vld [vmem:[#allocation4 + $0x180] sm:$0xff] }
 0x691   : > { %14022 = vst [vmem:[%s19411_s16 + $0x90] sm:$0xff] %v13990_v39  ;;  %14023 = vst [vmem:[%s19411_s16 + $0x98] sm:$0xff] %v13991_v48  ;;  %v13774_v62 = vadd.f32 %v13625_v6, %v12973_v56  ;;  %v13775_v0 = vadd.f32 %v13627_v60, %v12974_v9  ;;  %v13336_v46 = vpop.f32.mrf.mxu1  ;;  %v12982_v2 = vadd.f32 %v12918_v37, %v19377_v24 }
 0x692   : > { %13840 = vst [vmem:[#allocation4 + $0x150] sm:$0xff] %v13776_v47  ;;  %v13630_v63 = vrot.slane %v13336_v46, 1 }
 0x693   : > { %13838 = vst [vmem:[#allocation4 + $0x140] sm:$0xff] %v13774_v62  ;;  %13839 = vst [vmem:[#allocation4 + $0x148] sm:$0xff] %v13775_v0  ;;  %v13921_v4 = vmul.f32 %v19392_v21, %v13774_v62  ;;  %v13922_v10 = vmul.f32 %v19392_v21, %v13775_v0  ;;  %v16804_v13 = vpop.f32.mrf.mxu1  ;;  %v12922_v0 = vld [vmem:[#allocation4 + $0x1a8] sm:$0xff] }
 0x694   : > { %v13631_v23 = vsel %vm2357_vm0, %v13628_v31, %v13630_v63  ;;  %v13636_v59 = vrot.slane %v16804_v13, 1  ;;  %v13465_v31 = vld [vmem:[#allocation4 + $0x190] sm:$0xff] }
 0x695   : > { %v13960_v30 = vadd.f32 %v19397_v53, %v13921_v4  ;;  %v13961_v19 = vadd.f32 %v19397_v53, %v13922_v10  ;;  %v13777_v35 = vadd.f32 %v13631_v23, %v13458_v50  ;;  %v13339_v27 = vpop.f32.mrf.mxu1  ;;  %v13469_v23 = vld [vmem:[#allocation4 + $0x1b0] sm:$0xff] }
 0x696   : > { %v13637_v15 = vsel %vm2357_vm0, %v13634_v61, %v13636_v59  ;;  %v13632_v52 = vrot.slane %v13339_v27, 1 }
 0x697   : > { %v13992_v20 = vmax.f32 %v13960_v30, 0.0  ;;  %v13993_v14 = vmax.f32 %v13961_v19, 0.0  ;;  %13841 = vst [vmem:[#allocation4 + $0x158] sm:$0xff] %v13777_v35  ;;  %v13780_v32 = vadd.f32 %v13637_v15, %v13461_v57  ;;  %v16807_v40 = vpop.f32.mrf.mxu1  ;;  %v12986_v19 = vadd.f32 %v12922_v0, %v19379_v12 }
 0x698   : > { %v13633_v11 = vsel %vm2357_vm0, %v13630_v63, %v13632_v52  ;;  %v13635_v41 = vsel %vm2357_vm0, %v13632_v52, %v13634_v61  ;;  %v13642_v34 = vrot.slane %v16807_v40, 1  ;;  %v13466_v63 = vld [vmem:[#allocation4 + $0x198] sm:$0xff]  ;;  %v13467_v52 = vld [vmem:[#allocation4 + $0x1a0] sm:$0xff] }
 0x699   : > { %14024 = vst [vmem:[%s19411_s16 + $0xa0] sm:$0xff] %v13992_v20  ;;  %14025 = vst [vmem:[%s19411_s16 + $0xa8] sm:$0xff] %v13993_v14  ;;  %v13778_v49 = vadd.f32 %v13633_v11, %v13459_v43  ;;  %v13779_v58 = vadd.f32 %v13635_v41, %v12978_v18  ;;  %v13352_v33 = vpop.f32.mrf.mxu1 }
 0x69a   : > { %13844 = vst [vmem:[#allocation4 + $0x170] sm:$0xff] %v13780_v32  ;;  %v13638_v8 = vrot.slane %v13352_v33, 1  ;;  %v13470_v33 = vld [vmem:[#allocation4 + $0x1b8] sm:$0xff] }
 0x69b   : > { %13842 = vst [vmem:[#allocation4 + $0x160] sm:$0xff] %v13778_v49  ;;  %13843 = vst [vmem:[#allocation4 + $0x168] sm:$0xff] %v13779_v58  ;;  %v13923_v17 = vmul.f32 %v19392_v21, %v13778_v49  ;;  %v13924_v44 = vmul.f32 %v19392_v21, %v13779_v58  ;;  %v16808_v22 = vpop.f32.mrf.mxu1  ;;  %v12926_v49 = vld [vmem:[#allocation4 + $0x1c8] sm:$0xff] }
 0x69c   : > { %v13639_v55 = vsel %vm2357_vm0, %v13636_v59, %v13638_v8  ;;  %v13644_v7 = vrot.slane %v16808_v22, 1 }
 0x69d   : > { %v13962_v1 = vadd.f32 %v19397_v53, %v13923_v17  ;;  %v13963_v25 = vadd.f32 %v19397_v53, %v13924_v44  ;;  %v13781_v42 = vadd.f32 %v13639_v55, %v13462_v36  ;;  %v13355_v26 = vpop.f32.mrf.mxu1  ;;  %v13473_v36 = vld [vmem:[#allocation4 + $0x1d0] sm:$0xff] }
 0x69e   : > { %v13645_v3 = vsel %vm2357_vm0, %v13642_v34, %v13644_v7  ;;  %v13640_v5 = vrot.slane %v13355_v26, 1 }
 0x69f   : > { %v13994_v29 = vmax.f32 %v13962_v1, 0.0  ;;  %v13995_v56 = vmax.f32 %v13963_v25, 0.0  ;;  %13845 = vst [vmem:[#allocation4 + $0x178] sm:$0xff] %v13781_v42  ;;  %v13784_v54 = vadd.f32 %v13645_v3, %v13465_v31  ;;  %v16811_v45 = vpop.f32.mrf.mxu1  ;;  %v12990_v1 = vadd.f32 %v12926_v49, %v19381_v28  ;;  %v13471_v3 = vld [vmem:[#allocation4 + $0x1c0] sm:$0xff] }
 0x6a0   : > { %v13641_v9 = vsel %vm2357_vm0, %v13638_v8, %v13640_v5  ;;  %v13643_v39 = vsel %vm2357_vm0, %v13640_v5, %v13642_v34  ;;  %v13650_v46 = vrot.slane %v16811_v45, 1 }
 0x6a1   : > { %14026 = vst [vmem:[%s19411_s16 + $0xb0] sm:$0xff] %v13994_v29  ;;  %14027 = vst [vmem:[%s19411_s16 + $0xb8] sm:$0xff] %v13995_v56  ;;  %v13782_v48 = vadd.f32 %v13641_v9, %v13463_v51  ;;  %v13783_v47 = vadd.f32 %v13643_v39, %v12982_v2  ;;  %v13368_v38 = vpop.f32.mrf.mxu1  ;;  %v12857_v39 = vpop.f32.mrf.mxu0 }
 0x6a2   : > { %13848 = vst [vmem:[#allocation4 + $0x190] sm:$0xff] %v13784_v54  ;;  %v13646_v6 = vrot.slane %v13368_v38, 1  ;;  %v13474_v38 = vld [vmem:[#allocation4 + $0x1d8] sm:$0xff] }
 0x6a3   : > { %13846 = vst [vmem:[#allocation4 + $0x180] sm:$0xff] %v13782_v48  ;;  %13847 = vst [vmem:[#allocation4 + $0x188] sm:$0xff] %v13783_v47  ;;  %v13925_v24 = vmul.f32 %v19392_v21, %v13782_v48  ;;  %v13926_v60 = vmul.f32 %v19392_v21, %v13783_v47  ;;  %v16812_v62 = vpop.f32.mrf.mxu1  ;;  %v12930_v48 = vld [vmem:[#allocation4 + $0x1e8] sm:$0xff] }
 0x6a4   : > { %v13647_v4 = vsel %vm2357_vm0, %v13644_v7, %v13646_v6  ;;  %v13652_v10 = vrot.slane %v16812_v62, 1 }
 0x6a5   : > { %v13964_v13 = vadd.f32 %v19397_v53, %v13925_v24  ;;  %v13965_v16 = vadd.f32 %v19397_v53, %v13926_v60  ;;  %v13785_v61 = vadd.f32 %v13647_v4, %v13466_v63  ;;  %v13371_v50 = vpop.f32.mrf.mxu1  ;;  %v13477_v4 = vld [vmem:[#allocation4 + $0x1f0] sm:$0xff] }
 0x6a6   : > { %v13653_v59 = vsel %vm2357_vm0, %v13650_v46, %v13652_v10  ;;  %v13648_v30 = vrot.slane %v13371_v50, 1 }
 0x6a7   : > { %v13996_v35 = vmax.f32 %v13964_v13, 0.0  ;;  %v13997_v27 = vmax.f32 %v13965_v16, 0.0  ;;  %13849 = vst [vmem:[#allocation4 + $0x198] sm:$0xff] %v13785_v61  ;;  %v13788_v57 = vadd.f32 %v13653_v59, %v13469_v23  ;;  %v16815_v15 = vpop.f32.mrf.mxu1  ;;  %v12994_v16 = vadd.f32 %v12930_v48, %v12857_v39  ;;  %v13475_v59 = vld [vmem:[#allocation4 + $0x1e0] sm:$0xff] }
 0x6a8   : > { %v13649_v18 = vsel %vm2357_vm0, %v13646_v6, %v13648_v30  ;;  %v13651_v20 = vsel %vm2357_vm0, %v13648_v30, %v13650_v46  ;;  %v13658_v58 = vrot.slane %v16815_v15, 1  ;;  %v13478_v46 = vld [vmem:[#allocation4 + $0x1f8] sm:$0x7f] }
 0x6a9   : > { %14028 = vst [vmem:[%s19411_s16 + $0xc0] sm:$0xff] %v13996_v35  ;;  %14029 = vst [vmem:[%s19411_s16 + $0xc8] sm:$0xff] %v13997_v27  ;;  %v13786_v14 = vadd.f32 %v13649_v18, %v13467_v52  ;;  %v13787_v32 = vadd.f32 %v13651_v20, %v12986_v19  ;;  %v13384_v40 = vpop.f32.mrf.mxu1  ;;  %v17374_v27 = vld [vmem:[%s19648_s5] ss:$0 sm:$0xff] }
 0x6aa   : > { %13852 = vst [vmem:[#allocation4 + $0x1b0] sm:$0xff] %v13788_v57  ;;  %v13654_v43 = vrot.slane %v13384_v40, 1  ;;  %v17375_v52 = vld [vmem:[%s19649_s6] ss:$0 sm:$0xff] }
 0x6ab   : > { %13850 = vst [vmem:[#allocation4 + $0x1a0] sm:$0xff] %v13786_v14  ;;  %13851 = vst [vmem:[#allocation4 + $0x1a8] sm:$0xff] %v13787_v32  ;;  %v13927_v12 = vmul.f32 %v19392_v21, %v13786_v14  ;;  %v13928_v11 = vmul.f32 %v19392_v21, %v13787_v32  ;;  %v16816_v41 = vpop.f32.mrf.mxu1 }
 0x6ac   : > { %v13655_v8 = vsel %vm2357_vm0, %v13652_v10, %v13654_v43  ;;  %v13660_v17 = vrot.slane %v16816_v41, 1 }
 0x6ad   : > { %v13966_v44 = vadd.f32 %v19397_v53, %v13927_v12  ;;  %v13967_v22 = vadd.f32 %v19397_v53, %v13928_v11  ;;  %v13789_v37 = vadd.f32 %v13655_v8, %v13470_v33  ;;  %v13387_v34 = vpop.f32.mrf.mxu1 }
 0x6ae   : > { %v13661_v55 = vsel %vm2357_vm0, %v13658_v58, %v13660_v17  ;;  %v13656_v7 = vrot.slane %v13387_v34, 1 }
 0x6af   : > { %v13998_v25 = vmax.f32 %v13966_v44, 0.0  ;;  %v13999_v42 = vmax.f32 %v13967_v22, 0.0  ;;  %13853 = vst [vmem:[#allocation4 + $0x1b8] sm:$0xff] %v13789_v37  ;;  %v13792_v26 = vadd.f32 %v13661_v55, %v13473_v36  ;;  %v16819_v31 = vpop.f32.mrf.mxu1 }
 0x6b0   : > { %v13657_v5 = vsel %vm2357_vm0, %v13654_v43, %v13656_v7  ;;  %v13659_v2 = vsel %vm2357_vm0, %v13656_v7, %v13658_v58  ;;  %v13666_v47 = vrot.slane %v16819_v31, 1 }
 0x6b1   : > { %14030 = vst [vmem:[%s19411_s16 + $0xd0] sm:$0xff] %v13998_v25  ;;  %14031 = vst [vmem:[%s19411_s16 + $0xd8] sm:$0xff] %v13999_v42  ;;  %v13790_v29 = vadd.f32 %v13657_v5, %v13471_v3  ;;  %v13791_v56 = vadd.f32 %v13659_v2, %v12990_v1  ;;  %v13400_v54 = vpop.f32.mrf.mxu1 }
 0x6b2   : > { %13856 = vst [vmem:[#allocation4 + $0x1d0] sm:$0xff] %v13792_v26  ;;  %v13662_v45 = vrot.slane %v13400_v54, 1 }
 0x6b3   : > { %13854 = vst [vmem:[#allocation4 + $0x1c0] sm:$0xff] %v13790_v29  ;;  %13855 = vst [vmem:[#allocation4 + $0x1c8] sm:$0xff] %v13791_v56  ;;  %v13929_v28 = vmul.f32 %v19392_v21, %v13790_v29  ;;  %v13930_v51 = vmul.f32 %v19392_v21, %v13791_v56  ;;  %v16820_v9 = vpop.f32.mrf.mxu1 }
 0x6b4   : > { %v13663_v6 = vsel %vm2357_vm0, %v13660_v17, %v13662_v45  ;;  %v13668_v24 = vrot.slane %v16820_v9, 1 }
 0x6b5   : > { %v13968_v60 = vadd.f32 %v19397_v53, %v13929_v28  ;;  %v13969_v62 = vadd.f32 %v19397_v53, %v13930_v51  ;;  %v13793_v0 = vadd.f32 %v13663_v6, %v13474_v38  ;;  %v13403_v63 = vpop.f32.mrf.mxu1 }
 0x6b6   : > { %v13669_v21 = vsel %vm2357_vm0, %v13666_v47, %v13668_v24  ;;  %v13797_v10 = vadd.f32 %v13668_v24, %v13478_v46  ;;  %v13664_v13 = vrot.slane %v13403_v63, 1 }
 0x6b7   : > { %v14000_v61 = vmax.f32 %v13968_v60, 0.0  ;;  %v14001_v50 = vmax.f32 %v13969_v62, 0.0  ;;  %13857 = vst [vmem:[#allocation4 + $0x1d8] sm:$0xff] %v13793_v0  ;;  %v13796_v23 = vadd.f32 %v13669_v21, %v13477_v4 }
 0x6b8   : > { %13861 = vst [vmem:[#allocation4 + $0x1f8] sm:$0x7f] %v13797_v10  ;;  %v13665_v53 = vsel %vm2357_vm0, %v13662_v45, %v13664_v13  ;;  %v13667_v30 = vsel %vm2357_vm0, %v13664_v13, %v13666_v47 }
 0x6b9   : > { %14032 = vst [vmem:[%s19411_s16 + $0xe0] sm:$0xff] %v14000_v61  ;;  %14033 = vst [vmem:[%s19411_s16 + $0xe8] sm:$0xff] %v14001_v50  ;;  %v13794_v19 = vadd.f32 %v13665_v53, %v13475_v59  ;;  %v13795_v35 = vadd.f32 %v13667_v30, %v12994_v16 }
 0x6ba   : > { %13860 = vst [vmem:[#allocation4 + $0x1f0] sm:$0xff] %v13796_v23 }
 0x6bb   : > { %13858 = vst [vmem:[#allocation4 + $0x1e0] sm:$0xff] %v13794_v19  ;;  %13859 = vst [vmem:[#allocation4 + $0x1e8] sm:$0xff] %v13795_v35  ;;  %v13931_v57 = vmul.f32 %v17374_v27, %v13794_v19  ;;  %v13932_v15 = vmul.f32 %v17374_v27, %v13795_v35 }
 0x6bd   : > { %v13970_v18 = vadd.f32 %v17375_v52, %v13931_v57  ;;  %v13971_v20 = vadd.f32 %v17375_v52, %v13932_v15 }
 0x6bf   : > { %v14002_v14 = vmax.f32 %v13970_v18, 0.0  ;;  %v14003_v32 = vmax.f32 %v13971_v20, 0.0 }
 0x6c1   : > { %14034 = vst [vmem:[%s19411_s16 + $0xf0] sm:$0xff] %v14002_v14  ;;  %14035 = vst [vmem:[%s19411_s16 + $0xf8] sm:$0xff] %v14003_v32 }
 0x6c2   : > { %17469 = shalt.err (!%p17466_p3)
}
 0x6c3   : > { %s17470_s16 = scalar_lea.hbm %s19596_s10, 4096  ;;  %s17474_s15 = scalar_lea.hbm %s19650_s7, 8192 }
 0x6c4   : > { %p17471_p11 = scmp.ne.s32.totalorder %s19596_s10, %s17470_s16  ;;  %p17475_p4 = scmp.lt.s32.totalorder %s19596_s10, %s19650_s7 }
 0x6c5   : > { %p17476_p6 = scmp.lt.s32.totalorder %s17474_s15, %s17470_s16 }
 0x6c6   : > { %p17472_p9 = pnand %p17471_p11, %p19671_p2 }
 0x6c7   : > { %p17477_p8 = por %p17476_p6, %p17475_p4 }
 0x6c8   : > { %p17473_p1 = pneg %p17472_p9 }
 0x6ca   : > { %p17478_p5 = pnand %p17477_p8, %p17473_p1 }
 0x6cc   : > { %17481 = shalt.err (!%p17478_p5)
}
 0x6cd   : > { %s17534_s20 = smov 128   ;;  %s17535_s22 = smov 8  }
 0x6ce   : > { %16831 = dma.vmem_to_hbm [thread:$0]  (%p19671_p2), %s19598_s19, 4096, %s19596_s10, %s14037_s28, %s17534_s20, %s17534_s20, %s17535_s22  }
 0x6cf PF: > { %s14065_s29 = sand.u32 1, %s17512_s24   ;;  %p19672_p7 = scmp.ne.s32.totalorder %s19659_s8, 0 }
 0x6d0   : > { %p19673_p12 = scmp.ge.s32.totalorder %s17524_s27, 2  ;;  %s14066_s21 = scalar_lea.sflag [#allocation7], %s14065_s29 }
 0x6d2   : > { %p16845_p13 = pnand %p19673_p12, %p19672_p7 }
 0x6d4   : > { %p16846_p0 = pneg %p16845_p13 }
 0x6d6   : > { %17507 = dma.done.wait (%p16846_p0), %s14066_s21, 4096  }
 0x6d7   : > { %17509 = vsyncadd (%p16846_p0), %s14066_s21, 4294963200  ;;  %p21_p10 = scmp.ge.s32.totalorder %s17654_s23, 4   ;;  %s19674_s24 = smov %s17516_s25 }
 0x6d8   : > { %s19675_s25 = smov %s17520_s26  ;;  %s19676_s26 = smov %s17670_s12 }
 0x6d9   : > { %s19677_s27 = smov %s17654_s23  ;;  %23 = sbr.rel (!%p21_p10) target bundleno = 8 (0x8), region = 121 }
 0x6de   :  { %14071 = vsyncpa [#allocation6], 1 }
 0x6df   :  { %14073 = vsyncpa [#allocation6 + $0x1], 1 }
 0x6e0   :  { %14074 = vsyncpa [#allocation9], 1 }
 0x6e1   :  { %14075 = vsyncpa [#allocation7], 1 }
 0x6e2   :  { %14077 = vsyncpa [#allocation7 + $0x1], 1 }

</bundles_post_ra>
